<compile_context>
chip_gen: v6e
topology: v6e:2x2x1
jax: 0.10.0
libtpu: 0.0.40
codegen_flags: <defaults>
</compile_context>

<pallas_src>
import jax
import jax.numpy as jnp
from jax.experimental import pallas as pl
from jax.experimental.pallas import tpu as pltpu

EPS = 1e-5
LANE = 128
# MXU operand dtype.  jnp.bfloat16 roughly doubles MXU throughput on v6e/v7x,
# but then the rtol/atol=1e-3 check against the f32 reference must be
# loosened, so the default stays float32 (BN / ReLU math is f32 either way).
MATMUL_DTYPE = jnp.float32


def _round_up(x, m):
    return ((x + m - 1) // m) * m


def _make_kernel(N, H, W, Cin, Cout, Cp, stride, has_downsample):
    Ho = (H - 1) // stride + 1
    Wo = (W - 1) // stride + 1
    M = N * Ho * Wo
    inv_m = 1.0 / float(M)

    def bn(acc, g_ref, b_ref):
        # One-pass batch statistics (biased var, eps=1e-5, torch training mode).
        s = jnp.sum(acc, axis=0, keepdims=True)
        sq = jnp.sum(acc * acc, axis=0, keepdims=True)
        mean = s * inv_m
        var = jnp.maximum(sq * inv_m - mean * mean, 0.0)
        return (acc - mean) * jax.lax.rsqrt(var + EPS) * g_ref[...] + b_ref[...]

    def kernel(*refs):
        if has_downsample:
            (xpad_ref, w1_ref, w2_ref, g1_ref, b1_ref, g2_ref, b2_ref, wd_ref,
             out_ref, slab_scr, pad_scr) = refs
        else:
            (xpad_ref, w1_ref, w2_ref, g1_ref, b1_ref, g2_ref, b2_ref,
             out_ref, slab_scr, pad_scr) = refs
            wd_ref = None

        xpad = xpad_ref[...]                              # (N, H+2, W+2, Cin)

        def tap(dy, dx):
            return jax.lax.slice(
                xpad,
                (0, dy, dx, 0),
                (N, dy + (Ho - 1) * stride + 1,
                 dx + (Wo - 1) * stride + 1, Cin),
                (1, stride, stride, 1)).reshape(M, Cin)

        # ---- conv1: build im2col slab once, single K=9*Cin MXU push ----
        for dy in range(3):
            for dx in range(3):
                c0 = (dy * 3 + dx) * Cin
                slab_scr[:, c0:c0 + Cin] = tap(dy, dx)
        acc1 = jnp.dot(slab_scr[...].astype(MATMUL_DTYPE),
                       w1_ref[...].astype(MATMUL_DTYPE),
                       preferred_element_type=jnp.float32)      # (M, Cp)

        # ---- bn1 + relu (padded channels have g=b=0 -> stay exactly 0) ----
        h = jnp.maximum(bn(acc1, g1_ref, b1_ref), 0.0)

        # ---- conv2: 3x3 / stride 1 via padded VMEM scratch.  Zero only the
        # 1-pixel border; each tap is read straight from the ref view and is a
        # full-contraction (K=Cp) matmul. ----
        pad_scr[:, 0:1, :, :] = jnp.zeros((N, 1, Wo + 2, Cp), jnp.float32)
        pad_scr[:, Ho + 1:Ho + 2, :, :] = jnp.zeros((N, 1, Wo + 2, Cp), jnp.float32)
        pad_scr[:, :, 0:1, :] = jnp.zeros((N, Ho + 2, 1, Cp), jnp.float32)
        pad_scr[:, :, Wo + 1:Wo + 2, :] = jnp.zeros((N, Ho + 2, 1, Cp), jnp.float32)
        pad_scr[:, 1:Ho + 1, 1:Wo + 1, :] = h.reshape(N, Ho, Wo, Cp)

        acc2 = jnp.zeros((M, Cp), jnp.float32)
        for dy in range(3):
            for dx in range(3):
                ht = pad_scr[:, dy:dy + Ho, dx:dx + Wo, :].reshape(M, Cp)
                acc2 = acc2 + jnp.dot(ht.astype(MATMUL_DTYPE),
                                      w2_ref[dy, dx].astype(MATMUL_DTYPE),
                                      preferred_element_type=jnp.float32)

        o = bn(acc2, g2_ref, b2_ref)

        # ---- identity branch (center tap == x[:, ::stride, ::stride, :]) ----
        xid = tap(1, 1)                                   # (M, Cin)
        if has_downsample:
            identity = jnp.dot(xid.astype(MATMUL_DTYPE),
                               wd_ref[...].astype(MATMUL_DTYPE),
                               preferred_element_type=jnp.float32)
        else:
            if Cp == Cin:
                identity = xid
            else:
                identity = jnp.concatenate(
                    [xid, jnp.zeros((M, Cp - Cin), jnp.float32)], axis=1)

        out_ref[...] = jnp.maximum(o + identity, 0.0).reshape(N, Ho, Wo, Cp)

    return kernel, Ho, Wo, M


def conv_basic_block(x_nchw, params, stride=1):
    """ConvBasicBlock forward.  x_nchw: (N, Cin, H, W) f32 -> (N, Cout, Ho, Wo)."""
    w1, w2, wd, g1, b1, g2, b2 = params
    N, Cin, H, W = x_nchw.shape
    Cout = w1.shape[-1]
    has_ds = (stride != 1) or (Cin != Cout)
    Cp = _round_up(max(Cout, LANE), LANE)                 # lane-dense channel pad

    kernel, Ho, Wo, M = _make_kernel(N, H, W, Cin, Cout, Cp, stride, has_ds)

    # NHWC + spatial zero-pad for conv1 (done once by XLA outside the kernel).
    x_nhwc = jnp.transpose(x_nchw, (0, 2, 3, 1)).astype(jnp.float32)
    xpad = jnp.pad(x_nhwc, ((0, 0), (1, 1), (1, 1), (0, 0)))

    # Pre-reshape + lane-pad weights / BN params (MXU-friendly 2D layouts).
    cpad = (0, Cp - Cout)
    w1p = jnp.pad(w1.astype(jnp.float32).reshape(9 * Cin, Cout),
                  ((0, 0), cpad)).astype(MATMUL_DTYPE)                 # (9*Cin, Cp)
    w2p = jnp.pad(w2.astype(jnp.float32),
                  ((0, 0), (0, 0), cpad, cpad)).astype(MATMUL_DTYPE)   # (3,3,Cp,Cp)
    g1p, b1p, g2p, b2p = [
        jnp.pad(v.astype(jnp.float32).reshape(1, Cout), ((0, 0), cpad))
        for v in (g1, b1, g2, b2)]

    inputs = [xpad, w1p, w2p, g1p, b1p, g2p, b2p]
    if has_ds:
        inputs.append(jnp.pad(wd.astype(jnp.float32),
                              ((0, 0), cpad)).astype(MATMUL_DTYPE))    # (Cin, Cp)
    # (identity-shortcut case: no wd array is shipped to VMEM at all)

    # Explicit VMEM budget sized to the actual footprint (inputs + output +
    # scratches + live temps), clamped under the v7x 64 MiB physical cap.
    itemsize = 4
    footprint = itemsize * (
        sum(int(a.size) for a in inputs)
        + N * Ho * Wo * Cp                     # output block
        + M * 9 * Cin                          # im2col slab scratch
        + N * (Ho + 2) * (Wo + 2) * Cp         # padded conv2 scratch
        + 6 * M * Cp)                          # acc1/acc2/h/temps headroom
    vmem_limit = int(min(max(2 * footprint, 16 << 20), 60 << 20))

    vspec = pl.BlockSpec(memory_space=pltpu.MemorySpace.VMEM)
    out_nhwc = pl.pallas_call(
        kernel,
        out_shape=jax.ShapeDtypeStruct((N, Ho, Wo, Cp), jnp.float32),
        in_specs=[vspec] * len(inputs),
        out_specs=vspec,
        scratch_shapes=[
            pltpu.VMEM((M, 9 * Cin), jnp.float32),                 # im2col slab
            pltpu.VMEM((N, Ho + 2, Wo + 2, Cp), jnp.float32),      # conv2 padding
        ],
        compiler_params=pltpu.CompilerParams(vmem_limit_bytes=vmem_limit),
    )(*inputs)

    return jnp.transpose(out_nhwc[..., :Cout], (0, 3, 1, 2))


# ---------------------------- pure-JAX reference ----------------------------
def _bn_train(x_nchw, g, b):
    mean = jnp.mean(x_nchw, axis=(0, 2, 3), keepdims=True)
    var = jnp.mean((x_nchw - mean) ** 2, axis=(0, 2, 3), keepdims=True)
    return (x_nchw - mean) * jax.lax.rsqrt(var + EPS) * g.reshape(1, -1, 1, 1) \
        + b.reshape(1, -1, 1, 1)


def _conv_nchw(x, w_hwio, stride, pad):
    w_oihw = jnp.transpose(w_hwio, (3, 2, 0, 1))
    return jax.lax.conv_general_dilated(
        x, w_oihw, (stride, stride), [(pad, pad), (pad, pad)],
        dimension_numbers=("NCHW", "OIHW", "NCHW"))


def ref_forward(x_nchw, params, stride=1):
    w1, w2, wd, g1, b1, g2, b2 = params
    Cin = x_nchw.shape[1]
    Cout = w1.shape[-1]
    out = _conv_nchw(x_nchw, w1, stride, 1)
    out = jnp.maximum(_bn_train(out, g1, b1), 0.0)
    out = _conv_nchw(out, w2, 1, 1)
    out = _bn_train(out, g2, b2)
    if stride != 1 or Cin != Cout:
        identity = _conv_nchw(x_nchw, wd.reshape(1, 1, Cin, Cout), stride, 0)
    else:
        identity = x_nchw
    return jnp.maximum(out + identity, 0.0)


if __name__ == "__main__":
    key = jax.random.PRNGKey(0)

    def make_params(k, Cin, Cout):
        ks = jax.random.split(k, 7)
        w1 = jax.random.normal(ks[0], (3, 3, Cin, Cout), jnp.float32) / (3.0 * Cin ** 0.5)
        w2 = jax.random.normal(ks[1], (3, 3, Cout, Cout), jnp.float32) / (3.0 * Cout ** 0.5)
        wd = jax.random.normal(ks[2], (Cin, Cout), jnp.float32) / (Cin ** 0.5)
        g1 = 1.0 + 0.1 * jax.random.normal(ks[3], (Cout,), jnp.float32)
        b1 = 0.1 * jax.random.normal(ks[4], (Cout,), jnp.float32)
        g2 = 1.0 + 0.1 * jax.random.normal(ks[5], (Cout,), jnp.float32)
        b2 = 0.1 * jax.random.normal(ks[6], (Cout,), jnp.float32)
        return (w1, w2, wd, g1, b1, g2, b2)

    configs = [
        # (N, Cin, Cout, H, W, stride)
        (2, 4, 8, 16, 16, 1),    # channel change -> 1x1 downsample branch
        (2, 4, 8, 16, 16, 2),    # strided conv + downsample
        (2, 8, 8, 16, 16, 1),    # pure identity shortcut (no wd input shipped)
    ]
    for idx, (N, Cin, Cout, H, W, stride) in enumerate(configs):
        kx, kp, key = jax.random.split(key, 3)
        x = jax.random.normal(kx, (N, Cin, H, W), jnp.float32)
        params = make_params(kp, Cin, Cout)

        out = jax.block_until_ready(conv_basic_block(x, params, stride=stride))
        ref = jax.block_until_ready(ref_forward(x, params, stride=stride))

        assert out.shape == ref.shape, (idx, out.shape, ref.shape)
        err = float(jnp.max(jnp.abs(out - ref)))
        assert jnp.allclose(out, ref, rtol=1e-3, atol=1e-3), (idx, err)

    print("KERNEL_OK")
</pallas_src>

<mosaic_0001>
module attributes {stable_mosaic.version = 11 : i64} {
  func.func @kernel(%arg0: memref<2x18x18x4xf32, #tpu.memory_space<vmem>>, %arg1: memref<36x128xf32, #tpu.memory_space<vmem>>, %arg2: memref<3x3x128x128xf32, #tpu.memory_space<vmem>>, %arg3: memref<1x128xf32, #tpu.memory_space<vmem>>, %arg4: memref<1x128xf32, #tpu.memory_space<vmem>>, %arg5: memref<1x128xf32, #tpu.memory_space<vmem>>, %arg6: memref<1x128xf32, #tpu.memory_space<vmem>>, %arg7: memref<4x128xf32, #tpu.memory_space<vmem>>, %arg8: memref<2x16x16x128xf32, #tpu.memory_space<vmem>>, %arg9: memref<512x36xf32, #tpu.memory_space<vmem>>, %arg10: memref<2x18x18x128xf32, #tpu.memory_space<vmem>>) attributes {dimension_semantics = [], scalar_prefetch = 0 : i64, scratch_operands = 2 : i64, tpu.core_type = #tpu.core_type<tc>} {
    %c0 = arith.constant 0 : index
    %c0_0 = arith.constant 0 : index
    %c0_1 = arith.constant 0 : index
    %c0_2 = arith.constant 0 : index
    %0 = vector.load %arg0[%c0, %c0_0, %c0_1, %c0_2] : memref<2x18x18x4xf32, #tpu.memory_space<vmem>>, vector<2x18x18x4xf32>
    %1 = vector.extract_strided_slice %0 {offsets = [0, 0, 0, 0], sizes = [2, 16, 16, 4], strides = [1, 1, 1, 1]} : vector<2x18x18x4xf32> to vector<2x16x16x4xf32>
    %2 = vector.shape_cast %1 : vector<2x16x16x4xf32> to vector<512x4xf32>
    %c0_3 = arith.constant 0 : index
    %c0_4 = arith.constant 0 : index
    %3 = vector.load %arg9[%c0_3, %c0_4] : memref<512x36xf32, #tpu.memory_space<vmem>>, vector<512x4xf32>
    tpu.vector_store %arg9[%c0_3, %c0_4], %2 {strides = array<i32>} : memref<512x36xf32, #tpu.memory_space<vmem>>, vector<512x4xf32>,
    %4 = vector.extract_strided_slice %0 {offsets = [0, 0, 1, 0], sizes = [2, 16, 16, 4], strides = [1, 1, 1, 1]} : vector<2x18x18x4xf32> to vector<2x16x16x4xf32>
    %5 = vector.shape_cast %4 : vector<2x16x16x4xf32> to vector<512x4xf32>
    %c0_5 = arith.constant 0 : index
    %c4 = arith.constant 4 : index
    %6 = vector.load %arg9[%c0_5, %c4] : memref<512x36xf32, #tpu.memory_space<vmem>>, vector<512x4xf32>
    tpu.vector_store %arg9[%c0_5, %c4], %5 {strides = array<i32>} : memref<512x36xf32, #tpu.memory_space<vmem>>, vector<512x4xf32>,
    %7 = vector.extract_strided_slice %0 {offsets = [0, 0, 2, 0], sizes = [2, 16, 16, 4], strides = [1, 1, 1, 1]} : vector<2x18x18x4xf32> to vector<2x16x16x4xf32>
    %8 = vector.shape_cast %7 : vector<2x16x16x4xf32> to vector<512x4xf32>
    %c0_6 = arith.constant 0 : index
    %c8 = arith.constant 8 : index
    %9 = vector.load %arg9[%c0_6, %c8] : memref<512x36xf32, #tpu.memory_space<vmem>>, vector<512x4xf32>
    tpu.vector_store %arg9[%c0_6, %c8], %8 {strides = array<i32>} : memref<512x36xf32, #tpu.memory_space<vmem>>, vector<512x4xf32>,
    %10 = vector.extract_strided_slice %0 {offsets = [0, 1, 0, 0], sizes = [2, 16, 16, 4], strides = [1, 1, 1, 1]} : vector<2x18x18x4xf32> to vector<2x16x16x4xf32>
    %11 = vector.shape_cast %10 : vector<2x16x16x4xf32> to vector<512x4xf32>
    %c0_7 = arith.constant 0 : index
    %c12 = arith.constant 12 : index
    %12 = vector.load %arg9[%c0_7, %c12] : memref<512x36xf32, #tpu.memory_space<vmem>>, vector<512x4xf32>
    tpu.vector_store %arg9[%c0_7, %c12], %11 {strides = array<i32>} : memref<512x36xf32, #tpu.memory_space<vmem>>, vector<512x4xf32>,
    %13 = vector.extract_strided_slice %0 {offsets = [0, 1, 1, 0], sizes = [2, 16, 16, 4], strides = [1, 1, 1, 1]} : vector<2x18x18x4xf32> to vector<2x16x16x4xf32>
    %14 = vector.shape_cast %13 : vector<2x16x16x4xf32> to vector<512x4xf32>
    %c0_8 = arith.constant 0 : index
    %c16 = arith.constant 16 : index
    %15 = vector.load %arg9[%c0_8, %c16] : memref<512x36xf32, #tpu.memory_space<vmem>>, vector<512x4xf32>
    tpu.vector_store %arg9[%c0_8, %c16], %14 {strides = array<i32>} : memref<512x36xf32, #tpu.memory_space<vmem>>, vector<512x4xf32>,
    %16 = vector.extract_strided_slice %0 {offsets = [0, 1, 2, 0], sizes = [2, 16, 16, 4], strides = [1, 1, 1, 1]} : vector<2x18x18x4xf32> to vector<2x16x16x4xf32>
    %17 = vector.shape_cast %16 : vector<2x16x16x4xf32> to vector<512x4xf32>
    %c0_9 = arith.constant 0 : index
    %c20 = arith.constant 20 : index
    %18 = vector.load %arg9[%c0_9, %c20] : memref<512x36xf32, #tpu.memory_space<vmem>>, vector<512x4xf32>
    tpu.vector_store %arg9[%c0_9, %c20], %17 {strides = array<i32>} : memref<512x36xf32, #tpu.memory_space<vmem>>, vector<512x4xf32>,
    %19 = vector.extract_strided_slice %0 {offsets = [0, 2, 0, 0], sizes = [2, 16, 16, 4], strides = [1, 1, 1, 1]} : vector<2x18x18x4xf32> to vector<2x16x16x4xf32>
    %20 = vector.shape_cast %19 : vector<2x16x16x4xf32> to vector<512x4xf32>
    %c0_10 = arith.constant 0 : index
    %c24 = arith.constant 24 : index
    %21 = vector.load %arg9[%c0_10, %c24] : memref<512x36xf32, #tpu.memory_space<vmem>>, vector<512x4xf32>
    tpu.vector_store %arg9[%c0_10, %c24], %20 {strides = array<i32>} : memref<512x36xf32, #tpu.memory_space<vmem>>, vector<512x4xf32>,
    %22 = vector.extract_strided_slice %0 {offsets = [0, 2, 1, 0], sizes = [2, 16, 16, 4], strides = [1, 1, 1, 1]} : vector<2x18x18x4xf32> to vector<2x16x16x4xf32>
    %23 = vector.shape_cast %22 : vector<2x16x16x4xf32> to vector<512x4xf32>
    %c0_11 = arith.constant 0 : index
    %c28 = arith.constant 28 : index
    %24 = vector.load %arg9[%c0_11, %c28] : memref<512x36xf32, #tpu.memory_space<vmem>>, vector<512x4xf32>
    tpu.vector_store %arg9[%c0_11, %c28], %23 {strides = array<i32>} : memref<512x36xf32, #tpu.memory_space<vmem>>, vector<512x4xf32>,
    %25 = vector.extract_strided_slice %0 {offsets = [0, 2, 2, 0], sizes = [2, 16, 16, 4], strides = [1, 1, 1, 1]} : vector<2x18x18x4xf32> to vector<2x16x16x4xf32>
    %26 = vector.shape_cast %25 : vector<2x16x16x4xf32> to vector<512x4xf32>
    %c0_12 = arith.constant 0 : index
    %c32 = arith.constant 32 : index
    %27 = vector.load %arg9[%c0_12, %c32] : memref<512x36xf32, #tpu.memory_space<vmem>>, vector<512x4xf32>
    tpu.vector_store %arg9[%c0_12, %c32], %26 {strides = array<i32>} : memref<512x36xf32, #tpu.memory_space<vmem>>, vector<512x4xf32>,
    %c0_13 = arith.constant 0 : index
    %c0_14 = arith.constant 0 : index
    %28 = vector.load %arg9[%c0_13, %c0_14] : memref<512x36xf32, #tpu.memory_space<vmem>>, vector<512x36xf32>
    %c0_15 = arith.constant 0 : index
    %c0_16 = arith.constant 0 : index
    %29 = vector.load %arg1[%c0_15, %c0_16] : memref<36x128xf32, #tpu.memory_space<vmem>>, vector<36x128xf32>
    %cst = arith.constant dense<0.000000e+00> : vector<512x128xf32>
    %30 = tpu.matmul %28, %29, %cst {dimension_numbers = #tpu.dot_dimension_numbers<[1], [0], [0], [1], [0, 0, 1, 1], [], []>} : vector<512x36xf32>, vector<36x128xf32>, vector<512x128xf32> -> vector<512x128xf32>
    %cst_17 = arith.constant dense<0.000000e+00> : vector<128xf32>
    %31 = vector.multi_reduction <add>, %30, %cst_17 [0] : vector<512x128xf32> to vector<128xf32>
    %32 = vector.shape_cast %31 : vector<128xf32> to vector<1x128xf32>
    %33 = arith.mulf %30, %30 : vector<512x128xf32>
    %cst_18 = arith.constant dense<0.000000e+00> : vector<128xf32>
    %34 = vector.multi_reduction <add>, %33, %cst_18 [0] : vector<512x128xf32> to vector<128xf32>
    %35 = vector.shape_cast %34 : vector<128xf32> to vector<1x128xf32>
    %cst_19 = arith.constant 0.001953125 : f32
    %36 = vector.broadcast %cst_19 : f32 to vector<1x128xf32>
    %37 = arith.mulf %32, %36 : vector<1x128xf32>
    %cst_20 = arith.constant 0.001953125 : f32
    %38 = vector.broadcast %cst_20 : f32 to vector<1x128xf32>
    %39 = arith.mulf %35, %38 : vector<1x128xf32>
    %40 = arith.mulf %37, %37 : vector<1x128xf32>
    %41 = arith.subf %39, %40 : vector<1x128xf32>
    %cst_21 = arith.constant 0.000000e+00 : f32
    %42 = vector.broadcast %cst_21 : f32 to vector<1x128xf32>
    %43 = arith.maximumf %41, %42 : vector<1x128xf32>
    %44 = vector.broadcast %37 : vector<1x128xf32> to vector<512x128xf32>
    %45 = arith.subf %30, %44 : vector<512x128xf32>
    %cst_22 = arith.constant 9.99999974E-6 : f32
    %46 = vector.broadcast %cst_22 : f32 to vector<1x128xf32>
    %47 = arith.addf %43, %46 : vector<1x128xf32>
    %48 = math.rsqrt %47 : vector<1x128xf32>
    %49 = vector.broadcast %48 : vector<1x128xf32> to vector<512x128xf32>
    %50 = arith.mulf %45, %49 : vector<512x128xf32>
    %c0_23 = arith.constant 0 : index
    %c0_24 = arith.constant 0 : index
    %51 = vector.load %arg3[%c0_23, %c0_24] : memref<1x128xf32, #tpu.memory_space<vmem>>, vector<1x128xf32>
    %52 = vector.broadcast %51 : vector<1x128xf32> to vector<512x128xf32>
    %53 = arith.mulf %50, %52 : vector<512x128xf32>
    %c0_25 = arith.constant 0 : index
    %c0_26 = arith.constant 0 : index
    %54 = vector.load %arg4[%c0_25, %c0_26] : memref<1x128xf32, #tpu.memory_space<vmem>>, vector<1x128xf32>
    %55 = vector.broadcast %54 : vector<1x128xf32> to vector<512x128xf32>
    %56 = arith.addf %53, %55 : vector<512x128xf32>
    %cst_27 = arith.constant 0.000000e+00 : f32
    %57 = vector.broadcast %cst_27 : f32 to vector<512x128xf32>
    %58 = arith.maximumf %56, %57 : vector<512x128xf32>
    %cst_28 = arith.constant 0.000000e+00 : f32
    %59 = vector.broadcast %cst_28 : f32 to vector<2x1x18x128xf32>
    %c0_29 = arith.constant 0 : index
    %c0_30 = arith.constant 0 : index
    %c0_31 = arith.constant 0 : index
    %c0_32 = arith.constant 0 : index
    %60 = vector.load %arg10[%c0_29, %c0_30, %c0_31, %c0_32] : memref<2x18x18x128xf32, #tpu.memory_space<vmem>>, vector<2x1x18x128xf32>
    tpu.vector_store %arg10[%c0_29, %c0_30, %c0_31, %c0_32], %59 {strides = array<i32>} : memref<2x18x18x128xf32, #tpu.memory_space<vmem>>, vector<2x1x18x128xf32>,
    %cst_33 = arith.constant 0.000000e+00 : f32
    %61 = vector.broadcast %cst_33 : f32 to vector<2x1x18x128xf32>
    %c0_34 = arith.constant 0 : index
    %c17 = arith.constant 17 : index
    %c0_35 = arith.constant 0 : index
    %c0_36 = arith.constant 0 : index
    %62 = vector.load %arg10[%c0_34, %c17, %c0_35, %c0_36] : memref<2x18x18x128xf32, #tpu.memory_space<vmem>>, vector<2x1x18x128xf32>
    tpu.vector_store %arg10[%c0_34, %c17, %c0_35, %c0_36], %61 {strides = array<i32>} : memref<2x18x18x128xf32, #tpu.memory_space<vmem>>, vector<2x1x18x128xf32>,
    %cst_37 = arith.constant 0.000000e+00 : f32
    %63 = vector.broadcast %cst_37 : f32 to vector<2x18x1x128xf32>
    %c0_38 = arith.constant 0 : index
    %c0_39 = arith.constant 0 : index
    %c0_40 = arith.constant 0 : index
    %c0_41 = arith.constant 0 : index
    %64 = vector.load %arg10[%c0_38, %c0_39, %c0_40, %c0_41] : memref<2x18x18x128xf32, #tpu.memory_space<vmem>>, vector<2x18x1x128xf32>
    tpu.vector_store %arg10[%c0_38, %c0_39, %c0_40, %c0_41], %63 {strides = array<i32>} : memref<2x18x18x128xf32, #tpu.memory_space<vmem>>, vector<2x18x1x128xf32>,
    %cst_42 = arith.constant 0.000000e+00 : f32
    %65 = vector.broadcast %cst_42 : f32 to vector<2x18x1x128xf32>
    %c0_43 = arith.constant 0 : index
    %c0_44 = arith.constant 0 : index
    %c17_45 = arith.constant 17 : index
    %c0_46 = arith.constant 0 : index
    %66 = vector.load %arg10[%c0_43, %c0_44, %c17_45, %c0_46] : memref<2x18x18x128xf32, #tpu.memory_space<vmem>>, vector<2x18x1x128xf32>
    tpu.vector_store %arg10[%c0_43, %c0_44, %c17_45, %c0_46], %65 {strides = array<i32>} : memref<2x18x18x128xf32, #tpu.memory_space<vmem>>, vector<2x18x1x128xf32>,
    %67 = vector.shape_cast %58 : vector<512x128xf32> to vector<2x16x16x128xf32>
    %c0_47 = arith.constant 0 : index
    %c1 = arith.constant 1 : index
    %c1_48 = arith.constant 1 : index
    %c0_49 = arith.constant 0 : index
    %68 = vector.load %arg10[%c0_47, %c1, %c1_48, %c0_49] : memref<2x18x18x128xf32, #tpu.memory_space<vmem>>, vector<2x16x16x128xf32>
    tpu.vector_store %arg10[%c0_47, %c1, %c1_48, %c0_49], %67 {strides = array<i32>} : memref<2x18x18x128xf32, #tpu.memory_space<vmem>>, vector<2x16x16x128xf32>,
    %cst_50 = arith.constant 0.000000e+00 : f32
    %69 = vector.broadcast %cst_50 : f32 to vector<512x128xf32>
    %c0_51 = arith.constant 0 : index
    %c0_52 = arith.constant 0 : index
    %c0_53 = arith.constant 0 : index
    %c0_54 = arith.constant 0 : index
    %70 = vector.load %arg10[%c0_51, %c0_52, %c0_53, %c0_54] : memref<2x18x18x128xf32, #tpu.memory_space<vmem>>, vector<2x16x16x128xf32>
    %71 = vector.shape_cast %70 : vector<2x16x16x128xf32> to vector<512x128xf32>
    %c0_55 = arith.constant 0 : index
    %c0_56 = arith.constant 0 : index
    %c0_57 = arith.constant 0 : index
    %c0_58 = arith.constant 0 : index
    %72 = vector.load %arg2[%c0_55, %c0_56, %c0_57, %c0_58] : memref<3x3x128x128xf32, #tpu.memory_space<vmem>>, vector<1x1x128x128xf32>
    %73 = vector.shape_cast %72 : vector<1x1x128x128xf32> to vector<128x128xf32>
    %cst_59 = arith.constant dense<0.000000e+00> : vector<512x128xf32>
    %74 = tpu.matmul %71, %73, %cst_59 {dimension_numbers = #tpu.dot_dimension_numbers<[1], [0], [0], [1], [0, 0, 1, 1], [], []>} : vector<512x128xf32>, vector<128x128xf32>, vector<512x128xf32> -> vector<512x128xf32>
    %75 = arith.addf %69, %74 : vector<512x128xf32>
    %c0_60 = arith.constant 0 : index
    %c0_61 = arith.constant 0 : index
    %c1_62 = arith.constant 1 : index
    %c0_63 = arith.constant 0 : index
    %76 = vector.load %arg10[%c0_60, %c0_61, %c1_62, %c0_63] : memref<2x18x18x128xf32, #tpu.memory_space<vmem>>, vector<2x16x16x128xf32>
    %77 = vector.shape_cast %76 : vector<2x16x16x128xf32> to vector<512x128xf32>
    %c0_64 = arith.constant 0 : index
    %c1_65 = arith.constant 1 : index
    %c0_66 = arith.constant 0 : index
    %c0_67 = arith.constant 0 : index
    %78 = vector.load %arg2[%c0_64, %c1_65, %c0_66, %c0_67] : memref<3x3x128x128xf32, #tpu.memory_space<vmem>>, vector<1x1x128x128xf32>
    %79 = vector.shape_cast %78 : vector<1x1x128x128xf32> to vector<128x128xf32>
    %cst_68 = arith.constant dense<0.000000e+00> : vector<512x128xf32>
    %80 = tpu.matmul %77, %79, %cst_68 {dimension_numbers = #tpu.dot_dimension_numbers<[1], [0], [0], [1], [0, 0, 1, 1], [], []>} : vector<512x128xf32>, vector<128x128xf32>, vector<512x128xf32> -> vector<512x128xf32>
    %81 = arith.addf %75, %80 : vector<512x128xf32>
    %c0_69 = arith.constant 0 : index
    %c0_70 = arith.constant 0 : index
    %c2 = arith.constant 2 : index
    %c0_71 = arith.constant 0 : index
    %82 = vector.load %arg10[%c0_69, %c0_70, %c2, %c0_71] : memref<2x18x18x128xf32, #tpu.memory_space<vmem>>, vector<2x16x16x128xf32>
    %83 = vector.shape_cast %82 : vector<2x16x16x128xf32> to vector<512x128xf32>
    %c0_72 = arith.constant 0 : index
    %c2_73 = arith.constant 2 : index
    %c0_74 = arith.constant 0 : index
    %c0_75 = arith.constant 0 : index
    %84 = vector.load %arg2[%c0_72, %c2_73, %c0_74, %c0_75] : memref<3x3x128x128xf32, #tpu.memory_space<vmem>>, vector<1x1x128x128xf32>
    %85 = vector.shape_cast %84 : vector<1x1x128x128xf32> to vector<128x128xf32>
    %cst_76 = arith.constant dense<0.000000e+00> : vector<512x128xf32>
    %86 = tpu.matmul %83, %85, %cst_76 {dimension_numbers = #tpu.dot_dimension_numbers<[1], [0], [0], [1], [0, 0, 1, 1], [], []>} : vector<512x128xf32>, vector<128x128xf32>, vector<512x128xf32> -> vector<512x128xf32>
    %87 = arith.addf %81, %86 : vector<512x128xf32>
    %c0_77 = arith.constant 0 : index
    %c1_78 = arith.constant 1 : index
    %c0_79 = arith.constant 0 : index
    %c0_80 = arith.constant 0 : index
    %88 = vector.load %arg10[%c0_77, %c1_78, %c0_79, %c0_80] : memref<2x18x18x128xf32, #tpu.memory_space<vmem>>, vector<2x16x16x128xf32>
    %89 = vector.shape_cast %88 : vector<2x16x16x128xf32> to vector<512x128xf32>
    %c1_81 = arith.constant 1 : index
    %c0_82 = arith.constant 0 : index
    %c0_83 = arith.constant 0 : index
    %c0_84 = arith.constant 0 : index
    %90 = vector.load %arg2[%c1_81, %c0_82, %c0_83, %c0_84] : memref<3x3x128x128xf32, #tpu.memory_space<vmem>>, vector<1x1x128x128xf32>
    %91 = vector.shape_cast %90 : vector<1x1x128x128xf32> to vector<128x128xf32>
    %cst_85 = arith.constant dense<0.000000e+00> : vector<512x128xf32>
    %92 = tpu.matmul %89, %91, %cst_85 {dimension_numbers = #tpu.dot_dimension_numbers<[1], [0], [0], [1], [0, 0, 1, 1], [], []>} : vector<512x128xf32>, vector<128x128xf32>, vector<512x128xf32> -> vector<512x128xf32>
    %93 = arith.addf %87, %92 : vector<512x128xf32>
    %c0_86 = arith.constant 0 : index
    %c1_87 = arith.constant 1 : index
    %c1_88 = arith.constant 1 : index
    %c0_89 = arith.constant 0 : index
    %94 = vector.load %arg10[%c0_86, %c1_87, %c1_88, %c0_89] : memref<2x18x18x128xf32, #tpu.memory_space<vmem>>, vector<2x16x16x128xf32>
    %95 = vector.shape_cast %94 : vector<2x16x16x128xf32> to vector<512x128xf32>
    %c1_90 = arith.constant 1 : index
    %c1_91 = arith.constant 1 : index
    %c0_92 = arith.constant 0 : index
    %c0_93 = arith.constant 0 : index
    %96 = vector.load %arg2[%c1_90, %c1_91, %c0_92, %c0_93] : memref<3x3x128x128xf32, #tpu.memory_space<vmem>>, vector<1x1x128x128xf32>
    %97 = vector.shape_cast %96 : vector<1x1x128x128xf32> to vector<128x128xf32>
    %cst_94 = arith.constant dense<0.000000e+00> : vector<512x128xf32>
    %98 = tpu.matmul %95, %97, %cst_94 {dimension_numbers = #tpu.dot_dimension_numbers<[1], [0], [0], [1], [0, 0, 1, 1], [], []>} : vector<512x128xf32>, vector<128x128xf32>, vector<512x128xf32> -> vector<512x128xf32>
    %99 = arith.addf %93, %98 : vector<512x128xf32>
    %c0_95 = arith.constant 0 : index
    %c1_96 = arith.constant 1 : index
    %c2_97 = arith.constant 2 : index
    %c0_98 = arith.constant 0 : index
    %100 = vector.load %arg10[%c0_95, %c1_96, %c2_97, %c0_98] : memref<2x18x18x128xf32, #tpu.memory_space<vmem>>, vector<2x16x16x128xf32>
    %101 = vector.shape_cast %100 : vector<2x16x16x128xf32> to vector<512x128xf32>
    %c1_99 = arith.constant 1 : index
    %c2_100 = arith.constant 2 : index
    %c0_101 = arith.constant 0 : index
    %c0_102 = arith.constant 0 : index
    %102 = vector.load %arg2[%c1_99, %c2_100, %c0_101, %c0_102] : memref<3x3x128x128xf32, #tpu.memory_space<vmem>>, vector<1x1x128x128xf32>
    %103 = vector.shape_cast %102 : vector<1x1x128x128xf32> to vector<128x128xf32>
    %cst_103 = arith.constant dense<0.000000e+00> : vector<512x128xf32>
    %104 = tpu.matmul %101, %103, %cst_103 {dimension_numbers = #tpu.dot_dimension_numbers<[1], [0], [0], [1], [0, 0, 1, 1], [], []>} : vector<512x128xf32>, vector<128x128xf32>, vector<512x128xf32> -> vector<512x128xf32>
    %105 = arith.addf %99, %104 : vector<512x128xf32>
    %c0_104 = arith.constant 0 : index
    %c2_105 = arith.constant 2 : index
    %c0_106 = arith.constant 0 : index
    %c0_107 = arith.constant 0 : index
    %106 = vector.load %arg10[%c0_104, %c2_105, %c0_106, %c0_107] : memref<2x18x18x128xf32, #tpu.memory_space<vmem>>, vector<2x16x16x128xf32>
    %107 = vector.shape_cast %106 : vector<2x16x16x128xf32> to vector<512x128xf32>
    %c2_108 = arith.constant 2 : index
    %c0_109 = arith.constant 0 : index
    %c0_110 = arith.constant 0 : index
    %c0_111 = arith.constant 0 : index
    %108 = vector.load %arg2[%c2_108, %c0_109, %c0_110, %c0_111] : memref<3x3x128x128xf32, #tpu.memory_space<vmem>>, vector<1x1x128x128xf32>
    %109 = vector.shape_cast %108 : vector<1x1x128x128xf32> to vector<128x128xf32>
    %cst_112 = arith.constant dense<0.000000e+00> : vector<512x128xf32>
    %110 = tpu.matmul %107, %109, %cst_112 {dimension_numbers = #tpu.dot_dimension_numbers<[1], [0], [0], [1], [0, 0, 1, 1], [], []>} : vector<512x128xf32>, vector<128x128xf32>, vector<512x128xf32> -> vector<512x128xf32>
    %111 = arith.addf %105, %110 : vector<512x128xf32>
    %c0_113 = arith.constant 0 : index
    %c2_114 = arith.constant 2 : index
    %c1_115 = arith.constant 1 : index
    %c0_116 = arith.constant 0 : index
    %112 = vector.load %arg10[%c0_113, %c2_114, %c1_115, %c0_116] : memref<2x18x18x128xf32, #tpu.memory_space<vmem>>, vector<2x16x16x128xf32>
    %113 = vector.shape_cast %112 : vector<2x16x16x128xf32> to vector<512x128xf32>
    %c2_117 = arith.constant 2 : index
    %c1_118 = arith.constant 1 : index
    %c0_119 = arith.constant 0 : index
    %c0_120 = arith.constant 0 : index
    %114 = vector.load %arg2[%c2_117, %c1_118, %c0_119, %c0_120] : memref<3x3x128x128xf32, #tpu.memory_space<vmem>>, vector<1x1x128x128xf32>
    %115 = vector.shape_cast %114 : vector<1x1x128x128xf32> to vector<128x128xf32>
    %cst_121 = arith.constant dense<0.000000e+00> : vector<512x128xf32>
    %116 = tpu.matmul %113, %115, %cst_121 {dimension_numbers = #tpu.dot_dimension_numbers<[1], [0], [0], [1], [0, 0, 1, 1], [], []>} : vector<512x128xf32>, vector<128x128xf32>, vector<512x128xf32> -> vector<512x128xf32>
    %117 = arith.addf %111, %116 : vector<512x128xf32>
    %c0_122 = arith.constant 0 : index
    %c2_123 = arith.constant 2 : index
    %c2_124 = arith.constant 2 : index
    %c0_125 = arith.constant 0 : index
    %118 = vector.load %arg10[%c0_122, %c2_123, %c2_124, %c0_125] : memref<2x18x18x128xf32, #tpu.memory_space<vmem>>, vector<2x16x16x128xf32>
    %119 = vector.shape_cast %118 : vector<2x16x16x128xf32> to vector<512x128xf32>
    %c2_126 = arith.constant 2 : index
    %c2_127 = arith.constant 2 : index
    %c0_128 = arith.constant 0 : index
    %c0_129 = arith.constant 0 : index
    %120 = vector.load %arg2[%c2_126, %c2_127, %c0_128, %c0_129] : memref<3x3x128x128xf32, #tpu.memory_space<vmem>>, vector<1x1x128x128xf32>
    %121 = vector.shape_cast %120 : vector<1x1x128x128xf32> to vector<128x128xf32>
    %cst_130 = arith.constant dense<0.000000e+00> : vector<512x128xf32>
    %122 = tpu.matmul %119, %121, %cst_130 {dimension_numbers = #tpu.dot_dimension_numbers<[1], [0], [0], [1], [0, 0, 1, 1], [], []>} : vector<512x128xf32>, vector<128x128xf32>, vector<512x128xf32> -> vector<512x128xf32>
    %123 = arith.addf %117, %122 : vector<512x128xf32>
    %cst_131 = arith.constant dense<0.000000e+00> : vector<128xf32>
    %124 = vector.multi_reduction <add>, %123, %cst_131 [0] : vector<512x128xf32> to vector<128xf32>
    %125 = vector.shape_cast %124 : vector<128xf32> to vector<1x128xf32>
    %126 = arith.mulf %123, %123 : vector<512x128xf32>
    %cst_132 = arith.constant dense<0.000000e+00> : vector<128xf32>
    %127 = vector.multi_reduction <add>, %126, %cst_132 [0] : vector<512x128xf32> to vector<128xf32>
    %128 = vector.shape_cast %127 : vector<128xf32> to vector<1x128xf32>
    %cst_133 = arith.constant 0.001953125 : f32
    %129 = vector.broadcast %cst_133 : f32 to vector<1x128xf32>
    %130 = arith.mulf %125, %129 : vector<1x128xf32>
    %cst_134 = arith.constant 0.001953125 : f32
    %131 = vector.broadcast %cst_134 : f32 to vector<1x128xf32>
    %132 = arith.mulf %128, %131 : vector<1x128xf32>
    %133 = arith.mulf %130, %130 : vector<1x128xf32>
    %134 = arith.subf %132, %133 : vector<1x128xf32>
    %cst_135 = arith.constant 0.000000e+00 : f32
    %135 = vector.broadcast %cst_135 : f32 to vector<1x128xf32>
    %136 = arith.maximumf %134, %135 : vector<1x128xf32>
    %137 = vector.broadcast %130 : vector<1x128xf32> to vector<512x128xf32>
    %138 = arith.subf %123, %137 : vector<512x128xf32>
    %cst_136 = arith.constant 9.99999974E-6 : f32
    %139 = vector.broadcast %cst_136 : f32 to vector<1x128xf32>
    %140 = arith.addf %136, %139 : vector<1x128xf32>
    %141 = math.rsqrt %140 : vector<1x128xf32>
    %142 = vector.broadcast %141 : vector<1x128xf32> to vector<512x128xf32>
    %143 = arith.mulf %138, %142 : vector<512x128xf32>
    %c0_137 = arith.constant 0 : index
    %c0_138 = arith.constant 0 : index
    %144 = vector.load %arg5[%c0_137, %c0_138] : memref<1x128xf32, #tpu.memory_space<vmem>>, vector<1x128xf32>
    %145 = vector.broadcast %144 : vector<1x128xf32> to vector<512x128xf32>
    %146 = arith.mulf %143, %145 : vector<512x128xf32>
    %c0_139 = arith.constant 0 : index
    %c0_140 = arith.constant 0 : index
    %147 = vector.load %arg6[%c0_139, %c0_140] : memref<1x128xf32, #tpu.memory_space<vmem>>, vector<1x128xf32>
    %148 = vector.broadcast %147 : vector<1x128xf32> to vector<512x128xf32>
    %149 = arith.addf %146, %148 : vector<512x128xf32>
    %150 = vector.extract_strided_slice %0 {offsets = [0, 1, 1, 0], sizes = [2, 16, 16, 4], strides = [1, 1, 1, 1]} : vector<2x18x18x4xf32> to vector<2x16x16x4xf32>
    %151 = vector.shape_cast %150 : vector<2x16x16x4xf32> to vector<512x4xf32>
    %c0_141 = arith.constant 0 : index
    %c0_142 = arith.constant 0 : index
    %152 = vector.load %arg7[%c0_141, %c0_142] : memref<4x128xf32, #tpu.memory_space<vmem>>, vector<4x128xf32>
    %cst_143 = arith.constant dense<0.000000e+00> : vector<512x128xf32>
    %153 = tpu.matmul %151, %152, %cst_143 {dimension_numbers = #tpu.dot_dimension_numbers<[1], [0], [0], [1], [0, 0, 1, 1], [], []>} : vector<512x4xf32>, vector<4x128xf32>, vector<512x128xf32> -> vector<512x128xf32>
    %154 = arith.addf %149, %153 : vector<512x128xf32>
    %cst_144 = arith.constant 0.000000e+00 : f32
    %155 = vector.broadcast %cst_144 : f32 to vector<512x128xf32>
    %156 = arith.maximumf %154, %155 : vector<512x128xf32>
    %157 = vector.shape_cast %156 : vector<512x128xf32> to vector<2x16x16x128xf32>
    %c0_145 = arith.constant 0 : index
    %c0_146 = arith.constant 0 : index
    %c0_147 = arith.constant 0 : index
    %c0_148 = arith.constant 0 : index
    %158 = vector.load %arg8[%c0_145, %c0_146, %c0_147, %c0_148] : memref<2x16x16x128xf32, #tpu.memory_space<vmem>>, vector<2x16x16x128xf32>
    tpu.vector_store %arg8[%c0_145, %c0_146, %c0_147, %c0_148], %157 {strides = array<i32>} : memref<2x16x16x128xf32, #tpu.memory_space<vmem>>, vector<2x16x16x128xf32>,
    return
  }
}

</mosaic_0001>

<bundles_post_ra>
// kernel: tpu_custom_call.1
= control target key start
LH: loop header
LB: loop body
LE: loop exit
PB: predicated region body
PF: predicated region fallthrough
CT: control target
= control target key end

     0   :  { %13 = vsyncpa [#allocation5], 0  ;;  %s19067_s0 = inlined_call_operand.vmem [shape: f32[2,18,18,4], index: 0, kind: input, shape index: {}]   ;;  %s19068_s1 = inlined_call_operand.vmem [shape: f32[36,128], index: 1, kind: input, shape index: {}]   ;;  %s19069_s2 = inlined_call_operand.hbm [shape: f32[3,3,128,128], index: 2, kind: input, shape index: {}]   ;;  %s19070_s3 = inlined_call_operand.vmem [shape: f32[1,128], index: 3, kind: input, shape index: {}]   ;;  %s19071_s4 = inlined_call_operand.vmem [shape: f32[1,128], index: 4, kind: input, shape index: {}]   ;;  %s19072_s5 = inlined_call_operand.vmem [shape: f32[1,128], index: 5, kind: input, shape index: {}]   ;;  %s19073_s6 = inlined_call_operand.vmem [shape: f32[1,128], index: 6, kind: input, shape index: {}]   ;;  %s19074_s7 = inlined_call_operand.vmem [shape: f32[4,128], index: 7, kind: input, shape index: {}]   ;;  %s19075_s8 = inlined_call_operand.hbm [shape: f32[2,16,16,128], index: 8, kind: output, shape index: {}]  }
   0x1   :  { %14 = vsyncpa [#allocation6], 0  ;;  %s12350_s27 = smov [#allocation4]  }
   0x2   :  { %s24_s28 = sshll.u32 %s12350_s27, 4  ;;  %s25_s28 = int_to_ptr.vmem [resolvable:$true] %s24_s28 }
   0x3   :  { %s12314_s29 = scalar_lea.vmem %s25_s28, 18432  ;;  %p12319_p1 = scmp.lt.s32.totalorder %s25_s28, %s25_s28 }
   0x4   :  { %p12315_p0 = scmp.ne.s32.totalorder %s25_s28, %s12314_s29  ;;  %p12320_p2 = scmp.lt.s32.totalorder %s12314_s29, %s12314_s29 }
   0x6   :  { %p12321_p3 = por %p12320_p2, %p12319_p1 }
   0x8   :  { %p12322_p4 = pnand %p12321_p3, %p12315_p0 }
   0xa   :  { %12325 = shalt.err (!%p12322_p4)
}
   0xb   :  { %s12351_s30 = smov 128   ;;  %s12352_s9 = smov 8  }
   0xc   :  { %30 = dma.hbm_to_vmem [thread:$0]  %s19069_s2, 18432, %s25_s28, [#allocation5], %s12351_s30, %s12351_s30, %s12352_s9  }
   0xd   :  { %12346 = dma.done.wait [#allocation5], 18432  }
   0xe   :  { %12347 = vsyncadd [#allocation5], 4294948864  ;;  %vm152_vm0 = vcmask 31744   ;;  %v12416_v0 = vld [vmem:[%s19067_s0 + $0x20] sm:$0xff]  ;;  %v47_v1 = vld [vmem:[%s19067_s0 + $0x18] sm:$0xff]  ;;  %vm731_vm1 = vcmask 1045504  }
   0xf   :  { %v44_v2 = vld [vmem:[%s19067_s0] sm:$0xff]  ;;  %s12353_s18 = smov 12   ;;  %v45_v3 = vld [vmem:[%s19067_s0 + $0x8] sm:$0xff]  ;;  %vm313_vm2 = vcmask 1046528   ;;  %v46_v6 = vld [vmem:[%s19067_s0 + $0x10] sm:$0x3] }
  0x10   :  { %1155 = vrot.lane.b32.xlu1 %v12416_v0, %s12353_s18  ;;  %1153 = vrot.lane.b32.xlu0 %v47_v1, %s12353_s18  ;;  %v732_v4 = vrot.slane %v44_v2, 2  ;;  %v314_v5 = vrot.slane %v44_v2, 1  ;;  %153 = vst.msk [vmem:[#allocation2] sm:$0xff] %vm152_vm0, %v44_v2  ;;  %155 = vst.msk [vmem:[#allocation2 + $0x10] sm:$0xff] %vm152_vm0, %v47_v1  ;;  %v733_v7 = vrot.slane %v45_v3, 2  ;;  %v315_v8 = vrot.slane %v45_v3, 1 }
  0x11   :  { %156 = vst.msk [vmem:[#allocation2 + $0x18] sm:$0xff] %vm152_vm0, %v12416_v0  ;;  %v735_v9 = vrot.slane %v46_v6, 2  ;;  %v317_v10 = vrot.slane %v46_v6, 1  ;;  %154 = vst.msk [vmem:[#allocation2 + $0x8] sm:$0xff] %vm152_vm0, %v45_v3  ;;  %v12441_v11 = vld [vmem:[%s19067_s0 + $0x30] sm:$0xff]  ;;  %v12446_v12 = vld [vmem:[%s19067_s0 + $0x38] sm:$0xff] }
  0x12   :  { %v734_v13 = vsel %vm731_vm1, %v732_v4, %v733_v7  ;;  %v316_v14 = vsel %vm313_vm2, %v314_v5, %v315_v8  ;;  %v12453_v15 = vld [vmem:[%s19067_s0 + $0x48] sm:$0xff]  ;;  %v12458_v16 = vld [vmem:[%s19067_s0 + $0x50] sm:$0xff]  ;;  %157 = vst.msk [vmem:[#allocation2 + $0x20] sm:$0xff] %vm152_vm0, %v12441_v11  ;;  %158 = vst.msk [vmem:[#allocation2 + $0x28] sm:$0xff] %vm152_vm0, %v12446_v12  ;;  %s12354_s10 = smov 4   ;;  %v319_v20 = vrot.slane %v47_v1, 1 }
  0x13   :  { %v12469_v17 = vld [vmem:[%s19067_s0 + $0x60] sm:$0xff]  ;;  %159 = vst.msk [vmem:[#allocation2 + $0x30] sm:$0xff] %vm152_vm0, %v12453_v15  ;;  %160 = vst.msk [vmem:[#allocation2 + $0x38] sm:$0xff] %vm152_vm0, %v12458_v16  ;;  %v736_v18 = vsel %vm731_vm1, %v733_v7, %v735_v9  ;;  %v318_v19 = vsel %vm313_vm2, %v315_v8, %v317_v10  ;;  %v320_v21 = vrot.slane %v12416_v0, 1  ;;  %v12481_v22 = vld [vmem:[%s19067_s0 + $0x68] sm:$0xff]  ;;  %v747_v26 = vrot.slane %v12453_v15, 2 }
  0x14   :  { %892 = vrot.lane.b32.xlu1 %v734_v13, %s12352_s9  ;;  %474 = vrot.lane.b32.xlu0 %v316_v14, %s12354_s10  ;;  %161 = vst.msk [vmem:[#allocation2 + $0x40] sm:$0xff] %vm152_vm0, %v12469_v17  ;;  %v12488_v23 = vld [vmem:[%s19067_s0 + $0x78] sm:$0xff]  ;;  %v49_v24 = vld [vmem:[%s19067_s0 + $0x28] sm:$0x3]  ;;  %162 = vst.msk [vmem:[#allocation2 + $0x48] sm:$0xff] %vm152_vm0, %v12481_v22  ;;  %v748_v27 = vrot.slane %v12458_v16, 2 }
  0x15   :  { %163 = vst.msk [vmem:[#allocation2 + $0x50] sm:$0xff] %vm152_vm0, %v12488_v23  ;;  %v12500_v25 = vld [vmem:[%s19067_s0 + $0x80] sm:$0xff]  ;;  %v12509_v28 = vsel %vm313_vm2, %v319_v20, %v320_v21  ;;  %v737_v29 = vrot.slane %v47_v1, 2  ;;  %v738_v30 = vrot.slane %v12416_v0, 2  ;;  %v322_v31 = vrot.slane %v49_v24, 1  ;;  %s12355_s21 = smov 16  }
  0x16   :  { %164 = vst.msk [vmem:[#allocation2 + $0x58] sm:$0xff] %vm152_vm0, %v12500_v25  ;;  %19292 = vst [vmem:[#allocation10_spill] sm:$0xff] %v12509_v28  ;;  %v12515_v32 = vsel %vm731_vm1, %v747_v26, %v748_v27  ;;  %s12356_s22 = smov 20   ;;  %v740_v35 = vrot.slane %v49_v24, 2  ;;  %v12535_v37 = vld [vmem:[%s19067_s0 + $0x90] sm:$0xff]  ;;  %s12357_s25 = smov 24  }
  0x17   :  { %v739_v33 = vsel %vm731_vm1, %v737_v29, %v738_v30  ;;  %v12523_v34 = vsel %vm313_vm2, %v320_v21, %v322_v31  ;;  %165 = vst.msk [vmem:[#allocation2 + $0x60] sm:$0xff] %vm152_vm0, %v12535_v37  ;;  %v324_v38 = vrot.slane %v12441_v11, 1  ;;  %v325_v39 = vrot.slane %v12446_v12, 1  ;;  %v12550_v40 = vld [vmem:[%s19067_s0 + $0x98] sm:$0xff]  ;;  %v52_v42 = vld [vmem:[%s19067_s0 + $0x40] sm:$0x3] }
  0x18   :  { %894 = vrot.lane.b32.xlu1 %v736_v18, %s12352_s9  ;;  %476 = vrot.lane.b32.xlu0 %v318_v19, %s12354_s10  ;;  %19293 = vst [vmem:[#allocation11_spill] sm:$0xff] %v12523_v34  ;;  %v741_v36 = vsel %vm731_vm1, %v738_v30, %v740_v35  ;;  %166 = vst.msk [vmem:[#allocation2 + $0x68] sm:$0xff] %vm152_vm0, %v12550_v40  ;;  %s12358_s11 = smov 28   ;;  %v2811_v43 = vld [vmem:[%s19068_s1 + $0x20] sm:$0xf]  ;;  %vm3005_vm3 = vcmask 1043456  }
  0x19   :  { %v12553_v41 = vsel %vm313_vm2, %v324_v38, %v325_v39  ;;  %v742_v44 = vrot.slane %v12441_v11, 2  ;;  %v743_v45 = vrot.slane %v12446_v12, 2  ;;  %v327_v46 = vrot.slane %v52_v42, 1  ;;  %10922 = vmatprep.subr.msk.mxu0 %vm3005_vm3, %v2811_v43  ;;  %12278 = vmatprep.subr.msk.mxu1 %vm3005_vm3, %v2811_v43  ;;  %v2810_v47 = vld [vmem:[%s19068_s1 + $0x18] sm:$0xff]  ;;  %v2809_v48 = vld [vmem:[%s19068_s1 + $0x10] sm:$0xff]  ;;  %v2808_v51 = vld [vmem:[%s19068_s1 + $0x8] sm:$0xff] }
  0x1a   :  { %19294 = vst [vmem:[#allocation12_spill] sm:$0xff] %v12553_v41  ;;  %10923 = vmatpush3.msk.msra.mxu0 %vm3005_vm3, %v2811_v43  ;;  %12283 = vmatpush3.msk.msra.mxu1 %vm3005_vm3, %v2811_v43  ;;  %s12359_s20 = smov 32   ;;  %v2807_v52 = vld [vmem:[%s19068_s1] sm:$0xff]  ;;  %v745_v53 = vrot.slane %v52_v42, 2  ;;  %v12609_v55 = vld [vmem:[%s19067_s0 + $0xa8] sm:$0xff]  ;;  %v329_v56 = vrot.slane %v12453_v15, 1 }
  0x1b   :  { %10924 = vmatprep.subr.mxu0 %v2810_v47  ;;  %12279 = vmatprep.subr.mxu1 %v2810_v47  ;;  %v744_v49 = vsel %vm731_vm1, %v742_v44, %v743_v45  ;;  %v12585_v50 = vsel %vm313_vm2, %v325_v39, %v327_v46  ;;  %167 = vst.msk [vmem:[#allocation2 + $0x70] sm:$0xff] %vm152_vm0, %v12609_v55  ;;  %v330_v57 = vrot.slane %v12458_v16, 1  ;;  %v12624_v58 = vld [vmem:[%s19067_s0 + $0xb0] sm:$0xff]  ;;  %v55_v60 = vld [vmem:[%s19067_s0 + $0x58] sm:$0x3]  ;;  %v12666_v1 = vld [vmem:[%s19067_s0 + $0xc0] sm:$0xff] }
  0x1c   :  { %478 = vrot.lane.b32.xlu1 %v12509_v28, %s12354_s10  ;;  %1422 = vrot.lane.b32.xlu0 %v12509_v28, %s12355_s21  ;;  %19295 = vst [vmem:[#allocation13_spill] sm:$0xff] %v12585_v50  ;;  %v746_v54 = vsel %vm731_vm1, %v743_v45, %v745_v53  ;;  %168 = vst.msk [vmem:[#allocation2 + $0x78] sm:$0xff] %vm152_vm0, %v12624_v58  ;;  %v332_v61 = vrot.slane %v55_v60, 1  ;;  %v750_v63 = vrot.slane %v55_v60, 2  ;;  %v334_v2 = vrot.slane %v12469_v17, 1  ;;  %v12681_v4 = vld [vmem:[%s19067_s0 + $0xc8] sm:$0xff] }
  0x1d   :  { %10925 = vmatpush3.msra.mxu0 %v2810_v47  ;;  %12284 = vmatpush3.msra.mxu1 %v2810_v47  ;;  %v12627_v59 = vsel %vm313_vm2, %v329_v56, %v330_v57  ;;  %169 = vst.msk [vmem:[#allocation2 + $0x80] sm:$0xff] %vm152_vm0, %v12666_v1  ;;  %v335_v3 = vrot.slane %v12481_v22, 1  ;;  %170 = vst.msk [vmem:[#allocation2 + $0x88] sm:$0xff] %vm152_vm0, %v12681_v4  ;;  %v58_v6 = vld [vmem:[%s19067_s0 + $0x70] sm:$0x3]  ;;  %v752_v7 = vrot.slane %v12469_v17, 2 }
  0x1e   :  { %10926 = vmatprep.subr.mxu0 %v2809_v48  ;;  %12280 = vmatprep.subr.mxu1 %v2809_v48  ;;  %19296 = vst [vmem:[#allocation14_spill] sm:$0xff] %v12627_v59  ;;  %v12643_v62 = vsel %vm313_vm2, %v330_v57, %v332_v61  ;;  %v751_v0 = vsel %vm731_vm1, %v748_v27, %v750_v63  ;;  %v753_v8 = vrot.slane %v12481_v22, 2  ;;  %v337_v9 = vrot.slane %v58_v6, 1  ;;  %v12722_v18 = vld [vmem:[%s19067_s0 + $0xd8] sm:$0xff]  ;;  %v12741_v24 = vld [vmem:[%s19067_s0 + $0xe0] sm:$0xff]  ;;  %v12796_v53 = vld [vmem:[%s19067_s0 + $0xf0] sm:$0xff] }
  0x1f   :  { %10927 = vmatpush3.msra.mxu0 %v2809_v48  ;;  %12285 = vmatpush3.msra.mxu1 %v2809_v48  ;;  %19297 = vst [vmem:[#allocation15_spill] sm:$0xff] %v12643_v62  ;;  %v12684_v5 = vsel %vm313_vm2, %v334_v2, %v335_v3  ;;  %vm666_vm4 = vcmask 64544   ;;  %vm1084_vm5 = vcmask 97344   ;;  %vm1345_vm6 = vcmask 130144   ;;  %171 = vst.msk [vmem:[#allocation2 + $0x90] sm:$0xff] %vm152_vm0, %v12722_v18  ;;  %v12813_v61 = vld [vmem:[%s19067_s0 + $0xf8] sm:$0xff] }
  0x20   :  { %1689 = vrot.lane.b32.xlu1 %v739_v33, %s12356_s22  ;;  %1424 = vrot.lane.b32.xlu0 %v12523_v34, %s12355_s21  ;;  %19298 = vst [vmem:[#allocation16_spill] sm:$0xff] %v12684_v5  ;;  %v754_v10 = vsel %vm731_vm1, %v752_v7, %v753_v8  ;;  %v339_v19 = vrot.slane %v12488_v23, 1  ;;  %v340_v20 = vrot.slane %v12500_v25, 1  ;;  %vm1614_vm7 = vcmask 162944   ;;  %172 = vst.msk [vmem:[#allocation2 + $0x98] sm:$0xff] %vm152_vm0, %v12741_v24 }
  0x21   :  { %10928 = vmatprep.subr.mxu0 %v2808_v51  ;;  %12281 = vmatprep.subr.mxu1 %v2808_v51  ;;  %v61_v30 = vld [vmem:[%s19067_s0 + $0x88] sm:$0x3]  ;;  %vm1881_vm8 = vcmask 195744   ;;  %v757_v31 = vrot.slane %v12488_v23, 2  ;;  %vm2142_vm9 = vcmask 228544   ;;  %vm2411_vm10 = vcmask 261344  }
  0x22   :  { %10929 = vmatpush3.msra.mxu0 %v2808_v51  ;;  %12286 = vmatpush3.msra.mxu1 %v2808_v51  ;;  %v12745_v26 = vsel %vm313_vm2, %v339_v19, %v340_v20  ;;  %v760_v43 = vrot.slane %v61_v30, 2  ;;  %vm2678_vm11 = vcmask 294144   ;;  %173 = vst.msk [vmem:[#allocation2 + $0xa0] sm:$0xff] %vm152_vm0, %v12796_v53  ;;  %v345_v56 = vrot.slane %v12550_v40, 1  ;;  %174 = vst.msk [vmem:[#allocation2 + $0xa8] sm:$0xff] %vm152_vm0, %v12813_v61 }
  0x23   :  { %10930 = vmatprep.subr.mxu0 %v2807_v52  ;;  %12282 = vmatprep.subr.mxu1 %v2807_v52  ;;  %19300 = vst [vmem:[#allocation18_spill] sm:$0xff] %v12745_v26  ;;  %vm2812_vm12 = vcmask 293888   ;;  %v763_v7 = vrot.slane %v12550_v40, 2 }
  0x24   :  { %896 = vrot.lane.b32.xlu1 %v739_v33, %s12352_s9  ;;  %480 = vrot.lane.b32.xlu0 %v12523_v34, %s12354_s10  ;;  %v342_v33 = vrot.slane %v61_v30, 1 }
  0x25   :  { %10931 = vmatpush3.msra.mxu0 %v2807_v52  ;;  %12287 = vmatpush3.msra.mxu1 %v2807_v52 }
  0x26   :  { %v12768_v39 = vsel %vm313_vm2, %v340_v20, %v342_v33  ;;  %v349_v33 = vrot.slane %v12609_v55, 1 }
  0x27   :  { %19301 = vst [vmem:[#allocation19_spill] sm:$0xff] %v12768_v39 }
  0x28   :  { %1950 = vrot.lane.b32.xlu1 %v12441_v11, %s12357_s25  ;;  %1691 = vrot.lane.b32.xlu0 %v741_v36, %s12356_s22 }
  0x2c   :  { %1157 = vrot.lane.b32.xlu1 %v12441_v11, %s12353_s18  ;;  %898 = vrot.lane.b32.xlu0 %v741_v36, %s12352_s9  ;;  %v12703_v11 = vsel %vm313_vm2, %v335_v3, %v337_v9  ;;  %v64_v3 = vld [vmem:[%s19067_s0 + $0xa0] sm:$0x3] }
  0x2d   :  { %19299 = vst [vmem:[#allocation17_spill] sm:$0xff] %v12703_v11 }
  0x30   :  { %2219 = vrot.lane.b32.xlu1 %v12553_v41, %s12358_s11  ;;  %1952 = vrot.lane.b32.xlu0 %v12446_v12, %s12357_s25 }
  0x34   :  { %1426 = vrot.lane.b32.xlu1 %v12553_v41, %s12355_s21  ;;  %1159 = vrot.lane.b32.xlu0 %v12446_v12, %s12353_s18  ;;  %v755_v12 = vrot.slane %v58_v6, 2  ;;  %v762_v6 = vrot.slane %v12535_v37, 2 }
  0x36   :  { %v756_v13 = vsel %vm731_vm1, %v753_v8, %v755_v12  ;;  %v347_v8 = vrot.slane %v64_v3, 1 }
  0x38   :  { %2486 = vrot.lane.b32.xlu1 %v744_v49, %s12359_s20  ;;  %2221 = vrot.lane.b32.xlu0 %v12585_v50, %s12358_s11 }
  0x3c   :  { %1428 = vrot.lane.b32.xlu1 %v12585_v50, %s12355_s21  ;;  %482 = vrot.lane.b32.xlu0 %v12553_v41, %s12354_s10  ;;  %v4242_v41 = vld [vmem:[#allocation4 + $0xd0] sm:$0xff] }
  0x40   :  { %2488 = vrot.lane.b32.xlu1 %v746_v54, %s12359_s20  ;;  %1693 = vrot.lane.b32.xlu0 %v744_v49, %s12356_s22 }
  0x44   :  { %900 = vrot.lane.b32.xlu1 %v744_v49, %s12352_s9  ;;  %484 = vrot.lane.b32.xlu0 %v12585_v50, %s12354_s10 }
  0x48   :  { %1954 = vrot.lane.b32.xlu1 %v12453_v15, %s12357_s25  ;;  %1695 = vrot.lane.b32.xlu0 %v746_v54, %s12356_s22 }
  0x4c   :  { %1161 = vrot.lane.b32.xlu1 %v12453_v15, %s12353_s18  ;;  %902 = vrot.lane.b32.xlu0 %v746_v54, %s12352_s9  ;;  %v344_v54 = vrot.slane %v12535_v37, 1 }
  0x4e   :  { %v12816_v63 = vsel %vm313_vm2, %v344_v54, %v345_v56 }
  0x4f   :  { %19302 = vst [vmem:[#allocation20_spill] sm:$0xff] %v12816_v63 }
  0x50   :  { %2223 = vrot.lane.b32.xlu1 %v12627_v59, %s12358_s11  ;;  %1956 = vrot.lane.b32.xlu0 %v12458_v16, %s12357_s25 }
  0x54   :  { %1430 = vrot.lane.b32.xlu1 %v12627_v59, %s12355_s21  ;;  %1163 = vrot.lane.b32.xlu0 %v12458_v16, %s12353_s18 }
  0x58   :  { %2490 = vrot.lane.b32.xlu1 %v12515_v32, %s12359_s20  ;;  %2225 = vrot.lane.b32.xlu0 %v12643_v62, %s12358_s11 }
  0x5c   :  { %1432 = vrot.lane.b32.xlu1 %v12643_v62, %s12355_s21  ;;  %486 = vrot.lane.b32.xlu0 %v12627_v59, %s12354_s10  ;;  %v4162_v59 = vld [vmem:[#allocation4 + $0x58] sm:$0xff] }
  0x60   :  { %2492 = vrot.lane.b32.xlu1 %v751_v0, %s12359_s20  ;;  %1697 = vrot.lane.b32.xlu0 %v12515_v32, %s12356_s22 }
  0x64   :  { %904 = vrot.lane.b32.xlu1 %v12515_v32, %s12352_s9  ;;  %488 = vrot.lane.b32.xlu0 %v12643_v62, %s12354_s10  ;;  %v758_v32 = vrot.slane %v12500_v25, 2 }
  0x66   :  { %v759_v38 = vsel %vm731_vm1, %v757_v31, %v758_v32  ;;  %v761_v45 = vsel %vm731_vm1, %v758_v32, %v760_v43  ;;  %v12869_v32 = vld [vmem:[%s19067_s0 + $0x108] sm:$0xff] }
  0x67   :  { %175 = vst.msk [vmem:[#allocation2 + $0xb0] sm:$0xff] %vm152_vm0, %v12869_v32 }
  0x68   :  { %1958 = vrot.lane.b32.xlu1 %v12469_v17, %s12357_s25  ;;  %1699 = vrot.lane.b32.xlu0 %v751_v0, %s12356_s22 }
  0x6c   :  { %1165 = vrot.lane.b32.xlu1 %v12469_v17, %s12353_s18  ;;  %906 = vrot.lane.b32.xlu0 %v751_v0, %s12352_s9 }
  0x70   :  { %2227 = vrot.lane.b32.xlu1 %v12684_v5, %s12358_s11  ;;  %1960 = vrot.lane.b32.xlu0 %v12481_v22, %s12357_s25 }
  0x74   :  { %1434 = vrot.lane.b32.xlu1 %v12684_v5, %s12355_s21  ;;  %1167 = vrot.lane.b32.xlu0 %v12481_v22, %s12353_s18 }
  0x78   :  { %2494 = vrot.lane.b32.xlu1 %v754_v10, %s12359_s20  ;;  %2229 = vrot.lane.b32.xlu0 %v12703_v11, %s12358_s11 }
  0x7c   :  { %1436 = vrot.lane.b32.xlu1 %v12703_v11, %s12355_s21  ;;  %490 = vrot.lane.b32.xlu0 %v12684_v5, %s12354_s10 }
  0x80   :  { %2496 = vrot.lane.b32.xlu1 %v756_v13, %s12359_s20  ;;  %1701 = vrot.lane.b32.xlu0 %v754_v10, %s12356_s22 }
  0x82   :  { %v1156_v14 = vpop.permute.xlu1 %1155  ;;  %v1154_v15 = vpop.permute.xlu0 %1153 }
  0x84   :  { %908 = vrot.lane.b32.xlu1 %v754_v10, %s12352_s9  ;;  %492 = vrot.lane.b32.xlu0 %v12703_v11, %s12354_s10 }
  0x86   :  { %v893_v16 = vpop.permute.xlu1 %892  ;;  %v475_v17 = vpop.permute.xlu0 %474 }
  0x87   :  { %667 = vst.msk [vmem:[#allocation2] sm:$0xff] %vm666_vm4, %v475_v17 }
  0x88   :  { %1085 = vst.msk [vmem:[#allocation2] sm:$0xff] %vm1084_vm5, %v893_v16  ;;  %1962 = vrot.lane.b32.xlu1 %v12488_v23, %s12357_s25  ;;  %1703 = vrot.lane.b32.xlu0 %v756_v13, %s12356_s22  ;;  %v765_v16 = vrot.slane %v64_v3, 2 }
  0x89   :  { %1346 = vst.msk [vmem:[#allocation2] sm:$0xff] %vm1345_vm6, %v1154_v15 }
  0x8a   :  { %v895_v21 = vpop.permute.xlu1 %894  ;;  %v477_v22 = vpop.permute.xlu0 %476  ;;  %v766_v20 = vsel %vm731_vm1, %v763_v7, %v765_v16 }
  0x8b   :  { %668 = vst.msk [vmem:[#allocation2 + $0x8] sm:$0xff] %vm666_vm4, %v477_v22 }
  0x8c   :  { %1086 = vst.msk [vmem:[#allocation2 + $0x8] sm:$0xff] %vm1084_vm5, %v895_v21  ;;  %1169 = vrot.lane.b32.xlu1 %v12488_v23, %s12353_s18  ;;  %910 = vrot.lane.b32.xlu0 %v756_v13, %s12352_s9  ;;  %v12840_v13 = vsel %vm313_vm2, %v345_v56, %v347_v8 }
  0x8d   :  { %1347 = vst.msk [vmem:[#allocation2 + $0x8] sm:$0xff] %vm1345_vm6, %v1156_v14  ;;  %19303 = vst [vmem:[#allocation21_spill] sm:$0xff] %v12840_v13 }
  0x8e   :  { %v479_v27 = vpop.permute.xlu1 %478  ;;  %v1423_v29 = vpop.permute.xlu0 %1422 }
  0x8f   :  { %669 = vst.msk [vmem:[#allocation2 + $0x10] sm:$0xff] %vm666_vm4, %v479_v27 }
  0x90   :  { %1615 = vst.msk [vmem:[#allocation2] sm:$0xff] %vm1614_vm7, %v1423_v29  ;;  %2231 = vrot.lane.b32.xlu1 %v12745_v26, %s12358_s11  ;;  %1964 = vrot.lane.b32.xlu0 %v12500_v25, %s12357_s25 }
  0x92   :  { %v1690_v35 = vpop.permute.xlu1 %1689  ;;  %v1425_v36 = vpop.permute.xlu0 %1424 }
  0x93   :  { %1882 = vst.msk [vmem:[#allocation2] sm:$0xff] %vm1881_vm8, %v1690_v35  ;;  %v350_v35 = vrot.slane %v12624_v58, 1 }
  0x94   :  { %1616 = vst.msk [vmem:[#allocation2 + $0x8] sm:$0xff] %vm1614_vm7, %v1425_v36  ;;  %1438 = vrot.lane.b32.xlu1 %v12745_v26, %s12355_s21  ;;  %1171 = vrot.lane.b32.xlu0 %v12500_v25, %s12353_s18 }
  0x96   :  { %v897_v23 = vpop.permute.xlu1 %896  ;;  %v481_v42 = vpop.permute.xlu0 %480 }
  0x97   :  { %1087 = vst.msk [vmem:[#allocation2 + $0x10] sm:$0xff] %vm1084_vm5, %v897_v23  ;;  %v12886_v23 = vld [vmem:[%s19067_s0 + $0x110] sm:$0xff] }
  0x98   :  { %670 = vst.msk [vmem:[#allocation2 + $0x18] sm:$0xff] %vm666_vm4, %v481_v42  ;;  %2498 = vrot.lane.b32.xlu1 %v759_v38, %s12359_s20  ;;  %2233 = vrot.lane.b32.xlu0 %v12768_v39, %s12358_s11  ;;  %v12889_v42 = vsel %vm313_vm2, %v349_v33, %v350_v35 }
  0x99   :  { %19304 = vst [vmem:[#allocation22_spill] sm:$0xff] %v12889_v42  ;;  %176 = vst.msk [vmem:[#allocation2 + $0xb8] sm:$0xff] %vm152_vm0, %v12886_v23 }
  0x9a   :  { %v1951_v44 = vpop.permute.xlu1 %1950  ;;  %v1692_v25 = vpop.permute.xlu0 %1691 }
  0x9b   :  { %2143 = vst.msk [vmem:[#allocation2] sm:$0xff] %vm2142_vm9, %v1951_v44 }
  0x9c   :  { %1883 = vst.msk [vmem:[#allocation2 + $0x8] sm:$0xff] %vm1881_vm8, %v1692_v25  ;;  %1440 = vrot.lane.b32.xlu1 %v12768_v39, %s12355_s21  ;;  %494 = vrot.lane.b32.xlu0 %v12745_v26, %s12354_s10  ;;  %v67_v25 = vld [vmem:[%s19067_s0 + $0xb8] sm:$0x3] }
  0x9e   :  { %v1158_v46 = vpop.permute.xlu1 %1157  ;;  %v899_v47 = vpop.permute.xlu0 %898 }
  0x9f   :  { %1348 = vst.msk [vmem:[#allocation2 + $0x10] sm:$0xff] %vm1345_vm6, %v1158_v46  ;;  %v768_v46 = vrot.slane %v12624_v58, 2 }
  0xa0   :  { %1088 = vst.msk [vmem:[#allocation2 + $0x18] sm:$0xff] %vm1084_vm5, %v899_v47  ;;  %2500 = vrot.lane.b32.xlu1 %v761_v45, %s12359_s20  ;;  %1705 = vrot.lane.b32.xlu0 %v759_v38, %s12356_s22  ;;  %v352_v47 = vrot.slane %v67_v25, 1 }
  0xa2   :  { %v2220_v48 = vpop.permute.xlu1 %2219  ;;  %v1953_v49 = vpop.permute.xlu0 %1952 }
  0xa3   :  { %2412 = vst.msk [vmem:[#allocation2] sm:$0xff] %vm2411_vm10, %v2220_v48 }
  0xa4   :  { %2144 = vst.msk [vmem:[#allocation2 + $0x8] sm:$0xff] %vm2142_vm9, %v1953_v49  ;;  %912 = vrot.lane.b32.xlu1 %v759_v38, %s12352_s9  ;;  %496 = vrot.lane.b32.xlu0 %v12768_v39, %s12354_s10 }
  0xa6   :  { %v1427_v51 = vpop.permute.xlu1 %1426  ;;  %v1160_v52 = vpop.permute.xlu0 %1159 }
  0xa7   :  { %1617 = vst.msk [vmem:[#allocation2 + $0x10] sm:$0xff] %vm1614_vm7, %v1427_v51 }
  0xa8   :  { %1349 = vst.msk [vmem:[#allocation2 + $0x18] sm:$0xff] %vm1345_vm6, %v1160_v52  ;;  %1966 = vrot.lane.b32.xlu1 %v12535_v37, %s12357_s25  ;;  %1707 = vrot.lane.b32.xlu0 %v761_v45, %s12356_s22  ;;  %v12913_v52 = vsel %vm313_vm2, %v350_v35, %v352_v47 }
  0xa9   :  { %19305 = vst [vmem:[#allocation23_spill] sm:$0xff] %v12913_v52 }
  0xaa   :  { %v2487_v57 = vpop.permute.xlu1 %2486  ;;  %v2222_v60 = vpop.permute.xlu0 %2221 }
  0xab   :  { %2679 = vst.msk [vmem:[#allocation2] sm:$0xff] %vm2678_vm11, %v2487_v57  ;;  %v770_v57 = vrot.slane %v67_v25, 2 }
  0xac   :  { %2413 = vst.msk [vmem:[#allocation2 + $0x8] sm:$0xff] %vm2411_vm10, %v2222_v60  ;;  %1173 = vrot.lane.b32.xlu1 %v12535_v37, %s12353_s18  ;;  %914 = vrot.lane.b32.xlu0 %v761_v45, %s12352_s9  ;;  %v764_v37 = vsel %vm731_vm1, %v762_v6, %v763_v7  ;;  %v767_v45 = vrot.slane %v12609_v55, 2 }
  0xae   :  { %v1429_v0 = vpop.permute.xlu1 %1428  ;;  %v483_v2 = vpop.permute.xlu0 %482 }
  0xaf   :  { %1618 = vst.msk [vmem:[#allocation2 + $0x18] sm:$0xff] %vm1614_vm7, %v1429_v0 }
  0xb0   :  { %671 = vst.msk [vmem:[#allocation2 + $0x20] sm:$0xff] %vm666_vm4, %v483_v2  ;;  %2235 = vrot.lane.b32.xlu1 %v12816_v63, %s12358_s11  ;;  %1968 = vrot.lane.b32.xlu0 %v12550_v40, %s12357_s25  ;;  %v771_v2 = vsel %vm731_vm1, %v768_v46, %v770_v57  ;;  %v360_v57 = vrot.slane %v12741_v24, 1 }
  0xb2   :  { %v2489_v9 = vpop.permute.xlu1 %2488  ;;  %v1694_v10 = vpop.permute.xlu0 %1693  ;;  %v2743_v12 = vld [vmem:[#allocation2] sm:$0xff] }
  0xb3   :  { %2680 = vst.msk [vmem:[#allocation2 + $0x8] sm:$0xff] %vm2678_vm11, %v2489_v9  ;;  %10932 = vmatprep.mubr.msk.f32.mxu0 %vm2812_vm12, %v2743_v12  ;;  %v12942_v12 = vld [vmem:[%s19067_s0 + $0x120] sm:$0xff] }
  0xb4   :  { %1884 = vst.msk [vmem:[#allocation2 + $0x10] sm:$0xff] %vm1881_vm8, %v1694_v10  ;;  %1442 = vrot.lane.b32.xlu1 %v12816_v63, %s12355_s21  ;;  %1175 = vrot.lane.b32.xlu0 %v12550_v40, %s12353_s18 }
  0xb5   :  { %177 = vst.msk [vmem:[#allocation2 + $0xc0] sm:$0xff] %vm152_vm0, %v12942_v12 }
  0xb6   :  { %v901_v14 = vpop.permute.xlu1 %900  ;;  %v485_v15 = vpop.permute.xlu0 %484 }
  0xb7   :  { %1089 = vst.msk [vmem:[#allocation2 + $0x20] sm:$0xff] %vm1084_vm5, %v901_v14  ;;  %v355_v14 = vrot.slane %v12681_v4, 1 }
  0xb8   :  { %672 = vst.msk [vmem:[#allocation2 + $0x28] sm:$0xff] %vm666_vm4, %v485_v15  ;;  %2502 = vrot.lane.b32.xlu1 %v764_v37, %s12359_s20  ;;  %2237 = vrot.lane.b32.xlu0 %v12840_v13, %s12358_s11 }
  0xba   :  { %v1955_v17 = vpop.permute.xlu1 %1954  ;;  %v1696_v19 = vpop.permute.xlu0 %1695  ;;  %v2744_v40 = vld [vmem:[#allocation2 + $0x8] sm:$0xff] }
  0xbb   :  { %2145 = vst.msk [vmem:[#allocation2 + $0x10] sm:$0xff] %vm2142_vm9, %v1955_v17  ;;  %10933 = vmatmul.mubr.msk.f32.vlgmr.msra.gmra.mxu0 %vm2812_vm12, %v2744_v40  ;;  %v12959_v17 = vld [vmem:[%s19067_s0 + $0x128] sm:$0xff] }
  0xbc   :  { %1885 = vst.msk [vmem:[#allocation2 + $0x18] sm:$0xff] %vm1881_vm8, %v1696_v19  ;;  %1444 = vrot.lane.b32.xlu1 %v12840_v13, %s12355_s21  ;;  %498 = vrot.lane.b32.xlu0 %v12816_v63, %s12354_s10 }
  0xbd   :  { %178 = vst.msk [vmem:[#allocation2 + $0xc8] sm:$0xff] %vm152_vm0, %v12959_v17 }
  0xbe   :  { %v1162_v21 = vpop.permute.xlu1 %1161  ;;  %v903_v22 = vpop.permute.xlu0 %902 }
  0xbf   :  { %1350 = vst.msk [vmem:[#allocation2 + $0x20] sm:$0xff] %vm1345_vm6, %v1162_v21  ;;  %v70_v21 = vld [vmem:[%s19067_s0 + $0xd0] sm:$0x3] }
  0xc0   :  { %1090 = vst.msk [vmem:[#allocation2 + $0x28] sm:$0xff] %vm1084_vm5, %v903_v22  ;;  %2504 = vrot.lane.b32.xlu1 %v766_v20, %s12359_s20  ;;  %1709 = vrot.lane.b32.xlu0 %v764_v37, %s12356_s22  ;;  %v772_v22 = vrot.slane %v12666_v1, 2 }
  0xc2   :  { %v2224_v27 = vpop.permute.xlu1 %2223  ;;  %v1957_v29 = vpop.permute.xlu0 %1956 }
  0xc3   :  { %2414 = vst.msk [vmem:[#allocation2 + $0x10] sm:$0xff] %vm2411_vm10, %v2224_v27  ;;  %v773_v27 = vrot.slane %v12681_v4, 2 }
  0xc4   :  { %2146 = vst.msk [vmem:[#allocation2 + $0x18] sm:$0xff] %vm2142_vm9, %v1957_v29  ;;  %916 = vrot.lane.b32.xlu1 %v764_v37, %s12352_s9  ;;  %500 = vrot.lane.b32.xlu0 %v12840_v13, %s12354_s10  ;;  %v354_v37 = vrot.slane %v12666_v1, 1  ;;  %v357_v29 = vrot.slane %v70_v21, 1 }
  0xc6   :  { %v1431_v30 = vpop.permute.xlu1 %1430  ;;  %v1164_v31 = vpop.permute.xlu0 %1163  ;;  %v12962_v19 = vsel %vm313_vm2, %v354_v37, %v355_v14  ;;  %v12986_v35 = vsel %vm313_vm2, %v355_v14, %v357_v29 }
  0xc7   :  { %1619 = vst.msk [vmem:[#allocation2 + $0x20] sm:$0xff] %vm1614_vm7, %v1431_v30  ;;  %19306 = vst [vmem:[#allocation24_spill] sm:$0xff] %v12962_v19 }
  0xc8   :  { %1351 = vst.msk [vmem:[#allocation2 + $0x28] sm:$0xff] %vm1345_vm6, %v1164_v31  ;;  %1970 = vrot.lane.b32.xlu1 %v12609_v55, %s12357_s25  ;;  %1711 = vrot.lane.b32.xlu0 %v766_v20, %s12356_s22  ;;  %19307 = vst [vmem:[#allocation25_spill] sm:$0xff] %v12986_v35 }
  0xca   :  { %v2491_v36 = vpop.permute.xlu1 %2490  ;;  %v2226_v38 = vpop.permute.xlu0 %2225 }
  0xcb   :  { %2681 = vst.msk [vmem:[#allocation2 + $0x10] sm:$0xff] %vm2678_vm11, %v2491_v36 }
  0xcc   :  { %2415 = vst.msk [vmem:[#allocation2 + $0x18] sm:$0xff] %vm2411_vm10, %v2226_v38  ;;  %1177 = vrot.lane.b32.xlu1 %v12609_v55, %s12353_s18  ;;  %918 = vrot.lane.b32.xlu0 %v766_v20, %s12352_s9  ;;  %v769_v55 = vsel %vm731_vm1, %v767_v45, %v768_v46 }
  0xce   :  { %v1433_v43 = vpop.permute.xlu1 %1432  ;;  %v487_v44 = vpop.permute.xlu0 %486 }
  0xcf   :  { %1620 = vst.msk [vmem:[#allocation2 + $0x28] sm:$0xff] %vm1614_vm7, %v1433_v43  ;;  %v775_v43 = vrot.slane %v70_v21, 2 }
  0xd0   :  { %673 = vst.msk [vmem:[#allocation2 + $0x30] sm:$0xff] %vm666_vm4, %v487_v44  ;;  %2239 = vrot.lane.b32.xlu1 %v12889_v42, %s12358_s11  ;;  %1972 = vrot.lane.b32.xlu0 %v12624_v58, %s12357_s25 }
  0xd1   :  { %v776_v45 = vsel %vm731_vm1, %v773_v27, %v775_v43  ;;  %v13088_v43 = vld [vmem:[%s19067_s0 + $0x150] sm:$0xff] }
  0xd2   :  { %v2493_v48 = vpop.permute.xlu1 %2492  ;;  %v1698_v49 = vpop.permute.xlu0 %1697  ;;  %v2745_v51 = vld [vmem:[#allocation2 + $0x10] sm:$0xff]  ;;  %181 = vst.msk [vmem:[#allocation2 + $0xe0] sm:$0xff] %vm152_vm0, %v13088_v43 }
  0xd3   :  { %2682 = vst.msk [vmem:[#allocation2 + $0x18] sm:$0xff] %vm2678_vm11, %v2493_v48  ;;  %10935 = vmatprep.mubr.msk.f32.mxu0 %vm2812_vm12, %v2745_v51 }
  0xd4   :  { %1886 = vst.msk [vmem:[#allocation2 + $0x20] sm:$0xff] %vm1881_vm8, %v1698_v49  ;;  %1446 = vrot.lane.b32.xlu1 %v12889_v42, %s12355_s21  ;;  %1179 = vrot.lane.b32.xlu0 %v12624_v58, %s12353_s18 }
  0xd6   :  { %v905_v54 = vpop.permute.xlu1 %904  ;;  %v489_v56 = vpop.permute.xlu0 %488 }
  0xd7   :  { %1091 = vst.msk [vmem:[#allocation2 + $0x30] sm:$0xff] %vm1084_vm5, %v905_v54  ;;  %v13015_v54 = vld [vmem:[%s19067_s0 + $0x138] sm:$0xff] }
  0xd8   :  { %674 = vst.msk [vmem:[#allocation2 + $0x38] sm:$0xff] %vm666_vm4, %v489_v56  ;;  %2506 = vrot.lane.b32.xlu1 %v769_v55, %s12359_s20  ;;  %2241 = vrot.lane.b32.xlu0 %v12913_v52, %s12358_s11  ;;  %v359_v56 = vrot.slane %v12722_v18, 1 }
  0xd9   :  { %179 = vst.msk [vmem:[#allocation2 + $0xd0] sm:$0xff] %vm152_vm0, %v13015_v54 }
  0xda   :  { %v1959_v60 = vpop.permute.xlu1 %1958  ;;  %v1700_v0 = vpop.permute.xlu0 %1699  ;;  %v2746_v58 = vld [vmem:[#allocation2 + $0x18] sm:$0xff] }
  0xdb   :  { %2147 = vst.msk [vmem:[#allocation2 + $0x20] sm:$0xff] %vm2142_vm9, %v1959_v60  ;;  %10936 = vmatmul.mubr.msk.f32.gmra.mxu0 %vm2812_vm12, %v2746_v58  ;;  %v13032_v58 = vld [vmem:[%s19067_s0 + $0x140] sm:$0xff] }
  0xdc   :  { %1887 = vst.msk [vmem:[#allocation2 + $0x28] sm:$0xff] %vm1881_vm8, %v1700_v0  ;;  %1448 = vrot.lane.b32.xlu1 %v12913_v52, %s12355_s21  ;;  %502 = vrot.lane.b32.xlu0 %v12889_v42, %s12354_s10 }
  0xdd   :  { %180 = vst.msk [vmem:[#allocation2 + $0xd8] sm:$0xff] %vm152_vm0, %v13032_v58 }
  0xde   :  { %v1166_v3 = vpop.permute.xlu1 %1165  ;;  %v907_v6 = vpop.permute.xlu0 %906 }
  0xdf   :  { %1352 = vst.msk [vmem:[#allocation2 + $0x30] sm:$0xff] %vm1345_vm6, %v1166_v3 }
  0xe0   :  { %1092 = vst.msk [vmem:[#allocation2 + $0x38] sm:$0xff] %vm1084_vm5, %v907_v6  ;;  %2508 = vrot.lane.b32.xlu1 %v771_v2, %s12359_s20  ;;  %1713 = vrot.lane.b32.xlu0 %v769_v55, %s12356_s22 }
  0xe2   :  { %v2228_v7 = vpop.permute.xlu1 %2227  ;;  %v1961_v8 = vpop.permute.xlu0 %1960 }
  0xe3   :  { %2416 = vst.msk [vmem:[#allocation2 + $0x20] sm:$0xff] %vm2411_vm10, %v2228_v7  ;;  %v73_v7 = vld [vmem:[%s19067_s0 + $0xe8] sm:$0x3] }
  0xe4   :  { %2148 = vst.msk [vmem:[#allocation2 + $0x28] sm:$0xff] %vm2142_vm9, %v1961_v8  ;;  %920 = vrot.lane.b32.xlu1 %v769_v55, %s12352_s9  ;;  %504 = vrot.lane.b32.xlu0 %v12913_v52, %s12354_s10  ;;  %v777_v8 = vrot.slane %v12722_v18, 2  ;;  %v780_v21 = vrot.slane %v73_v7, 2 }
  0xe6   :  { %v1435_v9 = vpop.permute.xlu1 %1434  ;;  %v1168_v10 = vpop.permute.xlu0 %1167 }
  0xe7   :  { %1621 = vst.msk [vmem:[#allocation2 + $0x30] sm:$0xff] %vm1614_vm7, %v1435_v9  ;;  %v778_v9 = vrot.slane %v12741_v24, 2 }
  0xe8   :  { %1353 = vst.msk [vmem:[#allocation2 + $0x38] sm:$0xff] %vm1345_vm6, %v1168_v10  ;;  %1974 = vrot.lane.b32.xlu1 %v12666_v1, %s12357_s25  ;;  %1715 = vrot.lane.b32.xlu0 %v771_v2, %s12356_s22  ;;  %v362_v10 = vrot.slane %v73_v7, 1 }
  0xe9   :  { %v781_v29 = vsel %vm731_vm1, %v778_v9, %v780_v21 }
  0xea   :  { %v2495_v15 = vpop.permute.xlu1 %2494  ;;  %v2230_v16 = vpop.permute.xlu0 %2229 }
  0xeb   :  { %2683 = vst.msk [vmem:[#allocation2 + $0x20] sm:$0xff] %vm2678_vm11, %v2495_v15 }
  0xec   :  { %2417 = vst.msk [vmem:[#allocation2 + $0x28] sm:$0xff] %vm2411_vm10, %v2230_v16  ;;  %1181 = vrot.lane.b32.xlu1 %v12666_v1, %s12353_s18  ;;  %922 = vrot.lane.b32.xlu0 %v771_v2, %s12352_s9  ;;  %v774_v1 = vsel %vm731_vm1, %v772_v22, %v773_v27  ;;  %v13035_v2 = vsel %vm313_vm2, %v359_v56, %v360_v57  ;;  %v783_v56 = vrot.slane %v12813_v61, 2 }
  0xed   :  { %19308 = vst [vmem:[#allocation26_spill] sm:$0xff] %v13035_v2  ;;  %v13059_v16 = vsel %vm313_vm2, %v360_v57, %v362_v10 }
  0xee   :  { %v1437_v40 = vpop.permute.xlu1 %1436  ;;  %v491_v20 = vpop.permute.xlu0 %490  ;;  %19309 = vst [vmem:[#allocation27_spill] sm:$0xff] %v13059_v16 }
  0xef   :  { %1622 = vst.msk [vmem:[#allocation2 + $0x38] sm:$0xff] %vm1614_vm7, %v1437_v40 }
  0xf0   :  { %675 = vst.msk [vmem:[#allocation2 + $0x40] sm:$0xff] %vm666_vm4, %v491_v20  ;;  %2243 = vrot.lane.b32.xlu1 %v12962_v19, %s12358_s11  ;;  %1976 = vrot.lane.b32.xlu0 %v12681_v4, %s12357_s25 }
  0xf2   :  { %v2497_v30 = vpop.permute.xlu1 %2496  ;;  %v1702_v31 = vpop.permute.xlu0 %1701  ;;  %v2747_v33 = vld [vmem:[#allocation2 + $0x20] sm:$0xff] }
  0xf3   :  { %2684 = vst.msk [vmem:[#allocation2 + $0x28] sm:$0xff] %vm2678_vm11, %v2497_v30  ;;  %10938 = vmatprep.mubr.msk.f32.mxu0 %vm2812_vm12, %v2747_v33 }
  0xf4   :  { %1888 = vst.msk [vmem:[#allocation2 + $0x30] sm:$0xff] %vm1881_vm8, %v1702_v31  ;;  %1450 = vrot.lane.b32.xlu1 %v12962_v19, %s12355_s21  ;;  %1183 = vrot.lane.b32.xlu0 %v12681_v4, %s12353_s18 }
  0xf6   :  { %v909_v36 = vpop.permute.xlu1 %908  ;;  %v493_v38 = vpop.permute.xlu0 %492 }
  0xf7   :  { %1093 = vst.msk [vmem:[#allocation2 + $0x40] sm:$0xff] %vm1084_vm5, %v909_v36 }
  0xf8   :  { %676 = vst.msk [vmem:[#allocation2 + $0x48] sm:$0xff] %vm666_vm4, %v493_v38  ;;  %2510 = vrot.lane.b32.xlu1 %v774_v1, %s12359_s20  ;;  %2245 = vrot.lane.b32.xlu0 %v12986_v35, %s12358_s11 }
  0xfa   :  { %v1963_v44 = vpop.permute.xlu1 %1962  ;;  %v1704_v25 = vpop.permute.xlu0 %1703  ;;  %v2748_v4 = vld [vmem:[#allocation2 + $0x28] sm:$0xff] }
  0xfb   :  { %2149 = vst.msk [vmem:[#allocation2 + $0x30] sm:$0xff] %vm2142_vm9, %v1963_v44  ;;  %10939 = vmatmul.mubr.msk.f32.gmra.mxu0 %vm2812_vm12, %v2748_v4  ;;  %v364_v44 = vrot.slane %v12796_v53, 1 }
  0xfc   :  { %1889 = vst.msk [vmem:[#allocation2 + $0x38] sm:$0xff] %vm1881_vm8, %v1704_v25  ;;  %1452 = vrot.lane.b32.xlu1 %v12986_v35, %s12355_s21  ;;  %506 = vrot.lane.b32.xlu0 %v12962_v19, %s12354_s10  ;;  %v365_v25 = vrot.slane %v12813_v61, 1 }
  0xfe   :  { %v1170_v46 = vpop.permute.xlu1 %1169  ;;  %v911_v47 = vpop.permute.xlu0 %910 }
  0xff   :  { %1354 = vst.msk [vmem:[#allocation2 + $0x40] sm:$0xff] %vm1345_vm6, %v1170_v46  ;;  %v13105_v46 = vld [vmem:[%s19067_s0 + $0x158] sm:$0xff] }
 0x100   :  { %1094 = vst.msk [vmem:[#allocation2 + $0x48] sm:$0xff] %vm1084_vm5, %v911_v47  ;;  %2512 = vrot.lane.b32.xlu1 %v776_v45, %s12359_s20  ;;  %1717 = vrot.lane.b32.xlu0 %v774_v1, %s12356_s22  ;;  %v13108_v47 = vsel %vm313_vm2, %v364_v44, %v365_v25  ;;  %v79_v44 = vld [vmem:[%s19067_s0 + $0x118] sm:$0x3] }
 0x101   :  { %19310 = vst [vmem:[#allocation28_spill] sm:$0xff] %v13108_v47  ;;  %182 = vst.msk [vmem:[#allocation2 + $0xe8] sm:$0xff] %vm152_vm0, %v13105_v46 }
 0x102   :  { %v2232_v48 = vpop.permute.xlu1 %2231  ;;  %v1965_v49 = vpop.permute.xlu0 %1964 }
 0x103   :  { %2418 = vst.msk [vmem:[#allocation2 + $0x30] sm:$0xff] %vm2411_vm10, %v2232_v48 }
 0x104   :  { %2150 = vst.msk [vmem:[#allocation2 + $0x38] sm:$0xff] %vm2142_vm9, %v1965_v49  ;;  %924 = vrot.lane.b32.xlu1 %v774_v1, %s12352_s9  ;;  %508 = vrot.lane.b32.xlu0 %v12986_v35, %s12354_s10 }
 0x106   :  { %v1439_v51 = vpop.permute.xlu1 %1438  ;;  %v1172_v55 = vpop.permute.xlu0 %1171 }
 0x107   :  { %1623 = vst.msk [vmem:[#allocation2 + $0x40] sm:$0xff] %vm1614_vm7, %v1439_v51  ;;  %v76_v51 = vld [vmem:[%s19067_s0 + $0x100] sm:$0x3] }
 0x108   :  { %1355 = vst.msk [vmem:[#allocation2 + $0x48] sm:$0xff] %vm1345_vm6, %v1172_v55  ;;  %1978 = vrot.lane.b32.xlu1 %v12722_v18, %s12357_s25  ;;  %1719 = vrot.lane.b32.xlu0 %v776_v45, %s12356_s22  ;;  %v782_v55 = vrot.slane %v12796_v53, 2  ;;  %v367_v57 = vrot.slane %v76_v51, 1 }
 0x10a   :  { %v2499_v60 = vpop.permute.xlu1 %2498  ;;  %v2234_v0 = vpop.permute.xlu0 %2233 }
 0x10b   :  { %2685 = vst.msk [vmem:[#allocation2 + $0x30] sm:$0xff] %vm2678_vm11, %v2499_v60 }
 0x10c   :  { %2419 = vst.msk [vmem:[#allocation2 + $0x38] sm:$0xff] %vm2411_vm10, %v2234_v0  ;;  %1185 = vrot.lane.b32.xlu1 %v12722_v18, %s12353_s18  ;;  %926 = vrot.lane.b32.xlu0 %v776_v45, %s12352_s9  ;;  %v779_v18 = vsel %vm731_vm1, %v777_v8, %v778_v9  ;;  %v785_v9 = vrot.slane %v76_v51, 2 }
 0x10e   :  { %v1441_v3 = vpop.permute.xlu1 %1440  ;;  %v495_v6 = vpop.permute.xlu0 %494 }
 0x10f   :  { %1624 = vst.msk [vmem:[#allocation2 + $0x48] sm:$0xff] %vm1614_vm7, %v1441_v3 }
 0x110   :  { %677 = vst.msk [vmem:[#allocation2 + $0x50] sm:$0xff] %vm666_vm4, %v495_v6  ;;  %2247 = vrot.lane.b32.xlu1 %v13035_v2, %s12358_s11  ;;  %1980 = vrot.lane.b32.xlu0 %v12741_v24, %s12357_s25  ;;  %v13132_v6 = vsel %vm313_vm2, %v365_v25, %v367_v57  ;;  %v787_v25 = vrot.slane %v12869_v32, 2 }
 0x111   :  { %19311 = vst [vmem:[#allocation29_spill] sm:$0xff] %v13132_v6 }
 0x112   :  { %v2501_v37 = vpop.permute.xlu1 %2500  ;;  %v1706_v14 = vpop.permute.xlu0 %1705  ;;  %v2749_v15 = vld [vmem:[#allocation2 + $0x30] sm:$0xff] }
 0x113   :  { %2686 = vst.msk [vmem:[#allocation2 + $0x38] sm:$0xff] %vm2678_vm11, %v2501_v37  ;;  %10941 = vmatprep.mubr.msk.f32.mxu0 %vm2812_vm12, %v2749_v15 }
 0x114   :  { %1890 = vst.msk [vmem:[#allocation2 + $0x40] sm:$0xff] %vm1881_vm8, %v1706_v14  ;;  %1454 = vrot.lane.b32.xlu1 %v13035_v2, %s12355_s21  ;;  %1187 = vrot.lane.b32.xlu0 %v12741_v24, %s12353_s18  ;;  %v786_v14 = vsel %vm731_vm1, %v783_v56, %v785_v9 }
 0x116   :  { %v913_v40 = vpop.permute.xlu1 %912  ;;  %v497_v20 = vpop.permute.xlu0 %496 }
 0x117   :  { %1095 = vst.msk [vmem:[#allocation2 + $0x50] sm:$0xff] %vm1084_vm5, %v913_v40 }
 0x118   :  { %678 = vst.msk [vmem:[#allocation2 + $0x58] sm:$0xff] %vm666_vm4, %v497_v20  ;;  %2514 = vrot.lane.b32.xlu1 %v779_v18, %s12359_s20  ;;  %2249 = vrot.lane.b32.xlu0 %v13059_v16, %s12358_s11 }
 0x11a   :  { %v1967_v22 = vpop.permute.xlu1 %1966  ;;  %v1708_v27 = vpop.permute.xlu0 %1707  ;;  %v2750_v24 = vld [vmem:[#allocation2 + $0x38] sm:$0xff] }
 0x11b   :  { %2151 = vst.msk [vmem:[#allocation2 + $0x40] sm:$0xff] %vm2142_vm9, %v1967_v22  ;;  %10942 = vmatmul.mubr.msk.f32.gmra.mxu0 %vm2812_vm12, %v2750_v24  ;;  %v369_v24 = vrot.slane %v12869_v32, 1 }
 0x11c   :  { %1891 = vst.msk [vmem:[#allocation2 + $0x48] sm:$0xff] %vm1881_vm8, %v1708_v27  ;;  %1456 = vrot.lane.b32.xlu1 %v13059_v16, %s12355_s21  ;;  %510 = vrot.lane.b32.xlu0 %v13035_v2, %s12354_s10  ;;  %v13161_v27 = vld [vmem:[%s19067_s0 + $0x168] sm:$0xff] }
 0x11d   :  { %183 = vst.msk [vmem:[#allocation2 + $0xf0] sm:$0xff] %vm152_vm0, %v13161_v27 }
 0x11e   :  { %v1174_v30 = vpop.permute.xlu1 %1173  ;;  %v915_v31 = vpop.permute.xlu0 %914 }
 0x11f   :  { %1356 = vst.msk [vmem:[#allocation2 + $0x50] sm:$0xff] %vm1345_vm6, %v1174_v30 }
 0x120   :  { %1096 = vst.msk [vmem:[#allocation2 + $0x58] sm:$0xff] %vm1084_vm5, %v915_v31  ;;  %2516 = vrot.lane.b32.xlu1 %v781_v29, %s12359_s20  ;;  %1721 = vrot.lane.b32.xlu0 %v779_v18, %s12356_s22 }
 0x122   :  { %v2236_v33 = vpop.permute.xlu1 %2235  ;;  %v1969_v1 = vpop.permute.xlu0 %1968 }
 0x123   :  { %2420 = vst.msk [vmem:[#allocation2 + $0x40] sm:$0xff] %vm2411_vm10, %v2236_v33  ;;  %v13178_v33 = vld [vmem:[%s19067_s0 + $0x170] sm:$0xff] }
 0x124   :  { %2152 = vst.msk [vmem:[#allocation2 + $0x48] sm:$0xff] %vm2142_vm9, %v1969_v1  ;;  %928 = vrot.lane.b32.xlu1 %v779_v18, %s12352_s9  ;;  %512 = vrot.lane.b32.xlu0 %v13059_v16, %s12354_s10 }
 0x125   :  { %184 = vst.msk [vmem:[#allocation2 + $0xf8] sm:$0xff] %vm152_vm0, %v13178_v33 }
 0x126   :  { %v1443_v36 = vpop.permute.xlu1 %1442  ;;  %v1176_v38 = vpop.permute.xlu0 %1175 }
 0x127   :  { %1625 = vst.msk [vmem:[#allocation2 + $0x50] sm:$0xff] %vm1614_vm7, %v1443_v36 }
 0x128   :  { %1357 = vst.msk [vmem:[#allocation2 + $0x58] sm:$0xff] %vm1345_vm6, %v1176_v38  ;;  %1982 = vrot.lane.b32.xlu1 %v12796_v53, %s12357_s25  ;;  %1723 = vrot.lane.b32.xlu0 %v781_v29, %s12356_s22 }
 0x12a   :  { %v2503_v4 = vpop.permute.xlu1 %2502  ;;  %v2238_v45 = vpop.permute.xlu0 %2237 }
 0x12b   :  { %2687 = vst.msk [vmem:[#allocation2 + $0x40] sm:$0xff] %vm2678_vm11, %v2503_v4  ;;  %v788_v4 = vrot.slane %v12886_v23, 2 }
 0x12c   :  { %2421 = vst.msk [vmem:[#allocation2 + $0x48] sm:$0xff] %vm2411_vm10, %v2238_v45  ;;  %1189 = vrot.lane.b32.xlu1 %v12796_v53, %s12353_s18  ;;  %930 = vrot.lane.b32.xlu0 %v781_v29, %s12352_s9  ;;  %v784_v53 = vsel %vm731_vm1, %v782_v55, %v783_v56  ;;  %v370_v29 = vrot.slane %v12886_v23, 1  ;;  %v372_v45 = vrot.slane %v79_v44, 1 }
 0x12e   :  { %v1445_v48 = vpop.permute.xlu1 %1444  ;;  %v499_v49 = vpop.permute.xlu0 %498  ;;  %v13181_v1 = vsel %vm313_vm2, %v369_v24, %v370_v29  ;;  %v13205_v55 = vsel %vm313_vm2, %v370_v29, %v372_v45  ;;  %v82_v24 = vld [vmem:[%s19067_s0 + $0x130] sm:$0x3]  ;;  %v792_v29 = vrot.slane %v12942_v12, 2 }
 0x12f   :  { %1626 = vst.msk [vmem:[#allocation2 + $0x58] sm:$0xff] %vm1614_vm7, %v1445_v48  ;;  %19312 = vst [vmem:[#allocation30_spill] sm:$0xff] %v13181_v1 }
 0x130   :  { %679 = vst.msk [vmem:[#allocation2 + $0x60] sm:$0xff] %vm666_vm4, %v499_v49  ;;  %2251 = vrot.lane.b32.xlu1 %v13108_v47, %s12358_s11  ;;  %1984 = vrot.lane.b32.xlu0 %v12813_v61, %s12357_s25  ;;  %19313 = vst [vmem:[#allocation31_spill] sm:$0xff] %v13205_v55 }
 0x132   :  { %v2505_v60 = vpop.permute.xlu1 %2504  ;;  %v1710_v0 = vpop.permute.xlu0 %1709  ;;  %v2751_v3 = vld [vmem:[#allocation2 + $0x40] sm:$0xff] }
 0x133   :  { %2688 = vst.msk [vmem:[#allocation2 + $0x48] sm:$0xff] %vm2678_vm11, %v2505_v60  ;;  %10944 = vmatprep.mubr.msk.f32.mxu0 %vm2812_vm12, %v2751_v3  ;;  %v790_v60 = vrot.slane %v79_v44, 2 }
 0x134   :  { %1892 = vst.msk [vmem:[#allocation2 + $0x50] sm:$0xff] %vm1881_vm8, %v1710_v0  ;;  %1458 = vrot.lane.b32.xlu1 %v13108_v47, %s12355_s21  ;;  %1191 = vrot.lane.b32.xlu0 %v12813_v61, %s12353_s18 }
 0x136   :  { %v917_v7 = vpop.permute.xlu1 %916  ;;  %v501_v8 = vpop.permute.xlu0 %500 }
 0x137   :  { %1097 = vst.msk [vmem:[#allocation2 + $0x60] sm:$0xff] %vm1084_vm5, %v917_v7 }
 0x138   :  { %680 = vst.msk [vmem:[#allocation2 + $0x68] sm:$0xff] %vm666_vm4, %v501_v8  ;;  %2518 = vrot.lane.b32.xlu1 %v784_v53, %s12359_s20  ;;  %2253 = vrot.lane.b32.xlu0 %v13132_v6, %s12358_s11 }
 0x13a   :  { %v1971_v10 = vpop.permute.xlu1 %1970  ;;  %v1712_v37 = vpop.permute.xlu0 %1711  ;;  %v2752_v61 = vld [vmem:[#allocation2 + $0x48] sm:$0xff] }
 0x13b   :  { %2153 = vst.msk [vmem:[#allocation2 + $0x50] sm:$0xff] %vm2142_vm9, %v1971_v10  ;;  %10945 = vmatmul.mubr.msk.f32.gmra.mxu0 %vm2812_vm12, %v2752_v61 }
 0x13c   :  { %1893 = vst.msk [vmem:[#allocation2 + $0x58] sm:$0xff] %vm1881_vm8, %v1712_v37  ;;  %1460 = vrot.lane.b32.xlu1 %v13132_v6, %s12355_s21  ;;  %514 = vrot.lane.b32.xlu0 %v13108_v47, %s12354_s10 }
 0x13e   :  { %v1178_v15 = vpop.permute.xlu1 %1177  ;;  %v919_v18 = vpop.permute.xlu0 %918 }
 0x13f   :  { %1358 = vst.msk [vmem:[#allocation2 + $0x60] sm:$0xff] %vm1345_vm6, %v1178_v15  ;;  %v375_v15 = vrot.slane %v12959_v17, 1 }
 0x140   :  { %1098 = vst.msk [vmem:[#allocation2 + $0x68] sm:$0xff] %vm1084_vm5, %v919_v18  ;;  %2520 = vrot.lane.b32.xlu1 %v786_v14, %s12359_s20  ;;  %1725 = vrot.lane.b32.xlu0 %v784_v53, %s12356_s22 }
 0x142   :  { %v2240_v40 = vpop.permute.xlu1 %2239  ;;  %v1973_v20 = vpop.permute.xlu0 %1972 }
 0x143   :  { %2422 = vst.msk [vmem:[#allocation2 + $0x50] sm:$0xff] %vm2411_vm10, %v2240_v40 }
 0x144   :  { %2154 = vst.msk [vmem:[#allocation2 + $0x58] sm:$0xff] %vm2142_vm9, %v1973_v20  ;;  %932 = vrot.lane.b32.xlu1 %v784_v53, %s12352_s9  ;;  %516 = vrot.lane.b32.xlu0 %v13132_v6, %s12354_s10  ;;  %v791_v53 = vsel %vm731_vm1, %v788_v4, %v790_v60 }
 0x146   :  { %v1447_v21 = vpop.permute.xlu1 %1446  ;;  %v1180_v22 = vpop.permute.xlu0 %1179 }
 0x147   :  { %1627 = vst.msk [vmem:[#allocation2 + $0x60] sm:$0xff] %vm1614_vm7, %v1447_v21 }
 0x148   :  { %1359 = vst.msk [vmem:[#allocation2 + $0x68] sm:$0xff] %vm1345_vm6, %v1180_v22  ;;  %1986 = vrot.lane.b32.xlu1 %v12869_v32, %s12357_s25  ;;  %1727 = vrot.lane.b32.xlu0 %v786_v14, %s12356_s22 }
 0x14a   :  { %v2507_v30 = vpop.permute.xlu1 %2506  ;;  %v2242_v31 = vpop.permute.xlu0 %2241 }
 0x14b   :  { %2689 = vst.msk [vmem:[#allocation2 + $0x50] sm:$0xff] %vm2678_vm11, %v2507_v30  ;;  %v793_v30 = vrot.slane %v12959_v17, 2 }
 0x14c   :  { %2423 = vst.msk [vmem:[#allocation2 + $0x58] sm:$0xff] %vm2411_vm10, %v2242_v31  ;;  %1193 = vrot.lane.b32.xlu1 %v12869_v32, %s12353_s18  ;;  %934 = vrot.lane.b32.xlu0 %v786_v14, %s12352_s9  ;;  %v789_v32 = vsel %vm731_vm1, %v787_v25, %v788_v4  ;;  %v374_v14 = vrot.slane %v12942_v12, 1  ;;  %v377_v31 = vrot.slane %v82_v24, 1 }
 0x14e   :  { %v1449_v36 = vpop.permute.xlu1 %1448  ;;  %v503_v38 = vpop.permute.xlu0 %502  ;;  %v13242_v20 = vsel %vm313_vm2, %v374_v14, %v375_v15  ;;  %v13264_v25 = vsel %vm313_vm2, %v375_v15, %v377_v31  ;;  %v379_v15 = vrot.slane %v13015_v54, 1  ;;  %v85_v31 = vld [vmem:[%s19067_s0 + $0x148] sm:$0x3] }
 0x14f   :  { %1628 = vst.msk [vmem:[#allocation2 + $0x68] sm:$0xff] %vm1614_vm7, %v1449_v36  ;;  %19314 = vst [vmem:[#allocation32_spill] sm:$0xff] %v13242_v20 }
 0x150   :  { %681 = vst.msk [vmem:[#allocation2 + $0x70] sm:$0xff] %vm666_vm4, %v503_v38  ;;  %2255 = vrot.lane.b32.xlu1 %v13181_v1, %s12358_s11  ;;  %1988 = vrot.lane.b32.xlu0 %v12886_v23, %s12357_s25  ;;  %19315 = vst [vmem:[#allocation33_spill] sm:$0xff] %v13264_v25 }
 0x152   :  { %v2509_v48 = vpop.permute.xlu1 %2508  ;;  %v1714_v49 = vpop.permute.xlu0 %1713  ;;  %v2753_v51 = vld [vmem:[#allocation2 + $0x50] sm:$0xff] }
 0x153   :  { %2690 = vst.msk [vmem:[#allocation2 + $0x58] sm:$0xff] %vm2678_vm11, %v2509_v48  ;;  %10947 = vmatprep.mubr.msk.f32.mxu0 %vm2812_vm12, %v2753_v51  ;;  %v13277_v48 = vld [vmem:[%s19067_s0 + $0x1b8] sm:$0xff] }
 0x154   :  { %1894 = vst.msk [vmem:[#allocation2 + $0x60] sm:$0xff] %vm1881_vm8, %v1714_v49  ;;  %1462 = vrot.lane.b32.xlu1 %v13181_v1, %s12355_s21  ;;  %1195 = vrot.lane.b32.xlu0 %v12886_v23, %s12353_s18  ;;  %v795_v49 = vrot.slane %v82_v24, 2 }
 0x155   :  { %186 = vst.msk [vmem:[#allocation2 + $0x108] sm:$0xff] %vm152_vm0, %v13277_v48 }
 0x156   :  { %v921_v56 = vpop.permute.xlu1 %920  ;;  %v505_v57 = vpop.permute.xlu0 %504 }
 0x157   :  { %1099 = vst.msk [vmem:[#allocation2 + $0x70] sm:$0xff] %vm1084_vm5, %v921_v56 }
 0x158   :  { %682 = vst.msk [vmem:[#allocation2 + $0x78] sm:$0xff] %vm666_vm4, %v505_v57  ;;  %2522 = vrot.lane.b32.xlu1 %v789_v32, %s12359_s20  ;;  %2257 = vrot.lane.b32.xlu0 %v13205_v55, %s12358_s11 }
 0x15a   :  { %v1975_v0 = vpop.permute.xlu1 %1974  ;;  %v1716_v3 = vpop.permute.xlu0 %1715  ;;  %v2754_v23 = vld [vmem:[#allocation2 + $0x58] sm:$0xff] }
 0x15b   :  { %2155 = vst.msk [vmem:[#allocation2 + $0x60] sm:$0xff] %vm2142_vm9, %v1975_v0  ;;  %10948 = vmatmul.mubr.msk.f32.gmra.mxu0 %vm2812_vm12, %v2754_v23 }
 0x15c   :  { %1895 = vst.msk [vmem:[#allocation2 + $0x68] sm:$0xff] %vm1881_vm8, %v1716_v3  ;;  %1464 = vrot.lane.b32.xlu1 %v13205_v55, %s12355_s21  ;;  %518 = vrot.lane.b32.xlu0 %v13181_v1, %s12354_s10  ;;  %v796_v3 = vsel %vm731_vm1, %v793_v30, %v795_v49 }
 0x15e   :  { %v1182_v7 = vpop.permute.xlu1 %1181  ;;  %v923_v8 = vpop.permute.xlu0 %922 }
 0x15f   :  { %1360 = vst.msk [vmem:[#allocation2 + $0x70] sm:$0xff] %vm1345_vm6, %v1182_v7 }
 0x160   :  { %1100 = vst.msk [vmem:[#allocation2 + $0x78] sm:$0xff] %vm1084_vm5, %v923_v8  ;;  %2524 = vrot.lane.b32.xlu1 %v791_v53, %s12359_s20  ;;  %1729 = vrot.lane.b32.xlu0 %v789_v32, %s12356_s22  ;;  %v813_v8 = vrot.slane %v13277_v48, 2 }
 0x162   :  { %v2244_v9 = vpop.permute.xlu1 %2243  ;;  %v1977_v10 = vpop.permute.xlu0 %1976 }
 0x163   :  { %2424 = vst.msk [vmem:[#allocation2 + $0x60] sm:$0xff] %vm2411_vm10, %v2244_v9 }
 0x164   :  { %2156 = vst.msk [vmem:[#allocation2 + $0x68] sm:$0xff] %vm2142_vm9, %v1977_v10  ;;  %936 = vrot.lane.b32.xlu1 %v789_v32, %s12352_s9  ;;  %520 = vrot.lane.b32.xlu0 %v13205_v55, %s12354_s10  ;;  %v395_v32 = vrot.slane %v13277_v48, 1 }
 0x166   :  { %v1451_v37 = vpop.permute.xlu1 %1450  ;;  %v1184_v61 = vpop.permute.xlu0 %1183 }
 0x167   :  { %1629 = vst.msk [vmem:[#allocation2 + $0x70] sm:$0xff] %vm1614_vm7, %v1451_v37 }
 0x168   :  { %1361 = vst.msk [vmem:[#allocation2 + $0x78] sm:$0xff] %vm1345_vm6, %v1184_v61  ;;  %1990 = vrot.lane.b32.xlu1 %v12942_v12, %s12357_s25  ;;  %1731 = vrot.lane.b32.xlu0 %v791_v53, %s12356_s22 }
 0x16a   :  { %v2511_v18 = vpop.permute.xlu1 %2510  ;;  %v2246_v40 = vpop.permute.xlu0 %2245 }
 0x16b   :  { %2691 = vst.msk [vmem:[#allocation2 + $0x60] sm:$0xff] %vm2678_vm11, %v2511_v18  ;;  %v380_v18 = vrot.slane %v13032_v58, 1 }
 0x16c   :  { %2425 = vst.msk [vmem:[#allocation2 + $0x68] sm:$0xff] %vm2411_vm10, %v2246_v40  ;;  %1197 = vrot.lane.b32.xlu1 %v12942_v12, %s12353_s18  ;;  %938 = vrot.lane.b32.xlu0 %v791_v53, %s12352_s9  ;;  %v794_v12 = vsel %vm731_vm1, %v792_v29, %v793_v30 }
 0x16d   :  { %v13331_v24 = vsel %vm313_vm2, %v379_v15, %v380_v18  ;;  %v13389_v15 = vld [vmem:[%s19067_s0 + $0x1e0] sm:$0xff] }
 0x16e   :  { %v1453_v21 = vpop.permute.xlu1 %1452  ;;  %v507_v22 = vpop.permute.xlu0 %506  ;;  %19316 = vst [vmem:[#allocation34_spill] sm:$0xff] %v13331_v24  ;;  %189 = vst.msk [vmem:[#allocation2 + $0x120] sm:$0xff] %vm152_vm0, %v13389_v15 }
 0x16f   :  { %1630 = vst.msk [vmem:[#allocation2 + $0x78] sm:$0xff] %vm1614_vm7, %v1453_v21 }
 0x170   :  { %683 = vst.msk [vmem:[#allocation2 + $0x80] sm:$0xff] %vm666_vm4, %v507_v22  ;;  %2259 = vrot.lane.b32.xlu1 %v13242_v20, %s12358_s11  ;;  %1992 = vrot.lane.b32.xlu0 %v12959_v17, %s12357_s25  ;;  %v13323_v22 = vld [vmem:[%s19067_s0 + $0x1c8] sm:$0xff] }
 0x171   :  { %187 = vst.msk [vmem:[#allocation2 + $0x110] sm:$0xff] %vm152_vm0, %v13323_v22  ;;  %v399_v48 = vrot.slane %v13323_v22, 1 }
 0x172   :  { %v2513_v36 = vpop.permute.xlu1 %2512  ;;  %v1718_v38 = vpop.permute.xlu0 %1717  ;;  %v2755_v44 = vld [vmem:[#allocation2 + $0x60] sm:$0xff] }
 0x173   :  { %2692 = vst.msk [vmem:[#allocation2 + $0x68] sm:$0xff] %vm2678_vm11, %v2513_v36  ;;  %10950 = vmatprep.mubr.msk.f32.mxu0 %vm2812_vm12, %v2755_v44  ;;  %v13345_v36 = vld [vmem:[%s19067_s0 + $0x1d0] sm:$0xff]  ;;  %v798_v44 = vrot.slane %v13032_v58, 2 }
 0x174   :  { %1896 = vst.msk [vmem:[#allocation2 + $0x70] sm:$0xff] %vm1881_vm8, %v1718_v38  ;;  %1466 = vrot.lane.b32.xlu1 %v13242_v20, %s12355_s21  ;;  %1199 = vrot.lane.b32.xlu0 %v12959_v17, %s12353_s18  ;;  %v98_v17 = vld [vmem:[%s19067_s0 + $0x1b0] sm:$0xff]  ;;  %v797_v38 = vrot.slane %v13015_v54, 2 }
 0x175   :  { %v394_v51 = vrot.slane %v98_v17, 1  ;;  %185 = vst.msk [vmem:[#allocation2 + $0x100] sm:$0xff] %vm152_vm0, %v98_v17  ;;  %v812_v7 = vrot.slane %v98_v17, 2  ;;  %188 = vst.msk [vmem:[#allocation2 + $0x118] sm:$0xff] %vm152_vm0, %v13345_v36 }
 0x176   :  { %v925_v4 = vpop.permute.xlu1 %924  ;;  %v509_v45 = vpop.permute.xlu0 %508 }
 0x177   :  { %1101 = vst.msk [vmem:[#allocation2 + $0x80] sm:$0xff] %vm1084_vm5, %v925_v4  ;;  %v13289_v0 = vsel %vm313_vm2, %v394_v51, %v395_v32  ;;  %v13306_v37 = vsel %vm731_vm1, %v812_v7, %v813_v8 }
 0x178   :  { %684 = vst.msk [vmem:[#allocation2 + $0x88] sm:$0xff] %vm666_vm4, %v509_v45  ;;  %2526 = vrot.lane.b32.xlu1 %v794_v12, %s12359_s20  ;;  %2261 = vrot.lane.b32.xlu0 %v13264_v25, %s12358_s11 }
 0x17a   :  { %v1979_v56 = vpop.permute.xlu1 %1978  ;;  %v1720_v57 = vpop.permute.xlu0 %1719  ;;  %v2756_v60 = vld [vmem:[#allocation2 + $0x68] sm:$0xff] }
 0x17b   :  { %2157 = vst.msk [vmem:[#allocation2 + $0x70] sm:$0xff] %vm2142_vm9, %v1979_v56  ;;  %10951 = vmatmul.mubr.msk.f32.gmra.mxu0 %vm2812_vm12, %v2756_v60 }
 0x17c   :  { %1897 = vst.msk [vmem:[#allocation2 + $0x78] sm:$0xff] %vm1881_vm8, %v1720_v57  ;;  %1468 = vrot.lane.b32.xlu1 %v13264_v25, %s12355_s21  ;;  %522 = vrot.lane.b32.xlu0 %v13242_v20, %s12354_s10  ;;  %v800_v57 = vrot.slane %v85_v31, 2 }
 0x17e   :  { %v1186_v23 = vpop.permute.xlu1 %1185  ;;  %v927_v53 = vpop.permute.xlu0 %926 }
 0x17f   :  { %1362 = vst.msk [vmem:[#allocation2 + $0x80] sm:$0xff] %vm1345_vm6, %v1186_v23  ;;  %v801_v23 = vsel %vm731_vm1, %v798_v44, %v800_v57 }
 0x180   :  { %1102 = vst.msk [vmem:[#allocation2 + $0x88] sm:$0xff] %vm1084_vm5, %v927_v53  ;;  %2528 = vrot.lane.b32.xlu1 %v796_v3, %s12359_s20  ;;  %1733 = vrot.lane.b32.xlu0 %v794_v12, %s12356_s22 }
 0x182   :  { %v2248_v9 = vpop.permute.xlu1 %2247  ;;  %v1981_v10 = vpop.permute.xlu0 %1980 }
 0x183   :  { %2426 = vst.msk [vmem:[#allocation2 + $0x70] sm:$0xff] %vm2411_vm10, %v2248_v9 }
 0x184   :  { %2158 = vst.msk [vmem:[#allocation2 + $0x78] sm:$0xff] %vm2142_vm9, %v1981_v10  ;;  %940 = vrot.lane.b32.xlu1 %v794_v12, %s12352_s9  ;;  %524 = vrot.lane.b32.xlu0 %v13264_v25, %s12354_s10  ;;  %v382_v12 = vrot.slane %v85_v31, 1 }
 0x186   :  { %v1455_v61 = vpop.permute.xlu1 %1454  ;;  %v1188_v14 = vpop.permute.xlu0 %1187  ;;  %v13360_v49 = vsel %vm313_vm2, %v380_v18, %v382_v12  ;;  %v384_v18 = vrot.slane %v13088_v43, 1  ;;  %v88_v12 = vld [vmem:[%s19067_s0 + $0x160] sm:$0x3] }
 0x187   :  { %1631 = vst.msk [vmem:[#allocation2 + $0x80] sm:$0xff] %vm1614_vm7, %v1455_v61  ;;  %19317 = vst [vmem:[#allocation35_spill] sm:$0xff] %v13360_v49 }
 0x188   :  { %1363 = vst.msk [vmem:[#allocation2 + $0x88] sm:$0xff] %vm1345_vm6, %v1188_v14  ;;  %1994 = vrot.lane.b32.xlu1 %v13015_v54, %s12357_s25  ;;  %1735 = vrot.lane.b32.xlu0 %v796_v3, %s12356_s22 }
 0x18a   :  { %v2515_v40 = vpop.permute.xlu1 %2514  ;;  %v2250_v21 = vpop.permute.xlu0 %2249 }
 0x18b   :  { %2693 = vst.msk [vmem:[#allocation2 + $0x70] sm:$0xff] %vm2678_vm11, %v2515_v40  ;;  %v385_v40 = vrot.slane %v13105_v46, 1 }
 0x18c   :  { %2427 = vst.msk [vmem:[#allocation2 + $0x78] sm:$0xff] %vm2411_vm10, %v2250_v21  ;;  %1201 = vrot.lane.b32.xlu1 %v13015_v54, %s12353_s18  ;;  %942 = vrot.lane.b32.xlu0 %v796_v3, %s12352_s9  ;;  %v799_v54 = vsel %vm731_vm1, %v797_v38, %v798_v44 }
 0x18d   :  { %v13409_v31 = vsel %vm313_vm2, %v384_v18, %v385_v40 }
 0x18e   :  { %v1457_v29 = vpop.permute.xlu1 %1456  ;;  %v511_v30 = vpop.permute.xlu0 %510  ;;  %19318 = vst [vmem:[#allocation36_spill] sm:$0xff] %v13409_v31 }
 0x18f   :  { %1632 = vst.msk [vmem:[#allocation2 + $0x88] sm:$0xff] %vm1614_vm7, %v1457_v29 }
 0x190   :  { %685 = vst.msk [vmem:[#allocation2 + $0x90] sm:$0xff] %vm666_vm4, %v511_v30  ;;  %2263 = vrot.lane.b32.xlu1 %v13331_v24, %s12358_s11  ;;  %1996 = vrot.lane.b32.xlu0 %v13032_v58, %s12357_s25  ;;  %v13406_v30 = vld [vmem:[%s19067_s0 + $0x1e8] sm:$0xff] }
 0x191   :  { %190 = vst.msk [vmem:[#allocation2 + $0x128] sm:$0xff] %vm152_vm0, %v13406_v30 }
 0x192   :  { %v2517_v4 = vpop.permute.xlu1 %2516  ;;  %v1722_v45 = vpop.permute.xlu0 %1721  ;;  %v2757_v17 = vld [vmem:[#allocation2 + $0x70] sm:$0xff] }
 0x193   :  { %2694 = vst.msk [vmem:[#allocation2 + $0x78] sm:$0xff] %vm2678_vm11, %v2517_v4  ;;  %10953 = vmatprep.mubr.msk.f32.mxu0 %vm2812_vm12, %v2757_v17  ;;  %v802_v4 = vrot.slane %v13088_v43, 2  ;;  %v387_v17 = vrot.slane %v88_v12, 1 }
 0x194   :  { %1898 = vst.msk [vmem:[#allocation2 + $0x80] sm:$0xff] %vm1881_vm8, %v1722_v45  ;;  %1470 = vrot.lane.b32.xlu1 %v13331_v24, %s12355_s21  ;;  %1203 = vrot.lane.b32.xlu0 %v13032_v58, %s12353_s18  ;;  %v803_v45 = vrot.slane %v13105_v46, 2 }
 0x195   :  { %v13433_v57 = vsel %vm313_vm2, %v385_v40, %v387_v17 }
 0x196   :  { %v929_v51 = vpop.permute.xlu1 %928  ;;  %v513_v56 = vpop.permute.xlu0 %512  ;;  %19319 = vst [vmem:[#allocation37_spill] sm:$0xff] %v13433_v57 }
 0x197   :  { %1103 = vst.msk [vmem:[#allocation2 + $0x90] sm:$0xff] %vm1084_vm5, %v929_v51 }
 0x198   :  { %686 = vst.msk [vmem:[#allocation2 + $0x98] sm:$0xff] %vm666_vm4, %v513_v56  ;;  %2530 = vrot.lane.b32.xlu1 %v799_v54, %s12359_s20  ;;  %2265 = vrot.lane.b32.xlu0 %v13360_v49, %s12358_s11 }
 0x19a   :  { %v1983_v60 = vpop.permute.xlu1 %1982  ;;  %v1724_v3 = vpop.permute.xlu0 %1723  ;;  %v2758_v58 = vld [vmem:[#allocation2 + $0x78] sm:$0xff] }
 0x19b   :  { %2159 = vst.msk [vmem:[#allocation2 + $0x80] sm:$0xff] %vm2142_vm9, %v1983_v60  ;;  %10954 = vmatmul.mubr.msk.f32.gmra.mxu0 %vm2812_vm12, %v2758_v58  ;;  %v805_v58 = vrot.slane %v88_v12, 2 }
 0x19c   :  { %1899 = vst.msk [vmem:[#allocation2 + $0x88] sm:$0xff] %vm1881_vm8, %v1724_v3  ;;  %1472 = vrot.lane.b32.xlu1 %v13360_v49, %s12355_s21  ;;  %526 = vrot.lane.b32.xlu0 %v13331_v24, %s12354_s10 }
 0x19e   :  { %v1190_v53 = vpop.permute.xlu1 %1189  ;;  %v931_v7 = vpop.permute.xlu0 %930 }
 0x19f   :  { %1364 = vst.msk [vmem:[#allocation2 + $0x90] sm:$0xff] %vm1345_vm6, %v1190_v53 }
 0x1a0   :  { %1104 = vst.msk [vmem:[#allocation2 + $0x98] sm:$0xff] %vm1084_vm5, %v931_v7  ;;  %2532 = vrot.lane.b32.xlu1 %v801_v23, %s12359_s20  ;;  %1737 = vrot.lane.b32.xlu0 %v799_v54, %s12356_s22  ;;  %v806_v7 = vsel %vm731_vm1, %v803_v45, %v805_v58 }
 0x1a2   :  { %v2252_v9 = vpop.permute.xlu1 %2251  ;;  %v1985_v10 = vpop.permute.xlu0 %1984 }
 0x1a3   :  { %2428 = vst.msk [vmem:[#allocation2 + $0x80] sm:$0xff] %vm2411_vm10, %v2252_v9 }
 0x1a4   :  { %2160 = vst.msk [vmem:[#allocation2 + $0x88] sm:$0xff] %vm2142_vm9, %v1985_v10  ;;  %944 = vrot.lane.b32.xlu1 %v799_v54, %s12352_s9  ;;  %528 = vrot.lane.b32.xlu0 %v13360_v49, %s12354_s10 }
 0x1a6   :  { %v1459_v61 = vpop.permute.xlu1 %1458  ;;  %v1192_v14 = vpop.permute.xlu0 %1191 }
 0x1a7   :  { %1633 = vst.msk [vmem:[#allocation2 + $0x90] sm:$0xff] %vm1614_vm7, %v1459_v61 }
 0x1a8   :  { %1365 = vst.msk [vmem:[#allocation2 + $0x98] sm:$0xff] %vm1345_vm6, %v1192_v14  ;;  %1998 = vrot.lane.b32.xlu1 %v13088_v43, %s12357_s25  ;;  %1739 = vrot.lane.b32.xlu0 %v801_v23, %s12356_s22 }
 0x1aa   :  { %v2519_v21 = vpop.permute.xlu1 %2518  ;;  %v2254_v29 = vpop.permute.xlu0 %2253 }
 0x1ab   :  { %2695 = vst.msk [vmem:[#allocation2 + $0x80] sm:$0xff] %vm2678_vm11, %v2519_v21  ;;  %v13462_v21 = vld [vmem:[%s19067_s0 + $0x1f8] sm:$0xff] }
 0x1ac   :  { %2429 = vst.msk [vmem:[#allocation2 + $0x88] sm:$0xff] %vm2411_vm10, %v2254_v29  ;;  %1205 = vrot.lane.b32.xlu1 %v13088_v43, %s12353_s18  ;;  %946 = vrot.lane.b32.xlu0 %v801_v23, %s12352_s9  ;;  %v804_v43 = vsel %vm731_vm1, %v802_v4, %v803_v45  ;;  %v389_v29 = vrot.slane %v13161_v27, 1  ;;  %v13479_v4 = vld [vmem:[%s19067_s0 + $0x200] sm:$0xff] }
 0x1ad   :  { %191 = vst.msk [vmem:[#allocation2 + $0x130] sm:$0xff] %vm152_vm0, %v13462_v21  ;;  %192 = vst.msk [vmem:[#allocation2 + $0x138] sm:$0xff] %vm152_vm0, %v13479_v4 }
 0x1ae   :  { %v1461_v38 = vpop.permute.xlu1 %1460  ;;  %v515_v44 = vpop.permute.xlu0 %514 }
 0x1af   :  { %1634 = vst.msk [vmem:[#allocation2 + $0x98] sm:$0xff] %vm1614_vm7, %v1461_v38  ;;  %v390_v38 = vrot.slane %v13178_v33, 1 }
 0x1b0   :  { %687 = vst.msk [vmem:[#allocation2 + $0xa0] sm:$0xff] %vm666_vm4, %v515_v44  ;;  %2267 = vrot.lane.b32.xlu1 %v13409_v31, %s12358_s11  ;;  %2000 = vrot.lane.b32.xlu0 %v13105_v46, %s12357_s25 }
 0x1b1   :  { %v13482_v45 = vsel %vm313_vm2, %v389_v29, %v390_v38 }
 0x1b2   :  { %v2521_v54 = vpop.permute.xlu1 %2520  ;;  %v1726_v51 = vpop.permute.xlu0 %1725  ;;  %v2759_v56 = vld [vmem:[#allocation2 + $0x80] sm:$0xff]  ;;  %19320 = vst [vmem:[#allocation38_spill] sm:$0xff] %v13482_v45 }
 0x1b3   :  { %2696 = vst.msk [vmem:[#allocation2 + $0x88] sm:$0xff] %vm2678_vm11, %v2521_v54  ;;  %10956 = vmatprep.mubr.msk.f32.mxu0 %vm2812_vm12, %v2759_v56  ;;  %v807_v56 = vrot.slane %v13161_v27, 2 }
 0x1b4   :  { %1900 = vst.msk [vmem:[#allocation2 + $0x90] sm:$0xff] %vm1881_vm8, %v1726_v51  ;;  %1474 = vrot.lane.b32.xlu1 %v13409_v31, %s12355_s21  ;;  %1207 = vrot.lane.b32.xlu0 %v13105_v46, %s12353_s18  ;;  %v91_v51 = vld [vmem:[%s19067_s0 + $0x178] sm:$0x3] }
 0x1b6   :  { %v933_v60 = vpop.permute.xlu1 %932  ;;  %v517_v3 = vpop.permute.xlu0 %516 }
 0x1b7   :  { %1105 = vst.msk [vmem:[#allocation2 + $0xa0] sm:$0xff] %vm1084_vm5, %v933_v60  ;;  %v392_v60 = vrot.slane %v91_v51, 1 }
 0x1b8   :  { %688 = vst.msk [vmem:[#allocation2 + $0xa8] sm:$0xff] %vm666_vm4, %v517_v3  ;;  %2534 = vrot.lane.b32.xlu1 %v804_v43, %s12359_s20  ;;  %2269 = vrot.lane.b32.xlu0 %v13433_v57, %s12358_s11 }
 0x1ba   :  { %v1987_v23 = vpop.permute.xlu1 %1986  ;;  %v1728_v53 = vpop.permute.xlu0 %1727  ;;  %v2760_v46 = vld [vmem:[#allocation2 + $0x88] sm:$0xff] }
 0x1bb   :  { %2161 = vst.msk [vmem:[#allocation2 + $0x90] sm:$0xff] %vm2142_vm9, %v1987_v23  ;;  %10957 = vmatmul.mubr.msk.f32.gmra.mxu0 %vm2812_vm12, %v2760_v46 }
 0x1bc   :  { %1901 = vst.msk [vmem:[#allocation2 + $0x98] sm:$0xff] %vm1881_vm8, %v1728_v53  ;;  %1476 = vrot.lane.b32.xlu1 %v13433_v57, %s12355_s21  ;;  %530 = vrot.lane.b32.xlu0 %v13409_v31, %s12354_s10  ;;  %v13506_v53 = vsel %vm313_vm2, %v390_v38, %v392_v60 }
 0x1bd   :  { %19321 = vst [vmem:[#allocation39_spill] sm:$0xff] %v13506_v53 }
 0x1be   :  { %v1194_v9 = vpop.permute.xlu1 %1193  ;;  %v935_v10 = vpop.permute.xlu0 %934 }
 0x1bf   :  { %1366 = vst.msk [vmem:[#allocation2 + $0xa0] sm:$0xff] %vm1345_vm6, %v1194_v9  ;;  %v810_v9 = vrot.slane %v91_v51, 2  ;;  %v13541_v51 = vld [vmem:[%s19067_s0 + $0x210] sm:$0xff] }
 0x1c0   :  { %1106 = vst.msk [vmem:[#allocation2 + $0xa8] sm:$0xff] %vm1084_vm5, %v935_v10  ;;  %2536 = vrot.lane.b32.xlu1 %v806_v7, %s12359_s20  ;;  %1741 = vrot.lane.b32.xlu0 %v804_v43, %s12356_s22 }
 0x1c1   :  { %193 = vst.msk [vmem:[#allocation2 + $0x140] sm:$0xff] %vm152_vm0, %v13541_v51 }
 0x1c2   :  { %v2256_v61 = vpop.permute.xlu1 %2255  ;;  %v1989_v14 = vpop.permute.xlu0 %1988 }
 0x1c3   :  { %2430 = vst.msk [vmem:[#allocation2 + $0x90] sm:$0xff] %vm2411_vm10, %v2256_v61 }
 0x1c4   :  { %2162 = vst.msk [vmem:[#allocation2 + $0x98] sm:$0xff] %vm2142_vm9, %v1989_v14  ;;  %948 = vrot.lane.b32.xlu1 %v804_v43, %s12352_s9  ;;  %532 = vrot.lane.b32.xlu0 %v13433_v57, %s12354_s10  ;;  %v808_v43 = vrot.slane %v13178_v33, 2 }
 0x1c6   :  { %v1463_v18 = vpop.permute.xlu1 %1462  ;;  %v1196_v40 = vpop.permute.xlu0 %1195  ;;  %v811_v14 = vsel %vm731_vm1, %v808_v43, %v810_v9 }
 0x1c7   :  { %1635 = vst.msk [vmem:[#allocation2 + $0xa0] sm:$0xff] %vm1614_vm7, %v1463_v18 }
 0x1c8   :  { %1367 = vst.msk [vmem:[#allocation2 + $0xa8] sm:$0xff] %vm1345_vm6, %v1196_v40  ;;  %2002 = vrot.lane.b32.xlu1 %v13161_v27, %s12357_s25  ;;  %1743 = vrot.lane.b32.xlu0 %v806_v7, %s12356_s22 }
 0x1ca   :  { %v2523_v44 = vpop.permute.xlu1 %2522  ;;  %v2258_v12 = vpop.permute.xlu0 %2257 }
 0x1cb   :  { %2697 = vst.msk [vmem:[#allocation2 + $0x90] sm:$0xff] %vm2678_vm11, %v2523_v44  ;;  %v92_v44 = vld [vmem:[%s19067_s0 + $0x180] sm:$0xff] }
 0x1cc   :  { %2431 = vst.msk [vmem:[#allocation2 + $0x98] sm:$0xff] %vm2411_vm10, %v2258_v12  ;;  %1209 = vrot.lane.b32.xlu1 %v13161_v27, %s12353_s18  ;;  %950 = vrot.lane.b32.xlu0 %v806_v7, %s12352_s9  ;;  %v809_v27 = vsel %vm731_vm1, %v807_v56, %v808_v43  ;;  %v1412_v56 = vrot.slane %v92_v44, 1  ;;  %v1679_v9 = vrot.slane %v92_v44, 2 }
 0x1ce   :  { %v1465_v17 = vpop.permute.xlu1 %1464  ;;  %v519_v54 = vpop.permute.xlu0 %518 }
 0x1cf   :  { %1636 = vst.msk [vmem:[#allocation2 + $0xa8] sm:$0xff] %vm1614_vm7, %v1465_v17 }
 0x1d0   :  { %689 = vst.msk [vmem:[#allocation2 + $0xb0] sm:$0xff] %vm666_vm4, %v519_v54  ;;  %2271 = vrot.lane.b32.xlu1 %v13482_v45, %s12358_s11  ;;  %2004 = vrot.lane.b32.xlu0 %v13178_v33, %s12357_s25  ;;  %v93_v54 = vld [vmem:[%s19067_s0 + $0x188] sm:$0xff] }
 0x1d1   :  { %v1413_v43 = vrot.slane %v93_v54, 1 }
 0x1d2   :  { %v2525_v3 = vpop.permute.xlu1 %2524  ;;  %v1730_v58 = vpop.permute.xlu0 %1729  ;;  %v2761_v23 = vld [vmem:[#allocation2 + $0x90] sm:$0xff] }
 0x1d3   :  { %2698 = vst.msk [vmem:[#allocation2 + $0x98] sm:$0xff] %vm2678_vm11, %v2525_v3  ;;  %10959 = vmatprep.mubr.msk.f32.mxu0 %vm2812_vm12, %v2761_v23  ;;  %v13557_v23 = vsel %vm313_vm2, %v1412_v56, %v1413_v43 }
 0x1d4   :  { %1902 = vst.msk [vmem:[#allocation2 + $0xa0] sm:$0xff] %vm1881_vm8, %v1730_v58  ;;  %1478 = vrot.lane.b32.xlu1 %v13482_v45, %s12355_s21  ;;  %1211 = vrot.lane.b32.xlu0 %v13178_v33, %s12353_s18  ;;  %v13554_v58 = vld [vmem:[%s19067_s0 + $0x218] sm:$0xff]  ;;  %19322 = vst [vmem:[#allocation40_spill] sm:$0xff] %v13557_v23 }
 0x1d5   :  { %194 = vst.msk [vmem:[#allocation2 + $0x148] sm:$0xff] %vm152_vm0, %v13554_v58 }
 0x1d6   :  { %v937_v46 = vpop.permute.xlu1 %936  ;;  %v521_v7 = vpop.permute.xlu0 %520 }
 0x1d7   :  { %1107 = vst.msk [vmem:[#allocation2 + $0xb0] sm:$0xff] %vm1084_vm5, %v937_v46 }
 0x1d8   :  { %690 = vst.msk [vmem:[#allocation2 + $0xb8] sm:$0xff] %vm666_vm4, %v521_v7  ;;  %2538 = vrot.lane.b32.xlu1 %v809_v27, %s12359_s20  ;;  %2273 = vrot.lane.b32.xlu0 %v13506_v53, %s12358_s11  ;;  %v94_v7 = vld [vmem:[%s19067_s0 + $0x190] sm:$0x3] }
 0x1da   :  { %v1991_v10 = vpop.permute.xlu1 %1990  ;;  %v1732_v61 = vpop.permute.xlu0 %1731  ;;  %v2762_v33 = vld [vmem:[#allocation2 + $0x98] sm:$0xff] }
 0x1db   :  { %2163 = vst.msk [vmem:[#allocation2 + $0xa0] sm:$0xff] %vm2142_vm9, %v1991_v10  ;;  %10960 = vmatmul.mubr.msk.f32.gmra.mxu0 %vm2812_vm12, %v2762_v33  ;;  %v1680_v10 = vrot.slane %v93_v54, 2 }
 0x1dc   :  { %1903 = vst.msk [vmem:[#allocation2 + $0xa8] sm:$0xff] %vm1881_vm8, %v1732_v61  ;;  %1480 = vrot.lane.b32.xlu1 %v13506_v53, %s12355_s21  ;;  %534 = vrot.lane.b32.xlu0 %v13482_v45, %s12354_s10  ;;  %v1415_v61 = vrot.slane %v94_v7, 1 }
 0x1de   :  { %v1198_v18 = vpop.permute.xlu1 %1197  ;;  %v939_v40 = vpop.permute.xlu0 %938 }
 0x1df   :  { %1368 = vst.msk [vmem:[#allocation2 + $0xb0] sm:$0xff] %vm1345_vm6, %v1198_v18 }
 0x1e0   :  { %1108 = vst.msk [vmem:[#allocation2 + $0xb8] sm:$0xff] %vm1084_vm5, %v939_v40  ;;  %2540 = vrot.lane.b32.xlu1 %v811_v14, %s12359_s20  ;;  %1745 = vrot.lane.b32.xlu0 %v809_v27, %s12356_s22  ;;  %v1681_v40 = vsel %vm731_vm1, %v1679_v9, %v1680_v10 }
 0x1e2   :  { %v2260_v29 = vpop.permute.xlu1 %2259  ;;  %v1993_v38 = vpop.permute.xlu0 %1992 }
 0x1e3   :  { %2432 = vst.msk [vmem:[#allocation2 + $0xa0] sm:$0xff] %vm2411_vm10, %v2260_v29  ;;  %v13577_v29 = vsel %vm313_vm2, %v1413_v43, %v1415_v61  ;;  %v100_v43 = vld [vmem:[%s19067_s0 + $0x1c0] sm:$0x3] }
 0x1e4   :  { %2164 = vst.msk [vmem:[#allocation2 + $0xa8] sm:$0xff] %vm2142_vm9, %v1993_v38  ;;  %952 = vrot.lane.b32.xlu1 %v809_v27, %s12352_s9  ;;  %536 = vrot.lane.b32.xlu0 %v13506_v53, %s12354_s10  ;;  %19323 = vst [vmem:[#allocation41_spill] sm:$0xff] %v13577_v29 }
 0x1e6   :  { %v1467_v12 = vpop.permute.xlu1 %1466  ;;  %v1200_v17 = vpop.permute.xlu0 %1199 }
 0x1e7   :  { %1637 = vst.msk [vmem:[#allocation2 + $0xb0] sm:$0xff] %vm1614_vm7, %v1467_v12  ;;  %v1682_v12 = vrot.slane %v94_v7, 2 }
 0x1e8   :  { %1369 = vst.msk [vmem:[#allocation2 + $0xb8] sm:$0xff] %vm1345_vm6, %v1200_v17  ;;  %2006 = vrot.lane.b32.xlu1 %v92_v44, %s12357_s25  ;;  %1747 = vrot.lane.b32.xlu0 %v811_v14, %s12356_s22 }
 0x1ea   :  { %v2527_v60 = vpop.permute.xlu1 %2526  ;;  %v2262_v3 = vpop.permute.xlu0 %2261 }
 0x1eb   :  { %2699 = vst.msk [vmem:[#allocation2 + $0xa0] sm:$0xff] %vm2678_vm11, %v2527_v60  ;;  %v1683_v60 = vsel %vm731_vm1, %v1680_v10, %v1682_v12  ;;  %v815_v10 = vrot.slane %v100_v43, 2 }
 0x1ec   :  { %2433 = vst.msk [vmem:[#allocation2 + $0xa8] sm:$0xff] %vm2411_vm10, %v2262_v3  ;;  %1213 = vrot.lane.b32.xlu1 %v92_v44, %s12353_s18  ;;  %954 = vrot.lane.b32.xlu0 %v811_v14, %s12352_s9  ;;  %v397_v3 = vrot.slane %v100_v43, 1 }
 0x1ee   :  { %v1469_v27 = vpop.permute.xlu1 %1468  ;;  %v523_v46 = vpop.permute.xlu0 %522  ;;  %v398_v7 = vsel %vm313_vm2, %v395_v32, %v397_v3  ;;  %v13613_v32 = vld [vmem:[%s19067_s0 + $0x1a0] sm:$0xff] }
 0x1ef   :  { %1638 = vst.msk [vmem:[#allocation2 + $0xb8] sm:$0xff] %vm1614_vm7, %v1469_v27 }
 0x1f0   :  { %691 = vst.msk [vmem:[#allocation2 + $0xc0] sm:$0xff] %vm666_vm4, %v523_v46  ;;  %2275 = vrot.lane.b32.xlu1 %v13557_v23, %s12358_s11  ;;  %2008 = vrot.lane.b32.xlu0 %v93_v54, %s12357_s25 }
 0x1f2   :  { %v2529_v33 = vpop.permute.xlu1 %2528  ;;  %v1734_v14 = vpop.permute.xlu0 %1733  ;;  %v2763_v18 = vld [vmem:[#allocation2 + $0xa0] sm:$0xff] }
 0x1f3   :  { %2700 = vst.msk [vmem:[#allocation2 + $0xa8] sm:$0xff] %vm2678_vm11, %v2529_v33  ;;  %10962 = vmatprep.mubr.msk.f32.mxu0 %vm2812_vm12, %v2763_v18 }
 0x1f4   :  { %1904 = vst.msk [vmem:[#allocation2 + $0xb0] sm:$0xff] %vm1881_vm8, %v1734_v14  ;;  %1482 = vrot.lane.b32.xlu1 %v13557_v23, %s12355_s21  ;;  %1215 = vrot.lane.b32.xlu0 %v93_v54, %s12353_s18 }
 0x1f6   :  { %v941_v38 = vpop.permute.xlu1 %940  ;;  %v525_v44 = vpop.permute.xlu0 %524 }
 0x1f7   :  { %1109 = vst.msk [vmem:[#allocation2 + $0xc0] sm:$0xff] %vm1084_vm5, %v941_v38  ;;  %v2210_v38 = vrot.slane %v13613_v32, 1 }
 0x1f8   :  { %692 = vst.msk [vmem:[#allocation2 + $0xc8] sm:$0xff] %vm666_vm4, %v525_v44  ;;  %2542 = vrot.lane.b32.xlu1 %v1681_v40, %s12359_s20  ;;  %2277 = vrot.lane.b32.xlu0 %v13577_v29, %s12358_s11 }
 0x1fa   :  { %v1995_v17 = vpop.permute.xlu1 %1994  ;;  %v1736_v56 = vpop.permute.xlu0 %1735  ;;  %v2764_v54 = vld [vmem:[#allocation2 + $0xa8] sm:$0xff] }
 0x1fb   :  { %2165 = vst.msk [vmem:[#allocation2 + $0xb0] sm:$0xff] %vm2142_vm9, %v1995_v17  ;;  %10963 = vmatmul.mubr.msk.f32.gmra.mxu0 %vm2812_vm12, %v2764_v54  ;;  %v13638_v17 = vld [vmem:[%s19067_s0 + $0x230] sm:$0xff] }
 0x1fc   :  { %1905 = vst.msk [vmem:[#allocation2 + $0xb8] sm:$0xff] %vm1881_vm8, %v1736_v56  ;;  %1484 = vrot.lane.b32.xlu1 %v13577_v29, %s12355_s21  ;;  %538 = vrot.lane.b32.xlu0 %v13289_v0, %s12354_s10  ;;  %v95_v0 = vld [vmem:[%s19067_s0 + $0x198] sm:$0xff]  ;;  %v400_v56 = vrot.slane %v13345_v36, 1 }
 0x1fd   :  { %v2209_v18 = vrot.slane %v95_v0, 1  ;;  %196 = vst.msk [vmem:[#allocation2 + $0x158] sm:$0xff] %vm152_vm0, %v13638_v17  ;;  %v2476_v3 = vrot.slane %v95_v0, 2 }
 0x1fe   :  { %v1202_v27 = vpop.permute.xlu1 %1201  ;;  %v943_v46 = vpop.permute.xlu0 %942 }
 0x1ff   :  { %1370 = vst.msk [vmem:[#allocation2 + $0xc0] sm:$0xff] %vm1345_vm6, %v1202_v27  ;;  %v13654_v27 = vsel %vm313_vm2, %v399_v48, %v400_v56 }
 0x200   :  { %1110 = vst.msk [vmem:[#allocation2 + $0xc8] sm:$0xff] %vm1084_vm5, %v943_v46  ;;  %2544 = vrot.lane.b32.xlu1 %v1683_v60, %s12359_s20  ;;  %1749 = vrot.lane.b32.xlu0 %v1681_v40, %s12356_s22  ;;  %v816_v40 = vsel %vm731_vm1, %v813_v8, %v815_v10  ;;  %v2211_v8 = vsel %vm313_vm2, %v2209_v18, %v2210_v38  ;;  %19324 = vst [vmem:[#allocation42_spill] sm:$0xff] %v13654_v27  ;;  %v2477_v46 = vrot.slane %v13613_v32, 2 }
 0x202   :  { %v2264_v9 = vpop.permute.xlu1 %2263  ;;  %v1997_v61 = vpop.permute.xlu0 %1996 }
 0x203   :  { %2434 = vst.msk [vmem:[#allocation2 + $0xb0] sm:$0xff] %vm2411_vm10, %v2264_v9 }
 0x204   :  { %2166 = vst.msk [vmem:[#allocation2 + $0xb8] sm:$0xff] %vm2142_vm9, %v1997_v61  ;;  %956 = vrot.lane.b32.xlu1 %v13306_v37, %s12352_s9  ;;  %540 = vrot.lane.b32.xlu0 %v398_v7, %s12354_s10  ;;  %v13620_v37 = vld [vmem:[%s19067_s0 + $0x228] sm:$0xff] }
 0x205   :  { %195 = vst.msk [vmem:[#allocation2 + $0x150] sm:$0xff] %vm152_vm0, %v13620_v37 }
 0x206   :  { %v1471_v33 = vpop.permute.xlu1 %1470  ;;  %v1204_v14 = vpop.permute.xlu0 %1203 }
 0x207   :  { %1639 = vst.msk [vmem:[#allocation2 + $0xc0] sm:$0xff] %vm1614_vm7, %v1471_v33  ;;  %v103_v33 = vld [vmem:[%s19067_s0 + $0x1d8] sm:$0x3] }
 0x208   :  { %1371 = vst.msk [vmem:[#allocation2 + $0xc8] sm:$0xff] %vm1345_vm6, %v1204_v14  ;;  %2010 = vrot.lane.b32.xlu1 %v95_v0, %s12357_s25  ;;  %1751 = vrot.lane.b32.xlu0 %v1683_v60, %s12356_s22  ;;  %v97_v60 = vld [vmem:[%s19067_s0 + $0x1a8] sm:$0x3]  ;;  %v2478_v0 = vsel %vm731_vm1, %v2476_v3, %v2477_v46  ;;  %v820_v3 = vrot.slane %v103_v33, 2 }
 0x209   :  { %v2212_v7 = vrot.slane %v97_v60, 1  ;;  %v2479_v48 = vrot.slane %v97_v60, 2 }
 0x20a   :  { %v2531_v44 = vpop.permute.xlu1 %2530  ;;  %v2266_v12 = vpop.permute.xlu0 %2265 }
 0x20b   :  { %2701 = vst.msk [vmem:[#allocation2 + $0xb0] sm:$0xff] %vm2678_vm11, %v2531_v44  ;;  %v2213_v14 = vsel %vm313_vm2, %v2210_v38, %v2212_v7  ;;  %v817_v44 = vrot.slane %v13323_v22, 2 }
 0x20c   :  { %2435 = vst.msk [vmem:[#allocation2 + $0xb8] sm:$0xff] %vm2411_vm10, %v2266_v12  ;;  %1217 = vrot.lane.b32.xlu1 %v13323_v22, %s12353_s18  ;;  %958 = vrot.lane.b32.xlu0 %v816_v40, %s12352_s9  ;;  %v2480_v22 = vsel %vm731_vm1, %v2477_v46, %v2479_v48 }
 0x20e   :  { %v1473_v54 = vpop.permute.xlu1 %1472  ;;  %v527_v43 = vpop.permute.xlu0 %526 }
 0x20f   :  { %1640 = vst.msk [vmem:[#allocation2 + $0xc8] sm:$0xff] %vm1614_vm7, %v1473_v54 }
 0x210   :  { %693 = vst.msk [vmem:[#allocation2 + $0xd0] sm:$0xff] %vm666_vm4, %v527_v43  ;;  %2279 = vrot.lane.b32.xlu1 %v2211_v8, %s12358_s11  ;;  %2012 = vrot.lane.b32.xlu0 %v13613_v32, %s12357_s25  ;;  %v402_v32 = vrot.slane %v103_v33, 1  ;;  %v818_v8 = vrot.slane %v13345_v36, 2  ;;  %v13702_v33 = vld [vmem:[%s19067_s0 + $0x240] sm:$0xff] }
 0x211   :  { %197 = vst.msk [vmem:[#allocation2 + $0x160] sm:$0xff] %vm152_vm0, %v13702_v33 }
 0x212   :  { %v2533_v9 = vpop.permute.xlu1 %2532  ;;  %v1738_v61 = vpop.permute.xlu0 %1737  ;;  %v2765_v10 = vld [vmem:[#allocation2 + $0xb0] sm:$0xff]  ;;  %v13675_v12 = vsel %vm313_vm2, %v400_v56, %v402_v32  ;;  %v819_v56 = vsel %vm731_vm1, %v817_v44, %v818_v8  ;;  %v821_v46 = vsel %vm731_vm1, %v818_v8, %v820_v3 }
 0x213   :  { %2702 = vst.msk [vmem:[#allocation2 + $0xb8] sm:$0xff] %vm2678_vm11, %v2533_v9  ;;  %10965 = vmatprep.mubr.msk.f32.mxu0 %vm2812_vm12, %v2765_v10  ;;  %19325 = vst [vmem:[#allocation43_spill] sm:$0xff] %v13675_v12 }
 0x214   :  { %1906 = vst.msk [vmem:[#allocation2 + $0xc0] sm:$0xff] %vm1881_vm8, %v1738_v61  ;;  %1486 = vrot.lane.b32.xlu1 %v13654_v27, %s12355_s21  ;;  %1219 = vrot.lane.b32.xlu0 %v13345_v36, %s12353_s18 }
 0x216   :  { %v945_v18 = vpop.permute.xlu1 %944  ;;  %v529_v40 = vpop.permute.xlu0 %528 }
 0x217   :  { %1111 = vst.msk [vmem:[#allocation2 + $0xd0] sm:$0xff] %vm1084_vm5, %v945_v18 }
 0x218   :  { %694 = vst.msk [vmem:[#allocation2 + $0xd8] sm:$0xff] %vm666_vm4, %v529_v40  ;;  %2546 = vrot.lane.b32.xlu1 %v2478_v0, %s12359_s20  ;;  %2281 = vrot.lane.b32.xlu0 %v2213_v14, %s12358_s11  ;;  %v404_v0 = vrot.slane %v13389_v15, 1  ;;  %v405_v14 = vrot.slane %v13406_v30, 1  ;;  %v13719_v40 = vld [vmem:[%s19067_s0 + $0x248] sm:$0xff] }
 0x219   :  { %198 = vst.msk [vmem:[#allocation2 + $0x168] sm:$0xff] %vm152_vm0, %v13719_v40 }
 0x21a   :  { %v1999_v38 = vpop.permute.xlu1 %1998  ;;  %v1740_v54 = vpop.permute.xlu0 %1739  ;;  %v2766_v43 = vld [vmem:[#allocation2 + $0xb8] sm:$0xff]  ;;  %v13722_v44 = vsel %vm313_vm2, %v404_v0, %v405_v14 }
 0x21b   :  { %2167 = vst.msk [vmem:[#allocation2 + $0xc0] sm:$0xff] %vm2142_vm9, %v1999_v38  ;;  %10966 = vmatmul.mubr.msk.f32.gmra.mxu0 %vm2812_vm12, %v2766_v43  ;;  %19326 = vst [vmem:[#allocation44_spill] sm:$0xff] %v13722_v44  ;;  %v106_v38 = vld [vmem:[%s19067_s0 + $0x1f0] sm:$0x3]  ;;  %v823_v43 = vrot.slane %v13406_v30, 2 }
 0x21c   :  { %1907 = vst.msk [vmem:[#allocation2 + $0xc8] sm:$0xff] %vm1881_vm8, %v1740_v54  ;;  %1488 = vrot.lane.b32.xlu1 %v13675_v12, %s12355_s21  ;;  %542 = vrot.lane.b32.xlu0 %v13654_v27, %s12354_s10  ;;  %v822_v54 = vrot.slane %v13389_v15, 2 }
 0x21e   :  { %v1206_v36 = vpop.permute.xlu1 %1205  ;;  %v947_v60 = vpop.permute.xlu0 %946 }
 0x21f   :  { %1372 = vst.msk [vmem:[#allocation2 + $0xd0] sm:$0xff] %vm1345_vm6, %v1206_v36 }
 0x220   :  { %1112 = vst.msk [vmem:[#allocation2 + $0xd8] sm:$0xff] %vm1084_vm5, %v947_v60  ;;  %2548 = vrot.lane.b32.xlu1 %v2480_v22, %s12359_s20  ;;  %1753 = vrot.lane.b32.xlu0 %v819_v56, %s12356_s22  ;;  %v407_v22 = vrot.slane %v106_v38, 1 }
 0x222   :  { %v2268_v7 = vpop.permute.xlu1 %2267  ;;  %v2001_v9 = vpop.permute.xlu0 %2000  ;;  %v13746_v3 = vsel %vm313_vm2, %v405_v14, %v407_v22  ;;  %v410_v22 = vrot.slane %v13479_v4, 1 }
 0x223   :  { %2436 = vst.msk [vmem:[#allocation2 + $0xc0] sm:$0xff] %vm2411_vm10, %v2268_v7  ;;  %19327 = vst [vmem:[#allocation45_spill] sm:$0xff] %v13746_v3 }
 0x224   :  { %2168 = vst.msk [vmem:[#allocation2 + $0xc8] sm:$0xff] %vm2142_vm9, %v2001_v9  ;;  %960 = vrot.lane.b32.xlu1 %v819_v56, %s12352_s9  ;;  %544 = vrot.lane.b32.xlu0 %v13675_v12, %s12354_s10  ;;  %v4246_v12 = vld [vmem:[#allocation4 + $0xf0] sm:$0xff] }
 0x226   :  { %v1475_v61 = vpop.permute.xlu1 %1474  ;;  %v1208_v10 = vpop.permute.xlu0 %1207 }
 0x227   :  { %1641 = vst.msk [vmem:[#allocation2 + $0xd0] sm:$0xff] %vm1614_vm7, %v1475_v61 }
 0x228   :  { %1373 = vst.msk [vmem:[#allocation2 + $0xd8] sm:$0xff] %vm1345_vm6, %v1208_v10  ;;  %2014 = vrot.lane.b32.xlu1 %v13389_v15, %s12357_s25  ;;  %1755 = vrot.lane.b32.xlu0 %v821_v46, %s12356_s22 }
 0x22a   :  { %v2535_v32 = vpop.permute.xlu1 %2534  ;;  %v2270_v18 = vpop.permute.xlu0 %2269 }
 0x22b   :  { %2703 = vst.msk [vmem:[#allocation2 + $0xc0] sm:$0xff] %vm2678_vm11, %v2535_v32 }
 0x22c   :  { %2437 = vst.msk [vmem:[#allocation2 + $0xc8] sm:$0xff] %vm2411_vm10, %v2270_v18  ;;  %1221 = vrot.lane.b32.xlu1 %v13389_v15, %s12353_s18  ;;  %962 = vrot.lane.b32.xlu0 %v821_v46, %s12352_s9  ;;  %v824_v15 = vsel %vm731_vm1, %v822_v54, %v823_v43  ;;  %v825_v46 = vrot.slane %v106_v38, 2  ;;  %v13775_v54 = vld [vmem:[%s19067_s0 + $0x258] sm:$0xff] }
 0x22d   :  { %199 = vst.msk [vmem:[#allocation2 + $0x170] sm:$0xff] %vm152_vm0, %v13775_v54 }
 0x22e   :  { %v1477_v48 = vpop.permute.xlu1 %1476  ;;  %v531_v8 = vpop.permute.xlu0 %530  ;;  %v826_v0 = vsel %vm731_vm1, %v823_v43, %v825_v46  ;;  %v409_v43 = vrot.slane %v13462_v21, 1  ;;  %v109_v46 = vld [vmem:[%s19067_s0 + $0x208] sm:$0x3] }
 0x22f   :  { %1642 = vst.msk [vmem:[#allocation2 + $0xd8] sm:$0xff] %vm1614_vm7, %v1477_v48 }
 0x230   :  { %695 = vst.msk [vmem:[#allocation2 + $0xe0] sm:$0xff] %vm666_vm4, %v531_v8  ;;  %2283 = vrot.lane.b32.xlu1 %v13722_v44, %s12358_s11  ;;  %2016 = vrot.lane.b32.xlu0 %v13406_v30, %s12357_s25 }
 0x232   :  { %v2537_v56 = vpop.permute.xlu1 %2536  ;;  %v1742_v36 = vpop.permute.xlu0 %1741  ;;  %v2767_v60 = vld [vmem:[#allocation2 + $0xc0] sm:$0xff] }
 0x233   :  { %2704 = vst.msk [vmem:[#allocation2 + $0xc8] sm:$0xff] %vm2678_vm11, %v2537_v56  ;;  %10968 = vmatprep.mubr.msk.f32.mxu0 %vm2812_vm12, %v2767_v60  ;;  %v13792_v60 = vld [vmem:[%s19067_s0 + $0x260] sm:$0xff] }
 0x234   :  { %1908 = vst.msk [vmem:[#allocation2 + $0xd0] sm:$0xff] %vm1881_vm8, %v1742_v36  ;;  %1490 = vrot.lane.b32.xlu1 %v13722_v44, %s12355_s21  ;;  %1223 = vrot.lane.b32.xlu0 %v13406_v30, %s12353_s18 }
 0x235   :  { %200 = vst.msk [vmem:[#allocation2 + $0x178] sm:$0xff] %vm152_vm0, %v13792_v60 }
 0x236   :  { %v949_v7 = vpop.permute.xlu1 %948  ;;  %v533_v9 = vpop.permute.xlu0 %532 }
 0x237   :  { %1113 = vst.msk [vmem:[#allocation2 + $0xe0] sm:$0xff] %vm1084_vm5, %v949_v7 }
 0x238   :  { %696 = vst.msk [vmem:[#allocation2 + $0xe8] sm:$0xff] %vm666_vm4, %v533_v9  ;;  %2550 = vrot.lane.b32.xlu1 %v824_v15, %s12359_s20  ;;  %2285 = vrot.lane.b32.xlu0 %v13746_v3, %s12358_s11 }
 0x23a   :  { %v2003_v61 = vpop.permute.xlu1 %2002  ;;  %v1744_v10 = vpop.permute.xlu0 %1743  ;;  %v2768_v30 = vld [vmem:[#allocation2 + $0xc8] sm:$0xff] }
 0x23b   :  { %2169 = vst.msk [vmem:[#allocation2 + $0xd0] sm:$0xff] %vm2142_vm9, %v2003_v61  ;;  %10969 = vmatmul.mubr.msk.f32.gmra.mxu0 %vm2812_vm12, %v2768_v30  ;;  %v827_v61 = vrot.slane %v13462_v21, 2  ;;  %v412_v30 = vrot.slane %v109_v46, 1 }
 0x23c   :  { %1909 = vst.msk [vmem:[#allocation2 + $0xd8] sm:$0xff] %vm1881_vm8, %v1744_v10  ;;  %1492 = vrot.lane.b32.xlu1 %v13746_v3, %s12355_s21  ;;  %546 = vrot.lane.b32.xlu0 %v13722_v44, %s12354_s10  ;;  %v828_v10 = vrot.slane %v13479_v4, 2 }
 0x23e   :  { %v1210_v14 = vpop.permute.xlu1 %1209  ;;  %v951_v32 = vpop.permute.xlu0 %950 }
 0x23f   :  { %1374 = vst.msk [vmem:[#allocation2 + $0xe0] sm:$0xff] %vm1345_vm6, %v1210_v14 }
 0x240   :  { %1114 = vst.msk [vmem:[#allocation2 + $0xe8] sm:$0xff] %vm1084_vm5, %v951_v32  ;;  %2552 = vrot.lane.b32.xlu1 %v826_v0, %s12359_s20  ;;  %1757 = vrot.lane.b32.xlu0 %v824_v15, %s12356_s22 }
 0x242   :  { %v2272_v18 = vpop.permute.xlu1 %2271  ;;  %v2005_v48 = vpop.permute.xlu0 %2004 }
 0x243   :  { %2438 = vst.msk [vmem:[#allocation2 + $0xd0] sm:$0xff] %vm2411_vm10, %v2272_v18  ;;  %v13819_v18 = vsel %vm313_vm2, %v410_v22, %v412_v30  ;;  %v13848_v30 = vld [vmem:[%s19067_s0 + $0x270] sm:$0xff] }
 0x244   :  { %2170 = vst.msk [vmem:[#allocation2 + $0xd8] sm:$0xff] %vm2142_vm9, %v2005_v48  ;;  %964 = vrot.lane.b32.xlu1 %v824_v15, %s12352_s9  ;;  %548 = vrot.lane.b32.xlu0 %v13746_v3, %s12354_s10  ;;  %v13795_v15 = vsel %vm313_vm2, %v409_v43, %v410_v22  ;;  %19329 = vst [vmem:[#allocation47_spill] sm:$0xff] %v13819_v18 }
 0x245   :  { %19328 = vst [vmem:[#allocation46_spill] sm:$0xff] %v13795_v15  ;;  %201 = vst.msk [vmem:[#allocation2 + $0x180] sm:$0xff] %vm152_vm0, %v13848_v30 }
 0x246   :  { %v1479_v8 = vpop.permute.xlu1 %1478  ;;  %v1212_v38 = vpop.permute.xlu0 %1211 }
 0x247   :  { %1643 = vst.msk [vmem:[#allocation2 + $0xe0] sm:$0xff] %vm1614_vm7, %v1479_v8 }
 0x248   :  { %1375 = vst.msk [vmem:[#allocation2 + $0xe8] sm:$0xff] %vm1345_vm6, %v1212_v38  ;;  %2018 = vrot.lane.b32.xlu1 %v13462_v21, %s12357_s25  ;;  %1759 = vrot.lane.b32.xlu0 %v826_v0, %s12356_s22  ;;  %v830_v38 = vrot.slane %v109_v46, 2 }
 0x24a   :  { %v2539_v56 = vpop.permute.xlu1 %2538  ;;  %v2274_v36 = vpop.permute.xlu0 %2273  ;;  %v831_v22 = vsel %vm731_vm1, %v828_v10, %v830_v38 }
 0x24b   :  { %2705 = vst.msk [vmem:[#allocation2 + $0xd0] sm:$0xff] %vm2678_vm11, %v2539_v56 }
 0x24c   :  { %2439 = vst.msk [vmem:[#allocation2 + $0xd8] sm:$0xff] %vm2411_vm10, %v2274_v36  ;;  %1225 = vrot.lane.b32.xlu1 %v13462_v21, %s12353_s18  ;;  %966 = vrot.lane.b32.xlu0 %v826_v0, %s12352_s9  ;;  %v829_v21 = vsel %vm731_vm1, %v827_v61, %v828_v10 }
 0x24e   :  { %v1481_v7 = vpop.permute.xlu1 %1480  ;;  %v535_v9 = vpop.permute.xlu0 %534 }
 0x24f   :  { %1644 = vst.msk [vmem:[#allocation2 + $0xe8] sm:$0xff] %vm1614_vm7, %v1481_v7 }
 0x250   :  { %697 = vst.msk [vmem:[#allocation2 + $0xf0] sm:$0xff] %vm666_vm4, %v535_v9  ;;  %2287 = vrot.lane.b32.xlu1 %v13795_v15, %s12358_s11  ;;  %2020 = vrot.lane.b32.xlu0 %v13479_v4, %s12357_s25 }
 0x252   :  { %v2541_v0 = vpop.permute.xlu1 %2540  ;;  %v1746_v14 = vpop.permute.xlu0 %1745  ;;  %v2769_v32 = vld [vmem:[#allocation2 + $0xd0] sm:$0xff] }
 0x253   :  { %2706 = vst.msk [vmem:[#allocation2 + $0xd8] sm:$0xff] %vm2678_vm11, %v2541_v0  ;;  %10971 = vmatprep.mubr.msk.f32.mxu0 %vm2812_vm12, %v2769_v32  ;;  %v414_v0 = vrot.slane %v13541_v51, 1 }
 0x254   :  { %1910 = vst.msk [vmem:[#allocation2 + $0xe0] sm:$0xff] %vm1881_vm8, %v1746_v14  ;;  %1494 = vrot.lane.b32.xlu1 %v13795_v15, %s12355_s21  ;;  %1227 = vrot.lane.b32.xlu0 %v13479_v4, %s12353_s18  ;;  %v415_v14 = vrot.slane %v13554_v58, 1 }
 0x256   :  { %v953_v48 = vpop.permute.xlu1 %952  ;;  %v537_v8 = vpop.permute.xlu0 %536 }
 0x257   :  { %1115 = vst.msk [vmem:[#allocation2 + $0xf0] sm:$0xff] %vm1084_vm5, %v953_v48  ;;  %v13865_v48 = vld [vmem:[%s19067_s0 + $0x278] sm:$0xff] }
 0x258   :  { %698 = vst.msk [vmem:[#allocation2 + $0xf8] sm:$0xff] %vm666_vm4, %v537_v8  ;;  %2554 = vrot.lane.b32.xlu1 %v829_v21, %s12359_s20  ;;  %2289 = vrot.lane.b32.xlu0 %v13819_v18, %s12358_s11  ;;  %v13868_v8 = vsel %vm313_vm2, %v414_v0, %v415_v14 }
 0x259   :  { %19330 = vst [vmem:[#allocation48_spill] sm:$0xff] %v13868_v8  ;;  %202 = vst.msk [vmem:[#allocation2 + $0x188] sm:$0xff] %vm152_vm0, %v13865_v48 }
 0x25a   :  { %v2007_v43 = vpop.permute.xlu1 %2006  ;;  %v1748_v56 = vpop.permute.xlu0 %1747  ;;  %v2770_v4 = vld [vmem:[#allocation2 + $0xd8] sm:$0xff] }
 0x25b   :  { %2171 = vst.msk [vmem:[#allocation2 + $0xe0] sm:$0xff] %vm2142_vm9, %v2007_v43  ;;  %10972 = vmatmul.mubr.msk.f32.gmra.mxu0 %vm2812_vm12, %v2770_v4  ;;  %v832_v4 = vrot.slane %v13541_v51, 2 }
 0x25c   :  { %1911 = vst.msk [vmem:[#allocation2 + $0xe8] sm:$0xff] %vm1881_vm8, %v1748_v56  ;;  %1496 = vrot.lane.b32.xlu1 %v13819_v18, %s12355_s21  ;;  %550 = vrot.lane.b32.xlu0 %v13795_v15, %s12354_s10  ;;  %v112_v56 = vld [vmem:[%s19067_s0 + $0x220] sm:$0x3] }
 0x25e   :  { %v1214_v36 = vpop.permute.xlu1 %1213  ;;  %v955_v7 = vpop.permute.xlu0 %954 }
 0x25f   :  { %1376 = vst.msk [vmem:[#allocation2 + $0xf0] sm:$0xff] %vm1345_vm6, %v1214_v36  ;;  %v417_v36 = vrot.slane %v112_v56, 1 }
 0x260   :  { %1116 = vst.msk [vmem:[#allocation2 + $0xf8] sm:$0xff] %vm1084_vm5, %v955_v7  ;;  %2556 = vrot.lane.b32.xlu1 %v831_v22, %s12359_s20  ;;  %1761 = vrot.lane.b32.xlu0 %v829_v21, %s12356_s22 }
 0x262   :  { %v2276_v9 = vpop.permute.xlu1 %2275  ;;  %v2009_v46 = vpop.permute.xlu0 %2008 }
 0x263   :  { %2440 = vst.msk [vmem:[#allocation2 + $0xe0] sm:$0xff] %vm2411_vm10, %v2276_v9 }
 0x264   :  { %2172 = vst.msk [vmem:[#allocation2 + $0xe8] sm:$0xff] %vm2142_vm9, %v2009_v46  ;;  %968 = vrot.lane.b32.xlu1 %v829_v21, %s12352_s9  ;;  %552 = vrot.lane.b32.xlu0 %v13819_v18, %s12354_s10 }
 0x266   :  { %v1483_v61 = vpop.permute.xlu1 %1482  ;;  %v1216_v10 = vpop.permute.xlu0 %1215 }
 0x267   :  { %1645 = vst.msk [vmem:[#allocation2 + $0xf0] sm:$0xff] %vm1614_vm7, %v1483_v61  ;;  %v13892_v61 = vsel %vm313_vm2, %v415_v14, %v417_v36 }
 0x268   :  { %1377 = vst.msk [vmem:[#allocation2 + $0xf8] sm:$0xff] %vm1345_vm6, %v1216_v10  ;;  %2022 = vrot.lane.b32.xlu1 %v13541_v51, %s12357_s25  ;;  %1763 = vrot.lane.b32.xlu0 %v831_v22, %s12356_s22  ;;  %19331 = vst [vmem:[#allocation49_spill] sm:$0xff] %v13892_v61 }
 0x26a   :  { %v2543_v32 = vpop.permute.xlu1 %2542  ;;  %v2278_v21 = vpop.permute.xlu0 %2277 }
 0x26b   :  { %2707 = vst.msk [vmem:[#allocation2 + $0xe0] sm:$0xff] %vm2678_vm11, %v2543_v32  ;;  %v835_v32 = vrot.slane %v112_v56, 2 }
 0x26c   :  { %2441 = vst.msk [vmem:[#allocation2 + $0xe8] sm:$0xff] %vm2411_vm10, %v2278_v21  ;;  %1229 = vrot.lane.b32.xlu1 %v13541_v51, %s12353_s18  ;;  %970 = vrot.lane.b32.xlu0 %v831_v22, %s12352_s9  ;;  %v833_v22 = vrot.slane %v13554_v58, 2 }
 0x26e   :  { %v1485_v38 = vpop.permute.xlu1 %1484  ;;  %v539_v43 = vpop.permute.xlu0 %538  ;;  %v834_v51 = vsel %vm731_vm1, %v832_v4, %v833_v22  ;;  %v836_v14 = vsel %vm731_vm1, %v833_v22, %v835_v32  ;;  %v13938_v32 = vld [vmem:[%s19067_s0 + $0x290] sm:$0xff] }
 0x26f   :  { %1646 = vst.msk [vmem:[#allocation2 + $0xf8] sm:$0xff] %vm1614_vm7, %v1485_v38 }
 0x270   :  { %699 = vst.msk [vmem:[#allocation2 + $0x100] sm:$0xff] %vm666_vm4, %v539_v43  ;;  %2291 = vrot.lane.b32.xlu1 %v13868_v8, %s12358_s11  ;;  %2024 = vrot.lane.b32.xlu0 %v13554_v58, %s12357_s25 }
 0x271   :  { %204 = vst.msk [vmem:[#allocation2 + $0x198] sm:$0xff] %vm152_vm0, %v13938_v32 }
 0x272   :  { %v2545_v7 = vpop.permute.xlu1 %2544  ;;  %v1750_v9 = vpop.permute.xlu0 %1749  ;;  %v2771_v46 = vld [vmem:[#allocation2 + $0xe0] sm:$0xff] }
 0x273   :  { %2708 = vst.msk [vmem:[#allocation2 + $0xe8] sm:$0xff] %vm2678_vm11, %v2545_v7  ;;  %10974 = vmatprep.mubr.msk.f32.mxu0 %vm2812_vm12, %v2771_v46  ;;  %v419_v46 = vrot.slane %v13620_v37, 1 }
 0x274   :  { %1912 = vst.msk [vmem:[#allocation2 + $0xf0] sm:$0xff] %vm1881_vm8, %v1750_v9  ;;  %1498 = vrot.lane.b32.xlu1 %v13868_v8, %s12355_s21  ;;  %1231 = vrot.lane.b32.xlu0 %v13554_v58, %s12353_s18  ;;  %v13921_v9 = vld [vmem:[%s19067_s0 + $0x288] sm:$0xff] }
 0x275   :  { %203 = vst.msk [vmem:[#allocation2 + $0x190] sm:$0xff] %vm152_vm0, %v13921_v9 }
 0x276   :  { %v957_v10 = vpop.permute.xlu1 %956  ;;  %v541_v0 = vpop.permute.xlu0 %540 }
 0x277   :  { %1117 = vst.msk [vmem:[#allocation2 + $0x100] sm:$0xff] %vm1084_vm5, %v957_v10 }
 0x278   :  { %700 = vst.msk [vmem:[#allocation2 + $0x108] sm:$0xff] %vm666_vm4, %v541_v0  ;;  %2558 = vrot.lane.b32.xlu1 %v834_v51, %s12359_s20  ;;  %2293 = vrot.lane.b32.xlu0 %v13892_v61, %s12358_s11 }
 0x27a   :  { %v2011_v21 = vpop.permute.xlu1 %2010  ;;  %v1752_v38 = vpop.permute.xlu0 %1751  ;;  %v2772_v58 = vld [vmem:[#allocation2 + $0xe8] sm:$0xff] }
 0x27b   :  { %2173 = vst.msk [vmem:[#allocation2 + $0xf0] sm:$0xff] %vm2142_vm9, %v2011_v21  ;;  %10975 = vmatmul.mubr.msk.f32.gmra.mxu0 %vm2812_vm12, %v2772_v58 }
 0x27c   :  { %1913 = vst.msk [vmem:[#allocation2 + $0xf8] sm:$0xff] %vm1881_vm8, %v1752_v38  ;;  %1500 = vrot.lane.b32.xlu1 %v13892_v61, %s12355_s21  ;;  %554 = vrot.lane.b32.xlu0 %v13868_v8, %s12354_s10 }
 0x27e   :  { %v1218_v43 = vpop.permute.xlu1 %1217  ;;  %v959_v4 = vpop.permute.xlu0 %958 }
 0x27f   :  { %1378 = vst.msk [vmem:[#allocation2 + $0x100] sm:$0xff] %vm1345_vm6, %v1218_v43  ;;  %v115_v43 = vld [vmem:[%s19067_s0 + $0x238] sm:$0x3] }
 0x280   :  { %1118 = vst.msk [vmem:[#allocation2 + $0x108] sm:$0xff] %vm1084_vm5, %v959_v4  ;;  %2560 = vrot.lane.b32.xlu1 %v836_v14, %s12359_s20  ;;  %1765 = vrot.lane.b32.xlu0 %v834_v51, %s12356_s22  ;;  %v838_v4 = vrot.slane %v13638_v17, 2 }
 0x282   :  { %v2280_v56 = vpop.permute.xlu1 %2279  ;;  %v2013_v36 = vpop.permute.xlu0 %2012 }
 0x283   :  { %2442 = vst.msk [vmem:[#allocation2 + $0xf0] sm:$0xff] %vm2411_vm10, %v2280_v56  ;;  %v422_v56 = vrot.slane %v115_v43, 1 }
 0x284   :  { %2174 = vst.msk [vmem:[#allocation2 + $0xf8] sm:$0xff] %vm2142_vm9, %v2013_v36  ;;  %972 = vrot.lane.b32.xlu1 %v834_v51, %s12352_s9  ;;  %556 = vrot.lane.b32.xlu0 %v13892_v61, %s12354_s10  ;;  %v420_v51 = vrot.slane %v13638_v17, 1 }
 0x286   :  { %v1487_v22 = vpop.permute.xlu1 %1486  ;;  %v1220_v7 = vpop.permute.xlu0 %1219  ;;  %v13941_v21 = vsel %vm313_vm2, %v419_v46, %v420_v51  ;;  %v13965_v46 = vsel %vm313_vm2, %v420_v51, %v422_v56 }
 0x287   :  { %1647 = vst.msk [vmem:[#allocation2 + $0x100] sm:$0xff] %vm1614_vm7, %v1487_v22  ;;  %19332 = vst [vmem:[#allocation50_spill] sm:$0xff] %v13941_v21 }
 0x288   :  { %1379 = vst.msk [vmem:[#allocation2 + $0x108] sm:$0xff] %vm1345_vm6, %v1220_v7  ;;  %2026 = vrot.lane.b32.xlu1 %v13620_v37, %s12357_s25  ;;  %1767 = vrot.lane.b32.xlu0 %v836_v14, %s12356_s22  ;;  %19333 = vst [vmem:[#allocation51_spill] sm:$0xff] %v13965_v46 }
 0x28a   :  { %v2547_v10 = vpop.permute.xlu1 %2546  ;;  %v2282_v0 = vpop.permute.xlu0 %2281 }
 0x28b   :  { %2709 = vst.msk [vmem:[#allocation2 + $0xf0] sm:$0xff] %vm2678_vm11, %v2547_v10 }
 0x28c   :  { %2443 = vst.msk [vmem:[#allocation2 + $0xf8] sm:$0xff] %vm2411_vm10, %v2282_v0  ;;  %1233 = vrot.lane.b32.xlu1 %v13620_v37, %s12353_s18  ;;  %974 = vrot.lane.b32.xlu0 %v836_v14, %s12352_s9  ;;  %v837_v14 = vrot.slane %v13620_v37, 2 }
 0x28e   :  { %v1489_v38 = vpop.permute.xlu1 %1488  ;;  %v543_v58 = vpop.permute.xlu0 %542  ;;  %v839_v37 = vsel %vm731_vm1, %v837_v14, %v838_v4 }
 0x28f   :  { %1648 = vst.msk [vmem:[#allocation2 + $0x108] sm:$0xff] %vm1614_vm7, %v1489_v38  ;;  %v840_v38 = vrot.slane %v115_v43, 2 }
 0x290   :  { %701 = vst.msk [vmem:[#allocation2 + $0x110] sm:$0xff] %vm666_vm4, %v543_v58  ;;  %2295 = vrot.lane.b32.xlu1 %v13941_v21, %s12358_s11  ;;  %2028 = vrot.lane.b32.xlu0 %v13638_v17, %s12357_s25 }
 0x291   :  { %v841_v51 = vsel %vm731_vm1, %v838_v4, %v840_v38 }
 0x292   :  { %v2549_v36 = vpop.permute.xlu1 %2548  ;;  %v1754_v22 = vpop.permute.xlu0 %1753  ;;  %v2773_v7 = vld [vmem:[#allocation2 + $0xf0] sm:$0xff] }
 0x293   :  { %2710 = vst.msk [vmem:[#allocation2 + $0xf8] sm:$0xff] %vm2678_vm11, %v2549_v36  ;;  %10977 = vmatprep.mubr.msk.f32.mxu0 %vm2812_vm12, %v2773_v7 }
 0x294   :  { %1914 = vst.msk [vmem:[#allocation2 + $0x100] sm:$0xff] %vm1881_vm8, %v1754_v22  ;;  %1502 = vrot.lane.b32.xlu1 %v13941_v21, %s12355_s21  ;;  %1235 = vrot.lane.b32.xlu0 %v13638_v17, %s12353_s18 }
 0x296   :  { %v961_v10 = vpop.permute.xlu1 %960  ;;  %v545_v0 = vpop.permute.xlu0 %544 }
 0x297   :  { %1119 = vst.msk [vmem:[#allocation2 + $0x110] sm:$0xff] %vm1084_vm5, %v961_v10  ;;  %v13994_v10 = vld [vmem:[%s19067_s0 + $0x2a0] sm:$0xff] }
 0x298   :  { %702 = vst.msk [vmem:[#allocation2 + $0x118] sm:$0xff] %vm666_vm4, %v545_v0  ;;  %2562 = vrot.lane.b32.xlu1 %v839_v37, %s12359_s20  ;;  %2297 = vrot.lane.b32.xlu0 %v13965_v46, %s12358_s11  ;;  %v425_v0 = vrot.slane %v13719_v40, 1 }
 0x299   :  { %205 = vst.msk [vmem:[#allocation2 + $0x1a0] sm:$0xff] %vm152_vm0, %v13994_v10 }
 0x29a   :  { %v2015_v58 = vpop.permute.xlu1 %2014  ;;  %v1756_v36 = vpop.permute.xlu0 %1755  ;;  %v2774_v17 = vld [vmem:[#allocation2 + $0xf8] sm:$0xff] }
 0x29b   :  { %2175 = vst.msk [vmem:[#allocation2 + $0x100] sm:$0xff] %vm2142_vm9, %v2015_v58  ;;  %10978 = vmatmul.mubr.msk.f32.gmra.mxu0 %vm2812_vm12, %v2774_v17 }
 0x29c   :  { %1915 = vst.msk [vmem:[#allocation2 + $0x108] sm:$0xff] %vm1881_vm8, %v1756_v36  ;;  %1504 = vrot.lane.b32.xlu1 %v13965_v46, %s12355_s21  ;;  %558 = vrot.lane.b32.xlu0 %v13941_v21, %s12354_s10  ;;  %v14011_v36 = vld [vmem:[%s19067_s0 + $0x2a8] sm:$0xff] }
 0x29d   :  { %206 = vst.msk [vmem:[#allocation2 + $0x1a8] sm:$0xff] %vm152_vm0, %v14011_v36 }
 0x29e   :  { %v1222_v14 = vpop.permute.xlu1 %1221  ;;  %v963_v56 = vpop.permute.xlu0 %962 }
 0x29f   :  { %1380 = vst.msk [vmem:[#allocation2 + $0x110] sm:$0xff] %vm1345_vm6, %v1222_v14 }
 0x2a0   :  { %1120 = vst.msk [vmem:[#allocation2 + $0x118] sm:$0xff] %vm1084_vm5, %v963_v56  ;;  %2564 = vrot.lane.b32.xlu1 %v841_v51, %s12359_s20  ;;  %1769 = vrot.lane.b32.xlu0 %v839_v37, %s12356_s22 }
 0x2a2   :  { %v2284_v43 = vpop.permute.xlu1 %2283  ;;  %v2017_v22 = vpop.permute.xlu0 %2016 }
 0x2a3   :  { %2444 = vst.msk [vmem:[#allocation2 + $0x100] sm:$0xff] %vm2411_vm10, %v2284_v43  ;;  %v118_v43 = vld [vmem:[%s19067_s0 + $0x250] sm:$0x3] }
 0x2a4   :  { %2176 = vst.msk [vmem:[#allocation2 + $0x108] sm:$0xff] %vm2142_vm9, %v2017_v22  ;;  %976 = vrot.lane.b32.xlu1 %v839_v37, %s12352_s9  ;;  %560 = vrot.lane.b32.xlu0 %v13965_v46, %s12354_s10  ;;  %v424_v37 = vrot.slane %v13702_v33, 1  ;;  %v843_v22 = vrot.slane %v13719_v40, 2 }
 0x2a6   :  { %v1491_v4 = vpop.permute.xlu1 %1490  ;;  %v1224_v7 = vpop.permute.xlu0 %1223  ;;  %v14014_v17 = vsel %vm313_vm2, %v424_v37, %v425_v0 }
 0x2a7   :  { %1649 = vst.msk [vmem:[#allocation2 + $0x110] sm:$0xff] %vm1614_vm7, %v1491_v4  ;;  %19334 = vst [vmem:[#allocation52_spill] sm:$0xff] %v14014_v17  ;;  %v427_v4 = vrot.slane %v118_v43, 1 }
 0x2a8   :  { %1381 = vst.msk [vmem:[#allocation2 + $0x118] sm:$0xff] %vm1345_vm6, %v1224_v7  ;;  %2030 = vrot.lane.b32.xlu1 %v13702_v33, %s12357_s25  ;;  %1771 = vrot.lane.b32.xlu0 %v841_v51, %s12356_s22 }
 0x2aa   :  { %v2551_v38 = vpop.permute.xlu1 %2550  ;;  %v2286_v58 = vpop.permute.xlu0 %2285 }
 0x2ab   :  { %2711 = vst.msk [vmem:[#allocation2 + $0x100] sm:$0xff] %vm2678_vm11, %v2551_v38 }
 0x2ac   :  { %2445 = vst.msk [vmem:[#allocation2 + $0x108] sm:$0xff] %vm2411_vm10, %v2286_v58  ;;  %1237 = vrot.lane.b32.xlu1 %v13702_v33, %s12353_s18  ;;  %978 = vrot.lane.b32.xlu0 %v841_v51, %s12352_s9  ;;  %v842_v51 = vrot.slane %v13702_v33, 2  ;;  %v14038_v58 = vsel %vm313_vm2, %v425_v0, %v427_v4 }
 0x2ad   :  { %19335 = vst [vmem:[#allocation53_spill] sm:$0xff] %v14038_v58 }
 0x2ae   :  { %v1493_v14 = vpop.permute.xlu1 %1492  ;;  %v547_v56 = vpop.permute.xlu0 %546  ;;  %v844_v33 = vsel %vm731_vm1, %v842_v51, %v843_v22 }
 0x2af   :  { %1650 = vst.msk [vmem:[#allocation2 + $0x118] sm:$0xff] %vm1614_vm7, %v1493_v14 }
 0x2b0   :  { %703 = vst.msk [vmem:[#allocation2 + $0x120] sm:$0xff] %vm666_vm4, %v547_v56  ;;  %2299 = vrot.lane.b32.xlu1 %v14014_v17, %s12358_s11  ;;  %2032 = vrot.lane.b32.xlu0 %v13719_v40, %s12357_s25 }
 0x2b2   :  { %v2553_v7 = vpop.permute.xlu1 %2552  ;;  %v1758_v37 = vpop.permute.xlu0 %1757  ;;  %v2775_v38 = vld [vmem:[#allocation2 + $0x100] sm:$0xff] }
 0x2b3   :  { %2712 = vst.msk [vmem:[#allocation2 + $0x108] sm:$0xff] %vm2678_vm11, %v2553_v7  ;;  %10980 = vmatprep.mubr.msk.f32.mxu1 %vm2812_vm12, %v2775_v38  ;;  %v845_v7 = vrot.slane %v118_v43, 2 }
 0x2b4   :  { %1916 = vst.msk [vmem:[#allocation2 + $0x110] sm:$0xff] %vm1881_vm8, %v1758_v37  ;;  %1506 = vrot.lane.b32.xlu1 %v14014_v17, %s12355_s21  ;;  %1239 = vrot.lane.b32.xlu0 %v13719_v40, %s12353_s18 }
 0x2b5   :  { %v846_v0 = vsel %vm731_vm1, %v843_v22, %v845_v7  ;;  %v14067_v7 = vld [vmem:[%s19067_s0 + $0x2b8] sm:$0xff] }
 0x2b6   :  { %v965_v14 = vpop.permute.xlu1 %964  ;;  %v549_v56 = vpop.permute.xlu0 %548  ;;  %207 = vst.msk [vmem:[#allocation2 + $0x1b0] sm:$0xff] %vm152_vm0, %v14067_v7 }
 0x2b7   :  { %1121 = vst.msk [vmem:[#allocation2 + $0x120] sm:$0xff] %vm1084_vm5, %v965_v14 }
 0x2b8   :  { %704 = vst.msk [vmem:[#allocation2 + $0x128] sm:$0xff] %vm666_vm4, %v549_v56  ;;  %2566 = vrot.lane.b32.xlu1 %v844_v33, %s12359_s20  ;;  %2301 = vrot.lane.b32.xlu0 %v14038_v58, %s12358_s11 }
 0x2ba   :  { %v2019_v37 = vpop.permute.xlu1 %2018  ;;  %v1760_v38 = vpop.permute.xlu0 %1759  ;;  %v2776_v40 = vld [vmem:[#allocation2 + $0x108] sm:$0xff] }
 0x2bb   :  { %2177 = vst.msk [vmem:[#allocation2 + $0x110] sm:$0xff] %vm2142_vm9, %v2019_v37  ;;  %10981 = vmatmul.mubr.msk.f32.vlgmr.msra.gmra.mxu1 %vm2812_vm12, %v2776_v40  ;;  %v430_v37 = vrot.slane %v13792_v60, 1 }
 0x2bc   :  { %1917 = vst.msk [vmem:[#allocation2 + $0x118] sm:$0xff] %vm1881_vm8, %v1760_v38  ;;  %1508 = vrot.lane.b32.xlu1 %v14038_v58, %s12355_s21  ;;  %562 = vrot.lane.b32.xlu0 %v14014_v17, %s12354_s10 }
 0x2be   :  { %v1226_v51 = vpop.permute.xlu1 %1225  ;;  %v967_v4 = vpop.permute.xlu0 %966 }
 0x2bf   :  { %1382 = vst.msk [vmem:[#allocation2 + $0x120] sm:$0xff] %vm1345_vm6, %v1226_v51  ;;  %v14084_v51 = vld [vmem:[%s19067_s0 + $0x2c0] sm:$0xff] }
 0x2c0   :  { %1122 = vst.msk [vmem:[#allocation2 + $0x128] sm:$0xff] %vm1084_vm5, %v967_v4  ;;  %2568 = vrot.lane.b32.xlu1 %v846_v0, %s12359_s20  ;;  %1773 = vrot.lane.b32.xlu0 %v844_v33, %s12356_s22 }
 0x2c1   :  { %208 = vst.msk [vmem:[#allocation2 + $0x1b8] sm:$0xff] %vm152_vm0, %v14084_v51 }
 0x2c2   :  { %v2288_v43 = vpop.permute.xlu1 %2287  ;;  %v2021_v14 = vpop.permute.xlu0 %2020 }
 0x2c3   :  { %2446 = vst.msk [vmem:[#allocation2 + $0x110] sm:$0xff] %vm2411_vm10, %v2288_v43 }
 0x2c4   :  { %2178 = vst.msk [vmem:[#allocation2 + $0x118] sm:$0xff] %vm2142_vm9, %v2021_v14  ;;  %980 = vrot.lane.b32.xlu1 %v844_v33, %s12352_s9  ;;  %564 = vrot.lane.b32.xlu0 %v14038_v58, %s12354_s10  ;;  %v429_v33 = vrot.slane %v13775_v54, 1 }
 0x2c6   :  { %v1495_v22 = vpop.permute.xlu1 %1494  ;;  %v1228_v56 = vpop.permute.xlu0 %1227  ;;  %v14087_v4 = vsel %vm313_vm2, %v429_v33, %v430_v37 }
 0x2c7   :  { %1651 = vst.msk [vmem:[#allocation2 + $0x120] sm:$0xff] %vm1614_vm7, %v1495_v22  ;;  %19336 = vst [vmem:[#allocation54_spill] sm:$0xff] %v14087_v4  ;;  %v121_v22 = vld [vmem:[%s19067_s0 + $0x268] sm:$0x3] }
 0x2c8   :  { %1383 = vst.msk [vmem:[#allocation2 + $0x128] sm:$0xff] %vm1345_vm6, %v1228_v56  ;;  %2034 = vrot.lane.b32.xlu1 %v13775_v54, %s12357_s25  ;;  %1775 = vrot.lane.b32.xlu0 %v846_v0, %s12356_s22  ;;  %v848_v56 = vrot.slane %v13792_v60, 2  ;;  %v432_v33 = vrot.slane %v121_v22, 1 }
 0x2ca   :  { %v2555_v38 = vpop.permute.xlu1 %2554  ;;  %v2290_v40 = vpop.permute.xlu0 %2289 }
 0x2cb   :  { %2713 = vst.msk [vmem:[#allocation2 + $0x110] sm:$0xff] %vm2678_vm11, %v2555_v38 }
 0x2cc   :  { %2447 = vst.msk [vmem:[#allocation2 + $0x118] sm:$0xff] %vm2411_vm10, %v2290_v40  ;;  %1241 = vrot.lane.b32.xlu1 %v13775_v54, %s12353_s18  ;;  %982 = vrot.lane.b32.xlu0 %v846_v0, %s12352_s9  ;;  %v847_v0 = vrot.slane %v13775_v54, 2 }
 0x2ce   :  { %v1497_v43 = vpop.permute.xlu1 %1496  ;;  %v551_v14 = vpop.permute.xlu0 %550  ;;  %v849_v54 = vsel %vm731_vm1, %v847_v0, %v848_v56 }
 0x2cf   :  { %1652 = vst.msk [vmem:[#allocation2 + $0x128] sm:$0xff] %vm1614_vm7, %v1497_v43  ;;  %v14111_v43 = vsel %vm313_vm2, %v430_v37, %v432_v33 }
 0x2d0   :  { %705 = vst.msk [vmem:[#allocation2 + $0x130] sm:$0xff] %vm666_vm4, %v551_v14  ;;  %2303 = vrot.lane.b32.xlu1 %v14087_v4, %s12358_s11  ;;  %2036 = vrot.lane.b32.xlu0 %v13792_v60, %s12357_s25  ;;  %19337 = vst [vmem:[#allocation55_spill] sm:$0xff] %v14111_v43 }
 0x2d2   :  { %v2557_v38 = vpop.permute.xlu1 %2556  ;;  %v1762_v40 = vpop.permute.xlu0 %1761  ;;  %v2777_v58 = vld [vmem:[#allocation2 + $0x110] sm:$0xff] }
 0x2d3   :  { %2714 = vst.msk [vmem:[#allocation2 + $0x118] sm:$0xff] %vm2678_vm11, %v2557_v38  ;;  %10983 = vmatprep.mubr.msk.f32.mxu1 %vm2812_vm12, %v2777_v58  ;;  %v850_v58 = vrot.slane %v121_v22, 2 }
 0x2d4   :  { %1918 = vst.msk [vmem:[#allocation2 + $0x120] sm:$0xff] %vm1881_vm8, %v1762_v40  ;;  %1510 = vrot.lane.b32.xlu1 %v14087_v4, %s12355_s21  ;;  %1243 = vrot.lane.b32.xlu0 %v13792_v60, %s12353_s18 }
 0x2d6   :  { %v969_v14 = vpop.permute.xlu1 %968  ;;  %v553_v17 = vpop.permute.xlu0 %552 }
 0x2d7   :  { %1123 = vst.msk [vmem:[#allocation2 + $0x130] sm:$0xff] %vm1084_vm5, %v969_v14 }
 0x2d8   :  { %706 = vst.msk [vmem:[#allocation2 + $0x138] sm:$0xff] %vm666_vm4, %v553_v17  ;;  %2570 = vrot.lane.b32.xlu1 %v849_v54, %s12359_s20  ;;  %2305 = vrot.lane.b32.xlu0 %v14111_v43, %s12358_s11  ;;  %v851_v17 = vsel %vm731_vm1, %v848_v56, %v850_v58  ;;  %v14140_v58 = vld [vmem:[%s19067_s0 + $0x2d0] sm:$0xff] }
 0x2d9   :  { %209 = vst.msk [vmem:[#allocation2 + $0x1c0] sm:$0xff] %vm152_vm0, %v14140_v58 }
 0x2da   :  { %v2023_v38 = vpop.permute.xlu1 %2022  ;;  %v1764_v40 = vpop.permute.xlu0 %1763  ;;  %v2778_v60 = vld [vmem:[#allocation2 + $0x118] sm:$0xff] }
 0x2db   :  { %2179 = vst.msk [vmem:[#allocation2 + $0x120] sm:$0xff] %vm2142_vm9, %v2023_v38  ;;  %10984 = vmatmul.mubr.msk.f32.gmra.mxu1 %vm2812_vm12, %v2778_v60  ;;  %v435_v38 = vrot.slane %v13865_v48, 1 }
 0x2dc   :  { %1919 = vst.msk [vmem:[#allocation2 + $0x128] sm:$0xff] %vm1881_vm8, %v1764_v40  ;;  %1512 = vrot.lane.b32.xlu1 %v14111_v43, %s12355_s21  ;;  %566 = vrot.lane.b32.xlu0 %v14087_v4, %s12354_s10 }
 0x2de   :  { %v1230_v37 = vpop.permute.xlu1 %1229  ;;  %v971_v0 = vpop.permute.xlu0 %970 }
 0x2df   :  { %1384 = vst.msk [vmem:[#allocation2 + $0x130] sm:$0xff] %vm1345_vm6, %v1230_v37  ;;  %v14157_v37 = vld [vmem:[%s19067_s0 + $0x2d8] sm:$0xff] }
 0x2e0   :  { %1124 = vst.msk [vmem:[#allocation2 + $0x138] sm:$0xff] %vm1084_vm5, %v971_v0  ;;  %2572 = vrot.lane.b32.xlu1 %v851_v17, %s12359_s20  ;;  %1777 = vrot.lane.b32.xlu0 %v849_v54, %s12356_s22 }
 0x2e1   :  { %210 = vst.msk [vmem:[#allocation2 + $0x1c8] sm:$0xff] %vm152_vm0, %v14157_v37 }
 0x2e2   :  { %v2292_v22 = vpop.permute.xlu1 %2291  ;;  %v2025_v33 = vpop.permute.xlu0 %2024 }
 0x2e3   :  { %2448 = vst.msk [vmem:[#allocation2 + $0x120] sm:$0xff] %vm2411_vm10, %v2292_v22 }
 0x2e4   :  { %2180 = vst.msk [vmem:[#allocation2 + $0x128] sm:$0xff] %vm2142_vm9, %v2025_v33  ;;  %984 = vrot.lane.b32.xlu1 %v849_v54, %s12352_s9  ;;  %568 = vrot.lane.b32.xlu0 %v14111_v43, %s12354_s10  ;;  %v434_v54 = vrot.slane %v13848_v30, 1 }
 0x2e6   :  { %v1499_v56 = vpop.permute.xlu1 %1498  ;;  %v1232_v14 = vpop.permute.xlu0 %1231  ;;  %v14160_v0 = vsel %vm313_vm2, %v434_v54, %v435_v38 }
 0x2e7   :  { %1653 = vst.msk [vmem:[#allocation2 + $0x130] sm:$0xff] %vm1614_vm7, %v1499_v56  ;;  %19338 = vst [vmem:[#allocation56_spill] sm:$0xff] %v14160_v0  ;;  %v124_v56 = vld [vmem:[%s19067_s0 + $0x280] sm:$0x3] }
 0x2e8   :  { %1385 = vst.msk [vmem:[#allocation2 + $0x138] sm:$0xff] %vm1345_vm6, %v1232_v14  ;;  %2038 = vrot.lane.b32.xlu1 %v13848_v30, %s12357_s25  ;;  %1779 = vrot.lane.b32.xlu0 %v851_v17, %s12356_s22  ;;  %v853_v14 = vrot.slane %v13865_v48, 2  ;;  %v437_v54 = vrot.slane %v124_v56, 1 }
 0x2ea   :  { %v2559_v40 = vpop.permute.xlu1 %2558  ;;  %v2294_v60 = vpop.permute.xlu0 %2293 }
 0x2eb   :  { %2715 = vst.msk [vmem:[#allocation2 + $0x120] sm:$0xff] %vm2678_vm11, %v2559_v40 }
 0x2ec   :  { %2449 = vst.msk [vmem:[#allocation2 + $0x128] sm:$0xff] %vm2411_vm10, %v2294_v60  ;;  %1245 = vrot.lane.b32.xlu1 %v13848_v30, %s12353_s18  ;;  %986 = vrot.lane.b32.xlu0 %v851_v17, %s12352_s9  ;;  %v852_v17 = vrot.slane %v13848_v30, 2 }
 0x2ee   :  { %v1501_v22 = vpop.permute.xlu1 %1500  ;;  %v555_v33 = vpop.permute.xlu0 %554  ;;  %v854_v30 = vsel %vm731_vm1, %v852_v17, %v853_v14 }
 0x2ef   :  { %1654 = vst.msk [vmem:[#allocation2 + $0x138] sm:$0xff] %vm1614_vm7, %v1501_v22  ;;  %v14184_v22 = vsel %vm313_vm2, %v435_v38, %v437_v54 }
 0x2f0   :  { %707 = vst.msk [vmem:[#allocation2 + $0x140] sm:$0xff] %vm666_vm4, %v555_v33  ;;  %2307 = vrot.lane.b32.xlu1 %v14160_v0, %s12358_s11  ;;  %2040 = vrot.lane.b32.xlu0 %v13865_v48, %s12357_s25  ;;  %19339 = vst [vmem:[#allocation57_spill] sm:$0xff] %v14184_v22 }
 0x2f2   :  { %v2561_v40 = vpop.permute.xlu1 %2560  ;;  %v1766_v60 = vpop.permute.xlu0 %1765  ;;  %v2779_v43 = vld [vmem:[#allocation2 + $0x120] sm:$0xff] }
 0x2f3   :  { %2716 = vst.msk [vmem:[#allocation2 + $0x128] sm:$0xff] %vm2678_vm11, %v2561_v40  ;;  %10986 = vmatprep.mubr.msk.f32.mxu1 %vm2812_vm12, %v2779_v43  ;;  %v855_v43 = vrot.slane %v124_v56, 2 }
 0x2f4   :  { %1920 = vst.msk [vmem:[#allocation2 + $0x130] sm:$0xff] %vm1881_vm8, %v1766_v60  ;;  %1514 = vrot.lane.b32.xlu1 %v14160_v0, %s12355_s21  ;;  %1247 = vrot.lane.b32.xlu0 %v13865_v48, %s12353_s18 }
 0x2f6   :  { %v973_v33 = vpop.permute.xlu1 %972  ;;  %v557_v4 = vpop.permute.xlu0 %556 }
 0x2f7   :  { %1125 = vst.msk [vmem:[#allocation2 + $0x140] sm:$0xff] %vm1084_vm5, %v973_v33 }
 0x2f8   :  { %708 = vst.msk [vmem:[#allocation2 + $0x148] sm:$0xff] %vm666_vm4, %v557_v4  ;;  %2574 = vrot.lane.b32.xlu1 %v854_v30, %s12359_s20  ;;  %2309 = vrot.lane.b32.xlu0 %v14184_v22, %s12358_s11  ;;  %v856_v4 = vsel %vm731_vm1, %v853_v14, %v855_v43  ;;  %v14213_v43 = vld [vmem:[%s19067_s0 + $0x2e8] sm:$0xff] }
 0x2f9   :  { %211 = vst.msk [vmem:[#allocation2 + $0x1d0] sm:$0xff] %vm152_vm0, %v14213_v43 }
 0x2fa   :  { %v2027_v40 = vpop.permute.xlu1 %2026  ;;  %v1768_v60 = vpop.permute.xlu0 %1767  ;;  %v2780_v48 = vld [vmem:[#allocation2 + $0x128] sm:$0xff] }
 0x2fb   :  { %2181 = vst.msk [vmem:[#allocation2 + $0x130] sm:$0xff] %vm2142_vm9, %v2027_v40  ;;  %10987 = vmatmul.mubr.msk.f32.gmra.mxu1 %vm2812_vm12, %v2780_v48  ;;  %v440_v40 = vrot.slane %v13938_v32, 1 }
 0x2fc   :  { %1921 = vst.msk [vmem:[#allocation2 + $0x138] sm:$0xff] %vm1881_vm8, %v1768_v60  ;;  %1516 = vrot.lane.b32.xlu1 %v14184_v22, %s12355_s21  ;;  %570 = vrot.lane.b32.xlu0 %v14160_v0, %s12354_s10 }
 0x2fe   :  { %v1234_v38 = vpop.permute.xlu1 %1233  ;;  %v975_v17 = vpop.permute.xlu0 %974 }
 0x2ff   :  { %1386 = vst.msk [vmem:[#allocation2 + $0x140] sm:$0xff] %vm1345_vm6, %v1234_v38  ;;  %v14230_v38 = vld [vmem:[%s19067_s0 + $0x2f0] sm:$0xff] }
 0x300   :  { %1126 = vst.msk [vmem:[#allocation2 + $0x148] sm:$0xff] %vm1084_vm5, %v975_v17  ;;  %2576 = vrot.lane.b32.xlu1 %v856_v4, %s12359_s20  ;;  %1781 = vrot.lane.b32.xlu0 %v854_v30, %s12356_s22 }
 0x301   :  { %212 = vst.msk [vmem:[#allocation2 + $0x1d8] sm:$0xff] %vm152_vm0, %v14230_v38 }
 0x302   :  { %v2296_v56 = vpop.permute.xlu1 %2295  ;;  %v2029_v54 = vpop.permute.xlu0 %2028 }
 0x303   :  { %2450 = vst.msk [vmem:[#allocation2 + $0x130] sm:$0xff] %vm2411_vm10, %v2296_v56 }
 0x304   :  { %2182 = vst.msk [vmem:[#allocation2 + $0x138] sm:$0xff] %vm2142_vm9, %v2029_v54  ;;  %988 = vrot.lane.b32.xlu1 %v854_v30, %s12352_s9  ;;  %572 = vrot.lane.b32.xlu0 %v14184_v22, %s12354_s10  ;;  %v439_v30 = vrot.slane %v13921_v9, 1 }
 0x306   :  { %v1503_v14 = vpop.permute.xlu1 %1502  ;;  %v1236_v33 = vpop.permute.xlu0 %1235  ;;  %v14233_v17 = vsel %vm313_vm2, %v439_v30, %v440_v40 }
 0x307   :  { %1655 = vst.msk [vmem:[#allocation2 + $0x140] sm:$0xff] %vm1614_vm7, %v1503_v14  ;;  %19340 = vst [vmem:[#allocation58_spill] sm:$0xff] %v14233_v17  ;;  %v127_v14 = vld [vmem:[%s19067_s0 + $0x298] sm:$0x3] }
 0x308   :  { %1387 = vst.msk [vmem:[#allocation2 + $0x148] sm:$0xff] %vm1345_vm6, %v1236_v33  ;;  %2042 = vrot.lane.b32.xlu1 %v13921_v9, %s12357_s25  ;;  %1783 = vrot.lane.b32.xlu0 %v856_v4, %s12356_s22  ;;  %v858_v33 = vrot.slane %v13938_v32, 2  ;;  %v442_v30 = vrot.slane %v127_v14, 1 }
 0x30a   :  { %v2563_v60 = vpop.permute.xlu1 %2562  ;;  %v2298_v48 = vpop.permute.xlu0 %2297 }
 0x30b   :  { %2717 = vst.msk [vmem:[#allocation2 + $0x130] sm:$0xff] %vm2678_vm11, %v2563_v60 }
 0x30c   :  { %2451 = vst.msk [vmem:[#allocation2 + $0x138] sm:$0xff] %vm2411_vm10, %v2298_v48  ;;  %1249 = vrot.lane.b32.xlu1 %v13921_v9, %s12353_s18  ;;  %990 = vrot.lane.b32.xlu0 %v856_v4, %s12352_s9  ;;  %v857_v4 = vrot.slane %v13921_v9, 2 }
 0x30e   :  { %v1505_v56 = vpop.permute.xlu1 %1504  ;;  %v559_v54 = vpop.permute.xlu0 %558  ;;  %v859_v9 = vsel %vm731_vm1, %v857_v4, %v858_v33 }
 0x30f   :  { %1656 = vst.msk [vmem:[#allocation2 + $0x148] sm:$0xff] %vm1614_vm7, %v1505_v56  ;;  %v14257_v56 = vsel %vm313_vm2, %v440_v40, %v442_v30 }
 0x310   :  { %709 = vst.msk [vmem:[#allocation2 + $0x150] sm:$0xff] %vm666_vm4, %v559_v54  ;;  %2311 = vrot.lane.b32.xlu1 %v14233_v17, %s12358_s11  ;;  %2044 = vrot.lane.b32.xlu0 %v13938_v32, %s12357_s25  ;;  %19341 = vst [vmem:[#allocation59_spill] sm:$0xff] %v14257_v56 }
 0x312   :  { %v2565_v60 = vpop.permute.xlu1 %2564  ;;  %v1770_v48 = vpop.permute.xlu0 %1769  ;;  %v2781_v22 = vld [vmem:[#allocation2 + $0x130] sm:$0xff] }
 0x313   :  { %2718 = vst.msk [vmem:[#allocation2 + $0x138] sm:$0xff] %vm2678_vm11, %v2565_v60  ;;  %10989 = vmatprep.mubr.msk.f32.mxu1 %vm2812_vm12, %v2781_v22  ;;  %v860_v22 = vrot.slane %v127_v14, 2 }
 0x314   :  { %1922 = vst.msk [vmem:[#allocation2 + $0x140] sm:$0xff] %vm1881_vm8, %v1770_v48  ;;  %1518 = vrot.lane.b32.xlu1 %v14233_v17, %s12355_s21  ;;  %1251 = vrot.lane.b32.xlu0 %v13938_v32, %s12353_s18 }
 0x316   :  { %v977_v54 = vpop.permute.xlu1 %976  ;;  %v561_v0 = vpop.permute.xlu0 %560 }
 0x317   :  { %1127 = vst.msk [vmem:[#allocation2 + $0x150] sm:$0xff] %vm1084_vm5, %v977_v54 }
 0x318   :  { %710 = vst.msk [vmem:[#allocation2 + $0x158] sm:$0xff] %vm666_vm4, %v561_v0  ;;  %2578 = vrot.lane.b32.xlu1 %v859_v9, %s12359_s20  ;;  %2313 = vrot.lane.b32.xlu0 %v14257_v56, %s12358_s11  ;;  %v861_v0 = vsel %vm731_vm1, %v858_v33, %v860_v22  ;;  %v14286_v22 = vld [vmem:[%s19067_s0 + $0x300] sm:$0xff] }
 0x319   :  { %213 = vst.msk [vmem:[#allocation2 + $0x1e0] sm:$0xff] %vm152_vm0, %v14286_v22 }
 0x31a   :  { %v2031_v60 = vpop.permute.xlu1 %2030  ;;  %v1772_v48 = vpop.permute.xlu0 %1771  ;;  %v2782_v32 = vld [vmem:[#allocation2 + $0x138] sm:$0xff] }
 0x31b   :  { %2183 = vst.msk [vmem:[#allocation2 + $0x140] sm:$0xff] %vm2142_vm9, %v2031_v60  ;;  %10990 = vmatmul.mubr.msk.f32.gmra.mxu1 %vm2812_vm12, %v2782_v32  ;;  %v445_v60 = vrot.slane %v14011_v36, 1 }
 0x31c   :  { %1923 = vst.msk [vmem:[#allocation2 + $0x148] sm:$0xff] %vm1881_vm8, %v1772_v48  ;;  %1520 = vrot.lane.b32.xlu1 %v14257_v56, %s12355_s21  ;;  %574 = vrot.lane.b32.xlu0 %v14233_v17, %s12354_s10 }
 0x31e   :  { %v1238_v40 = vpop.permute.xlu1 %1237  ;;  %v979_v4 = vpop.permute.xlu0 %978 }
 0x31f   :  { %1388 = vst.msk [vmem:[#allocation2 + $0x150] sm:$0xff] %vm1345_vm6, %v1238_v40  ;;  %v14303_v40 = vld [vmem:[%s19067_s0 + $0x308] sm:$0xff] }
 0x320   :  { %1128 = vst.msk [vmem:[#allocation2 + $0x158] sm:$0xff] %vm1084_vm5, %v979_v4  ;;  %2580 = vrot.lane.b32.xlu1 %v861_v0, %s12359_s20  ;;  %1785 = vrot.lane.b32.xlu0 %v859_v9, %s12356_s22 }
 0x321   :  { %214 = vst.msk [vmem:[#allocation2 + $0x1e8] sm:$0xff] %vm152_vm0, %v14303_v40 }
 0x322   :  { %v2300_v14 = vpop.permute.xlu1 %2299  ;;  %v2033_v30 = vpop.permute.xlu0 %2032 }
 0x323   :  { %2452 = vst.msk [vmem:[#allocation2 + $0x140] sm:$0xff] %vm2411_vm10, %v2300_v14 }
 0x324   :  { %2184 = vst.msk [vmem:[#allocation2 + $0x148] sm:$0xff] %vm2142_vm9, %v2033_v30  ;;  %992 = vrot.lane.b32.xlu1 %v859_v9, %s12352_s9  ;;  %576 = vrot.lane.b32.xlu0 %v14257_v56, %s12354_s10  ;;  %v444_v9 = vrot.slane %v13994_v10, 1 }
 0x326   :  { %v1507_v33 = vpop.permute.xlu1 %1506  ;;  %v1240_v54 = vpop.permute.xlu0 %1239  ;;  %v14306_v4 = vsel %vm313_vm2, %v444_v9, %v445_v60 }
 0x327   :  { %1657 = vst.msk [vmem:[#allocation2 + $0x150] sm:$0xff] %vm1614_vm7, %v1507_v33  ;;  %19342 = vst [vmem:[#allocation60_spill] sm:$0xff] %v14306_v4  ;;  %v130_v33 = vld [vmem:[%s19067_s0 + $0x2b0] sm:$0x3] }
 0x328   :  { %1389 = vst.msk [vmem:[#allocation2 + $0x158] sm:$0xff] %vm1345_vm6, %v1240_v54  ;;  %2046 = vrot.lane.b32.xlu1 %v13994_v10, %s12357_s25  ;;  %1787 = vrot.lane.b32.xlu0 %v861_v0, %s12356_s22  ;;  %v863_v54 = vrot.slane %v14011_v36, 2  ;;  %v447_v9 = vrot.slane %v130_v33, 1 }
 0x32a   :  { %v2567_v48 = vpop.permute.xlu1 %2566  ;;  %v2302_v32 = vpop.permute.xlu0 %2301 }
 0x32b   :  { %2719 = vst.msk [vmem:[#allocation2 + $0x140] sm:$0xff] %vm2678_vm11, %v2567_v48 }
 0x32c   :  { %2453 = vst.msk [vmem:[#allocation2 + $0x148] sm:$0xff] %vm2411_vm10, %v2302_v32  ;;  %1253 = vrot.lane.b32.xlu1 %v13994_v10, %s12353_s18  ;;  %994 = vrot.lane.b32.xlu0 %v861_v0, %s12352_s9  ;;  %v862_v0 = vrot.slane %v13994_v10, 2 }
 0x32e   :  { %v1509_v14 = vpop.permute.xlu1 %1508  ;;  %v563_v30 = vpop.permute.xlu0 %562  ;;  %v864_v10 = vsel %vm731_vm1, %v862_v0, %v863_v54 }
 0x32f   :  { %1658 = vst.msk [vmem:[#allocation2 + $0x158] sm:$0xff] %vm1614_vm7, %v1509_v14  ;;  %v14330_v14 = vsel %vm313_vm2, %v445_v60, %v447_v9 }
 0x330   :  { %711 = vst.msk [vmem:[#allocation2 + $0x160] sm:$0xff] %vm666_vm4, %v563_v30  ;;  %2315 = vrot.lane.b32.xlu1 %v14306_v4, %s12358_s11  ;;  %2048 = vrot.lane.b32.xlu0 %v14011_v36, %s12357_s25  ;;  %19343 = vst [vmem:[#allocation61_spill] sm:$0xff] %v14330_v14 }
 0x332   :  { %v2569_v48 = vpop.permute.xlu1 %2568  ;;  %v1774_v32 = vpop.permute.xlu0 %1773  ;;  %v2783_v56 = vld [vmem:[#allocation2 + $0x140] sm:$0xff] }
 0x333   :  { %2720 = vst.msk [vmem:[#allocation2 + $0x148] sm:$0xff] %vm2678_vm11, %v2569_v48  ;;  %10992 = vmatprep.mubr.msk.f32.mxu1 %vm2812_vm12, %v2783_v56  ;;  %v865_v56 = vrot.slane %v130_v33, 2 }
 0x334   :  { %1924 = vst.msk [vmem:[#allocation2 + $0x150] sm:$0xff] %vm1881_vm8, %v1774_v32  ;;  %1522 = vrot.lane.b32.xlu1 %v14306_v4, %s12355_s21  ;;  %1255 = vrot.lane.b32.xlu0 %v14011_v36, %s12353_s18 }
 0x336   :  { %v981_v30 = vpop.permute.xlu1 %980  ;;  %v565_v17 = vpop.permute.xlu0 %564 }
 0x337   :  { %1129 = vst.msk [vmem:[#allocation2 + $0x160] sm:$0xff] %vm1084_vm5, %v981_v30 }
 0x338   :  { %712 = vst.msk [vmem:[#allocation2 + $0x168] sm:$0xff] %vm666_vm4, %v565_v17  ;;  %2582 = vrot.lane.b32.xlu1 %v864_v10, %s12359_s20  ;;  %2317 = vrot.lane.b32.xlu0 %v14330_v14, %s12358_s11  ;;  %v866_v17 = vsel %vm731_vm1, %v863_v54, %v865_v56  ;;  %v14359_v56 = vld [vmem:[%s19067_s0 + $0x318] sm:$0xff] }
 0x339   :  { %215 = vst.msk [vmem:[#allocation2 + $0x1f0] sm:$0xff] %vm152_vm0, %v14359_v56 }
 0x33a   :  { %v2035_v48 = vpop.permute.xlu1 %2034  ;;  %v1776_v32 = vpop.permute.xlu0 %1775  ;;  %v2784_v36 = vld [vmem:[#allocation2 + $0x148] sm:$0xff] }
 0x33b   :  { %2185 = vst.msk [vmem:[#allocation2 + $0x150] sm:$0xff] %vm2142_vm9, %v2035_v48  ;;  %10993 = vmatmul.mubr.msk.f32.gmra.mxu1 %vm2812_vm12, %v2784_v36  ;;  %v450_v48 = vrot.slane %v14084_v51, 1 }
 0x33c   :  { %1925 = vst.msk [vmem:[#allocation2 + $0x158] sm:$0xff] %vm1881_vm8, %v1776_v32  ;;  %1524 = vrot.lane.b32.xlu1 %v14330_v14, %s12355_s21  ;;  %578 = vrot.lane.b32.xlu0 %v14306_v4, %s12354_s10 }
 0x33e   :  { %v1242_v60 = vpop.permute.xlu1 %1241  ;;  %v983_v0 = vpop.permute.xlu0 %982 }
 0x33f   :  { %1390 = vst.msk [vmem:[#allocation2 + $0x160] sm:$0xff] %vm1345_vm6, %v1242_v60  ;;  %v14376_v60 = vld [vmem:[%s19067_s0 + $0x320] sm:$0xff] }
 0x340   :  { %1130 = vst.msk [vmem:[#allocation2 + $0x168] sm:$0xff] %vm1084_vm5, %v983_v0  ;;  %2584 = vrot.lane.b32.xlu1 %v866_v17, %s12359_s20  ;;  %1789 = vrot.lane.b32.xlu0 %v864_v10, %s12356_s22 }
 0x341   :  { %216 = vst.msk [vmem:[#allocation2 + $0x1f8] sm:$0xff] %vm152_vm0, %v14376_v60 }
 0x342   :  { %v2304_v33 = vpop.permute.xlu1 %2303  ;;  %v2037_v9 = vpop.permute.xlu0 %2036 }
 0x343   :  { %2454 = vst.msk [vmem:[#allocation2 + $0x150] sm:$0xff] %vm2411_vm10, %v2304_v33 }
 0x344   :  { %2186 = vst.msk [vmem:[#allocation2 + $0x158] sm:$0xff] %vm2142_vm9, %v2037_v9  ;;  %996 = vrot.lane.b32.xlu1 %v864_v10, %s12352_s9  ;;  %580 = vrot.lane.b32.xlu0 %v14330_v14, %s12354_s10  ;;  %v449_v10 = vrot.slane %v14067_v7, 1 }
 0x346   :  { %v1511_v54 = vpop.permute.xlu1 %1510  ;;  %v1244_v30 = vpop.permute.xlu0 %1243  ;;  %v14379_v0 = vsel %vm313_vm2, %v449_v10, %v450_v48 }
 0x347   :  { %1659 = vst.msk [vmem:[#allocation2 + $0x160] sm:$0xff] %vm1614_vm7, %v1511_v54  ;;  %19344 = vst [vmem:[#allocation62_spill] sm:$0xff] %v14379_v0  ;;  %v133_v54 = vld [vmem:[%s19067_s0 + $0x2c8] sm:$0x3] }
 0x348   :  { %1391 = vst.msk [vmem:[#allocation2 + $0x168] sm:$0xff] %vm1345_vm6, %v1244_v30  ;;  %2050 = vrot.lane.b32.xlu1 %v14067_v7, %s12357_s25  ;;  %1791 = vrot.lane.b32.xlu0 %v866_v17, %s12356_s22  ;;  %v868_v30 = vrot.slane %v14084_v51, 2  ;;  %v452_v10 = vrot.slane %v133_v54, 1 }
 0x34a   :  { %v2571_v32 = vpop.permute.xlu1 %2570  ;;  %v2306_v36 = vpop.permute.xlu0 %2305 }
 0x34b   :  { %2721 = vst.msk [vmem:[#allocation2 + $0x150] sm:$0xff] %vm2678_vm11, %v2571_v32 }
 0x34c   :  { %2455 = vst.msk [vmem:[#allocation2 + $0x158] sm:$0xff] %vm2411_vm10, %v2306_v36  ;;  %1257 = vrot.lane.b32.xlu1 %v14067_v7, %s12353_s18  ;;  %998 = vrot.lane.b32.xlu0 %v866_v17, %s12352_s9  ;;  %v867_v17 = vrot.slane %v14067_v7, 2 }
 0x34e   :  { %v1513_v33 = vpop.permute.xlu1 %1512  ;;  %v567_v9 = vpop.permute.xlu0 %566  ;;  %v869_v7 = vsel %vm731_vm1, %v867_v17, %v868_v30 }
 0x34f   :  { %1660 = vst.msk [vmem:[#allocation2 + $0x168] sm:$0xff] %vm1614_vm7, %v1513_v33  ;;  %v14403_v33 = vsel %vm313_vm2, %v450_v48, %v452_v10 }
 0x350   :  { %713 = vst.msk [vmem:[#allocation2 + $0x170] sm:$0xff] %vm666_vm4, %v567_v9  ;;  %2319 = vrot.lane.b32.xlu1 %v14379_v0, %s12358_s11  ;;  %2052 = vrot.lane.b32.xlu0 %v14084_v51, %s12357_s25  ;;  %19345 = vst [vmem:[#allocation63_spill] sm:$0xff] %v14403_v33 }
 0x352   :  { %v2573_v32 = vpop.permute.xlu1 %2572  ;;  %v1778_v36 = vpop.permute.xlu0 %1777  ;;  %v2785_v14 = vld [vmem:[#allocation2 + $0x150] sm:$0xff] }
 0x353   :  { %2722 = vst.msk [vmem:[#allocation2 + $0x158] sm:$0xff] %vm2678_vm11, %v2573_v32  ;;  %10995 = vmatprep.mubr.msk.f32.mxu1 %vm2812_vm12, %v2785_v14  ;;  %v870_v14 = vrot.slane %v133_v54, 2 }
 0x354   :  { %1926 = vst.msk [vmem:[#allocation2 + $0x160] sm:$0xff] %vm1881_vm8, %v1778_v36  ;;  %1526 = vrot.lane.b32.xlu1 %v14379_v0, %s12355_s21  ;;  %1259 = vrot.lane.b32.xlu0 %v14084_v51, %s12353_s18 }
 0x356   :  { %v985_v9 = vpop.permute.xlu1 %984  ;;  %v569_v4 = vpop.permute.xlu0 %568 }
 0x357   :  { %1131 = vst.msk [vmem:[#allocation2 + $0x170] sm:$0xff] %vm1084_vm5, %v985_v9 }
 0x358   :  { %714 = vst.msk [vmem:[#allocation2 + $0x178] sm:$0xff] %vm666_vm4, %v569_v4  ;;  %2586 = vrot.lane.b32.xlu1 %v869_v7, %s12359_s20  ;;  %2321 = vrot.lane.b32.xlu0 %v14403_v33, %s12358_s11  ;;  %v871_v4 = vsel %vm731_vm1, %v868_v30, %v870_v14  ;;  %v454_v14 = vrot.slane %v14140_v58, 1 }
 0x35a   :  { %v2039_v32 = vpop.permute.xlu1 %2038  ;;  %v1780_v36 = vpop.permute.xlu0 %1779  ;;  %v2786_v51 = vld [vmem:[#allocation2 + $0x158] sm:$0xff] }
 0x35b   :  { %2187 = vst.msk [vmem:[#allocation2 + $0x160] sm:$0xff] %vm2142_vm9, %v2039_v32  ;;  %10996 = vmatmul.mubr.msk.f32.gmra.mxu1 %vm2812_vm12, %v2786_v51  ;;  %v455_v32 = vrot.slane %v14157_v37, 1 }
 0x35c   :  { %1927 = vst.msk [vmem:[#allocation2 + $0x168] sm:$0xff] %vm1881_vm8, %v1780_v36  ;;  %1528 = vrot.lane.b32.xlu1 %v14403_v33, %s12355_s21  ;;  %582 = vrot.lane.b32.xlu0 %v14379_v0, %s12354_s10 }
 0x35d   :  { %v14440_v51 = vsel %vm313_vm2, %v454_v14, %v455_v32 }
 0x35e   :  { %v1246_v48 = vpop.permute.xlu1 %1245  ;;  %v987_v17 = vpop.permute.xlu0 %986  ;;  %19346 = vst [vmem:[#allocation64_spill] sm:$0xff] %v14440_v51 }
 0x35f   :  { %1392 = vst.msk [vmem:[#allocation2 + $0x170] sm:$0xff] %vm1345_vm6, %v1246_v48 }
 0x360   :  { %1132 = vst.msk [vmem:[#allocation2 + $0x178] sm:$0xff] %vm1084_vm5, %v987_v17  ;;  %2588 = vrot.lane.b32.xlu1 %v871_v4, %s12359_s20  ;;  %1793 = vrot.lane.b32.xlu0 %v869_v7, %s12356_s22 }
 0x362   :  { %v2308_v54 = vpop.permute.xlu1 %2307  ;;  %v2041_v10 = vpop.permute.xlu0 %2040 }
 0x363   :  { %2456 = vst.msk [vmem:[#allocation2 + $0x160] sm:$0xff] %vm2411_vm10, %v2308_v54  ;;  %v136_v54 = vld [vmem:[%s19067_s0 + $0x2e0] sm:$0x3] }
 0x364   :  { %2188 = vst.msk [vmem:[#allocation2 + $0x168] sm:$0xff] %vm2142_vm9, %v2041_v10  ;;  %1000 = vrot.lane.b32.xlu1 %v869_v7, %s12352_s9  ;;  %584 = vrot.lane.b32.xlu0 %v14403_v33, %s12354_s10  ;;  %v873_v10 = vrot.slane %v14157_v37, 2 }
 0x366   :  { %v1515_v30 = vpop.permute.xlu1 %1514  ;;  %v1248_v9 = vpop.permute.xlu0 %1247 }
 0x367   :  { %1661 = vst.msk [vmem:[#allocation2 + $0x170] sm:$0xff] %vm1614_vm7, %v1515_v30  ;;  %v457_v30 = vrot.slane %v136_v54, 1 }
 0x368   :  { %1393 = vst.msk [vmem:[#allocation2 + $0x178] sm:$0xff] %vm1345_vm6, %v1248_v9  ;;  %2054 = vrot.lane.b32.xlu1 %v14140_v58, %s12357_s25  ;;  %1795 = vrot.lane.b32.xlu0 %v871_v4, %s12356_s22 }
 0x36a   :  { %v2575_v36 = vpop.permute.xlu1 %2574  ;;  %v2310_v7 = vpop.permute.xlu0 %2309 }
 0x36b   :  { %2723 = vst.msk [vmem:[#allocation2 + $0x160] sm:$0xff] %vm2678_vm11, %v2575_v36 }
 0x36c   :  { %2457 = vst.msk [vmem:[#allocation2 + $0x168] sm:$0xff] %vm2411_vm10, %v2310_v7  ;;  %1261 = vrot.lane.b32.xlu1 %v14140_v58, %s12353_s18  ;;  %1002 = vrot.lane.b32.xlu0 %v871_v4, %s12352_s9  ;;  %v872_v4 = vrot.slane %v14140_v58, 2  ;;  %v14462_v7 = vsel %vm313_vm2, %v455_v32, %v457_v30 }
 0x36d   :  { %19347 = vst [vmem:[#allocation65_spill] sm:$0xff] %v14462_v7 }
 0x36e   :  { %v1517_v48 = vpop.permute.xlu1 %1516  ;;  %v571_v17 = vpop.permute.xlu0 %570  ;;  %v874_v58 = vsel %vm731_vm1, %v872_v4, %v873_v10 }
 0x36f   :  { %1662 = vst.msk [vmem:[#allocation2 + $0x178] sm:$0xff] %vm1614_vm7, %v1517_v48 }
 0x370   :  { %715 = vst.msk [vmem:[#allocation2 + $0x180] sm:$0xff] %vm666_vm4, %v571_v17  ;;  %2323 = vrot.lane.b32.xlu1 %v14440_v51, %s12358_s11  ;;  %2056 = vrot.lane.b32.xlu0 %v14157_v37, %s12357_s25 }
 0x372   :  { %v2577_v9 = vpop.permute.xlu1 %2576  ;;  %v1782_v14 = vpop.permute.xlu0 %1781  ;;  %v2787_v36 = vld [vmem:[#allocation2 + $0x160] sm:$0xff] }
 0x373   :  { %2724 = vst.msk [vmem:[#allocation2 + $0x168] sm:$0xff] %vm2678_vm11, %v2577_v9  ;;  %10998 = vmatprep.mubr.msk.f32.mxu1 %vm2812_vm12, %v2787_v36  ;;  %v875_v9 = vrot.slane %v136_v54, 2 }
 0x374   :  { %1928 = vst.msk [vmem:[#allocation2 + $0x170] sm:$0xff] %vm1881_vm8, %v1782_v14  ;;  %1530 = vrot.lane.b32.xlu1 %v14440_v51, %s12355_s21  ;;  %1263 = vrot.lane.b32.xlu0 %v14157_v37, %s12353_s18 }
 0x375   :  { %v876_v32 = vsel %vm731_vm1, %v873_v10, %v875_v9  ;;  %v459_v9 = vrot.slane %v14213_v43, 1 }
 0x376   :  { %v989_v48 = vpop.permute.xlu1 %988  ;;  %v573_v17 = vpop.permute.xlu0 %572 }
 0x377   :  { %1133 = vst.msk [vmem:[#allocation2 + $0x180] sm:$0xff] %vm1084_vm5, %v989_v48 }
 0x378   :  { %716 = vst.msk [vmem:[#allocation2 + $0x188] sm:$0xff] %vm666_vm4, %v573_v17  ;;  %2590 = vrot.lane.b32.xlu1 %v874_v58, %s12359_s20  ;;  %2325 = vrot.lane.b32.xlu0 %v14462_v7, %s12358_s11 }
 0x37a   :  { %v2043_v14 = vpop.permute.xlu1 %2042  ;;  %v1784_v36 = vpop.permute.xlu0 %1783  ;;  %v2788_v37 = vld [vmem:[#allocation2 + $0x168] sm:$0xff] }
 0x37b   :  { %2189 = vst.msk [vmem:[#allocation2 + $0x170] sm:$0xff] %vm2142_vm9, %v2043_v14  ;;  %10999 = vmatmul.mubr.msk.f32.gmra.mxu1 %vm2812_vm12, %v2788_v37  ;;  %v460_v14 = vrot.slane %v14230_v38, 1 }
 0x37c   :  { %1929 = vst.msk [vmem:[#allocation2 + $0x178] sm:$0xff] %vm1881_vm8, %v1784_v36  ;;  %1532 = vrot.lane.b32.xlu1 %v14462_v7, %s12355_s21  ;;  %586 = vrot.lane.b32.xlu0 %v14440_v51, %s12354_s10 }
 0x37d   :  { %v14499_v37 = vsel %vm313_vm2, %v459_v9, %v460_v14 }
 0x37e   :  { %v1250_v4 = vpop.permute.xlu1 %1249  ;;  %v991_v30 = vpop.permute.xlu0 %990  ;;  %19348 = vst [vmem:[#allocation66_spill] sm:$0xff] %v14499_v37 }
 0x37f   :  { %1394 = vst.msk [vmem:[#allocation2 + $0x180] sm:$0xff] %vm1345_vm6, %v1250_v4 }
 0x380   :  { %1134 = vst.msk [vmem:[#allocation2 + $0x188] sm:$0xff] %vm1084_vm5, %v991_v30  ;;  %2592 = vrot.lane.b32.xlu1 %v876_v32, %s12359_s20  ;;  %1797 = vrot.lane.b32.xlu0 %v874_v58, %s12356_s22 }
 0x382   :  { %v2312_v54 = vpop.permute.xlu1 %2311  ;;  %v2045_v48 = vpop.permute.xlu0 %2044 }
 0x383   :  { %2458 = vst.msk [vmem:[#allocation2 + $0x170] sm:$0xff] %vm2411_vm10, %v2312_v54  ;;  %v139_v54 = vld [vmem:[%s19067_s0 + $0x2f8] sm:$0x3] }
 0x384   :  { %2190 = vst.msk [vmem:[#allocation2 + $0x178] sm:$0xff] %vm2142_vm9, %v2045_v48  ;;  %1004 = vrot.lane.b32.xlu1 %v874_v58, %s12352_s9  ;;  %588 = vrot.lane.b32.xlu0 %v14462_v7, %s12354_s10  ;;  %v878_v48 = vrot.slane %v14230_v38, 2 }
 0x386   :  { %v1519_v10 = vpop.permute.xlu1 %1518  ;;  %v1252_v17 = vpop.permute.xlu0 %1251 }
 0x387   :  { %1663 = vst.msk [vmem:[#allocation2 + $0x180] sm:$0xff] %vm1614_vm7, %v1519_v10  ;;  %v462_v10 = vrot.slane %v139_v54, 1 }
 0x388   :  { %1395 = vst.msk [vmem:[#allocation2 + $0x188] sm:$0xff] %vm1345_vm6, %v1252_v17  ;;  %2058 = vrot.lane.b32.xlu1 %v14213_v43, %s12357_s25  ;;  %1799 = vrot.lane.b32.xlu0 %v876_v32, %s12356_s22 }
 0x38a   :  { %v2579_v36 = vpop.permute.xlu1 %2578  ;;  %v2314_v58 = vpop.permute.xlu0 %2313 }
 0x38b   :  { %2725 = vst.msk [vmem:[#allocation2 + $0x170] sm:$0xff] %vm2678_vm11, %v2579_v36 }
 0x38c   :  { %2459 = vst.msk [vmem:[#allocation2 + $0x178] sm:$0xff] %vm2411_vm10, %v2314_v58  ;;  %1265 = vrot.lane.b32.xlu1 %v14213_v43, %s12353_s18  ;;  %1006 = vrot.lane.b32.xlu0 %v876_v32, %s12352_s9  ;;  %v877_v32 = vrot.slane %v14213_v43, 2  ;;  %v14521_v58 = vsel %vm313_vm2, %v460_v14, %v462_v10 }
 0x38d   :  { %19349 = vst [vmem:[#allocation67_spill] sm:$0xff] %v14521_v58 }
 0x38e   :  { %v1521_v4 = vpop.permute.xlu1 %1520  ;;  %v575_v30 = vpop.permute.xlu0 %574  ;;  %v879_v43 = vsel %vm731_vm1, %v877_v32, %v878_v48 }
 0x38f   :  { %1664 = vst.msk [vmem:[#allocation2 + $0x188] sm:$0xff] %vm1614_vm7, %v1521_v4 }
 0x390   :  { %717 = vst.msk [vmem:[#allocation2 + $0x190] sm:$0xff] %vm666_vm4, %v575_v30  ;;  %2327 = vrot.lane.b32.xlu1 %v14499_v37, %s12358_s11  ;;  %2060 = vrot.lane.b32.xlu0 %v14230_v38, %s12357_s25 }
 0x392   :  { %v2581_v17 = vpop.permute.xlu1 %2580  ;;  %v1786_v9 = vpop.permute.xlu0 %1785  ;;  %v2789_v36 = vld [vmem:[#allocation2 + $0x170] sm:$0xff] }
 0x393   :  { %2726 = vst.msk [vmem:[#allocation2 + $0x178] sm:$0xff] %vm2678_vm11, %v2581_v17  ;;  %11001 = vmatprep.mubr.msk.f32.mxu1 %vm2812_vm12, %v2789_v36  ;;  %v880_v17 = vrot.slane %v139_v54, 2 }
 0x394   :  { %1930 = vst.msk [vmem:[#allocation2 + $0x180] sm:$0xff] %vm1881_vm8, %v1786_v9  ;;  %1534 = vrot.lane.b32.xlu1 %v14499_v37, %s12355_s21  ;;  %1267 = vrot.lane.b32.xlu0 %v14230_v38, %s12353_s18 }
 0x395   :  { %v881_v14 = vsel %vm731_vm1, %v878_v48, %v880_v17  ;;  %v464_v17 = vrot.slane %v14286_v22, 1 }
 0x396   :  { %v993_v4 = vpop.permute.xlu1 %992  ;;  %v577_v30 = vpop.permute.xlu0 %576 }
 0x397   :  { %1135 = vst.msk [vmem:[#allocation2 + $0x190] sm:$0xff] %vm1084_vm5, %v993_v4 }
 0x398   :  { %718 = vst.msk [vmem:[#allocation2 + $0x198] sm:$0xff] %vm666_vm4, %v577_v30  ;;  %2594 = vrot.lane.b32.xlu1 %v879_v43, %s12359_s20  ;;  %2329 = vrot.lane.b32.xlu0 %v14521_v58, %s12358_s11 }
 0x39a   :  { %v2047_v9 = vpop.permute.xlu1 %2046  ;;  %v1788_v36 = vpop.permute.xlu0 %1787  ;;  %v2790_v38 = vld [vmem:[#allocation2 + $0x178] sm:$0xff] }
 0x39b   :  { %2191 = vst.msk [vmem:[#allocation2 + $0x180] sm:$0xff] %vm2142_vm9, %v2047_v9  ;;  %11002 = vmatmul.mubr.msk.f32.gmra.mxu1 %vm2812_vm12, %v2790_v38  ;;  %v465_v9 = vrot.slane %v14303_v40, 1 }
 0x39c   :  { %1931 = vst.msk [vmem:[#allocation2 + $0x188] sm:$0xff] %vm1881_vm8, %v1788_v36  ;;  %1536 = vrot.lane.b32.xlu1 %v14521_v58, %s12355_s21  ;;  %590 = vrot.lane.b32.xlu0 %v14499_v37, %s12354_s10 }
 0x39d   :  { %v14558_v38 = vsel %vm313_vm2, %v464_v17, %v465_v9 }
 0x39e   :  { %v1254_v32 = vpop.permute.xlu1 %1253  ;;  %v995_v10 = vpop.permute.xlu0 %994  ;;  %19350 = vst [vmem:[#allocation68_spill] sm:$0xff] %v14558_v38 }
 0x39f   :  { %1396 = vst.msk [vmem:[#allocation2 + $0x190] sm:$0xff] %vm1345_vm6, %v1254_v32 }
 0x3a0   :  { %1136 = vst.msk [vmem:[#allocation2 + $0x198] sm:$0xff] %vm1084_vm5, %v995_v10  ;;  %2596 = vrot.lane.b32.xlu1 %v881_v14, %s12359_s20  ;;  %1801 = vrot.lane.b32.xlu0 %v879_v43, %s12356_s22 }
 0x3a2   :  { %v2316_v54 = vpop.permute.xlu1 %2315  ;;  %v2049_v4 = vpop.permute.xlu0 %2048 }
 0x3a3   :  { %2460 = vst.msk [vmem:[#allocation2 + $0x180] sm:$0xff] %vm2411_vm10, %v2316_v54  ;;  %v142_v54 = vld [vmem:[%s19067_s0 + $0x310] sm:$0x3] }
 0x3a4   :  { %2192 = vst.msk [vmem:[#allocation2 + $0x188] sm:$0xff] %vm2142_vm9, %v2049_v4  ;;  %1008 = vrot.lane.b32.xlu1 %v879_v43, %s12352_s9  ;;  %592 = vrot.lane.b32.xlu0 %v14521_v58, %s12354_s10  ;;  %v883_v4 = vrot.slane %v14303_v40, 2 }
 0x3a6   :  { %v1523_v48 = vpop.permute.xlu1 %1522  ;;  %v1256_v30 = vpop.permute.xlu0 %1255 }
 0x3a7   :  { %1665 = vst.msk [vmem:[#allocation2 + $0x190] sm:$0xff] %vm1614_vm7, %v1523_v48  ;;  %v467_v48 = vrot.slane %v142_v54, 1 }
 0x3a8   :  { %1397 = vst.msk [vmem:[#allocation2 + $0x198] sm:$0xff] %vm1345_vm6, %v1256_v30  ;;  %2062 = vrot.lane.b32.xlu1 %v14286_v22, %s12357_s25  ;;  %1803 = vrot.lane.b32.xlu0 %v881_v14, %s12356_s22 }
 0x3aa   :  { %v2583_v36 = vpop.permute.xlu1 %2582  ;;  %v2318_v43 = vpop.permute.xlu0 %2317 }
 0x3ab   :  { %2727 = vst.msk [vmem:[#allocation2 + $0x180] sm:$0xff] %vm2678_vm11, %v2583_v36 }
 0x3ac   :  { %2461 = vst.msk [vmem:[#allocation2 + $0x188] sm:$0xff] %vm2411_vm10, %v2318_v43  ;;  %1269 = vrot.lane.b32.xlu1 %v14286_v22, %s12353_s18  ;;  %1010 = vrot.lane.b32.xlu0 %v881_v14, %s12352_s9  ;;  %v882_v14 = vrot.slane %v14286_v22, 2  ;;  %v14580_v43 = vsel %vm313_vm2, %v465_v9, %v467_v48 }
 0x3ad   :  { %19351 = vst [vmem:[#allocation69_spill] sm:$0xff] %v14580_v43 }
 0x3ae   :  { %v1525_v32 = vpop.permute.xlu1 %1524  ;;  %v579_v10 = vpop.permute.xlu0 %578  ;;  %v884_v22 = vsel %vm731_vm1, %v882_v14, %v883_v4 }
 0x3af   :  { %1666 = vst.msk [vmem:[#allocation2 + $0x198] sm:$0xff] %vm1614_vm7, %v1525_v32 }
 0x3b0   :  { %719 = vst.msk [vmem:[#allocation2 + $0x1a0] sm:$0xff] %vm666_vm4, %v579_v10  ;;  %2331 = vrot.lane.b32.xlu1 %v14558_v38, %s12358_s11  ;;  %2064 = vrot.lane.b32.xlu0 %v14303_v40, %s12357_s25 }
 0x3b2   :  { %v2585_v30 = vpop.permute.xlu1 %2584  ;;  %v1790_v17 = vpop.permute.xlu0 %1789  ;;  %v2791_v36 = vld [vmem:[#allocation2 + $0x180] sm:$0xff] }
 0x3b3   :  { %2728 = vst.msk [vmem:[#allocation2 + $0x188] sm:$0xff] %vm2678_vm11, %v2585_v30  ;;  %11004 = vmatprep.mubr.msk.f32.mxu1 %vm2812_vm12, %v2791_v36  ;;  %v885_v30 = vrot.slane %v142_v54, 2 }
 0x3b4   :  { %1932 = vst.msk [vmem:[#allocation2 + $0x190] sm:$0xff] %vm1881_vm8, %v1790_v17  ;;  %1538 = vrot.lane.b32.xlu1 %v14558_v38, %s12355_s21  ;;  %1271 = vrot.lane.b32.xlu0 %v14303_v40, %s12353_s18 }
 0x3b5   :  { %v886_v9 = vsel %vm731_vm1, %v883_v4, %v885_v30  ;;  %v469_v30 = vrot.slane %v14359_v56, 1 }
 0x3b6   :  { %v997_v32 = vpop.permute.xlu1 %996  ;;  %v581_v10 = vpop.permute.xlu0 %580 }
 0x3b7   :  { %1137 = vst.msk [vmem:[#allocation2 + $0x1a0] sm:$0xff] %vm1084_vm5, %v997_v32 }
 0x3b8   :  { %720 = vst.msk [vmem:[#allocation2 + $0x1a8] sm:$0xff] %vm666_vm4, %v581_v10  ;;  %2598 = vrot.lane.b32.xlu1 %v884_v22, %s12359_s20  ;;  %2333 = vrot.lane.b32.xlu0 %v14580_v43, %s12358_s11 }
 0x3ba   :  { %v2051_v17 = vpop.permute.xlu1 %2050  ;;  %v1792_v36 = vpop.permute.xlu0 %1791  ;;  %v2792_v40 = vld [vmem:[#allocation2 + $0x188] sm:$0xff] }
 0x3bb   :  { %2193 = vst.msk [vmem:[#allocation2 + $0x190] sm:$0xff] %vm2142_vm9, %v2051_v17  ;;  %11005 = vmatmul.mubr.msk.f32.gmra.mxu1 %vm2812_vm12, %v2792_v40  ;;  %v470_v17 = vrot.slane %v14376_v60, 1 }
 0x3bc   :  { %1933 = vst.msk [vmem:[#allocation2 + $0x198] sm:$0xff] %vm1881_vm8, %v1792_v36  ;;  %1540 = vrot.lane.b32.xlu1 %v14580_v43, %s12355_s21  ;;  %594 = vrot.lane.b32.xlu0 %v14558_v38, %s12354_s10 }
 0x3bd   :  { %v14617_v40 = vsel %vm313_vm2, %v469_v30, %v470_v17 }
 0x3be   :  { %v1258_v14 = vpop.permute.xlu1 %1257  ;;  %v999_v48 = vpop.permute.xlu0 %998  ;;  %19352 = vst [vmem:[#allocation70_spill] sm:$0xff] %v14617_v40 }
 0x3bf   :  { %1398 = vst.msk [vmem:[#allocation2 + $0x1a0] sm:$0xff] %vm1345_vm6, %v1258_v14 }
 0x3c0   :  { %1138 = vst.msk [vmem:[#allocation2 + $0x1a8] sm:$0xff] %vm1084_vm5, %v999_v48  ;;  %2600 = vrot.lane.b32.xlu1 %v886_v9, %s12359_s20  ;;  %1805 = vrot.lane.b32.xlu0 %v884_v22, %s12356_s22 }
 0x3c2   :  { %v2320_v54 = vpop.permute.xlu1 %2319  ;;  %v2053_v32 = vpop.permute.xlu0 %2052 }
 0x3c3   :  { %2462 = vst.msk [vmem:[#allocation2 + $0x190] sm:$0xff] %vm2411_vm10, %v2320_v54  ;;  %v145_v54 = vld [vmem:[%s19067_s0 + $0x328] sm:$0x3] }
 0x3c4   :  { %2194 = vst.msk [vmem:[#allocation2 + $0x198] sm:$0xff] %vm2142_vm9, %v2053_v32  ;;  %1012 = vrot.lane.b32.xlu1 %v884_v22, %s12352_s9  ;;  %596 = vrot.lane.b32.xlu0 %v14580_v43, %s12354_s10  ;;  %v888_v32 = vrot.slane %v14376_v60, 2 }
 0x3c6   :  { %v1527_v4 = vpop.permute.xlu1 %1526  ;;  %v1260_v10 = vpop.permute.xlu0 %1259 }
 0x3c7   :  { %1667 = vst.msk [vmem:[#allocation2 + $0x1a0] sm:$0xff] %vm1614_vm7, %v1527_v4  ;;  %v472_v4 = vrot.slane %v145_v54, 1 }
 0x3c8   :  { %1399 = vst.msk [vmem:[#allocation2 + $0x1a8] sm:$0xff] %vm1345_vm6, %v1260_v10  ;;  %2066 = vrot.lane.b32.xlu1 %v14359_v56, %s12357_s25  ;;  %1807 = vrot.lane.b32.xlu0 %v886_v9, %s12356_s22 }
 0x3ca   :  { %v2587_v36 = vpop.permute.xlu1 %2586  ;;  %v2322_v22 = vpop.permute.xlu0 %2321 }
 0x3cb   :  { %2729 = vst.msk [vmem:[#allocation2 + $0x190] sm:$0xff] %vm2678_vm11, %v2587_v36 }
 0x3cc   :  { %2463 = vst.msk [vmem:[#allocation2 + $0x198] sm:$0xff] %vm2411_vm10, %v2322_v22  ;;  %1273 = vrot.lane.b32.xlu1 %v14359_v56, %s12353_s18  ;;  %1014 = vrot.lane.b32.xlu0 %v886_v9, %s12352_s9  ;;  %v887_v9 = vrot.slane %v14359_v56, 2  ;;  %v14639_v22 = vsel %vm313_vm2, %v470_v17, %v472_v4 }
 0x3cd   :  { %19353 = vst [vmem:[#allocation71_spill] sm:$0xff] %v14639_v22 }
 0x3ce   :  { %v1529_v14 = vpop.permute.xlu1 %1528  ;;  %v583_v48 = vpop.permute.xlu0 %582  ;;  %v889_v56 = vsel %vm731_vm1, %v887_v9, %v888_v32 }
 0x3cf   :  { %1668 = vst.msk [vmem:[#allocation2 + $0x1a8] sm:$0xff] %vm1614_vm7, %v1529_v14 }
 0x3d0   :  { %721 = vst.msk [vmem:[#allocation2 + $0x1b0] sm:$0xff] %vm666_vm4, %v583_v48  ;;  %2335 = vrot.lane.b32.xlu1 %v14617_v40, %s12358_s11  ;;  %2068 = vrot.lane.b32.xlu0 %v14376_v60, %s12357_s25 }
 0x3d2   :  { %v2589_v10 = vpop.permute.xlu1 %2588  ;;  %v1794_v30 = vpop.permute.xlu0 %1793  ;;  %v2793_v36 = vld [vmem:[#allocation2 + $0x190] sm:$0xff] }
 0x3d3   :  { %2730 = vst.msk [vmem:[#allocation2 + $0x198] sm:$0xff] %vm2678_vm11, %v2589_v10  ;;  %11007 = vmatprep.mubr.msk.f32.mxu1 %vm2812_vm12, %v2793_v36  ;;  %v890_v10 = vrot.slane %v145_v54, 2 }
 0x3d4   :  { %1934 = vst.msk [vmem:[#allocation2 + $0x1a0] sm:$0xff] %vm1881_vm8, %v1794_v30  ;;  %1542 = vrot.lane.b32.xlu1 %v14617_v40, %s12355_s21  ;;  %1275 = vrot.lane.b32.xlu0 %v14376_v60, %s12353_s18 }
 0x3d5   :  { %v891_v17 = vsel %vm731_vm1, %v888_v32, %v890_v10  ;;  %v146_v32 = vld [vmem:[%s19067_s0 + $0x330] sm:$0xff] }
 0x3d6   :  { %v1001_v14 = vpop.permute.xlu1 %1000  ;;  %v585_v48 = vpop.permute.xlu0 %584 }
 0x3d7   :  { %1139 = vst.msk [vmem:[#allocation2 + $0x1b0] sm:$0xff] %vm1084_vm5, %v1001_v14 }
 0x3d8   :  { %722 = vst.msk [vmem:[#allocation2 + $0x1b8] sm:$0xff] %vm666_vm4, %v585_v48  ;;  %2602 = vrot.lane.b32.xlu1 %v889_v56, %s12359_s20  ;;  %2337 = vrot.lane.b32.xlu0 %v14639_v22, %s12358_s11 }
 0x3da   :  { %v2055_v30 = vpop.permute.xlu1 %2054  ;;  %v1796_v36 = vpop.permute.xlu0 %1795  ;;  %v2794_v60 = vld [vmem:[#allocation2 + $0x198] sm:$0xff] }
 0x3db   :  { %2195 = vst.msk [vmem:[#allocation2 + $0x1a0] sm:$0xff] %vm2142_vm9, %v2055_v30  ;;  %11008 = vmatmul.mubr.msk.f32.gmra.mxu1 %vm2812_vm12, %v2794_v60  ;;  %v147_v30 = vld [vmem:[%s19067_s0 + $0x338] sm:$0xff] }
 0x3dc   :  { %1935 = vst.msk [vmem:[#allocation2 + $0x1a8] sm:$0xff] %vm1881_vm8, %v1796_v36  ;;  %1544 = vrot.lane.b32.xlu1 %v14639_v22, %s12355_s21  ;;  %598 = vrot.lane.b32.xlu0 %v14617_v40, %s12354_s10  ;;  %v1417_v36 = vrot.slane %v146_v32, 1 }
 0x3de   :  { %v1262_v9 = vpop.permute.xlu1 %1261  ;;  %v1003_v4 = vpop.permute.xlu0 %1002 }
 0x3df   :  { %1400 = vst.msk [vmem:[#allocation2 + $0x1b0] sm:$0xff] %vm1345_vm6, %v1262_v9 }
 0x3e0   :  { %1140 = vst.msk [vmem:[#allocation2 + $0x1b8] sm:$0xff] %vm1084_vm5, %v1003_v4  ;;  %2604 = vrot.lane.b32.xlu1 %v891_v17, %s12359_s20  ;;  %1809 = vrot.lane.b32.xlu0 %v889_v56, %s12356_s22 }
 0x3e2   :  { %v2324_v54 = vpop.permute.xlu1 %2323  ;;  %v2057_v14 = vpop.permute.xlu0 %2056 }
 0x3e3   :  { %2464 = vst.msk [vmem:[#allocation2 + $0x1a0] sm:$0xff] %vm2411_vm10, %v2324_v54 }
 0x3e4   :  { %2196 = vst.msk [vmem:[#allocation2 + $0x1a8] sm:$0xff] %vm2142_vm9, %v2057_v14  ;;  %600 = vrot.lane.b32.xlu0 %v14639_v22, %s12354_s10  ;;  %1016 = vrot.lane.b32.xlu1 %v889_v56, %s12352_s9  ;;  %v1418_v56 = vrot.slane %v147_v30, 1 }
 0x3e6   :  { %v1531_v48 = vpop.permute.xlu1 %1530  ;;  %v1264_v10 = vpop.permute.xlu0 %1263  ;;  %v14678_v4 = vsel %vm313_vm2, %v1417_v36, %v1418_v56 }
 0x3e7   :  { %1669 = vst.msk [vmem:[#allocation2 + $0x1b0] sm:$0xff] %vm1614_vm7, %v1531_v48  ;;  %19354 = vst [vmem:[#allocation72_spill] sm:$0xff] %v14678_v4  ;;  %v148_v48 = vld [vmem:[%s19067_s0 + $0x340] sm:$0x3] }
 0x3e8   :  { %1401 = vst.msk [vmem:[#allocation2 + $0x1b8] sm:$0xff] %vm1345_vm6, %v1264_v10  ;;  %1811 = vrot.lane.b32.xlu0 %v891_v17, %s12356_s22  ;;  %2070 = vrot.lane.b32.xlu1 %v146_v32, %s12357_s25  ;;  %v1685_v10 = vrot.slane %v147_v30, 2 }
 0x3ea   :  { %v2591_v60 = vpop.permute.xlu1 %2590  ;;  %v2326_v9 = vpop.permute.xlu0 %2325 }
 0x3eb   :  { %2731 = vst.msk [vmem:[#allocation2 + $0x1a0] sm:$0xff] %vm2678_vm11, %v2591_v60  ;;  %v1420_v60 = vrot.slane %v148_v48, 1 }
 0x3ec   :  { %2465 = vst.msk [vmem:[#allocation2 + $0x1a8] sm:$0xff] %vm2411_vm10, %v2326_v9  ;;  %1018 = vrot.lane.b32.xlu0 %v891_v17, %s12352_s9  ;;  %1277 = vrot.lane.b32.xlu1 %v146_v32, %s12353_s18  ;;  %v1684_v17 = vrot.slane %v146_v32, 2 }
 0x3ee   :  { %v1533_v54 = vpop.permute.xlu1 %1532  ;;  %v587_v14 = vpop.permute.xlu0 %586  ;;  %v1686_v32 = vsel %vm731_vm1, %v1684_v17, %v1685_v10 }
 0x3ef   :  { %1670 = vst.msk [vmem:[#allocation2 + $0x1b8] sm:$0xff] %vm1614_vm7, %v1533_v54  ;;  %v14695_v54 = vsel %vm313_vm2, %v1418_v56, %v1420_v60  ;;  %v150_v60 = vld [vmem:[%s19067_s0 + $0x350] sm:$0xff] }
 0x3f0   :  { %723 = vst.msk [vmem:[#allocation2 + $0x1c0] sm:$0xff] %vm666_vm4, %v587_v14  ;;  %2072 = vrot.lane.b32.xlu0 %v147_v30, %s12357_s25  ;;  %2339 = vrot.lane.b32.xlu1 %v14678_v4, %s12358_s11  ;;  %19355 = vst [vmem:[#allocation73_spill] sm:$0xff] %v14695_v54 }
 0x3f2   :  { %v2593_v36 = vpop.permute.xlu1 %2592  ;;  %v1798_v9 = vpop.permute.xlu0 %1797  ;;  %v2795_v22 = vld [vmem:[#allocation2 + $0x1a0] sm:$0xff] }
 0x3f3   :  { %2732 = vst.msk [vmem:[#allocation2 + $0x1a8] sm:$0xff] %vm2678_vm11, %v2593_v36  ;;  %11010 = vmatprep.mubr.msk.f32.mxu1 %vm2812_vm12, %v2795_v22  ;;  %v1687_v22 = vrot.slane %v148_v48, 2  ;;  %v149_v48 = vld [vmem:[%s19067_s0 + $0x348] sm:$0xff] }
 0x3f4   :  { %1936 = vst.msk [vmem:[#allocation2 + $0x1b0] sm:$0xff] %vm1881_vm8, %v1798_v9  ;;  %1279 = vrot.lane.b32.xlu0 %v147_v30, %s12353_s18  ;;  %1546 = vrot.lane.b32.xlu1 %v14678_v4, %s12355_s21 }
 0x3f6   :  { %v1005_v14 = vpop.permute.xlu1 %1004  ;;  %v589_v40 = vpop.permute.xlu0 %588 }
 0x3f7   :  { %1141 = vst.msk [vmem:[#allocation2 + $0x1c0] sm:$0xff] %vm1084_vm5, %v1005_v14  ;;  %v151_v14 = vld [vmem:[%s19067_s0 + $0x358] sm:$0x3] }
 0x3f8   :  { %724 = vst.msk [vmem:[#allocation2 + $0x1c8] sm:$0xff] %vm666_vm4, %v589_v40  ;;  %2341 = vrot.lane.b32.xlu0 %v14695_v54, %s12358_s11  ;;  %2606 = vrot.lane.b32.xlu1 %v1686_v32, %s12359_s20  ;;  %v1688_v40 = vsel %vm731_vm1, %v1685_v10, %v1687_v22  ;;  %v2214_v10 = vrot.slane %v149_v48, 1  ;;  %v2217_v22 = vrot.slane %v151_v14, 1 }
 0x3fa   :  { %v2059_v30 = vpop.permute.xlu1 %2058  ;;  %v1800_v36 = vpop.permute.xlu0 %1799  ;;  %v2796_v9 = vld [vmem:[#allocation2 + $0x1a8] sm:$0xff] }
 0x3fb   :  { %2197 = vst.msk [vmem:[#allocation2 + $0x1b0] sm:$0xff] %vm2142_vm9, %v2059_v30  ;;  %11011 = vmatmul.mubr.msk.f32.gmra.mxu1 %vm2812_vm12, %v2796_v9  ;;  %v2481_v9 = vrot.slane %v149_v48, 2 }
 0x3fc   :  { %1937 = vst.msk [vmem:[#allocation2 + $0x1b8] sm:$0xff] %vm1881_vm8, %v1800_v36  ;;  %1548 = vrot.lane.b32.xlu0 %v14695_v54, %s12355_s21  ;;  %1813 = vrot.lane.b32.xlu1 %v1686_v32, %s12356_s22  ;;  %v2215_v32 = vrot.slane %v150_v60, 1 }
 0x3fe   :  { %v1266_v56 = vpop.permute.xlu1 %1265  ;;  %v1007_v17 = vpop.permute.xlu0 %1006  ;;  %v2218_v54 = vsel %vm313_vm2, %v2215_v32, %v2217_v22 }
 0x3ff   :  { %1402 = vst.msk [vmem:[#allocation2 + $0x1c0] sm:$0xff] %vm1345_vm6, %v1266_v56  ;;  %v2482_v56 = vrot.slane %v150_v60, 2 }
 0x400   :  { %1142 = vst.msk [vmem:[#allocation2 + $0x1c8] sm:$0xff] %vm1084_vm5, %v1007_v17  ;;  %2608 = vrot.lane.b32.xlu0 %v1688_v40, %s12359_s20  ;;  %1815 = vrot.lane.b32.xlu1 %v1688_v40, %s12356_s22  ;;  %v2216_v17 = vsel %vm313_vm2, %v2214_v10, %v2215_v32  ;;  %v2484_v40 = vrot.slane %v151_v14, 2 }
 0x402   :  { %v2328_v30 = vpop.permute.xlu1 %2327  ;;  %v2061_v36 = vpop.permute.xlu0 %2060 }
 0x403   :  { %2466 = vst.msk [vmem:[#allocation2 + $0x1b0] sm:$0xff] %vm2411_vm10, %v2328_v30  ;;  %v2485_v30 = vsel %vm731_vm1, %v2482_v56, %v2484_v40 }
 0x404   :  { %2198 = vst.msk [vmem:[#allocation2 + $0x1b8] sm:$0xff] %vm2142_vm9, %v2061_v36  ;;  %2074 = vrot.lane.b32.xlu0 %v149_v48, %s12357_s25  ;;  %2076 = vrot.lane.b32.xlu1 %v150_v60, %s12357_s25  ;;  %v2483_v48 = vsel %vm731_vm1, %v2481_v9, %v2482_v56 }
 0x406   :  { %v1535_v4 = vpop.permute.xlu1 %1534  ;;  %v1268_v43 = vpop.permute.xlu0 %1267 }
 0x407   :  { %1671 = vst.msk [vmem:[#allocation2 + $0x1c0] sm:$0xff] %vm1614_vm7, %v1535_v4 }
 0x408   :  { %1403 = vst.msk [vmem:[#allocation2 + $0x1c8] sm:$0xff] %vm1345_vm6, %v1268_v43  ;;  %2343 = vrot.lane.b32.xlu0 %v2216_v17, %s12358_s11  ;;  %2345 = vrot.lane.b32.xlu1 %v2218_v54, %s12358_s11 }
 0x40a   :  { %v2595_v60 = vpop.permute.xlu1 %2594  ;;  %v2330_v36 = vpop.permute.xlu0 %2329 }
 0x40b   :  { %2733 = vst.msk [vmem:[#allocation2 + $0x1b0] sm:$0xff] %vm2678_vm11, %v2595_v60 }
 0x40c   :  { %2467 = vst.msk [vmem:[#allocation2 + $0x1b8] sm:$0xff] %vm2411_vm10, %v2330_v36  ;;  %2610 = vrot.lane.b32.xlu0 %v2483_v48, %s12359_s20  ;;  %2612 = vrot.lane.b32.xlu1 %v2485_v30, %s12359_s20 }
 0x40e   :  { %v1537_v4 = vpop.permute.xlu1 %1536  ;;  %v591_v43 = vpop.permute.xlu0 %590 }
 0x40f   :  { %1672 = vst.msk [vmem:[#allocation2 + $0x1c8] sm:$0xff] %vm1614_vm7, %v1537_v4 }
 0x410   :  { %725 = vst.msk [vmem:[#allocation2 + $0x1d0] sm:$0xff] %vm666_vm4, %v591_v43 }
 0x412   :  { %v2597_v54 = vpop.permute.xlu1 %2596  ;;  %v1802_v14 = vpop.permute.xlu0 %1801  ;;  %v2797_v10 = vld [vmem:[#allocation2 + $0x1b0] sm:$0xff] }
 0x413   :  { %2734 = vst.msk [vmem:[#allocation2 + $0x1b8] sm:$0xff] %vm2678_vm11, %v2597_v54  ;;  %11013 = vmatprep.mubr.msk.f32.mxu1 %vm2812_vm12, %v2797_v10 }
 0x414   :  { %1938 = vst.msk [vmem:[#allocation2 + $0x1c0] sm:$0xff] %vm1881_vm8, %v1802_v14 }
 0x416   :  { %v1009_v32 = vpop.permute.xlu1 %1008  ;;  %v593_v22 = vpop.permute.xlu0 %592 }
 0x417   :  { %1143 = vst.msk [vmem:[#allocation2 + $0x1d0] sm:$0xff] %vm1084_vm5, %v1009_v32 }
 0x418   :  { %726 = vst.msk [vmem:[#allocation2 + $0x1d8] sm:$0xff] %vm666_vm4, %v593_v22 }
 0x41a   :  { %v2063_v9 = vpop.permute.xlu1 %2062  ;;  %v1804_v56 = vpop.permute.xlu0 %1803  ;;  %v2798_v17 = vld [vmem:[#allocation2 + $0x1b8] sm:$0xff] }
 0x41b   :  { %2199 = vst.msk [vmem:[#allocation2 + $0x1c0] sm:$0xff] %vm2142_vm9, %v2063_v9  ;;  %11014 = vmatmul.mubr.msk.f32.gmra.mxu1 %vm2812_vm12, %v2798_v17 }
 0x41c   :  { %1939 = vst.msk [vmem:[#allocation2 + $0x1c8] sm:$0xff] %vm1881_vm8, %v1804_v56 }
 0x41e   :  { %v1270_v40 = vpop.permute.xlu1 %1269  ;;  %v1011_v48 = vpop.permute.xlu0 %1010 }
 0x41f   :  { %1404 = vst.msk [vmem:[#allocation2 + $0x1d0] sm:$0xff] %vm1345_vm6, %v1270_v40 }
 0x420   :  { %1144 = vst.msk [vmem:[#allocation2 + $0x1d8] sm:$0xff] %vm1084_vm5, %v1011_v48 }
 0x422   :  { %v2332_v30 = vpop.permute.xlu1 %2331  ;;  %v2065_v60 = vpop.permute.xlu0 %2064 }
 0x423   :  { %2468 = vst.msk [vmem:[#allocation2 + $0x1c0] sm:$0xff] %vm2411_vm10, %v2332_v30 }
 0x424   :  { %2200 = vst.msk [vmem:[#allocation2 + $0x1c8] sm:$0xff] %vm2142_vm9, %v2065_v60 }
 0x426   :  { %v1539_v36 = vpop.permute.xlu1 %1538  ;;  %v1272_v4 = vpop.permute.xlu0 %1271 }
 0x427   :  { %1673 = vst.msk [vmem:[#allocation2 + $0x1d0] sm:$0xff] %vm1614_vm7, %v1539_v36 }
 0x428   :  { %1405 = vst.msk [vmem:[#allocation2 + $0x1d8] sm:$0xff] %vm1345_vm6, %v1272_v4 }
 0x42a   :  { %v2599_v43 = vpop.permute.xlu1 %2598  ;;  %v2334_v54 = vpop.permute.xlu0 %2333 }
 0x42b   :  { %2735 = vst.msk [vmem:[#allocation2 + $0x1c0] sm:$0xff] %vm2678_vm11, %v2599_v43 }
 0x42c   :  { %2469 = vst.msk [vmem:[#allocation2 + $0x1c8] sm:$0xff] %vm2411_vm10, %v2334_v54 }
 0x42e   :  { %v1541_v14 = vpop.permute.xlu1 %1540  ;;  %v595_v10 = vpop.permute.xlu0 %594 }
 0x42f   :  { %1674 = vst.msk [vmem:[#allocation2 + $0x1d8] sm:$0xff] %vm1614_vm7, %v1541_v14 }
 0x430   :  { %727 = vst.msk [vmem:[#allocation2 + $0x1e0] sm:$0xff] %vm666_vm4, %v595_v10 }
 0x432   :  { %v2601_v32 = vpop.permute.xlu1 %2600  ;;  %v1806_v22 = vpop.permute.xlu0 %1805  ;;  %v2799_v9 = vld [vmem:[#allocation2 + $0x1c0] sm:$0xff] }
 0x433   :  { %2736 = vst.msk [vmem:[#allocation2 + $0x1c8] sm:$0xff] %vm2678_vm11, %v2601_v32  ;;  %11016 = vmatprep.mubr.msk.f32.mxu1 %vm2812_vm12, %v2799_v9 }
 0x434   :  { %1940 = vst.msk [vmem:[#allocation2 + $0x1d0] sm:$0xff] %vm1881_vm8, %v1806_v22 }
 0x436   :  { %v1013_v56 = vpop.permute.xlu1 %1012  ;;  %v597_v17 = vpop.permute.xlu0 %596 }
 0x437   :  { %1145 = vst.msk [vmem:[#allocation2 + $0x1e0] sm:$0xff] %vm1084_vm5, %v1013_v56 }
 0x438   :  { %728 = vst.msk [vmem:[#allocation2 + $0x1e8] sm:$0xff] %vm666_vm4, %v597_v17 }
 0x43a   :  { %v2067_v40 = vpop.permute.xlu1 %2066  ;;  %v1808_v48 = vpop.permute.xlu0 %1807  ;;  %v2800_v30 = vld [vmem:[#allocation2 + $0x1c8] sm:$0xff] }
 0x43b   :  { %2201 = vst.msk [vmem:[#allocation2 + $0x1d0] sm:$0xff] %vm2142_vm9, %v2067_v40  ;;  %11017 = vmatmul.mubr.msk.f32.gmra.mxu1 %vm2812_vm12, %v2800_v30 }
 0x43c   :  { %1941 = vst.msk [vmem:[#allocation2 + $0x1d8] sm:$0xff] %vm1881_vm8, %v1808_v48 }
 0x43e   :  { %v1274_v60 = vpop.permute.xlu1 %1273  ;;  %v1015_v36 = vpop.permute.xlu0 %1014 }
 0x43f   :  { %1406 = vst.msk [vmem:[#allocation2 + $0x1e0] sm:$0xff] %vm1345_vm6, %v1274_v60 }
 0x440   :  { %1146 = vst.msk [vmem:[#allocation2 + $0x1e8] sm:$0xff] %vm1084_vm5, %v1015_v36 }
 0x442   :  { %v2336_v4 = vpop.permute.xlu1 %2335  ;;  %v2069_v43 = vpop.permute.xlu0 %2068 }
 0x443   :  { %2470 = vst.msk [vmem:[#allocation2 + $0x1d0] sm:$0xff] %vm2411_vm10, %v2336_v4 }
 0x444   :  { %2202 = vst.msk [vmem:[#allocation2 + $0x1d8] sm:$0xff] %vm2142_vm9, %v2069_v43 }
 0x446   :  { %v1543_v54 = vpop.permute.xlu1 %1542  ;;  %v1276_v14 = vpop.permute.xlu0 %1275 }
 0x447   :  { %1675 = vst.msk [vmem:[#allocation2 + $0x1e0] sm:$0xff] %vm1614_vm7, %v1543_v54 }
 0x448   :  { %1407 = vst.msk [vmem:[#allocation2 + $0x1e8] sm:$0xff] %vm1345_vm6, %v1276_v14 }
 0x44a   :  { %v2603_v10 = vpop.permute.xlu1 %2602  ;;  %v2338_v32 = vpop.permute.xlu0 %2337 }
 0x44b   :  { %2737 = vst.msk [vmem:[#allocation2 + $0x1d0] sm:$0xff] %vm2678_vm11, %v2603_v10 }
 0x44c   :  { %2471 = vst.msk [vmem:[#allocation2 + $0x1d8] sm:$0xff] %vm2411_vm10, %v2338_v32 }
 0x44e   :  { %v1545_v22 = vpop.permute.xlu1 %1544  ;;  %v599_v9 = vpop.permute.xlu0 %598 }
 0x44f   :  { %1676 = vst.msk [vmem:[#allocation2 + $0x1e8] sm:$0xff] %vm1614_vm7, %v1545_v22 }
 0x450   :  { %729 = vst.msk [vmem:[#allocation2 + $0x1f0] sm:$0xff] %vm666_vm4, %v599_v9 }
 0x452   :  { %v2605_v56 = vpop.permute.xlu1 %2604  ;;  %v1810_v17 = vpop.permute.xlu0 %1809  ;;  %v2801_v40 = vld [vmem:[#allocation2 + $0x1d0] sm:$0xff] }
 0x453   :  { %2738 = vst.msk [vmem:[#allocation2 + $0x1d8] sm:$0xff] %vm2678_vm11, %v2605_v56  ;;  %11019 = vmatprep.mubr.msk.f32.mxu1 %vm2812_vm12, %v2801_v40 }
 0x454   :  { %1942 = vst.msk [vmem:[#allocation2 + $0x1e0] sm:$0xff] %vm1881_vm8, %v1810_v17 }
 0x456   :  { %v601_v48 = vpop.permute.xlu0 %600  ;;  %v1017_v30 = vpop.permute.xlu1 %1016 }
 0x457   :  { %730 = vst.msk [vmem:[#allocation2 + $0x1f8] sm:$0xff] %vm666_vm4, %v601_v48 }
 0x458   :  { %1147 = vst.msk [vmem:[#allocation2 + $0x1f0] sm:$0xff] %vm1084_vm5, %v1017_v30 }
 0x45a   :  { %v1812_v60 = vpop.permute.xlu0 %1811  ;;  %v2071_v36 = vpop.permute.xlu1 %2070  ;;  %v2802_v4 = vld [vmem:[#allocation2 + $0x1d8] sm:$0xff] }
 0x45b   :  { %1943 = vst.msk [vmem:[#allocation2 + $0x1e8] sm:$0xff] %vm1881_vm8, %v1812_v60  ;;  %11020 = vmatmul.mubr.msk.f32.gmra.mxu1 %vm2812_vm12, %v2802_v4 }
 0x45c   :  { %2203 = vst.msk [vmem:[#allocation2 + $0x1e0] sm:$0xff] %vm2142_vm9, %v2071_v36 }
 0x45e   :  { %v1019_v43 = vpop.permute.xlu0 %1018  ;;  %v1278_v54 = vpop.permute.xlu1 %1277 }
 0x45f   :  { %1148 = vst.msk [vmem:[#allocation2 + $0x1f8] sm:$0xff] %vm1084_vm5, %v1019_v43 }
 0x460   :  { %1408 = vst.msk [vmem:[#allocation2 + $0x1f0] sm:$0xff] %vm1345_vm6, %v1278_v54 }
 0x462   :  { %v2073_v14 = vpop.permute.xlu0 %2072  ;;  %v2340_v10 = vpop.permute.xlu1 %2339 }
 0x463   :  { %2204 = vst.msk [vmem:[#allocation2 + $0x1e8] sm:$0xff] %vm2142_vm9, %v2073_v14 }
 0x464   :  { %2472 = vst.msk [vmem:[#allocation2 + $0x1e0] sm:$0xff] %vm2411_vm10, %v2340_v10 }
 0x466   :  { %v1280_v32 = vpop.permute.xlu0 %1279  ;;  %v1547_v22 = vpop.permute.xlu1 %1546 }
 0x467   :  { %1409 = vst.msk [vmem:[#allocation2 + $0x1f8] sm:$0xff] %vm1345_vm6, %v1280_v32 }
 0x468   :  { %1677 = vst.msk [vmem:[#allocation2 + $0x1f0] sm:$0xff] %vm1614_vm7, %v1547_v22 }
 0x46a   :  { %v2342_v9 = vpop.permute.xlu0 %2341  ;;  %v2607_v56 = vpop.permute.xlu1 %2606 }
 0x46b   :  { %2473 = vst.msk [vmem:[#allocation2 + $0x1e8] sm:$0xff] %vm2411_vm10, %v2342_v9 }
 0x46c   :  { %2739 = vst.msk [vmem:[#allocation2 + $0x1e0] sm:$0xff] %vm2678_vm11, %v2607_v56  ;;  %v14806_v56 = vpop.f32.mrf.mxu0 }
 0x46e   :  { %v1549_v17 = vpop.permute.xlu0 %1548  ;;  %v1814_v40 = vpop.permute.xlu1 %1813 }
 0x46f   :  { %1678 = vst.msk [vmem:[#allocation2 + $0x1f8] sm:$0xff] %vm1614_vm7, %v1549_v17  ;;  %v14809_v17 = vpop.f32.mrf.mxu0 }
 0x470   :  { %1944 = vst.msk [vmem:[#allocation2 + $0x1f0] sm:$0xff] %vm1881_vm8, %v1814_v40 }
 0x471   :  { %v14811_v40 = vpop.f32.mrf.mxu0 }
 0x472   :  { %v2609_v48 = vpop.permute.xlu0 %2608  ;;  %v1816_v30 = vpop.permute.xlu1 %1815 }
 0x473   :  { %v2803_v60 = vld [vmem:[#allocation2 + $0x1e0] sm:$0xff]  ;;  %2740 = vst.msk [vmem:[#allocation2 + $0x1e8] sm:$0xff] %vm2678_vm11, %v2609_v48  ;;  %v14813_v48 = vpop.f32.mrf.mxu0 }
 0x474   :  { %1945 = vst.msk [vmem:[#allocation2 + $0x1f8] sm:$0xff] %vm1881_vm8, %v1816_v30  ;;  %11022 = vmatprep.mubr.msk.f32.mxu1 %vm2812_vm12, %v2803_v60  ;;  %v3464_v30 = vmul.f32 %v14806_v56, %v14806_v56  ;;  %v3463_v60 = vmul.f32 %v14809_v17, %v14809_v17 }
 0x476   :  { %v2075_v36 = vpop.permute.xlu0 %2074  ;;  %v2077_v4 = vpop.permute.xlu1 %2076 }
 0x477   :  { %2205 = vst.msk [vmem:[#allocation2 + $0x1f0] sm:$0xff] %vm2142_vm9, %v2075_v36  ;;  %2206 = vst.msk [vmem:[#allocation2 + $0x1f8] sm:$0xff] %vm2142_vm9, %v2077_v4  ;;  %v14819_v36 = vpop.f32.mrf.mxu0  ;;  %v3394_v4 = vadd.f32 %v14806_v56, %v14809_v17 }
 0x47a   :  { %v2344_v43 = vpop.permute.xlu0 %2343  ;;  %v2346_v54 = vpop.permute.xlu1 %2345  ;;  %v2804_v14 = vld [vmem:[#allocation2 + $0x1e8] sm:$0xff] }
 0x47b   :  { %2474 = vst.msk [vmem:[#allocation2 + $0x1f0] sm:$0xff] %vm2411_vm10, %v2344_v43  ;;  %2475 = vst.msk [vmem:[#allocation2 + $0x1f8] sm:$0xff] %vm2411_vm10, %v2346_v54  ;;  %11023 = vmatmul.mubr.msk.f32.gmra.mxu1 %vm2812_vm12, %v2804_v14  ;;  %v3465_v43 = vmul.f32 %v14813_v48, %v14813_v48  ;;  %v3527_v54 = vadd.f32 %v3464_v30, %v3463_v60  ;;  %v3395_v14 = vadd.f32 %v3394_v4, %v14813_v48 }
 0x47c   :  { %v3468_v4 = vmul.f32 %v14819_v36, %v14819_v36 }
 0x47d   :  { %v3396_v38 = vadd.f32 %v14811_v40, %v3395_v14 }
 0x47e   :  { %v2611_v10 = vpop.permute.xlu0 %2610  ;;  %v2613_v32 = vpop.permute.xlu1 %2612 }
 0x47f   :  { %2741 = vst.msk [vmem:[#allocation2 + $0x1f0] sm:$0xff] %vm2678_vm11, %v2611_v10  ;;  %2742 = vst.msk [vmem:[#allocation2 + $0x1f8] sm:$0xff] %vm2678_vm11, %v2613_v32  ;;  %v14826_v10 = vpop.f32.mrf.mxu0  ;;  %v3528_v32 = vadd.f32 %v3527_v54, %v3465_v43 }
 0x480   :  { %v3467_v58 = vmul.f32 %v14826_v10, %v14826_v10  ;;  %v3397_v7 = vadd.f32 %v3396_v38, %v14826_v10 }
 0x482   :  { %v3398_v43 = vadd.f32 %v14819_v36, %v3397_v7 }
 0x486   :  { %v2805_v22 = vld [vmem:[#allocation2 + $0x1f0] sm:$0xff]  ;;  %v2806_v9 = vld [vmem:[#allocation2 + $0x1f8] sm:$0xff] }
 0x487   :  { %11025 = vmatprep.mubr.msk.f32.mxu1 %vm2812_vm12, %v2805_v22  ;;  %v14828_v22 = vpop.f32.mrf.mxu0 }
 0x488   :  { %11026 = vmatmul.mubr.msk.f32.gmra.mxu1 %vm2812_vm12, %v2806_v9  ;;  %v3466_v9 = vmul.f32 %v14811_v40, %v14811_v40 }
 0x489   :  { %v14836_v51 = vpop.f32.mrf.mxu0 }
 0x48a   :  { %v3529_v37 = vadd.f32 %v3528_v32, %v3466_v9  ;;  %v3469_v54 = vmul.f32 %v14836_v51, %v14836_v51  ;;  %v3399_v14 = vadd.f32 %v3398_v43, %v14836_v51 }
 0x48b   :  { %v14838_v60 = vpop.f32.mrf.mxu0 }
 0x48c   :  { %v3530_v30 = vadd.f32 %v3529_v37, %v3467_v58  ;;  %v3470_v37 = vmul.f32 %v14828_v22, %v14828_v22  ;;  %v3400_v58 = vadd.f32 %v14828_v22, %v3399_v14 }
 0x48d   :  { %v14846_v0 = vpop.f32.mrf.mxu0 }
 0x48e   :  { %v3531_v33 = vadd.f32 %v3530_v30, %v3468_v4  ;;  %v3471_v9 = vmul.f32 %v14846_v0, %v14846_v0  ;;  %v3401_v7 = vadd.f32 %v3400_v58, %v14846_v0 }
 0x48f   :  { %v14848_v38 = vpop.f32.mrf.mxu0 }
 0x490   :  { %v3532_v32 = vadd.f32 %v3531_v33, %v3469_v54  ;;  %v3472_v33 = vmul.f32 %v14838_v60, %v14838_v60  ;;  %v3402_v4 = vadd.f32 %v14838_v60, %v3401_v7 }
 0x491   :  { %v14856_v21 = vpop.f32.mrf.mxu0 }
 0x492   :  { %v3533_v46 = vadd.f32 %v3532_v32, %v3470_v37  ;;  %v3473_v54 = vmul.f32 %v14856_v21, %v14856_v21  ;;  %v3403_v14 = vadd.f32 %v3402_v4, %v14856_v21 }
 0x493   :  { %v14858_v30 = vpop.f32.mrf.mxu0 }
 0x494   :  { %v3534_v43 = vadd.f32 %v3533_v46, %v3471_v9  ;;  %v3474_v46 = vmul.f32 %v14848_v38, %v14848_v38  ;;  %v3404_v37 = vadd.f32 %v14848_v38, %v3403_v14 }
 0x495   :  { %v14866_v8 = vpop.f32.mrf.mxu0 }
 0x496   :  { %v3535_v61 = vadd.f32 %v3534_v43, %v3472_v33  ;;  %v3475_v9 = vmul.f32 %v14866_v8, %v14866_v8  ;;  %v3405_v7 = vadd.f32 %v3404_v37, %v14866_v8 }
 0x497   :  { %v14868_v32 = vpop.f32.mrf.mxu0 }
 0x498   :  { %v3536_v58 = vadd.f32 %v3535_v61, %v3473_v54  ;;  %v3476_v61 = vmul.f32 %v14858_v30, %v14858_v30  ;;  %v3406_v33 = vadd.f32 %v14858_v30, %v3405_v7  ;;  %v4247_v7 = vld [vmem:[#allocation4 + $0xf8] sm:$0xff] }
 0x499   :  { %v14876_v15 = vpop.f32.mrf.mxu0  ;;  %11028 = vmatprep.subr.mxu1 %v4247_v7 }
 0x49a   :  { %v3537_v18 = vadd.f32 %v3536_v58, %v3474_v46  ;;  %v3477_v54 = vmul.f32 %v14876_v15, %v14876_v15  ;;  %v3407_v14 = vadd.f32 %v3406_v33, %v14876_v15  ;;  %11029 = vmatpush3.msra.mxu1 %v4247_v7 }
 0x49b   :  { %v14878_v43 = vpop.f32.mrf.mxu0  ;;  %11030 = vmatprep.subr.mxu1 %v4246_v12 }
 0x49c   :  { %v3538_v4 = vadd.f32 %v3537_v18, %v3475_v9  ;;  %v3478_v18 = vmul.f32 %v14868_v32, %v14868_v32  ;;  %v3408_v46 = vadd.f32 %v14868_v32, %v3407_v14  ;;  %11031 = vmatpush3.msra.mxu1 %v4246_v12 }
 0x49d   :  { %v14886_v44 = vpop.f32.mrf.mxu0 }
 0x49e   :  { %v3539_v3 = vadd.f32 %v3538_v4, %v3476_v61  ;;  %v3479_v9 = vmul.f32 %v14886_v44, %v14886_v44  ;;  %v3409_v27 = vadd.f32 %v3408_v46, %v14886_v44 }
 0x49f   :  { %v14888_v58 = vpop.f32.mrf.mxu0 }
 0x4a0   :  { %v3540_v37 = vadd.f32 %v3539_v3, %v3477_v54  ;;  %v4245_v3 = vld [vmem:[#allocation4 + $0xe8] sm:$0xff]  ;;  %v3480_v54 = vmul.f32 %v14878_v43, %v14878_v43  ;;  %v3410_v14 = vadd.f32 %v14878_v43, %v3409_v27  ;;  %v3482_v12 = vmul.f32 %v14888_v58, %v14888_v58 }
 0x4a1   :  { %v14896_v4 = vpop.f32.mrf.mxu0  ;;  %11032 = vmatprep.subr.mxu1 %v4245_v3 }
 0x4a2   :  { %v3541_v29 = vadd.f32 %v3540_v37, %v3478_v18  ;;  %v3481_v23 = vmul.f32 %v14896_v4, %v14896_v4  ;;  %11033 = vmatpush3.msra.mxu1 %v4245_v3  ;;  %v3411_v37 = vadd.f32 %v3410_v14, %v14896_v4 }
 0x4a3   :  { %v14898_v33 = vpop.f32.mrf.mxu0 }
 0x4a4   :  { %v3542_v61 = vadd.f32 %v3541_v29, %v3479_v9  ;;  %v3412_v7 = vadd.f32 %v14888_v58, %v3411_v37 }
 0x4a5   :  { %v14906_v46 = vpop.f32.mrf.mxu0 }
 0x4a6   :  { %v3543_v18 = vadd.f32 %v3542_v61, %v3480_v54  ;;  %v3483_v27 = vmul.f32 %v14906_v46, %v14906_v46  ;;  %v3413_v53 = vadd.f32 %v3412_v7, %v14906_v46 }
 0x4a7   :  { %v14908_v9 = vpop.f32.mrf.mxu0 }
 0x4a8   :  { %v3544_v29 = vadd.f32 %v3543_v18, %v3481_v23  ;;  %v3484_v23 = vmul.f32 %v14898_v33, %v14898_v33  ;;  %v3414_v54 = vadd.f32 %v14898_v33, %v3413_v53 }
 0x4a9   :  { %v14916_v3 = vpop.f32.mrf.mxu0 }
 0x4aa   :  { %v3545_v45 = vadd.f32 %v3544_v29, %v3482_v12  ;;  %v3485_v18 = vmul.f32 %v14916_v3, %v14916_v3  ;;  %v3415_v37 = vadd.f32 %v3414_v54, %v14916_v3 }
 0x4ab   :  { %v14918_v61 = vpop.f32.mrf.mxu0 }
 0x4ac   :  { %v3546_v14 = vadd.f32 %v3545_v45, %v3483_v27  ;;  %v3486_v45 = vmul.f32 %v14908_v9, %v14908_v9  ;;  %v3416_v12 = vadd.f32 %v14908_v9, %v3415_v37 }
 0x4ad   :  { %v14926_v31 = vpop.f32.mrf.mxu0 }
 0x4ae   :  { %v3547_v57 = vadd.f32 %v3546_v14, %v3484_v23  ;;  %v3487_v27 = vmul.f32 %v14926_v31, %v14926_v31  ;;  %v3417_v53 = vadd.f32 %v3416_v12, %v14926_v31 }
 0x4af   :  { %v14928_v29 = vpop.f32.mrf.mxu0 }
 0x4b0   :  { %v3548_v7 = vadd.f32 %v3547_v57, %v3485_v18  ;;  %v3488_v57 = vmul.f32 %v14918_v61, %v14918_v61  ;;  %v3418_v23 = vadd.f32 %v14918_v61, %v3417_v53 }
 0x4b1   :  { %v14936_v24 = vpop.f32.mrf.mxu0 }
 0x4b2   :  { %v3549_v49 = vadd.f32 %v3548_v7, %v3486_v45  ;;  %v3489_v18 = vmul.f32 %v14936_v24, %v14936_v24  ;;  %v3419_v37 = vadd.f32 %v3418_v23, %v14936_v24 }
 0x4b3   :  { %v14938_v14 = vpop.f32.mrf.mxu0 }
 0x4b4   :  { %v3550_v54 = vadd.f32 %v3549_v49, %v3487_v27  ;;  %v3490_v49 = vmul.f32 %v14928_v29, %v14928_v29  ;;  %v3420_v45 = vadd.f32 %v14928_v29, %v3419_v37 }
 0x4b5   :  { %v14946_v20 = vpop.f32.mrf.mxu0 }
 0x4b6   :  { %v3551_v25 = vadd.f32 %v3550_v54, %v3488_v57  ;;  %v3491_v27 = vmul.f32 %v14946_v20, %v14946_v20  ;;  %v3421_v53 = vadd.f32 %v3420_v45, %v14946_v20  ;;  %v14958_v54 = vpop.f32.mrf.mxu1 }
 0x4b7   :  { %v14948_v7 = vpop.f32.mrf.mxu0 }
 0x4b8   :  { %v3552_v12 = vadd.f32 %v3551_v25, %v3489_v18  ;;  %v3492_v25 = vmul.f32 %v14938_v14, %v14938_v14  ;;  %v3422_v57 = vadd.f32 %v14938_v14, %v3421_v53  ;;  %v14966_v47 = vpop.f32.mrf.mxu1 }
 0x4b9   :  { %v14956_v1 = vpop.f32.mrf.mxu0 }
 0x4ba   :  { %v3553_v55 = vadd.f32 %v3552_v12, %v3490_v49  ;;  %v3493_v18 = vmul.f32 %v14956_v1, %v14956_v1  ;;  %v3423_v37 = vadd.f32 %v3422_v57, %v14956_v1  ;;  %v14968_v12 = vpop.f32.mrf.mxu1 }
 0x4bc   :  { %v3554_v23 = vadd.f32 %v3553_v55, %v3491_v27  ;;  %v3494_v55 = vmul.f32 %v14948_v7, %v14948_v7  ;;  %v3424_v49 = vadd.f32 %v14948_v7, %v3423_v37  ;;  %v3495_v27 = vmul.f32 %v14966_v47, %v14966_v47  ;;  %v14976_v2 = vpop.f32.mrf.mxu1 }
 0x4be   :  { %v3555_v6 = vadd.f32 %v3554_v23, %v3492_v25  ;;  %v3425_v53 = vadd.f32 %v3424_v49, %v14966_v47  ;;  %v14978_v23 = vpop.f32.mrf.mxu1 }
 0x4c0   :  { %v3556_v45 = vadd.f32 %v3555_v6, %v3493_v18  ;;  %v3496_v6 = vmul.f32 %v14958_v54, %v14958_v54  ;;  %v3426_v25 = vadd.f32 %v14958_v54, %v3425_v53  ;;  %v3497_v18 = vmul.f32 %v14976_v2, %v14976_v2  ;;  %v14986_v19 = vpop.f32.mrf.mxu1 }
 0x4c2   :  { %v3557_v16 = vadd.f32 %v3556_v45, %v3494_v55  ;;  %v3427_v37 = vadd.f32 %v3426_v25, %v14976_v2  ;;  %v14988_v45 = vpop.f32.mrf.mxu1 }
 0x4c4   :  { %v3558_v57 = vadd.f32 %v3557_v16, %v3495_v27  ;;  %v3498_v16 = vmul.f32 %v14968_v12, %v14968_v12  ;;  %v3428_v55 = vadd.f32 %v14968_v12, %v3427_v37  ;;  %v3499_v27 = vmul.f32 %v14986_v19, %v14986_v19  ;;  %v14996_v42 = vpop.f32.mrf.mxu1 }
 0x4c6   :  { %v3559_v35 = vadd.f32 %v3558_v57, %v3496_v6  ;;  %v3429_v53 = vadd.f32 %v3428_v55, %v14986_v19  ;;  %v14998_v57 = vpop.f32.mrf.mxu1 }
 0x4c8   :  { %v3560_v49 = vadd.f32 %v3559_v35, %v3497_v18  ;;  %v3500_v35 = vmul.f32 %v14978_v23, %v14978_v23  ;;  %v3430_v6 = vadd.f32 %v14978_v23, %v3429_v53  ;;  %v3501_v18 = vmul.f32 %v14996_v42, %v14996_v42  ;;  %v15006_v63 = vpop.f32.mrf.mxu1 }
 0x4ca   :  { %v3561_v52 = vadd.f32 %v3560_v49, %v3498_v16  ;;  %v3431_v37 = vadd.f32 %v3430_v6, %v14996_v42  ;;  %v15008_v49 = vpop.f32.mrf.mxu1 }
 0x4cb   :  { %19356 = vst [vmem:[#allocation74_spill] sm:$0xff] %v15008_v49 }
 0x4cc   :  { %v3562_v25 = vadd.f32 %v3561_v52, %v3499_v27  ;;  %v3502_v52 = vmul.f32 %v14988_v45, %v14988_v45  ;;  %v3432_v16 = vadd.f32 %v14988_v45, %v3431_v37  ;;  %v3503_v27 = vmul.f32 %v15006_v63, %v15006_v63  ;;  %v15016_v26 = vpop.f32.mrf.mxu1  ;;  %v4166_v37 = vld [vmem:[#allocation4 + $0x78] sm:$0xff] }
 0x4cd   :  { %19357 = vst [vmem:[#allocation75_spill] sm:$0xff] %v15016_v26  ;;  %11156 = vmatprep.subr.mxu0 %v4166_v37 }
 0x4ce   :  { %v3563_v13 = vadd.f32 %v3562_v25, %v3500_v35  ;;  %v3433_v53 = vadd.f32 %v3432_v16, %v15006_v63  ;;  %v15018_v25 = vpop.f32.mrf.mxu1  ;;  %11157 = vmatpush3.msra.mxu0 %v4166_v37 }
 0x4cf   :  { %19358 = vst [vmem:[#allocation76_spill] sm:$0xff] %v15018_v25 }
 0x4d0   :  { %v3564_v55 = vadd.f32 %v3563_v13, %v3501_v18  ;;  %v3504_v13 = vmul.f32 %v14998_v57, %v14998_v57  ;;  %v3434_v35 = vadd.f32 %v14998_v57, %v3433_v53  ;;  %v3505_v18 = vmul.f32 %v15016_v26, %v15016_v26  ;;  %v15026_v16 = vpop.f32.mrf.mxu1 }
 0x4d1   :  { %19359 = vst [vmem:[#allocation77_spill] sm:$0xff] %v15026_v16  ;;  %v3506_v53 = vmul.f32 %v15008_v49, %v15008_v49 }
 0x4d2   :  { %v3565_v39 = vadd.f32 %v3564_v55, %v3502_v52  ;;  %v3435_v11 = vadd.f32 %v3434_v35, %v15016_v26  ;;  %v4165_v55 = vld [vmem:[#allocation4 + $0x70] sm:$0xff]  ;;  %v15028_v52 = vpop.f32.mrf.mxu1  ;;  %v3507_v35 = vmul.f32 %v15026_v16, %v15026_v16 }
 0x4d3   :  { %11158 = vmatprep.subr.mxu0 %v4165_v55  ;;  %19360 = vst [vmem:[#allocation78_spill] sm:$0xff] %v15028_v52 }
 0x4d4   :  { %v3566_v6 = vadd.f32 %v3565_v39, %v3503_v27  ;;  %11159 = vmatpush3.msra.mxu0 %v4165_v55  ;;  %v4164_v27 = vld [vmem:[#allocation4 + $0x68] sm:$0xff]  ;;  %v3436_v62 = vadd.f32 %v15008_v49, %v3435_v11  ;;  %v4243_v55 = vld [vmem:[#allocation4 + $0xd8] sm:$0xff] }
 0x4d5   :  { %11160 = vmatprep.subr.mxu0 %v4164_v27 }
 0x4d6   :  { %v3567_v5 = vadd.f32 %v3566_v6, %v3504_v13  ;;  %v4244_v6 = vld [vmem:[#allocation4 + $0xe0] sm:$0xff]  ;;  %11161 = vmatpush3.msra.mxu0 %v4164_v27  ;;  %v3437_v37 = vadd.f32 %v3436_v62, %v15026_v16  ;;  %v4161_v27 = vld [vmem:[#allocation4 + $0x50] sm:$0xff]  ;;  %v3508_v62 = vmul.f32 %v15018_v25, %v15018_v25 }
 0x4d7   :  { %v4163_v13 = vld [vmem:[#allocation4 + $0x60] sm:$0xff]  ;;  %11034 = vmatprep.subr.mxu1 %v4244_v6 }
 0x4d8   :  { %v3568_v39 = vadd.f32 %v3567_v5, %v3505_v18  ;;  %11162 = vmatprep.subr.mxu0 %v4163_v13  ;;  %v15036_v18 = vpop.f32.mrf.mxu1  ;;  %11035 = vmatpush3.msra.mxu1 %v4244_v6  ;;  %v4160_v6 = vld [vmem:[#allocation4 + $0x48] sm:$0xff] }
 0x4d9   :  { %19361 = vst [vmem:[#allocation79_spill] sm:$0xff] %v15036_v18  ;;  %11163 = vmatpush3.msra.mxu0 %v4163_v13  ;;  %11036 = vmatprep.subr.mxu1 %v4243_v55 }
 0x4da   :  { %v3569_v5 = vadd.f32 %v3568_v39, %v3506_v53  ;;  %11164 = vmatprep.subr.mxu0 %v4162_v59  ;;  %v15038_v11 = vpop.f32.mrf.mxu1  ;;  %11037 = vmatpush3.msra.mxu1 %v4243_v55  ;;  %v3438_v39 = vadd.f32 %v15018_v25, %v3437_v37  ;;  %v3509_v53 = vmul.f32 %v15036_v18, %v15036_v18  ;;  %v4240_v55 = vld [vmem:[#allocation4 + $0xc0] sm:$0xff] }
 0x4db   :  { %19362 = vst [vmem:[#allocation80_spill] sm:$0xff] %v15038_v11  ;;  %11165 = vmatpush3.msra.mxu0 %v4162_v59  ;;  %11038 = vmatprep.subr.mxu1 %v4242_v41  ;;  %v4159_v37 = vld [vmem:[#allocation4 + $0x40] sm:$0xff] }
 0x4dc   :  { %v3570_v50 = vadd.f32 %v3569_v5, %v3507_v35  ;;  %11166 = vmatprep.subr.mxu0 %v4161_v27  ;;  %11039 = vmatpush3.msra.mxu1 %v4242_v41  ;;  %v4241_v35 = vld [vmem:[#allocation4 + $0xc8] sm:$0xff]  ;;  %v3439_v13 = vadd.f32 %v3438_v39, %v15036_v18  ;;  %v15046_v59 = vpop.f32.mrf.mxu1  ;;  %v4239_v41 = vld [vmem:[#allocation4 + $0xb8] sm:$0xff] }
 0x4dd   :  { %11167 = vmatpush3.msra.mxu0 %v4161_v27  ;;  %11040 = vmatprep.subr.mxu1 %v4241_v35  ;;  %19363 = vst [vmem:[#allocation81_spill] sm:$0xff] %v15046_v59  ;;  %v4158_v27 = vld [vmem:[#allocation4 + $0x38] sm:$0xff]  ;;  %v3511_v39 = vmul.f32 %v15046_v59, %v15046_v59 }
 0x4de   :  { %v3571_v5 = vadd.f32 %v3570_v50, %v3508_v62  ;;  %11168 = vmatprep.subr.mxu0 %v4160_v6  ;;  %11041 = vmatpush3.msra.mxu1 %v4241_v35  ;;  %v15048_v28 = vpop.f32.mrf.mxu1  ;;  %v3510_v50 = vmul.f32 %v15028_v52, %v15028_v52  ;;  %v3440_v62 = vadd.f32 %v15028_v52, %v3439_v13  ;;  %v4157_v35 = vld [vmem:[#allocation4 + $0x30] sm:$0xff]  ;;  %v4156_v13 = vld [vmem:[#allocation4 + $0x28] sm:$0xff] }
 0x4df   :  { %11169 = vmatpush3.msra.mxu0 %v4160_v6  ;;  %11042 = vmatprep.subr.mxu1 %v4240_v55  ;;  %19364 = vst [vmem:[#allocation82_spill] sm:$0xff] %v15048_v28 }
 0x4e0   :  { %v3572_v34 = vadd.f32 %v3571_v5, %v3509_v53  ;;  %11170 = vmatprep.subr.mxu0 %v4159_v37  ;;  %11043 = vmatpush3.msra.mxu1 %v4240_v55  ;;  %v4238_v53 = vld [vmem:[#allocation4 + $0xb0] sm:$0xff]  ;;  %v3441_v6 = vadd.f32 %v3440_v62, %v15046_v59  ;;  %v15056_v55 = vpop.f32.mrf.mxu1 }
 0x4e1   :  { %11171 = vmatpush3.msra.mxu0 %v4159_v37  ;;  %11044 = vmatprep.subr.mxu1 %v4239_v41  ;;  %19365 = vst [vmem:[#allocation83_spill] sm:$0xff] %v15056_v55  ;;  %v4237_v37 = vld [vmem:[#allocation4 + $0xa8] sm:$0xff]  ;;  %v15075_v62 = vmul.f32 %v15056_v55, %v15056_v55 }
 0x4e2   :  { %11172 = vmatprep.subr.mxu0 %v4158_v27  ;;  %11045 = vmatpush3.msra.mxu1 %v4239_v41  ;;  %v3573_v5 = vadd.f32 %v3572_v34, %v3510_v50  ;;  %v15060_v18 = vpop.f32.mrf.mxu1  ;;  %v15062_v41 = vld [vmem:[#allocation4 + $0xa0] sm:$0xff]  ;;  %v15068_v34 = vmul.f32 %v15038_v11, %v15038_v11  ;;  %v15071_v50 = vadd.f32 %v15038_v11, %v3441_v6 }
 0x4e3   :  { %11173 = vmatpush3.msra.mxu0 %v4158_v27  ;;  %11046 = vmatprep.subr.mxu1 %v4238_v53  ;;  %19366 = vst [vmem:[#allocation84_spill] sm:$0xff] %v15060_v18  ;;  %v15064_v27 = vld [vmem:[#allocation4 + $0x20] sm:$0xff] }
 0x4e4   :  { %11174 = vmatprep.subr.mxu0 %v4157_v35  ;;  %11047 = vmatpush3.msra.mxu1 %v4238_v53  ;;  %v15058_v52 = vadd.f32 %v3573_v5, %v3511_v39  ;;  %v19146_v39 = vmov 0.0   ;;  %v4235_v53 = vld [vmem:[#allocation4 + $0x98] sm:$0xff]  ;;  %v3443_v6 = vadd.f32 %v15071_v50, %v15056_v55  ;;  %v4152_v50 = vld [vmem:[#allocation4 + $0x8] sm:$0xff] }
 0x4e5   :  { %11175 = vmatpush3.msra.mxu0 %v4157_v35  ;;  %11048 = vmatprep.subr.mxu1 %v4237_v37  ;;  %3937 = vst [vmem:[#allocation3] sm:$0xff] %v19146_v39  ;;  %3938 = vst [vmem:[#allocation3 + $0x8] sm:$0xff] %v19146_v39  ;;  %v4154_v35 = vld [vmem:[#allocation4 + $0x18] sm:$0xff] }
 0x4e6   :  { %11176 = vmatprep.subr.mxu0 %v4156_v13  ;;  %11049 = vmatpush3.msra.mxu1 %v4237_v37  ;;  %3939 = vst [vmem:[#allocation3 + $0x10] sm:$0x3] %v19146_v39  ;;  %3940 = vst [vmem:[#allocation3 + $0x1b0] sm:$0xff] %v19146_v39  ;;  %v3575_v5 = vadd.f32 %v15058_v52, %v15068_v34  ;;  %v15169_v37 = vpop.f32.mrf.mxu1  ;;  %v3514_v52 = vmul.f32 %v15048_v28, %v15048_v28 }
 0x4e7   :  { %11177 = vmatpush3.msra.mxu0 %v4156_v13  ;;  %11050 = vmatprep.subr.mxu1 %v15062_v41  ;;  %3941 = vst [vmem:[#allocation3 + $0x1b8] sm:$0xff] %v19146_v39  ;;  %3942 = vst [vmem:[#allocation3 + $0x1c0] sm:$0x3] %v19146_v39  ;;  %v4234_v13 = vld [vmem:[#allocation4 + $0x90] sm:$0xff]  ;;  %v3444_v34 = vadd.f32 %v15048_v28, %v3443_v6 }
 0x4e8   :  { %11178 = vmatprep.subr.mxu0 %v15064_v27  ;;  %3944 = vst [vmem:[#allocation3 + $0x198] sm:$0xff] %v19146_v39  ;;  %3945 = vst [vmem:[#allocation3 + $0x1a0] sm:$0xff] %v19146_v39  ;;  %11051 = vmatpush3.msra.mxu1 %v15062_v41  ;;  %v4153_v41 = vld [vmem:[#allocation4 + $0x10] sm:$0xff]  ;;  %v15172_v11 = vpop.f32.mrf.mxu1 }
 0x4e9   :  { %3946 = vst [vmem:[#allocation3 + $0x1a8] sm:$0x3] %v19146_v39  ;;  %3947 = vst [vmem:[#allocation3 + $0x348] sm:$0xff] %v19146_v39  ;;  %11179 = vmatpush3.msra.mxu0 %v15064_v27  ;;  %11052 = vmatprep.subr.mxu1 %v4235_v53  ;;  %v3576_v27 = vadd.f32 %v3575_v5, %v15075_v62  ;;  %v4232_v62 = vld [vmem:[#allocation4 + $0x80] sm:$0xff]  ;;  %v3445_v5 = vadd.f32 %v3444_v34, %v15169_v37 }
 0x4ea   :  { %3948 = vst [vmem:[#allocation3 + $0x350] sm:$0xff] %v19146_v39  ;;  %3949 = vst [vmem:[#allocation3 + $0x358] sm:$0x3] %v19146_v39  ;;  %11180 = vmatprep.subr.mxu0 %v4154_v35  ;;  %11053 = vmatpush3.msra.mxu1 %v4235_v53  ;;  %v3515_v53 = vmul.f32 %v15169_v37, %v15169_v37  ;;  %v15180_v59 = vpop.f32.mrf.mxu1 }
 0x4eb   :  { %3951 = vst [vmem:[#allocation3 + $0x18] sm:$0x1] %v19146_v39  ;;  %3952 = vst [vmem:[#allocation3 + $0x30] sm:$0x1] %v19146_v39  ;;  %11181 = vmatpush3.msra.mxu0 %v4154_v35  ;;  %11054 = vmatprep.subr.mxu1 %v4234_v13  ;;  %v4151_v35 = vld [vmem:[#allocation4] sm:$0xff] }
 0x4ec   :  { %3953 = vst [vmem:[#allocation3 + $0x48] sm:$0x1] %v19146_v39  ;;  %3954 = vst [vmem:[#allocation3 + $0x60] sm:$0x1] %v19146_v39  ;;  %11182 = vmatprep.subr.mxu0 %v4153_v41  ;;  %11055 = vmatpush3.msra.mxu1 %v4234_v13  ;;  %v3577_v13 = vadd.f32 %v3576_v27, %v3514_v52  ;;  %v3516_v27 = vmul.f32 %v15060_v18, %v15060_v18 }
 0x4ed   :  { %3955 = vst [vmem:[#allocation3 + $0x78] sm:$0x1] %v19146_v39  ;;  %3956 = vst [vmem:[#allocation3 + $0x90] sm:$0x1] %v19146_v39  ;;  %11183 = vmatpush3.msra.mxu0 %v4153_v41  ;;  %v4167_v41 = vld [vmem:[#allocation3 + $0x1] sm:$0xff]  ;;  %v4168_v6 = vld [vmem:[#allocation3 + $0x9] sm:$0xff]  ;;  %v3517_v52 = vmul.f32 %v15180_v59, %v15180_v59 }
 0x4ee   :  { %3957 = vst [vmem:[#allocation3 + $0xa8] sm:$0x1] %v19146_v39  ;;  %3958 = vst [vmem:[#allocation3 + $0xc0] sm:$0x1] %v19146_v39  ;;  %11184 = vmatprep.subr.mxu0 %v4152_v50  ;;  %11060 = vmatprep.mubr.f32.mxu1 %v4167_v41  ;;  %v3578_v28 = vadd.f32 %v3577_v13, %v3515_v53  ;;  %v5098_v53 = vld [vmem:[#allocation4 + $0x178] sm:$0xff] }
 0x4ef   :  { %3959 = vst [vmem:[#allocation3 + $0xd8] sm:$0x1] %v19146_v39  ;;  %3960 = vst [vmem:[#allocation3 + $0xf0] sm:$0x1] %v19146_v39  ;;  %11185 = vmatpush3.msra.mxu0 %v4152_v50  ;;  %v3446_v50 = vadd.f32 %v15060_v18, %v3445_v5 }
 0x4f0   :  { %3961 = vst [vmem:[#allocation3 + $0x108] sm:$0x1] %v19146_v39  ;;  %3962 = vst [vmem:[#allocation3 + $0x120] sm:$0x1] %v19146_v39  ;;  %11186 = vmatprep.subr.mxu0 %v4151_v35 }
 0x4f1   :  { %3963 = vst [vmem:[#allocation3 + $0x138] sm:$0x1] %v19146_v39  ;;  %3964 = vst [vmem:[#allocation3 + $0x150] sm:$0x1] %v19146_v39  ;;  %11187 = vmatpush3.msra.mxu0 %v4151_v35  ;;  %v3447_v34 = vadd.f32 %v3446_v50, %v15180_v59  ;;  %v5096_v50 = vld [vmem:[#allocation4 + $0x168] sm:$0xff] }
 0x4f2   :  { %3965 = vst [vmem:[#allocation3 + $0x168] sm:$0x1] %v19146_v39  ;;  %3966 = vst [vmem:[#allocation3 + $0x180] sm:$0x1] %v19146_v39 }
 0x4f3   :  { %3969 = vst [vmem:[#allocation3 + $0x1c8] sm:$0x1] %v19146_v39  ;;  %3970 = vst [vmem:[#allocation3 + $0x1e0] sm:$0x1] %v19146_v39  ;;  %v3448_v5 = vadd.f32 %v15172_v11, %v3447_v34 }
 0x4f4   :  { %3971 = vst [vmem:[#allocation3 + $0x1f8] sm:$0x1] %v19146_v39  ;;  %3972 = vst [vmem:[#allocation3 + $0x210] sm:$0x1] %v19146_v39 }
 0x4f5   :  { %3973 = vst [vmem:[#allocation3 + $0x228] sm:$0x1] %v19146_v39  ;;  %3974 = vst [vmem:[#allocation3 + $0x240] sm:$0x1] %v19146_v39 }
 0x4f6   :  { %3975 = vst [vmem:[#allocation3 + $0x258] sm:$0x1] %v19146_v39  ;;  %3976 = vst [vmem:[#allocation3 + $0x270] sm:$0x1] %v19146_v39 }
 0x4f7   :  { %3977 = vst [vmem:[#allocation3 + $0x288] sm:$0x1] %v19146_v39  ;;  %3978 = vst [vmem:[#allocation3 + $0x2a0] sm:$0x1] %v19146_v39 }
 0x4f8   :  { %3979 = vst [vmem:[#allocation3 + $0x2b8] sm:$0x1] %v19146_v39  ;;  %3980 = vst [vmem:[#allocation3 + $0x2d0] sm:$0x1] %v19146_v39 }
 0x4f9   :  { %3981 = vst [vmem:[#allocation3 + $0x2e8] sm:$0x1] %v19146_v39  ;;  %3982 = vst [vmem:[#allocation3 + $0x300] sm:$0x1] %v19146_v39 }
 0x4fa   :  { %3983 = vst [vmem:[#allocation3 + $0x318] sm:$0x1] %v19146_v39  ;;  %3984 = vst [vmem:[#allocation3 + $0x330] sm:$0x1] %v19146_v39 }
 0x4fb   :  { %3987 = vst [vmem:[#allocation3 + $0x29] sm:$0x1] %v19146_v39  ;;  %3988 = vst [vmem:[#allocation3 + $0x41] sm:$0x1] %v19146_v39  ;;  %v15182_v25 = vpop.f32.mrf.mxu1 }
 0x4fc   :  { %3989 = vst [vmem:[#allocation3 + $0x59] sm:$0x1] %v19146_v39  ;;  %3990 = vst [vmem:[#allocation3 + $0x71] sm:$0x1] %v19146_v39 }
 0x4fd   :  { %3991 = vst [vmem:[#allocation3 + $0x89] sm:$0x1] %v19146_v39  ;;  %3992 = vst [vmem:[#allocation3 + $0xa1] sm:$0x1] %v19146_v39  ;;  %v15191_v41 = vpop.f32.mrf.mxu1 }
 0x4fe   :  { %3993 = vst [vmem:[#allocation3 + $0xb9] sm:$0x1] %v19146_v39  ;;  %3994 = vst [vmem:[#allocation3 + $0xd1] sm:$0x1] %v19146_v39 }
 0x4ff   :  { %3995 = vst [vmem:[#allocation3 + $0xe9] sm:$0x1] %v19146_v39  ;;  %3996 = vst [vmem:[#allocation3 + $0x101] sm:$0x1] %v19146_v39 }
 0x500   :  { %3997 = vst [vmem:[#allocation3 + $0x119] sm:$0x1] %v19146_v39  ;;  %3998 = vst [vmem:[#allocation3 + $0x131] sm:$0x1] %v19146_v39 }
 0x501   :  { %3999 = vst [vmem:[#allocation3 + $0x149] sm:$0x1] %v19146_v39  ;;  %4000 = vst [vmem:[#allocation3 + $0x161] sm:$0x1] %v19146_v39 }
 0x502   :  { %4001 = vst [vmem:[#allocation3 + $0x179] sm:$0x1] %v19146_v39  ;;  %4002 = vst [vmem:[#allocation3 + $0x191] sm:$0x1] %v19146_v39 }
 0x503   :  { %4005 = vst [vmem:[#allocation3 + $0x1d9] sm:$0x1] %v19146_v39  ;;  %4006 = vst [vmem:[#allocation3 + $0x1f1] sm:$0x1] %v19146_v39 }
 0x504   :  { %4007 = vst [vmem:[#allocation3 + $0x209] sm:$0x1] %v19146_v39  ;;  %4008 = vst [vmem:[#allocation3 + $0x221] sm:$0x1] %v19146_v39 }
 0x505   :  { %4009 = vst [vmem:[#allocation3 + $0x239] sm:$0x1] %v19146_v39  ;;  %4010 = vst [vmem:[#allocation3 + $0x251] sm:$0x1] %v19146_v39 }
 0x506   :  { %4011 = vst [vmem:[#allocation3 + $0x269] sm:$0x1] %v19146_v39  ;;  %4012 = vst [vmem:[#allocation3 + $0x281] sm:$0x1] %v19146_v39 }
 0x507   :  { %4013 = vst [vmem:[#allocation3 + $0x299] sm:$0x1] %v19146_v39  ;;  %4014 = vst [vmem:[#allocation3 + $0x2b1] sm:$0x1] %v19146_v39 }
 0x508   :  { %4015 = vst [vmem:[#allocation3 + $0x2c9] sm:$0x1] %v19146_v39  ;;  %4016 = vst [vmem:[#allocation3 + $0x2e1] sm:$0x1] %v19146_v39 }
 0x509   :  { %4017 = vst [vmem:[#allocation3 + $0x2f9] sm:$0x1] %v19146_v39  ;;  %4018 = vst [vmem:[#allocation3 + $0x311] sm:$0x1] %v19146_v39 }
 0x50a   :  { %4019 = vst [vmem:[#allocation3 + $0x329] sm:$0x1] %v19146_v39  ;;  %4020 = vst [vmem:[#allocation3 + $0x341] sm:$0x1] %v19146_v39 }
 0x50b   :  { %3950 = vst [vmem:[#allocation3] sm:$0x1] %v19146_v39  ;;  %3967 = vst [vmem:[#allocation3 + $0x198] sm:$0x1] %v19146_v39 }
 0x50c   :  { %3968 = vst [vmem:[#allocation3 + $0x1b0] sm:$0x1] %v19146_v39  ;;  %3985 = vst [vmem:[#allocation3 + $0x348] sm:$0x1] %v19146_v39 }
 0x50d   :  { %3986 = vst [vmem:[#allocation3 + $0x11] sm:$0x1] %v19146_v39  ;;  %4003 = vst [vmem:[#allocation3 + $0x1a9] sm:$0x1] %v19146_v39 }
 0x50e   :  { %4004 = vst [vmem:[#allocation3 + $0x1c1] sm:$0x1] %v19146_v39  ;;  %4021 = vst [vmem:[#allocation3 + $0x359] sm:$0x1] %v19146_v39  ;;  %v4233_v39 = vld [vmem:[#allocation4 + $0x88] sm:$0xff] }
 0x50f   :  { %19367 = vst [vmem:[#allocation85_spill] sm:$0xff] %v15169_v37  ;;  %19368 = vst [vmem:[#allocation86_spill] sm:$0xff] %v15172_v11  ;;  %11056 = vmatprep.subr.mxu1 %v4233_v39 }
 0x510   :  { %11057 = vmatpush3.msra.mxu1 %v4233_v39  ;;  %19369 = vst [vmem:[#allocation87_spill] sm:$0xff] %v15180_v59  ;;  %19370 = vst [vmem:[#allocation88_spill] sm:$0xff] %v15182_v25  ;;  %v19371_v39 = vmov 0.0   ;;  %v3520_v59 = vmul.f32 %v15182_v25, %v15182_v25 }
 0x511   :  { %11058 = vmatprep.subr.mxu1 %v4232_v62  ;;  %19372 = vst [vmem:[#allocation89_spill] sm:$0xff] %v15191_v41 }
 0x512   :  { %v4087_v55 = vld [vmem:[#allocation3] sm:$0xff]  ;;  %11059 = vmatpush3.msra.mxu1 %v4232_v62  ;;  %v3579_v62 = vadd.f32 %v3578_v28, %v3516_v27  ;;  %v3449_v28 = vadd.f32 %v3448_v5, %v15191_v41 }
 0x513   :  { %11188 = vmatprep.mubr.f32.mxu0 %v4087_v55  ;;  %11061 = vmatmul.mubr.f32.vlgmr.msra.gmra.mxu1 %v4168_v6  ;;  %v5097_v55 = vld [vmem:[#allocation4 + $0x170] sm:$0xff]  ;;  %v3518_v6 = vmul.f32 %v15172_v11, %v15172_v11  ;;  %v5095_v5 = vld [vmem:[#allocation4 + $0x160] sm:$0xff] }
 0x514   :  { %11189 = vmatmul.mubr.f32.vlgmr.msra.gmra.mxu0 %v19371_v39  ;;  %v3580_v35 = vadd.f32 %v3579_v62, %v3517_v52  ;;  %11284 = vmatprep.subr.mxu1 %v5098_v53  ;;  %v3519_v39 = vmul.f32 %v15191_v41, %v15191_v41  ;;  %v3450_v34 = vadd.f32 %v15182_v25, %v3449_v28 }
 0x515   :  { %11285 = vmatpush3.msra.mxu1 %v5098_v53 }
 0x516   :  { %11286 = vmatprep.subr.mxu1 %v5097_v55  ;;  %v3581_v27 = vadd.f32 %v3580_v35, %v3518_v6 }
 0x517   :  { %11287 = vmatpush3.msra.mxu1 %v5097_v55 }
 0x518   :  { %11288 = vmatprep.subr.mxu1 %v5096_v50  ;;  %v3582_v62 = vadd.f32 %v3581_v27, %v3519_v39 }
 0x519   :  { %11289 = vmatpush3.msra.mxu1 %v5096_v50 }
 0x51a   :  { %v3583_v18 = vadd.f32 %v3582_v62, %v3520_v59  ;;  %11290 = vmatprep.subr.mxu1 %v5095_v5 }
 0x51b   :  { %v15193_v13 = vpop.f32.mrf.mxu1  ;;  %11291 = vmatpush3.msra.mxu1 %v5095_v5 }
 0x51c   :  { %19373 = vst [vmem:[#allocation90_spill] sm:$0xff] %v15193_v13  ;;  %v3522_v39 = vmul.f32 %v15193_v13, %v15193_v13 }
 0x51d   :  { %v15201_v52 = vpop.f32.mrf.mxu1 }
 0x51e   :  { %19374 = vst [vmem:[#allocation91_spill] sm:$0xff] %v15201_v52  ;;  %v3521_v11 = vmul.f32 %v15201_v52, %v15201_v52  ;;  %v3451_v55 = vadd.f32 %v3450_v34, %v15201_v52  ;;  %v5094_v34 = vld [vmem:[#allocation4 + $0x158] sm:$0xff] }
 0x51f   :  { %11292 = vmatprep.subr.mxu1 %v5094_v34 }
 0x520   :  { %v3584_v6 = vadd.f32 %v3583_v18, %v3521_v11  ;;  %v3452_v50 = vadd.f32 %v15193_v13, %v3451_v55  ;;  %11293 = vmatpush3.msra.mxu1 %v5094_v34  ;;  %v5093_v13 = vld [vmem:[#allocation4 + $0x150] sm:$0xff] }
 0x521   :  { %11294 = vmatprep.subr.mxu1 %v5093_v13 }
 0x522   :  { %v3585_v25 = vadd.f32 %v3584_v6, %v3522_v39  ;;  %11295 = vmatpush3.msra.mxu1 %v5093_v13 }
 0x53b   :  { %v15203_v53 = vpop.f32.mrf.mxu1 }
 0x53c   :  { %19375 = vst [vmem:[#allocation92_spill] sm:$0xff] %v15203_v53  ;;  %v3524_v18 = vmul.f32 %v15203_v53, %v15203_v53 }
 0x53d   :  { %v15211_v35 = vpop.f32.mrf.mxu1 }
 0x53e   :  { %19376 = vst [vmem:[#allocation93_spill] sm:$0xff] %v15211_v35  ;;  %v3523_v28 = vmul.f32 %v15211_v35, %v15211_v35  ;;  %v3453_v27 = vadd.f32 %v3452_v50, %v15211_v35 }
 0x540   :  { %v3586_v41 = vadd.f32 %v3585_v25, %v3523_v28  ;;  %v3454_v11 = vadd.f32 %v15203_v53, %v3453_v27 }
 0x542   :  { %v3587_v50 = vadd.f32 %v3586_v41, %v3524_v18  ;;  %v5092_v41 = vld [vmem:[#allocation4 + $0x148] sm:$0xff]  ;;  %v5628_v18 = vld [vmem:[#allocation4 + $0x1f8] sm:$0xff] }
 0x543   :  { %11296 = vmatprep.subr.mxu1 %v5092_v41  ;;  %11412 = vmatprep.subr.mxu0 %v5628_v18 }
 0x544   :  { %11297 = vmatpush3.msra.mxu1 %v5092_v41  ;;  %11413 = vmatpush3.msra.mxu0 %v5628_v18  ;;  %v19396_v18 = vld [vmem:[#allocation90_spill] sm:$0xff] }
 0x545   :  { %v19397_v41 = vld [vmem:[#allocation93_spill] sm:$0xff] }
 0x548   :  { %v15219_v59 = vpop.f32.mrf.mxu1 }
 0x549   :  { %19377 = vst [vmem:[#allocation94_spill] sm:$0xff] %v15219_v59  ;;  %v3526_v25 = vmul.f32 %v15219_v59, %v15219_v59 }
 0x54a   :  { %v15224_v62 = vpop.f32.mrf.mxu1 }
 0x54b   :  { %v3455_v55 = vadd.f32 %v3454_v11, %v15224_v62  ;;  %v3525_v5 = vmul.f32 %v15224_v62, %v15224_v62 }
 0x54d   :  { %v3456_v6 = vadd.f32 %v15219_v59, %v3455_v55  ;;  %v3588_v39 = vadd.f32 %v3587_v50, %v3525_v5 }
 0x54f   :  { %v3457_v28 = vrot.slane %v3456_v6, 4  ;;  %v3589_v35 = vadd.f32 %v3588_v39, %v3526_v25 }
 0x551   :  { %v3458_v27 = vadd.f32 %v3457_v28, %v3456_v6  ;;  %v3590_v34 = vrot.slane %v3589_v35, 4  ;;  %v5627_v6 = vld [vmem:[#allocation4 + $0x1f0] sm:$0xff] }
 0x552   :  { %11414 = vmatprep.subr.mxu0 %v5627_v6 }
 0x553   :  { %v3459_v52 = vrot.slane %v3458_v27, 2  ;;  %v3591_v37 = vadd.f32 %v3590_v34, %v3589_v35  ;;  %11415 = vmatpush3.msra.mxu0 %v5627_v6  ;;  %v15361_v6 = vld [vmem:[%s19070_s3] ss:$0 sm:$0xff] }
 0x555   :  { %v3460_v11 = vadd.f32 %v3459_v52, %v3458_v27  ;;  %v3592_v53 = vrot.slane %v3591_v37, 2  ;;  %v5091_v52 = vld [vmem:[#allocation4 + $0x140] sm:$0xff]  ;;  %v19394_v27 = vld [vmem:[#allocation88_spill] sm:$0xff] }
 0x556   :  { %11298 = vmatprep.subr.mxu1 %v5091_v52 }
 0x557   :  { %v3461_v16 = vrot.slane %v3460_v11, 1  ;;  %v3593_v49 = vadd.f32 %v3592_v53, %v3591_v37  ;;  %11299 = vmatpush3.msra.mxu1 %v5091_v52  ;;  %v5626_v52 = vld [vmem:[#allocation4 + $0x1e8] sm:$0xff]  ;;  %v5089_v53 = vld [vmem:[#allocation4 + $0x130] sm:$0xff] }
 0x558   :  { %11416 = vmatprep.subr.mxu0 %v5626_v52 }
 0x559   :  { %v3462_v26 = vadd.f32 %v3461_v16, %v3460_v11  ;;  %v3594_v55 = vrot.slane %v3593_v49, 1  ;;  %11417 = vmatpush3.msra.mxu0 %v5626_v52  ;;  %v19379_v52 = vld [vmem:[#allocation74_spill] sm:$0xff] }
 0x55a   :  { %v5625_v11 = vld [vmem:[#allocation4 + $0x1e0] sm:$0xff] }
 0x55b   :  { %v3595_v5 = vadd.f32 %v3594_v55, %v3593_v49  ;;  %v15232_v50 = vmul.f32 0.001953125, %v3462_v26  ;;  %11418 = vmatprep.subr.mxu0 %v5625_v11 }
 0x55c   :  { %11419 = vmatpush3.msra.mxu0 %v5625_v11 }
 0x55d   :  { %v3597_v25 = vmul.f32 0.001953125, %v3595_v5  ;;  %v3598_v13 = vmul.f32 %v15232_v50, %v15232_v50  ;;  %v5090_v5 = vld [vmem:[#allocation4 + $0x138] sm:$0xff]  ;;  %v19398_v11 = vsub.f32 %v15224_v62, %v15232_v50  ;;  %v19399_v55 = vsub.f32 %v14809_v17, %v15232_v50  ;;  %v15396_v62 = vld [vmem:[%s19071_s4] ss:$0 sm:$0xff] }
 0x55e   :  { %11300 = vmatprep.subr.mxu1 %v5090_v5  ;;  %v19400_v28 = vsub.f32 %v14806_v56, %v15232_v50  ;;  %v19403_v17 = vsub.f32 %v14811_v40, %v15232_v50  ;;  %v19404_v56 = vsub.f32 %v14826_v10, %v15232_v50  ;;  %v19407_v10 = vsub.f32 %v14828_v22, %v15232_v50 }
 0x55f   :  { %v3599_v35 = vsub.f32 %v3597_v25, %v3598_v13  ;;  %11301 = vmatpush3.msra.mxu1 %v5090_v5  ;;  %v19381_v13 = vld [vmem:[#allocation76_spill] sm:$0xff]  ;;  %v19382_v5 = vld [vmem:[#allocation79_spill] sm:$0xff]  ;;  %v19384_v25 = vld [vmem:[#allocation78_spill] sm:$0xff] }
 0x560   :  { %11302 = vmatprep.subr.mxu1 %v5089_v53 }
 0x561   :  { %v3600_v37 = vmax.f32 %v3599_v35, 0.0  ;;  %v19378_v35 = vld [vmem:[#allocation75_spill] sm:$0xff]  ;;  %11303 = vmatpush3.msra.mxu1 %v5089_v53  ;;  %v19401_v53 = vsub.f32 %v14813_v48, %v15232_v50  ;;  %v19405_v48 = vsub.f32 %v14819_v36, %v15232_v50  ;;  %v19408_v36 = vsub.f32 %v14846_v0, %v15232_v50 }
 0x562   :  { %19402 = vst [vmem:[#allocation75_spill] sm:$0xff] %v15396_v62 }
 0x563   :  { %v3665_v39 = vadd.f32 1e-05, %v3600_v37  ;;  %v19380_v37 = vld [vmem:[#allocation77_spill] sm:$0xff] }
 0x565   :  { %12300 = vrsqrt.f32 %v3665_v39  ;;  %v19395_v39 = vld [vmem:[#allocation91_spill] sm:$0xff] }
 0x572   :  { %v15356_v34 = vpop.eup %12300 }
 0x573   :  { %v3729_v26 = vmul.f32 %v15356_v34, %v19398_v11  ;;  %v15379_v16 = vmul.f32 %v15356_v34, %v19399_v55  ;;  %v15385_v59 = vmul.f32 %v15356_v34, %v19400_v28  ;;  %v15391_v49 = vmul.f32 %v15356_v34, %v19401_v53 }
 0x574   :  { %v15402_v55 = vmul.f32 %v15356_v34, %v19403_v17  ;;  %v15408_v28 = vmul.f32 %v15356_v34, %v19404_v56  ;;  %v15414_v53 = vmul.f32 %v15356_v34, %v19405_v48  ;;  %v19406_v11 = vsub.f32 %v14836_v51, %v15232_v50 }
 0x575   :  { %v3800_v17 = vmul.f32 %v15361_v6, %v3729_v26  ;;  %v15427_v56 = vmul.f32 %v15356_v34, %v19407_v10  ;;  %v15433_v48 = vmul.f32 %v15356_v34, %v19408_v36  ;;  %v19409_v51 = vsub.f32 %v14838_v60, %v15232_v50 }
 0x576   :  { %v15420_v40 = vmul.f32 %v15356_v34, %v19406_v11  ;;  %v19410_v26 = vsub.f32 %v14856_v21, %v15232_v50  ;;  %v19411_v10 = vsub.f32 %v14848_v38, %v15232_v50  ;;  %v19412_v36 = vsub.f32 %v14866_v8, %v15232_v50 }
 0x577   :  { %v15439_v11 = vmul.f32 %v15356_v34, %v19409_v51  ;;  %v19413_v51 = vsub.f32 %v14858_v30, %v15232_v50  ;;  %v19415_v38 = vsub.f32 %v14876_v15, %v15232_v50  ;;  %v19416_v8 = vsub.f32 %v14868_v32, %v15232_v50 }
 0x578   :  { %v15445_v22 = vmul.f32 %v15356_v34, %v19410_v26  ;;  %v15451_v0 = vmul.f32 %v15356_v34, %v19411_v10  ;;  %v15457_v60 = vmul.f32 %v15356_v34, %v19412_v36  ;;  %v3871_v26 = vadd.f32 %v15396_v62, %v3800_v17  ;;  %v5624_v17 = vld [vmem:[#allocation4 + $0x1d8] sm:$0xff] }
 0x579   :  { %v15463_v21 = vmul.f32 %v15356_v34, %v19413_v51  ;;  %v15470_v10 = vmul.f32 %v15356_v34, %v19415_v38  ;;  %v15476_v36 = vmul.f32 %v15356_v34, %v19416_v8  ;;  %v19417_v30 = vsub.f32 %v14886_v44, %v15232_v50  ;;  %11420 = vmatprep.subr.mxu0 %v5624_v17 }
 0x57a   :  { %v19418_v15 = vsub.f32 %v14878_v43, %v15232_v50  ;;  %v19419_v32 = vsub.f32 %v14896_v4, %v15232_v50  ;;  %v19420_v44 = vsub.f32 %v14888_v58, %v15232_v50  ;;  %v19421_v62 = vsub.f32 %v14906_v46, %v15232_v50  ;;  %11421 = vmatpush3.msra.mxu0 %v5624_v17 }
 0x57b   :  { %19414 = vst [vmem:[#allocation74_spill] sm:$0xff] %v15463_v21  ;;  %v15482_v51 = vmul.f32 %v15356_v34, %v19417_v30  ;;  %v5088_v21 = vld [vmem:[#allocation4 + $0x128] sm:$0xff]  ;;  %v19422_v4 = vsub.f32 %v14898_v33, %v15232_v50  ;;  %v19423_v58 = vsub.f32 %v14916_v3, %v15232_v50  ;;  %v19424_v46 = vsub.f32 %v14908_v9, %v15232_v50 }
 0x57c   :  { %v15488_v38 = vmul.f32 %v15356_v34, %v19418_v15  ;;  %v15494_v8 = vmul.f32 %v15356_v34, %v19419_v32  ;;  %v15500_v30 = vmul.f32 %v15356_v34, %v19420_v44  ;;  %v15506_v43 = vmul.f32 %v15356_v34, %v19421_v62  ;;  %11304 = vmatprep.subr.mxu1 %v5088_v21 }
 0x57d   :  { %v3935_v15 = vmax.f32 %v3871_v26, 0.0  ;;  %v15512_v32 = vmul.f32 %v15356_v34, %v19422_v4  ;;  %v15518_v44 = vmul.f32 %v15356_v34, %v19423_v58  ;;  %v15524_v62 = vmul.f32 %v15356_v34, %v19424_v46  ;;  %11305 = vmatpush3.msra.mxu1 %v5088_v21 }
 0x57e   :  { %v19425_v33 = vsub.f32 %v14926_v31, %v15232_v50  ;;  %v19426_v3 = vsub.f32 %v14918_v61, %v15232_v50  ;;  %v19427_v9 = vsub.f32 %v14936_v24, %v15232_v50  ;;  %v19428_v21 = vsub.f32 %v14928_v29, %v15232_v50 }
 0x57f   :  { %4085 = vst [vmem:[#allocation3 + $0x331] sm:$0xff] %v3935_v15  ;;  %v19429_v61 = vsub.f32 %v14946_v20, %v15232_v50  ;;  %v19430_v24 = vsub.f32 %v14938_v14, %v15232_v50  ;;  %v19431_v29 = vsub.f32 %v14956_v1, %v15232_v50  ;;  %v19432_v17 = vsub.f32 %v14948_v7, %v15232_v50 }
 0x580   :  { %v15530_v26 = vmul.f32 %v15356_v34, %v19425_v33  ;;  %v15536_v4 = vmul.f32 %v15356_v34, %v19426_v3  ;;  %v15542_v58 = vmul.f32 %v15356_v34, %v19427_v9  ;;  %v15548_v31 = vmul.f32 %v15356_v34, %v19428_v21 }
 0x581   :  { %v15554_v46 = vmul.f32 %v15356_v34, %v19429_v61  ;;  %v15560_v33 = vmul.f32 %v15356_v34, %v19430_v24  ;;  %v15566_v3 = vmul.f32 %v15356_v34, %v19431_v29  ;;  %v15572_v20 = vmul.f32 %v15356_v34, %v19432_v17 }
 0x582   :  { %v19433_v15 = vsub.f32 %v14966_v47, %v15232_v50  ;;  %v19434_v9 = vsub.f32 %v14958_v54, %v15232_v50  ;;  %v19435_v21 = vsub.f32 %v14976_v2, %v15232_v50  ;;  %v19436_v61 = vsub.f32 %v14968_v12, %v15232_v50 }
 0x583   :  { %v19437_v24 = vsub.f32 %v14986_v19, %v15232_v50  ;;  %v19438_v29 = vsub.f32 %v14978_v23, %v15232_v50  ;;  %v19439_v17 = vsub.f32 %v14996_v42, %v15232_v50 }
 0x584   :  { %v15578_v14 = vmul.f32 %v15356_v34, %v19433_v15  ;;  %v15584_v1 = vmul.f32 %v15356_v34, %v19434_v9  ;;  %v15590_v7 = vmul.f32 %v15356_v34, %v19435_v21  ;;  %v15596_v47 = vmul.f32 %v15356_v34, %v19436_v61 }
 0x585   :  { %v15602_v54 = vmul.f32 %v15356_v34, %v19437_v24  ;;  %v15608_v2 = vmul.f32 %v15356_v34, %v19438_v29  ;;  %v15614_v12 = vmul.f32 %v15356_v34, %v19439_v17  ;;  %v19440_v15 = vsub.f32 %v14988_v45, %v15232_v50 }
 0x586   :  { %v19441_v9 = vsub.f32 %v15006_v63, %v15232_v50  ;;  %v19442_v21 = vsub.f32 %v14998_v57, %v15232_v50  ;;  %v19443_v61 = vsub.f32 %v19378_v35, %v15232_v50  ;;  %v19444_v24 = vsub.f32 %v19379_v52, %v15232_v50 }
 0x587   :  { %v15620_v19 = vmul.f32 %v15356_v34, %v19440_v15  ;;  %v19445_v29 = vsub.f32 %v19380_v37, %v15232_v50  ;;  %v19446_v17 = vsub.f32 %v19381_v13, %v15232_v50  ;;  %v19448_v15 = vsub.f32 %v19382_v5, %v15232_v50 }
 0x588   :  { %v15626_v23 = vmul.f32 %v15356_v34, %v19441_v9  ;;  %v15632_v42 = vmul.f32 %v15356_v34, %v19442_v21  ;;  %v15638_v45 = vmul.f32 %v15356_v34, %v19443_v61  ;;  %v15644_v63 = vmul.f32 %v15356_v34, %v19444_v24  ;;  %v5087_v21 = vld [vmem:[#allocation4 + $0x120] sm:$0xff]  ;;  %v5623_v61 = vld [vmem:[#allocation4 + $0x1d0] sm:$0xff]  ;;  %v19452_v24 = vld [vmem:[#allocation81_spill] sm:$0xff] }
 0x589   :  { %v15650_v57 = vmul.f32 %v15356_v34, %v19445_v29  ;;  %v15656_v35 = vmul.f32 %v15356_v34, %v19446_v17  ;;  %v15662_v52 = vmul.f32 %v15356_v34, %v19448_v15  ;;  %v19450_v9 = vsub.f32 %v19384_v25, %v15232_v50  ;;  %v19455_v17 = vld [vmem:[#allocation80_spill] sm:$0xff]  ;;  %11306 = vmatprep.subr.mxu1 %v5087_v21 }
 0x58a   :  { %v19453_v13 = vsub.f32 %v19452_v24, %v15232_v50  ;;  %v19456_v5 = vsub.f32 %v19455_v17, %v15232_v50  ;;  %11422 = vmatprep.subr.mxu0 %v5623_v61  ;;  %11307 = vmatpush3.msra.mxu1 %v5087_v21  ;;  %v15762_v21 = vmul.f32 %v15361_v6, %v15379_v16 }
 0x58b   :  { %19447 = vst [vmem:[#allocation77_spill] sm:$0xff] %v15656_v35  ;;  %19449 = vst [vmem:[#allocation76_spill] sm:$0xff] %v15662_v52  ;;  %v15668_v37 = vmul.f32 %v15356_v34, %v19450_v9  ;;  %v19458_v52 = vld [vmem:[#allocation83_spill] sm:$0xff]  ;;  %11423 = vmatpush3.msra.mxu0 %v5623_v61  ;;  %v15782_v16 = vmul.f32 %v15361_v6, %v15414_v53  ;;  %v15806_v53 = vmul.f32 %v15361_v6, %v15451_v0  ;;  %v5086_v61 = vld [vmem:[#allocation4 + $0x118] sm:$0xff] }
 0x58c   :  { %v15674_v29 = vmul.f32 %v15356_v34, %v19453_v13  ;;  %v15680_v15 = vmul.f32 %v15356_v34, %v19456_v5  ;;  %v19459_v25 = vsub.f32 %v19458_v52, %v15232_v50  ;;  %v19464_v13 = vld [vmem:[#allocation85_spill] sm:$0xff]  ;;  %v19467_v5 = vld [vmem:[#allocation84_spill] sm:$0xff]  ;;  %v15826_v0 = vmul.f32 %v15361_v6, %v15482_v51  ;;  %11308 = vmatprep.subr.mxu1 %v5086_v61 }
 0x58d   :  { %19451 = vst [vmem:[#allocation79_spill] sm:$0xff] %v15668_v37  ;;  %v19461_v37 = vld [vmem:[#allocation82_spill] sm:$0xff]  ;;  %v15846_v51 = vmul.f32 %v15361_v6, %v15512_v32  ;;  %v15866_v32 = vmul.f32 %v15361_v6, %v15542_v58  ;;  %11309 = vmatpush3.msra.mxu1 %v5086_v61  ;;  %v15886_v58 = vmul.f32 %v15361_v6, %v15572_v20 }
 0x58e   :  { %19454 = vst [vmem:[#allocation78_spill] sm:$0xff] %v15674_v29  ;;  %19457 = vst [vmem:[#allocation88_spill] sm:$0xff] %v15680_v15  ;;  %v15686_v9 = vmul.f32 %v15356_v34, %v19459_v25  ;;  %v19462_v35 = vsub.f32 %v19461_v37, %v15232_v50  ;;  %v19465_v29 = vsub.f32 %v19464_v13, %v15232_v50  ;;  %v19469_v25 = vld [vmem:[#allocation87_spill] sm:$0xff] }
 0x58f   :  { %v19468_v15 = vsub.f32 %v19467_v5, %v15232_v50  ;;  %v15906_v20 = vmul.f32 %v15361_v6, %v15602_v54  ;;  %v15926_v54 = vmul.f32 %v15361_v6, %v15632_v42 }
 0x590   :  { %19460 = vst [vmem:[#allocation91_spill] sm:$0xff] %v15686_v9  ;;  %v15692_v24 = vmul.f32 %v15356_v34, %v19462_v35  ;;  %v15698_v17 = vmul.f32 %v15356_v34, %v19465_v29  ;;  %v19470_v9 = vsub.f32 %v19469_v25, %v15232_v50  ;;  %v19471_v35 = vld [vmem:[#allocation86_spill] sm:$0xff]  ;;  %v19473_v29 = vld [vmem:[#allocation89_spill] sm:$0xff] }
 0x591   :  { %v15704_v52 = vmul.f32 %v15356_v34, %v19468_v15  ;;  %v19475_v15 = vsub.f32 %v19394_v27, %v15232_v50 }
 0x592   :  { %19463 = vst [vmem:[#allocation90_spill] sm:$0xff] %v15692_v24  ;;  %19466 = vst [vmem:[#allocation93_spill] sm:$0xff] %v15698_v17  ;;  %v15710_v37 = vmul.f32 %v15356_v34, %v19470_v9  ;;  %v19472_v24 = vsub.f32 %v19471_v35, %v15232_v50  ;;  %v19474_v17 = vsub.f32 %v19473_v29, %v15232_v50 }
 0x593   :  { %v15728_v25 = vmul.f32 %v15356_v34, %v19475_v15  ;;  %v19477_v9 = vsub.f32 %v19395_v39, %v15232_v50  ;;  %v19481_v15 = vld [vmem:[#allocation92_spill] sm:$0xff] }
 0x594   :  { %v15716_v13 = vmul.f32 %v15356_v34, %v19472_v24  ;;  %v15722_v5 = vmul.f32 %v15356_v34, %v19474_v17  ;;  %v19479_v24 = vsub.f32 %v19396_v18, %v15232_v50  ;;  %v19480_v17 = vsub.f32 %v19397_v41, %v15232_v50 }
 0x595   :  { %19476 = vst [vmem:[#allocation81_spill] sm:$0xff] %v15728_v25  ;;  %v15734_v35 = vmul.f32 %v15356_v34, %v19477_v9  ;;  %v19482_v25 = vsub.f32 %v19481_v15, %v15232_v50  ;;  %v19483_v9 = vld [vmem:[#allocation94_spill] sm:$0xff]  ;;  %v15766_v41 = vmul.f32 %v15361_v6, %v15385_v59  ;;  %v15786_v59 = vmul.f32 %v15361_v6, %v15420_v40  ;;  %v19488_v15 = vld [vmem:[#allocation77_spill] sm:$0xff] }
 0x596   :  { %v15740_v29 = vmul.f32 %v15356_v34, %v19479_v24  ;;  %v15746_v27 = vmul.f32 %v15356_v34, %v19480_v17  ;;  %v15770_v24 = vmul.f32 %v15361_v6, %v15391_v49  ;;  %v15790_v49 = vmul.f32 %v15361_v6, %v15427_v56  ;;  %v19485_v56 = vld [vmem:[#allocation74_spill] sm:$0xff] }
 0x597   :  { %19478 = vst [vmem:[#allocation80_spill] sm:$0xff] %v15734_v35  ;;  %v15752_v39 = vmul.f32 %v15356_v34, %v19482_v25  ;;  %v19484_v35 = vsub.f32 %v19483_v9, %v15232_v50  ;;  %v15774_v25 = vmul.f32 %v15361_v6, %v15402_v55  ;;  %v15778_v50 = vmul.f32 %v15361_v6, %v15408_v28  ;;  %v19490_v9 = vld [vmem:[#allocation76_spill] sm:$0xff]  ;;  %v19494_v61 = vld [vmem:[#allocation78_spill] sm:$0xff] }
 0x598   :  { %v15798_v55 = vmul.f32 %v15361_v6, %v15439_v11  ;;  %v15802_v28 = vmul.f32 %v15361_v6, %v15445_v22  ;;  %v15810_v40 = vmul.f32 %v15361_v6, %v15457_v60  ;;  %v15818_v11 = vmul.f32 %v15361_v6, %v15470_v10 }
 0x599   :  { %v15758_v18 = vmul.f32 %v15356_v34, %v19484_v35  ;;  %v15794_v34 = vmul.f32 %v15361_v6, %v15433_v48  ;;  %v15814_v48 = vmul.f32 %v15361_v6, %v19485_v56  ;;  %v15822_v22 = vmul.f32 %v15361_v6, %v15476_v36  ;;  %v5622_v35 = vld [vmem:[#allocation4 + $0x1c8] sm:$0xff] }
 0x59a   :  { %v15830_v60 = vmul.f32 %v15361_v6, %v15488_v38  ;;  %v15834_v17 = vmul.f32 %v15361_v6, %v15494_v8  ;;  %v15838_v10 = vmul.f32 %v15361_v6, %v15500_v30  ;;  %v15842_v36 = vmul.f32 %v15361_v6, %v15506_v43  ;;  %11424 = vmatprep.subr.mxu0 %v5622_v35  ;;  %v19492_v56 = vld [vmem:[#allocation79_spill] sm:$0xff] }
 0x59b   :  { %v15850_v38 = vmul.f32 %v15361_v6, %v15518_v44  ;;  %v15854_v8 = vmul.f32 %v15361_v6, %v15524_v62  ;;  %v15858_v30 = vmul.f32 %v15361_v6, %v15530_v26  ;;  %v15862_v43 = vmul.f32 %v15361_v6, %v15536_v4  ;;  %11425 = vmatpush3.msra.mxu0 %v5622_v35  ;;  %v5085_v35 = vld [vmem:[#allocation4 + $0x110] sm:$0xff] }
 0x59c   :  { %v15870_v44 = vmul.f32 %v15361_v6, %v15548_v31  ;;  %v15874_v62 = vmul.f32 %v15361_v6, %v15554_v46  ;;  %v15878_v26 = vmul.f32 %v15361_v6, %v15560_v33  ;;  %v15882_v4 = vmul.f32 %v15361_v6, %v15566_v3  ;;  %11310 = vmatprep.subr.mxu1 %v5085_v35 }
 0x59d   :  { %v15890_v31 = vmul.f32 %v15361_v6, %v15578_v14  ;;  %v15894_v46 = vmul.f32 %v15361_v6, %v15584_v1  ;;  %v15898_v33 = vmul.f32 %v15361_v6, %v15590_v7  ;;  %v15902_v3 = vmul.f32 %v15361_v6, %v15596_v47  ;;  %11311 = vmatpush3.msra.mxu1 %v5085_v35 }
 0x59e   :  { %v15910_v14 = vmul.f32 %v15361_v6, %v15608_v2  ;;  %v15914_v1 = vmul.f32 %v15361_v6, %v15614_v12  ;;  %v15918_v7 = vmul.f32 %v15361_v6, %v15620_v19  ;;  %v15922_v47 = vmul.f32 %v15361_v6, %v15626_v23 }
 0x59f   :  { %v15930_v2 = vmul.f32 %v15361_v6, %v15638_v45  ;;  %v15934_v12 = vmul.f32 %v15361_v6, %v15644_v63  ;;  %v15938_v19 = vmul.f32 %v15361_v6, %v15650_v57  ;;  %v15942_v23 = vmul.f32 %v15361_v6, %v19488_v15  ;;  %v19495_v57 = vld [vmem:[#allocation88_spill] sm:$0xff]  ;;  %v19496_v15 = vld [vmem:[#allocation91_spill] sm:$0xff] }
 0x5a0   :  { %v15946_v42 = vmul.f32 %v15361_v6, %v19490_v9  ;;  %v15950_v45 = vmul.f32 %v15361_v6, %v19492_v56  ;;  %v15954_v63 = vmul.f32 %v15361_v6, %v19494_v61  ;;  %v19497_v9 = vld [vmem:[#allocation90_spill] sm:$0xff]  ;;  %v19499_v56 = vld [vmem:[#allocation93_spill] sm:$0xff]  ;;  %v15974_v61 = vmul.f32 %v15361_v6, %v15704_v52 }
 0x5a1   :  { %19486 = vst [vmem:[#allocation83_spill] sm:$0xff] %v15934_v12  ;;  %19487 = vst [vmem:[#allocation82_spill] sm:$0xff] %v15938_v19  ;;  %v5621_v12 = vld [vmem:[#allocation4 + $0x1c0] sm:$0xff]  ;;  %v15958_v19 = vmul.f32 %v15361_v6, %v19495_v57  ;;  %v15978_v57 = vmul.f32 %v15361_v6, %v15710_v37  ;;  %v15998_v37 = vmul.f32 %v15361_v6, %v15740_v29 }
 0x5a2   :  { %19489 = vst [vmem:[#allocation85_spill] sm:$0xff] %v15942_v23  ;;  %19491 = vst [vmem:[#allocation84_spill] sm:$0xff] %v15946_v42  ;;  %v15962_v23 = vmul.f32 %v15361_v6, %v19496_v15  ;;  %v15966_v42 = vmul.f32 %v15361_v6, %v19497_v9  ;;  %v15982_v15 = vmul.f32 %v15361_v6, %v15716_v13  ;;  %11426 = vmatprep.subr.mxu0 %v5621_v12 }
 0x5a3   :  { %19493 = vst [vmem:[#allocation87_spill] sm:$0xff] %v15950_v45  ;;  %v15970_v45 = vmul.f32 %v15361_v6, %v19499_v56  ;;  %v15986_v9 = vmul.f32 %v15361_v6, %v15722_v5  ;;  %v19501_v56 = vld [vmem:[#allocation81_spill] sm:$0xff]  ;;  %v16002_v13 = vmul.f32 %v15361_v6, %v15746_v27  ;;  %v16006_v5 = vmul.f32 %v15361_v6, %v15752_v39 }
 0x5a4   :  { %19498 = vst [vmem:[#allocation86_spill] sm:$0xff] %v15966_v42  ;;  %v19502_v42 = vld [vmem:[#allocation80_spill] sm:$0xff]  ;;  %11427 = vmatpush3.msra.mxu0 %v5621_v12  ;;  %v5620_v12 = vld [vmem:[#allocation4 + $0x1b8] sm:$0xff] }
 0x5a5   :  { %19500 = vst [vmem:[#allocation89_spill] sm:$0xff] %v15970_v45  ;;  %v15990_v45 = vmul.f32 %v15361_v6, %v19501_v56  ;;  %v15994_v52 = vmul.f32 %v15361_v6, %v19502_v42  ;;  %v16010_v56 = vmul.f32 %v15361_v6, %v15758_v18  ;;  %v19504_v42 = vld [vmem:[#allocation75_spill] sm:$0xff]  ;;  %11428 = vmatprep.subr.mxu0 %v5620_v12 }
 0x5a6   :  { %v16018_v29 = vadd.f32 %v19504_v42, %v15766_v41  ;;  %v16022_v27 = vadd.f32 %v19504_v42, %v15770_v24  ;;  %v16026_v39 = vadd.f32 %v19504_v42, %v15774_v25  ;;  %v16030_v6 = vadd.f32 %v19504_v42, %v15778_v50  ;;  %11429 = vmatpush3.msra.mxu0 %v5620_v12 }
 0x5a7   :  { %19503 = vst [vmem:[#allocation92_spill] sm:$0xff] %v15994_v52  ;;  %v16014_v52 = vadd.f32 %v19504_v42, %v15762_v21  ;;  %v16034_v18 = vadd.f32 %v19504_v42, %v15782_v16  ;;  %v16038_v21 = vadd.f32 %v19504_v42, %v15786_v59  ;;  %v16042_v41 = vadd.f32 %v19504_v42, %v15790_v49 }
 0x5a8   :  { %v16046_v24 = vadd.f32 %v19504_v42, %v15794_v34  ;;  %v16050_v25 = vadd.f32 %v19504_v42, %v15798_v55  ;;  %v16054_v50 = vadd.f32 %v19504_v42, %v15802_v28  ;;  %v16058_v16 = vadd.f32 %v19504_v42, %v15806_v53  ;;  %v19509_v12 = vld [vmem:[#allocation82_spill] sm:$0xff] }
 0x5a9   :  { %v16062_v59 = vadd.f32 %v19504_v42, %v15810_v40  ;;  %v16066_v49 = vadd.f32 %v19504_v42, %v15814_v48  ;;  %v16070_v34 = vadd.f32 %v19504_v42, %v15818_v11  ;;  %v16074_v55 = vadd.f32 %v19504_v42, %v15822_v22  ;;  %v5084_v40 = vld [vmem:[#allocation4 + $0x108] sm:$0xff] }
 0x5aa   :  { %v16078_v28 = vadd.f32 %v19504_v42, %v15826_v0  ;;  %v16082_v53 = vadd.f32 %v19504_v42, %v15830_v60  ;;  %v16086_v48 = vadd.f32 %v19504_v42, %v15834_v17  ;;  %v16090_v11 = vadd.f32 %v19504_v42, %v15838_v10  ;;  %11312 = vmatprep.subr.mxu1 %v5084_v40 }
 0x5ab   :  { %v16094_v22 = vadd.f32 %v19504_v42, %v15842_v36  ;;  %v16098_v0 = vadd.f32 %v19504_v42, %v15846_v51  ;;  %v16102_v60 = vadd.f32 %v19504_v42, %v15850_v38  ;;  %v16106_v17 = vadd.f32 %v19504_v42, %v15854_v8  ;;  %11313 = vmatpush3.msra.mxu1 %v5084_v40  ;;  %v19508_v40 = vld [vmem:[#allocation83_spill] sm:$0xff] }
 0x5ac   :  { %v16110_v10 = vadd.f32 %v19504_v42, %v15858_v30  ;;  %v16114_v36 = vadd.f32 %v19504_v42, %v15862_v43  ;;  %v16118_v51 = vadd.f32 %v19504_v42, %v15866_v32  ;;  %v16122_v38 = vadd.f32 %v19504_v42, %v15870_v44 }
 0x5ad   :  { %v16126_v8 = vadd.f32 %v19504_v42, %v15874_v62  ;;  %v16130_v30 = vadd.f32 %v19504_v42, %v15878_v26  ;;  %v16134_v43 = vadd.f32 %v19504_v42, %v15882_v4  ;;  %v16138_v32 = vadd.f32 %v19504_v42, %v15886_v58  ;;  %v5619_v26 = vld [vmem:[#allocation4 + $0x1b0] sm:$0xff] }
 0x5ae   :  { %v16142_v44 = vadd.f32 %v19504_v42, %v15890_v31  ;;  %v16146_v62 = vadd.f32 %v19504_v42, %v15894_v46  ;;  %v16150_v35 = vadd.f32 %v19504_v42, %v15898_v33  ;;  %v16154_v4 = vadd.f32 %v19504_v42, %v15902_v3  ;;  %11430 = vmatprep.subr.mxu0 %v5619_v26 }
 0x5af   :  { %v16158_v58 = vadd.f32 %v19504_v42, %v15906_v20  ;;  %v16162_v31 = vadd.f32 %v19504_v42, %v15910_v14  ;;  %v16166_v46 = vadd.f32 %v19504_v42, %v15914_v1  ;;  %v16170_v33 = vadd.f32 %v19504_v42, %v15918_v7  ;;  %11431 = vmatpush3.msra.mxu0 %v5619_v26 }
 0x5b0   :  { %v16174_v3 = vadd.f32 %v19504_v42, %v15922_v47  ;;  %v16178_v20 = vadd.f32 %v19504_v42, %v15926_v54  ;;  %v16182_v14 = vadd.f32 %v19504_v42, %v15930_v2  ;;  %v16186_v1 = vadd.f32 %v19504_v42, %v19508_v40  ;;  %v19513_v54 = vld [vmem:[#allocation84_spill] sm:$0xff] }
 0x5b1   :  { %19505 = vst [vmem:[#allocation94_spill] sm:$0xff] %v16170_v33  ;;  %v16190_v7 = vadd.f32 %v19504_v42, %v19509_v12  ;;  %v19511_v33 = vld [vmem:[#allocation85_spill] sm:$0xff]  ;;  %v16198_v26 = vadd.f32 %v19504_v42, %v19513_v54  ;;  %v16206_v40 = vadd.f32 %v19504_v42, %v15954_v63  ;;  %v16210_v12 = vadd.f32 %v19504_v42, %v15958_v19  ;;  %v19517_v54 = vld [vmem:[#allocation86_spill] sm:$0xff] }
 0x5b2   :  { %19506 = vst [vmem:[#allocation74_spill] sm:$0xff] %v16174_v3  ;;  %19507 = vst [vmem:[#allocation77_spill] sm:$0xff] %v16178_v20  ;;  %v16194_v47 = vadd.f32 %v19504_v42, %v19511_v33  ;;  %v5618_v3 = vld [vmem:[#allocation4 + $0x1a8] sm:$0xff]  ;;  %v5617_v33 = vld [vmem:[#allocation4 + $0x1a0] sm:$0xff]  ;;  %v16226_v63 = vadd.f32 %v19504_v42, %v15974_v61  ;;  %v16230_v19 = vadd.f32 %v19504_v42, %v15978_v57 }
 0x5b3   :  { %19510 = vst [vmem:[#allocation76_spill] sm:$0xff] %v16190_v7  ;;  %19514 = vst [vmem:[#allocation78_spill] sm:$0xff] %v16198_v26  ;;  %v19515_v20 = vld [vmem:[#allocation87_spill] sm:$0xff]  ;;  %11432 = vmatprep.subr.mxu0 %v5618_v3  ;;  %v16214_v7 = vadd.f32 %v19504_v42, %v15962_v23  ;;  %v16218_v26 = vadd.f32 %v19504_v42, %v19517_v54  ;;  %v16234_v23 = vadd.f32 %v19504_v42, %v15982_v15  ;;  %v19520_v61 = vld [vmem:[#allocation92_spill] sm:$0xff] }
 0x5b4   :  { %19512 = vst [vmem:[#allocation79_spill] sm:$0xff] %v16194_v47  ;;  %v16202_v2 = vadd.f32 %v19504_v42, %v19515_v20  ;;  %v5083_v47 = vld [vmem:[#allocation4 + $0x100] sm:$0xff]  ;;  %v19518_v20 = vld [vmem:[#allocation89_spill] sm:$0xff]  ;;  %11433 = vmatpush3.msra.mxu0 %v5618_v3  ;;  %v16238_v54 = vadd.f32 %v19504_v42, %v15986_v9  ;;  %v16246_v3 = vadd.f32 %v19504_v42, %v19520_v61  ;;  %v3873_v61 = vmax.f32 %v16014_v52, 0.0 }
 0x5b5   :  { %11434 = vmatprep.subr.mxu0 %v5617_v33  ;;  %v16250_v57 = vadd.f32 %v19504_v42, %v15998_v37  ;;  %v16254_v15 = vadd.f32 %v19504_v42, %v16002_v13  ;;  %v16258_v9 = vadd.f32 %v19504_v42, %v16006_v5  ;;  %11314 = vmatprep.subr.mxu1 %v5083_v47  ;;  %v3875_v37 = vmax.f32 %v16022_v27, 0.0  ;;  %v5615_v13 = vld [vmem:[#allocation4 + $0x190] sm:$0xff] }
 0x5b6   :  { %19516 = vst [vmem:[#allocation88_spill] sm:$0xff] %v16202_v2  ;;  %v16222_v2 = vadd.f32 %v19504_v42, %v19518_v20  ;;  %v16242_v20 = vadd.f32 %v19504_v42, %v15990_v45  ;;  %19521 = vst [vmem:[#allocation90_spill] sm:$0xff] %v16246_v3  ;;  %v5616_v45 = vld [vmem:[#allocation4 + $0x198] sm:$0xff]  ;;  %v3874_v3 = vmax.f32 %v16018_v29, 0.0  ;;  %11435 = vmatpush3.msra.mxu0 %v5617_v33  ;;  %11315 = vmatpush3.msra.mxu1 %v5083_v47 }
 0x5b7   :  { %19522 = vst [vmem:[#allocation93_spill] sm:$0xff] %v16250_v57  ;;  %19523 = vst [vmem:[#allocation81_spill] sm:$0xff] %v16254_v15  ;;  %v19195_v15 = vmax.f32 %v16026_v39, 0.0  ;;  %v19197_v5 = vmax.f32 %v16030_v6, 0.0  ;;  %11436 = vmatprep.subr.mxu0 %v5616_v45  ;;  %v19199_v52 = vmax.f32 %v16046_v24, 0.0  ;;  %v19201_v29 = vmax.f32 %v16054_v50, 0.0  ;;  %11063 = vmatprep.mubr.f32.mxu1 %v3873_v61 }
 0x5b8   :  { %19519 = vst [vmem:[#allocation91_spill] sm:$0xff] %v16242_v20  ;;  %19524 = vst [vmem:[#allocation80_spill] sm:$0xff] %v16258_v9  ;;  %v16262_v20 = vadd.f32 %v19504_v42, %v16010_v56  ;;  %v19196_v9 = vmax.f32 %v16034_v18, 0.0  ;;  %v19198_v56 = vmax.f32 %v16042_v41, 0.0  ;;  %v19200_v42 = vmax.f32 %v16050_v25, 0.0  ;;  %11437 = vmatpush3.msra.mxu0 %v5616_v45  ;;  %11064 = vmatmul.mubr.f32.gmra.mxu1 %v3874_v3  ;;  %v5614_v45 = vld [vmem:[#allocation4 + $0x188] sm:$0xff] }
 0x5b9   :  { %4023 = vst [vmem:[#allocation3 + $0x19] sm:$0xff] %v3873_v61  ;;  %4024 = vst [vmem:[#allocation3 + $0x21] sm:$0xff] %v3874_v3  ;;  %v19202_v27 = vmax.f32 %v16058_v16, 0.0  ;;  %v19525_v61 = vmax.f32 %v16038_v21, 0.0  ;;  %11438 = vmatprep.subr.mxu0 %v5615_v13  ;;  %v19203_v47 = vmax.f32 %v16074_v55, 0.0  ;;  %v19206_v33 = vmax.f32 %v16078_v28, 0.0  ;;  %11066 = vmatprep.mubr.f32.mxu1 %v3875_v37 }
 0x5ba   :  { %4025 = vst [vmem:[#allocation3 + $0x31] sm:$0xff] %v3875_v37  ;;  %4026 = vst [vmem:[#allocation3 + $0x39] sm:$0xff] %v19195_v15  ;;  %v19204_v57 = vmax.f32 %v16082_v53, 0.0  ;;  %v19205_v15 = vmax.f32 %v16086_v48, 0.0  ;;  %11439 = vmatpush3.msra.mxu0 %v5615_v13  ;;  %v5613_v3 = vld [vmem:[#allocation4 + $0x180] sm:$0xff]  ;;  %v19528_v37 = vmax.f32 %v16070_v34, 0.0 }
 0x5bb   :  { %4027 = vst [vmem:[#allocation3 + $0x49] sm:$0xff] %v19197_v5  ;;  %4028 = vst [vmem:[#allocation3 + $0x51] sm:$0xff] %v19196_v9  ;;  %v19212_v9 = vmax.f32 %v16094_v22, 0.0  ;;  %11440 = vmatprep.subr.mxu0 %v5614_v45  ;;  %v16311_v13 = vld [vmem:[#allocation4 + $0x278] sm:$0xff]  ;;  %v19210_v5 = vmax.f32 %v16110_v10, 0.0 }
 0x5bc   :  { %4029 = vst [vmem:[#allocation3 + $0x61] sm:$0xff] %v19525_v61  ;;  %4030 = vst [vmem:[#allocation3 + $0x69] sm:$0xff] %v19198_v56  ;;  %v19207_v61 = vmax.f32 %v16090_v11, 0.0  ;;  %v19209_v56 = vmax.f32 %v16114_v36, 0.0  ;;  %11441 = vmatpush3.msra.mxu0 %v5614_v45  ;;  %11540 = vmatprep.subr.mxu1 %v16311_v13  ;;  %v19530_v45 = vmax.f32 %v16102_v60, 0.0 }
 0x5bd   :  { %4031 = vst [vmem:[#allocation3 + $0x79] sm:$0xff] %v19199_v52  ;;  %4032 = vst [vmem:[#allocation3 + $0x81] sm:$0xff] %v19200_v42  ;;  %v19526_v52 = vmax.f32 %v16062_v59, 0.0  ;;  %v19527_v42 = vmax.f32 %v16066_v49, 0.0  ;;  %11442 = vmatprep.subr.mxu0 %v5613_v3 }
 0x5be   :  { %4033 = vst [vmem:[#allocation3 + $0x91] sm:$0xff] %v19201_v29  ;;  %4034 = vst [vmem:[#allocation3 + $0x99] sm:$0xff] %v19202_v27  ;;  %v19211_v29 = vmax.f32 %v16106_v17, 0.0  ;;  %v19208_v27 = vmax.f32 %v16118_v51, 0.0  ;;  %11443 = vmatpush3.msra.mxu0 %v5613_v3 }
 0x5bf   :  { %4035 = vst [vmem:[#allocation3 + $0xa9] sm:$0xff] %v19526_v52  ;;  %4036 = vst [vmem:[#allocation3 + $0xb1] sm:$0xff] %v19527_v42  ;;  %v19214_v52 = vmax.f32 %v16122_v38, 0.0  ;;  %v19213_v42 = vmax.f32 %v16126_v8, 0.0 }
 0x5c0   :  { %4037 = vst [vmem:[#allocation3 + $0xc1] sm:$0xff] %v19528_v37  ;;  %4038 = vst [vmem:[#allocation3 + $0xc9] sm:$0xff] %v19203_v47  ;;  %v3903_v47 = vmax.f32 %v16134_v43, 0.0  ;;  %v19217_v43 = vmax.f32 %v16142_v44, 0.0  ;;  %v19216_v37 = vmax.f32 %v16146_v62, 0.0  ;;  %v16366_v3 = vld [vmem:[#allocation3 + $0x20] sm:$0xff] }
 0x5c1   :  { %4039 = vst [vmem:[#allocation3 + $0xd9] sm:$0xff] %v19206_v33  ;;  %4040 = vst [vmem:[#allocation3 + $0xe1] sm:$0xff] %v19204_v57  ;;  %v19529_v57 = vmax.f32 %v16098_v0, 0.0  ;;  %v3904_v33 = vmax.f32 %v16138_v32, 0.0  ;;  %v19218_v32 = vmax.f32 %v16154_v4, 0.0 }
 0x5c2   :  { %4041 = vst [vmem:[#allocation3 + $0xf1] sm:$0xff] %v19205_v15  ;;  %4042 = vst [vmem:[#allocation3 + $0xf9] sm:$0xff] %v19207_v61  ;;  %v19531_v15 = vmax.f32 %v16026_v39, 0.0  ;;  %v19215_v61 = vmax.f32 %v16150_v35, 0.0  ;;  %v19532_v39 = vmax.f32 %v16030_v6, 0.0  ;;  %v16364_v6 = vld [vmem:[#allocation3 + $0x18] sm:$0xff] }
 0x5c3   :  { %4043 = vst [vmem:[#allocation3 + $0x109] sm:$0xff] %v19212_v9  ;;  %4044 = vst [vmem:[#allocation3 + $0x111] sm:$0xff] %v19529_v57  ;;  %v19219_v57 = vmax.f32 %v16158_v58, 0.0  ;;  %v19538_v9 = vld [vmem:[#allocation77_spill] sm:$0xff]  ;;  %11191 = vmatprep.mubr.f32.mxu0 %v16364_v6 }
 0x5c4   :  { %4045 = vst [vmem:[#allocation3 + $0x121] sm:$0xff] %v19530_v45  ;;  %11067 = vmatmul.mubr.f32.gmra.mxu1 %v19531_v15  ;;  %4046 = vst [vmem:[#allocation3 + $0x129] sm:$0xff] %v19211_v29  ;;  %v19541_v29 = vld [vmem:[#allocation78_spill] sm:$0xff]  ;;  %11192 = vmatmul.mubr.f32.gmra.mxu0 %v16366_v3  ;;  %v19546_v15 = vld [vmem:[#allocation88_spill] sm:$0xff] }
 0x5c5   :  { %4047 = vst [vmem:[#allocation3 + $0x139] sm:$0xff] %v19210_v5  ;;  %4048 = vst [vmem:[#allocation3 + $0x141] sm:$0xff] %v19209_v56  ;;  %11069 = vmatprep.mubr.f32.mxu1 %v19532_v39  ;;  %v19536_v39 = vld [vmem:[#allocation94_spill] sm:$0xff]  ;;  %v19225_v45 = vmax.f32 %v19546_v15, 0.0 }
 0x5c6   :  { %4049 = vst [vmem:[#allocation3 + $0x151] sm:$0xff] %v19208_v27  ;;  %4050 = vst [vmem:[#allocation3 + $0x159] sm:$0xff] %v19214_v52  ;;  %v19533_v27 = vmax.f32 %v16130_v30, 0.0  ;;  %v19220_v56 = vmax.f32 %v19536_v39, 0.0  ;;  %v19537_v5 = vld [vmem:[#allocation74_spill] sm:$0xff]  ;;  %v19540_v52 = vld [vmem:[#allocation79_spill] sm:$0xff] }
 0x5c7   :  { %4051 = vst [vmem:[#allocation3 + $0x169] sm:$0xff] %v19213_v42  ;;  %4053 = vst [vmem:[#allocation3 + $0x181] sm:$0xff] %v3903_v47  ;;  %v19539_v47 = vld [vmem:[#allocation76_spill] sm:$0xff]  ;;  %v19555_v42 = vld [vmem:[#allocation90_spill] sm:$0xff] }
 0x5c8   :  { %4052 = vst [vmem:[#allocation3 + $0x171] sm:$0xff] %v19533_v27  ;;  %19534 = vst [vmem:[#allocation75_spill] sm:$0xff] %v16364_v6  ;;  %v19221_v27 = vmax.f32 %v16186_v1, 0.0  ;;  %v3936_v6 = vmax.f32 %v16262_v20, 0.0  ;;  %v19567_v20 = vmax.f32 %v16234_v23, 0.0 }
 0x5c9   :  { %19535 = vst [vmem:[#allocation83_spill] sm:$0xff] %v16366_v3  ;;  %4054 = vst [vmem:[#allocation3 + $0x189] sm:$0xff] %v3904_v33  ;;  %v19542_v33 = vmax.f32 %v16162_v31, 0.0  ;;  %v19561_v3 = vld [vmem:[#allocation80_spill] sm:$0xff] }
 0x5ca   :  { %4055 = vst [vmem:[#allocation3 + $0x1c9] sm:$0xff] %v19217_v43  ;;  %4056 = vst [vmem:[#allocation3 + $0x1d1] sm:$0xff] %v19216_v37  ;;  %v16392_v37 = vld [vmem:[#allocation3 + $0x30] sm:$0xff]  ;;  %v19545_v43 = vmax.f32 %v16034_v18, 0.0  ;;  %v19549_v18 = vmax.f32 %v16182_v14, 0.0 }
 0x5cb   :  { %4057 = vst [vmem:[#allocation3 + $0x1e1] sm:$0xff] %v19215_v61  ;;  %4058 = vst [vmem:[#allocation3 + $0x1e9] sm:$0xff] %v19218_v32  ;;  %v19543_v61 = vmax.f32 %v16166_v46, 0.0  ;;  %11194 = vmatprep.mubr.f32.mxu0 %v16392_v37  ;;  %v3934_v32 = vmax.f32 %v19561_v3, 0.0  ;;  %v19566_v3 = vmax.f32 %v16042_v41, 0.0 }
 0x5cc   :  { %4059 = vst [vmem:[#allocation3 + $0x1f9] sm:$0xff] %v19219_v57  ;;  %4060 = vst [vmem:[#allocation3 + $0x201] sm:$0xff] %v19542_v33  ;;  %11070 = vmatmul.mubr.f32.gmra.mxu1 %v19545_v43  ;;  %v19548_v33 = vmax.f32 %v19538_v9, 0.0  ;;  %v19550_v43 = vmax.f32 %v16038_v21, 0.0  ;;  %v19553_v21 = vmax.f32 %v19541_v29, 0.0  ;;  %v19554_v57 = vld [vmem:[#allocation91_spill] sm:$0xff] }
 0x5cd   :  { %4061 = vst [vmem:[#allocation3 + $0x211] sm:$0xff] %v19543_v61  ;;  %19544 = vst [vmem:[#allocation82_spill] sm:$0xff] %v16392_v37  ;;  %v19547_v61 = vmax.f32 %v19537_v5, 0.0  ;;  %v19560_v37 = vld [vmem:[#allocation81_spill] sm:$0xff] }
 0x5ce   :  { %4062 = vst [vmem:[#allocation3 + $0x219] sm:$0xff] %v19220_v56  ;;  %4064 = vst [vmem:[#allocation3 + $0x231] sm:$0xff] %v19548_v33  ;;  %11072 = vmatprep.mubr.f32.mxu1 %v19550_v43  ;;  %v19552_v33 = vmax.f32 %v19540_v52, 0.0  ;;  %v19226_v56 = vmax.f32 %v19560_v37, 0.0  ;;  %v16450_v43 = vld [vmem:[#allocation3 + $0x48] sm:$0xff] }
 0x5cf   :  { %4063 = vst [vmem:[#allocation3 + $0x229] sm:$0xff] %v19547_v61  ;;  %4065 = vst [vmem:[#allocation3 + $0x241] sm:$0xff] %v19549_v18  ;;  %v19551_v61 = vmax.f32 %v19539_v47, 0.0  ;;  %v19559_v18 = vld [vmem:[#allocation93_spill] sm:$0xff] }
 0x5d0   :  { %4066 = vst [vmem:[#allocation3 + $0x249] sm:$0xff] %v19221_v27  ;;  %4068 = vst [vmem:[#allocation3 + $0x261] sm:$0xff] %v19552_v33  ;;  %v19556_v27 = vmax.f32 %v16206_v40, 0.0  ;;  %v19558_v33 = vmax.f32 %v16214_v7, 0.0  ;;  %11073 = vmatmul.mubr.f32.gmra.mxu1 %v19566_v3  ;;  %v19572_v41 = vmax.f32 %v19559_v18, 0.0  ;;  %v16469_v3 = vld [vmem:[#allocation3 + $0x50] sm:$0xff] }
 0x5d1   :  { %4067 = vst [vmem:[#allocation3 + $0x259] sm:$0xff] %v19551_v61  ;;  %4069 = vst [vmem:[#allocation3 + $0x271] sm:$0xff] %v19553_v21  ;;  %v19557_v61 = vmax.f32 %v16210_v12, 0.0  ;;  %v16435_v21 = vld [vmem:[#allocation3 + $0x38] sm:$0xff] }
 0x5d2   :  { %4070 = vst [vmem:[#allocation3 + $0x279] sm:$0xff] %v19225_v45  ;;  %4071 = vst [vmem:[#allocation3 + $0x289] sm:$0xff] %v19556_v27  ;;  %v19562_v45 = vmax.f32 %v16218_v26, 0.0  ;;  %v19563_v27 = vmax.f32 %v16222_v2, 0.0  ;;  %11195 = vmatmul.mubr.f32.gmra.mxu0 %v16435_v21 }
 0x5d3   :  { %4072 = vst [vmem:[#allocation3 + $0x291] sm:$0xff] %v19557_v61  ;;  %4073 = vst [vmem:[#allocation3 + $0x2a1] sm:$0xff] %v19558_v33  ;;  %v19564_v61 = vmax.f32 %v16226_v63, 0.0  ;;  %v19565_v33 = vmax.f32 %v16230_v19, 0.0  ;;  %11197 = vmatprep.mubr.f32.mxu0 %v16450_v43 }
 0x5d4   :  { %4074 = vst [vmem:[#allocation3 + $0x2a9] sm:$0xff] %v19562_v45  ;;  %4075 = vst [vmem:[#allocation3 + $0x2b9] sm:$0xff] %v19563_v27  ;;  %v19568_v45 = vmax.f32 %v16238_v54, 0.0  ;;  %v19569_v27 = vmax.f32 %v19554_v57, 0.0 }
 0x5d5   :  { %4076 = vst [vmem:[#allocation3 + $0x2c1] sm:$0xff] %v19564_v61  ;;  %4077 = vst [vmem:[#allocation3 + $0x2d1] sm:$0xff] %v19565_v33  ;;  %v19570_v61 = vmax.f32 %v19555_v42, 0.0  ;;  %v19571_v33 = vmax.f32 %v16046_v24, 0.0  ;;  %v19574_v24 = vmax.f32 %v16054_v50, 0.0  ;;  %v16492_v50 = vld [vmem:[#allocation3 + $0x90] sm:$0xff] }
 0x5d6   :  { %4078 = vst [vmem:[#allocation3 + $0x2d9] sm:$0xff] %v19567_v20  ;;  %4079 = vst [vmem:[#allocation3 + $0x2e9] sm:$0xff] %v19568_v45  ;;  %11198 = vmatmul.mubr.f32.gmra.mxu0 %v16469_v3  ;;  %v16472_v20 = vld [vmem:[#allocation3 + $0x60] sm:$0xff]  ;;  %v19573_v45 = vmax.f32 %v16050_v25, 0.0 }
 0x5d7   :  { %4080 = vst [vmem:[#allocation3 + $0x2f1] sm:$0xff] %v19569_v27  ;;  %4081 = vst [vmem:[#allocation3 + $0x301] sm:$0xff] %v19570_v61  ;;  %11075 = vmatprep.mubr.f32.mxu1 %v19571_v33  ;;  %11200 = vmatprep.mubr.f32.mxu0 %v16472_v20  ;;  %v16479_v27 = vld [vmem:[#allocation3 + $0x68] sm:$0xff]  ;;  %v19576_v61 = vmax.f32 %v16062_v59, 0.0  ;;  %v16489_v25 = vld [vmem:[#allocation3 + $0x80] sm:$0xff]  ;;  %v19577_v33 = vmax.f32 %v16066_v49, 0.0 }
 0x5d8   :  { %4082 = vst [vmem:[#allocation3 + $0x309] sm:$0xff] %v19572_v41  ;;  %4083 = vst [vmem:[#allocation3 + $0x319] sm:$0xff] %v19226_v56  ;;  %11076 = vmatmul.mubr.f32.gmra.mxu1 %v19573_v45  ;;  %v19578_v41 = vmax.f32 %v16070_v34, 0.0  ;;  %v16502_v59 = vld [vmem:[#allocation3 + $0xa8] sm:$0xff]  ;;  %v19579_v45 = vmax.f32 %v16074_v55, 0.0  ;;  %v16509_v49 = vld [vmem:[#allocation3 + $0xb0] sm:$0xff] }
 0x5d9   :  { %4084 = vst [vmem:[#allocation3 + $0x321] sm:$0xff] %v3934_v32  ;;  %4086 = vst [vmem:[#allocation3 + $0x339] sm:$0xff] %v3936_v6  ;;  %11078 = vmatprep.mubr.f32.mxu1 %v19574_v24  ;;  %v16482_v32 = vld [vmem:[#allocation3 + $0x78] sm:$0xff]  ;;  %v19575_v6 = vmax.f32 %v16058_v16, 0.0  ;;  %v19580_v24 = vmax.f32 %v16078_v28, 0.0  ;;  %v16512_v34 = vld [vmem:[#allocation3 + $0xc0] sm:$0xff] }
 0x5da   :  { %11201 = vmatmul.mubr.f32.gmra.mxu0 %v16479_v27  ;;  %v16499_v16 = vld [vmem:[#allocation3 + $0x98] sm:$0xff]  ;;  %v16519_v55 = vld [vmem:[#allocation3 + $0xc8] sm:$0xff]  ;;  %v16588_v56 = vld [vmem:[#allocation3 + $0x170] sm:$0xff] }
 0x5db   :  { %11203 = vmatprep.mubr.f32.mxu0 %v16482_v32  ;;  %v16522_v28 = vld [vmem:[#allocation3 + $0xd8] sm:$0xff] }
 0x5dc   :  { %11079 = vmatmul.mubr.f32.gmra.mxu1 %v19575_v6  ;;  %v19581_v6 = vmax.f32 %v16082_v53, 0.0  ;;  %v16529_v53 = vld [vmem:[#allocation3 + $0xe0] sm:$0xff] }
 0x5dd   :  { %11081 = vmatprep.mubr.f32.mxu1 %v19576_v61  ;;  %v19582_v61 = vmax.f32 %v16086_v48, 0.0  ;;  %v16532_v48 = vld [vmem:[#allocation3 + $0xf0] sm:$0xff] }
 0x5de   :  { %11204 = vmatmul.mubr.f32.gmra.mxu0 %v16489_v25 }
 0x5df   :  { %11206 = vmatprep.mubr.f32.mxu0 %v16492_v50 }
 0x5e0   :  { %11082 = vmatmul.mubr.f32.gmra.mxu1 %v19577_v33  ;;  %v19583_v33 = vmax.f32 %v16090_v11, 0.0  ;;  %v16539_v11 = vld [vmem:[#allocation3 + $0xf8] sm:$0xff] }
 0x5e1   :  { %11084 = vmatprep.mubr.f32.mxu1 %v19578_v41  ;;  %v19584_v41 = vmax.f32 %v16094_v22, 0.0  ;;  %v16542_v22 = vld [vmem:[#allocation3 + $0x108] sm:$0xff] }
 0x5e2   :  { %11207 = vmatmul.mubr.f32.gmra.mxu0 %v16499_v16 }
 0x5e3   :  { %11209 = vmatprep.mubr.f32.mxu0 %v16502_v59 }
 0x5e4   :  { %11085 = vmatmul.mubr.f32.gmra.mxu1 %v19579_v45  ;;  %v19585_v45 = vmax.f32 %v16098_v0, 0.0  ;;  %v16549_v0 = vld [vmem:[#allocation3 + $0x110] sm:$0xff] }
 0x5e5   :  { %11087 = vmatprep.mubr.f32.mxu1 %v19580_v24  ;;  %v19586_v24 = vmax.f32 %v16102_v60, 0.0  ;;  %v16552_v60 = vld [vmem:[#allocation3 + $0x120] sm:$0xff] }
 0x5e6   :  { %11210 = vmatmul.mubr.f32.gmra.mxu0 %v16509_v49 }
 0x5e7   :  { %11212 = vmatprep.mubr.f32.mxu0 %v16512_v34 }
 0x5e8   :  { %11088 = vmatmul.mubr.f32.gmra.mxu1 %v19581_v6  ;;  %v19587_v6 = vmax.f32 %v16106_v17, 0.0  ;;  %v16559_v17 = vld [vmem:[#allocation4 + $0x2f8] sm:$0xff] }
 0x5e9   :  { %11090 = vmatprep.mubr.f32.mxu1 %v19582_v61  ;;  %v19588_v61 = vmax.f32 %v16110_v10, 0.0  ;;  %11668 = vmatprep.subr.mxu0 %v16559_v17  ;;  %v16562_v10 = vld [vmem:[#allocation3 + $0x128] sm:$0xff] }
 0x5ea   :  { %11213 = vmatmul.mubr.f32.gmra.mxu0 %v16519_v55 }
 0x5eb   :  { %11215 = vmatprep.mubr.f32.mxu0 %v16522_v28 }
 0x5ec   :  { %11091 = vmatmul.mubr.f32.gmra.mxu1 %v19583_v33  ;;  %v19589_v33 = vmax.f32 %v16114_v36, 0.0  ;;  %v19592_v36 = vmax.f32 %v16126_v8, 0.0  ;;  %v16583_v8 = vld [vmem:[#allocation3 + $0x168] sm:$0xff] }
 0x5ed   :  { %11093 = vmatprep.mubr.f32.mxu1 %v19584_v41  ;;  %v19590_v41 = vmax.f32 %v16118_v51, 0.0  ;;  %v4199_v51 = vld [vmem:[#allocation3 + $0x1b1] sm:$0xff]  ;;  %19594 = vst [vmem:[#allocation85_spill] sm:$0xff] %v16583_v8 }
 0x5ee   :  { %11216 = vmatmul.mubr.f32.gmra.mxu0 %v16529_v53 }
 0x5ef   :  { %11218 = vmatprep.mubr.f32.mxu0 %v16532_v48 }
 0x5f0   :  { %11094 = vmatmul.mubr.f32.gmra.mxu1 %v19585_v45  ;;  %v16565_v45 = vld [vmem:[#allocation3 + $0x138] sm:$0xff] }
 0x5f1   :  { %11096 = vmatprep.mubr.f32.mxu1 %v19586_v24  ;;  %v19591_v24 = vmax.f32 %v16122_v38, 0.0  ;;  %v4200_v38 = vld [vmem:[#allocation3 + $0x1b9] sm:$0xff] }
 0x5f2   :  { %11219 = vmatmul.mubr.f32.gmra.mxu0 %v16539_v11 }
 0x5f3   :  { %11221 = vmatprep.mubr.f32.mxu0 %v16542_v22 }
 0x5f4   :  { %11097 = vmatmul.mubr.f32.gmra.mxu1 %v19587_v6  ;;  %v16572_v6 = vld [vmem:[#allocation3 + $0x140] sm:$0xff] }
 0x5f5   :  { %11099 = vmatprep.mubr.f32.mxu1 %v19588_v61  ;;  %v16575_v61 = vld [vmem:[#allocation3 + $0x150] sm:$0xff] }
 0x5f6   :  { %11222 = vmatmul.mubr.f32.gmra.mxu0 %v16549_v0 }
 0x5f7   :  { %11224 = vmatprep.mubr.f32.mxu0 %v16552_v60 }
 0x5f8   :  { %11100 = vmatmul.mubr.f32.gmra.mxu1 %v19589_v33  ;;  %v19593_v33 = vmax.f32 %v16130_v30, 0.0  ;;  %v19596_v30 = vmax.f32 %v16146_v62, 0.0  ;;  %v16605_v62 = vld [vmem:[#allocation3 + $0x1e0] sm:$0xff] }
 0x5f9   :  { %11102 = vmatprep.mubr.f32.mxu1 %v19590_v41  ;;  %v16580_v41 = vld [vmem:[#allocation3 + $0x158] sm:$0xff] }
 0x5fa   :  { %11225 = vmatmul.mubr.f32.gmra.mxu0 %v16562_v10 }
 0x5fb   :  { %11227 = vmatprep.mubr.f32.mxu0 %v16565_v45 }
 0x5fc   :  { %11103 = vmatmul.mubr.f32.gmra.mxu1 %v19591_v24  ;;  %v19595_v24 = vmax.f32 %v16142_v44, 0.0  ;;  %v19599_v44 = vmax.f32 %v16158_v58, 0.0 }
 0x5fd   :  { %11105 = vmatprep.mubr.f32.mxu1 %v19592_v36  ;;  %v4119_v36 = vld [vmem:[#allocation3 + $0x1b0] sm:$0xff] }
 0x5fe   :  { %11228 = vmatmul.mubr.f32.gmra.mxu0 %v16572_v6 }
 0x5ff   :  { %11230 = vmatprep.mubr.f32.mxu0 %v16575_v61 }
 0x600   :  { %11106 = vmatmul.mubr.f32.gmra.mxu1 %v19593_v33  ;;  %v12304_v33 = vld [vmem:[#allocation3 + $0x8] sm:$0xff] }
 0x601   :  { %11108 = vmatprep.mubr.f32.mxu1 %v4199_v51  ;;  %v19597_v51 = vmax.f32 %v16150_v35, 0.0  ;;  %v19600_v35 = vmax.f32 %v16162_v31, 0.0  ;;  %v19604_v31 = vmax.f32 %v19537_v5, 0.0  ;;  %v16637_v5 = vld [vmem:[#allocation3 + $0x228] sm:$0xff] }
 0x602   :  { %11231 = vmatmul.mubr.f32.gmra.mxu0 %v16580_v41 }
 0x603   :  { %11233 = vmatprep.mubr.f32.mxu0 %v16583_v8  ;;  %v19598_v8 = vmax.f32 %v16154_v4, 0.0  ;;  %v11062_v4 = vpop.f32.mrf.mxu1 }
 0x604   :  { %11109 = vmatmul.mubr.f32.gmra.mxu1 %v4200_v38  ;;  %v16595_v38 = vld [vmem:[#allocation3 + $0x1c8] sm:$0xff] }
 0x605   :  { %11111 = vmatprep.mubr.f32.mxu1 %v19595_v24  ;;  %v16602_v24 = vld [vmem:[#allocation3 + $0x1d0] sm:$0xff] }
 0x606   :  { %11234 = vmatmul.mubr.f32.gmra.mxu0 %v16588_v56 }
 0x607   :  { %11236 = vmatprep.mubr.f32.mxu0 %v4119_v36  ;;  %v19601_v36 = vmax.f32 %v16166_v46, 0.0  ;;  %v16624_v46 = vld [vmem:[#allocation3 + $0x200] sm:$0xff] }
 0x608   :  { %11112 = vmatmul.mubr.f32.gmra.mxu1 %v19596_v30  ;;  %v16612_v30 = vld [vmem:[#allocation3 + $0x1e8] sm:$0xff] }
 0x609   :  { %11114 = vmatprep.mubr.f32.mxu1 %v19597_v51  ;;  %v16617_v51 = vld [vmem:[#allocation3 + $0x1f8] sm:$0xff] }
 0x60a   :  { %11237 = vmatmul.mubr.f32.gmra.mxu0 %v12304_v33  ;;  %v19603_v33 = vmax.f32 %v19536_v39, 0.0  ;;  %v16634_v39 = vld [vmem:[#allocation3 + $0x218] sm:$0xff] }
 0x60b   :  { %11239 = vmatprep.mubr.f32.mxu0 %v16595_v38 }
 0x60c   :  { %11115 = vmatmul.mubr.f32.gmra.mxu1 %v19598_v8  ;;  %v11190_v8 = vpop.f32.mrf.mxu0 }
 0x60d   :  { %11117 = vmatprep.mubr.f32.mxu1 %v19599_v44  ;;  %v16614_v58 = vadd.f32 %v11190_v8, %v11062_v4  ;;  %v16627_v44 = vld [vmem:[#allocation3 + $0x210] sm:$0xff]  ;;  %v19607_v4 = vmax.f32 %v16186_v1, 0.0  ;;  %v19608_v8 = vmax.f32 %v19539_v47, 0.0  ;;  %v16654_v1 = vld [vmem:[#allocation3 + $0x248] sm:$0xff]  ;;  %v16657_v47 = vld [vmem:[#allocation3 + $0x258] sm:$0xff] }
 0x60e   :  { %11240 = vmatmul.mubr.f32.gmra.mxu0 %v16602_v24 }
 0x60f   :  { %11242 = vmatprep.mubr.f32.mxu0 %v16605_v62  ;;  %19602 = vst [vmem:[#allocation84_spill] sm:$0xff] %v16614_v58  ;;  %v19630_v58 = vld [vmem:[#allocation75_spill] sm:$0xff] }
 0x610   :  { %11118 = vmatmul.mubr.f32.gmra.mxu1 %v19600_v35  ;;  %v19605_v35 = vmax.f32 %v19538_v9, 0.0  ;;  %v16644_v9 = vld [vmem:[#allocation3 + $0x230] sm:$0xff] }
 0x611   :  { %11120 = vmatprep.mubr.f32.mxu1 %v19601_v36  ;;  %v19606_v36 = vmax.f32 %v16182_v14, 0.0  ;;  %v16647_v14 = vld [vmem:[#allocation3 + $0x240] sm:$0xff] }
 0x612   :  { %11243 = vmatmul.mubr.f32.gmra.mxu0 %v16612_v30 }
 0x613   :  { %11245 = vmatprep.mubr.f32.mxu0 %v16617_v51 }
 0x614   :  { %11121 = vmatmul.mubr.f32.gmra.mxu1 %v19603_v33  ;;  %v19609_v33 = vmax.f32 %v19540_v52, 0.0  ;;  %v16664_v52 = vld [vmem:[#allocation3 + $0x260] sm:$0xff] }
 0x615   :  { %11123 = vmatprep.mubr.f32.mxu1 %v19604_v31  ;;  %v19610_v31 = vmax.f32 %v19541_v29, 0.0  ;;  %v16667_v29 = vld [vmem:[#allocation3 + $0x270] sm:$0xff] }
 0x616   :  { %11246 = vmatmul.mubr.f32.gmra.mxu0 %v16624_v46 }
 0x617   :  { %11248 = vmatprep.mubr.f32.mxu0 %v16627_v44 }
 0x618   :  { %11124 = vmatmul.mubr.f32.gmra.mxu1 %v19605_v35  ;;  %v19611_v35 = vmax.f32 %v19546_v15, 0.0  ;;  %v16674_v15 = vld [vmem:[#allocation3 + $0x278] sm:$0xff] }
 0x619   :  { %11126 = vmatprep.mubr.f32.mxu1 %v19606_v36  ;;  %v19612_v36 = vmax.f32 %v16206_v40, 0.0  ;;  %v16677_v40 = vld [vmem:[#allocation3 + $0x288] sm:$0xff] }
 0x61a   :  { %11249 = vmatmul.mubr.f32.gmra.mxu0 %v16634_v39 }
 0x61b   :  { %11251 = vmatprep.mubr.f32.mxu0 %v16637_v5 }
 0x61c   :  { %11127 = vmatmul.mubr.f32.gmra.mxu1 %v19607_v4  ;;  %v19613_v4 = vmax.f32 %v16210_v12, 0.0  ;;  %v16684_v12 = vld [vmem:[#allocation3 + $0x290] sm:$0xff] }
 0x61d   :  { %11129 = vmatprep.mubr.f32.mxu1 %v19608_v8  ;;  %v19614_v8 = vmax.f32 %v16214_v7, 0.0  ;;  %v16687_v7 = vld [vmem:[#allocation3 + $0x2a0] sm:$0xff] }
 0x61e   :  { %11252 = vmatmul.mubr.f32.gmra.mxu0 %v16644_v9 }
 0x61f   :  { %11254 = vmatprep.mubr.f32.mxu0 %v16647_v14 }
 0x620   :  { %11130 = vmatmul.mubr.f32.gmra.mxu1 %v19609_v33  ;;  %v19615_v33 = vmax.f32 %v16218_v26, 0.0  ;;  %v16694_v26 = vld [vmem:[#allocation3 + $0x2a8] sm:$0xff] }
 0x621   :  { %11132 = vmatprep.mubr.f32.mxu1 %v19610_v31  ;;  %v19616_v31 = vmax.f32 %v16222_v2, 0.0  ;;  %v16697_v2 = vld [vmem:[#allocation3 + $0x2b8] sm:$0xff] }
 0x622   :  { %11255 = vmatmul.mubr.f32.gmra.mxu0 %v16654_v1 }
 0x623   :  { %11257 = vmatprep.mubr.f32.mxu0 %v16657_v47 }
 0x624   :  { %11133 = vmatmul.mubr.f32.gmra.mxu1 %v19611_v35  ;;  %v19617_v35 = vmax.f32 %v16226_v63, 0.0  ;;  %v16704_v63 = vld [vmem:[#allocation3 + $0x2c0] sm:$0xff] }
 0x625   :  { %11135 = vmatprep.mubr.f32.mxu1 %v19612_v36  ;;  %v19618_v36 = vmax.f32 %v16230_v19, 0.0  ;;  %v16707_v19 = vld [vmem:[#allocation3 + $0x2d0] sm:$0xff] }
 0x626   :  { %11258 = vmatmul.mubr.f32.gmra.mxu0 %v16664_v52 }
 0x627   :  { %11260 = vmatprep.mubr.f32.mxu0 %v16667_v29 }
 0x628   :  { %11136 = vmatmul.mubr.f32.gmra.mxu1 %v19613_v4  ;;  %v19619_v4 = vmax.f32 %v16234_v23, 0.0  ;;  %v16714_v23 = vld [vmem:[#allocation3 + $0x2d8] sm:$0xff] }
 0x629   :  { %11138 = vmatprep.mubr.f32.mxu1 %v19614_v8  ;;  %v19620_v8 = vmax.f32 %v16238_v54, 0.0  ;;  %v16717_v54 = vld [vmem:[#allocation3 + $0x2e8] sm:$0xff] }
 0x62a   :  { %11261 = vmatmul.mubr.f32.gmra.mxu0 %v16674_v15 }
 0x62b   :  { %11263 = vmatprep.mubr.f32.mxu0 %v16677_v40 }
 0x62c   :  { %11139 = vmatmul.mubr.f32.gmra.mxu1 %v19615_v33  ;;  %v19621_v33 = vmax.f32 %v19554_v57, 0.0  ;;  %v5018_v57 = vld [vmem:[#allocation3 + $0x2] sm:$0xff] }
 0x62d   :  { %11141 = vmatprep.mubr.f32.mxu1 %v19616_v31  ;;  %v19622_v31 = vmax.f32 %v19555_v42, 0.0  ;;  %v16727_v42 = vld [vmem:[#allocation3 + $0x300] sm:$0xff] }
 0x62e   :  { %11264 = vmatmul.mubr.f32.gmra.mxu0 %v16684_v12 }
 0x62f   :  { %11266 = vmatprep.mubr.f32.mxu0 %v16687_v7 }
 0x630   :  { %11142 = vmatmul.mubr.f32.gmra.mxu1 %v19617_v35  ;;  %v19623_v35 = vmax.f32 %v19559_v18, 0.0  ;;  %v16730_v18 = vld [vmem:[#allocation3 + $0x308] sm:$0xff] }
 0x631   :  { %11144 = vmatprep.mubr.f32.mxu1 %v19618_v36  ;;  %v19624_v36 = vmax.f32 %v19560_v37, 0.0  ;;  %19625 = vst [vmem:[#allocation87_spill] sm:$0xff] %v16730_v18  ;;  %v16733_v37 = vld [vmem:[#allocation3 + $0x318] sm:$0xff] }
 0x632   :  { %11267 = vmatmul.mubr.f32.gmra.mxu0 %v16694_v26  ;;  %19626 = vst [vmem:[#allocation86_spill] sm:$0xff] %v16733_v37 }
 0x633   :  { %11269 = vmatprep.mubr.f32.mxu0 %v16697_v2 }
 0x634   :  { %11145 = vmatmul.mubr.f32.gmra.mxu1 %v19619_v4  ;;  %v16724_v4 = vld [vmem:[#allocation3 + $0x2f0] sm:$0xff] }
 0x635   :  { %11147 = vmatprep.mubr.f32.mxu1 %v19620_v8  ;;  %v4230_v8 = vld [vmem:[#allocation3 + $0x321] sm:$0xff] }
 0x636   :  { %11270 = vmatmul.mubr.f32.gmra.mxu0 %v16704_v63 }
 0x637   :  { %11272 = vmatprep.mubr.f32.mxu0 %v16707_v19 }
 0x638   :  { %11148 = vmatmul.mubr.f32.gmra.mxu1 %v19621_v33  ;;  %v5019_v33 = vld [vmem:[#allocation3 + $0xa] sm:$0xff] }
 0x639   :  { %11150 = vmatprep.mubr.f32.mxu1 %v19622_v31  ;;  %v6157_v31 = vld [vmem:[#allocation4 + $0x270] sm:$0xff] }
 0x63a   :  { %11273 = vmatmul.mubr.f32.gmra.mxu0 %v16714_v23 }
 0x63b   :  { %11275 = vmatprep.mubr.f32.mxu0 %v16717_v54 }
 0x63c   :  { %11151 = vmatmul.mubr.f32.gmra.mxu1 %v19623_v35  ;;  %v16737_v35 = vld [vmem:[#allocation3 + $0x1a] sm:$0xff] }
 0x63d   :  { %11153 = vmatprep.mubr.f32.mxu1 %v19624_v36  ;;  %19627 = vst [vmem:[#allocation89_spill] sm:$0xff] %v16737_v35  ;;  %v16740_v36 = vld [vmem:[#allocation3 + $0x320] sm:$0xff] }
 0x63e   :  { %11276 = vmatmul.mubr.f32.gmra.mxu0 %v16724_v4  ;;  %19628 = vst [vmem:[#allocation92_spill] sm:$0xff] %v16740_v36 }
 0x63f   :  { %11278 = vmatprep.mubr.f32.mxu0 %v16727_v42 }
 0x640   :  { %11154 = vmatmul.mubr.f32.gmra.mxu1 %v4230_v8  ;;  %v6156_v8 = vld [vmem:[#allocation4 + $0x268] sm:$0xff] }
 0x641   :  { %11316 = vmatprep.mubr.f32.mxu1 %v5018_v57  ;;  %v16742_v57 = vld [vmem:[#allocation3 + $0x22] sm:$0xff] }
 0x642   :  { %11279 = vmatmul.mubr.f32.gmra.mxu0 %v16730_v18  ;;  %v19632_v18 = vld [vmem:[#allocation82_spill] sm:$0xff] }
 0x643   :  { %11281 = vmatprep.mubr.f32.mxu0 %v16733_v37  ;;  %v19631_v37 = vld [vmem:[#allocation83_spill] sm:$0xff] }
 0x644   :  { %11317 = vmatmul.mubr.f32.vlgmr.msra.gmra.mxu1 %v5019_v33  ;;  %v16746_v33 = vld [vmem:[#allocation3 + $0x32] sm:$0xff] }
 0x645   :  { %11541 = vmatpush3.msra.mxu1 %v16311_v13  ;;  %11319 = vmatprep.mubr.f32.mxu1 %v16737_v35  ;;  %19629 = vst [vmem:[#allocation94_spill] sm:$0xff] %v16746_v33  ;;  %v16750_v13 = vld [vmem:[#allocation3 + $0x3a] sm:$0xff] }
 0x646   :  { %11542 = vmatprep.subr.mxu1 %v6157_v31  ;;  %11282 = vmatmul.mubr.f32.gmra.mxu0 %v16740_v36  ;;  %v6155_v35 = vld [vmem:[#allocation4 + $0x260] sm:$0xff]  ;;  %v6687_v36 = vld [vmem:[#allocation4 + $0x2f0] sm:$0xff] }
 0x647   :  { %11543 = vmatpush3.msra.mxu1 %v6157_v31  ;;  %11444 = vmatprep.mubr.f32.mxu0 %v19630_v58  ;;  %v16754_v31 = vld [vmem:[#allocation3 + $0x4a] sm:$0xff]  ;;  %v16759_v58 = vld [vmem:[#allocation3 + $0x52] sm:$0xff] }
 0x648   :  { %11320 = vmatmul.mubr.f32.gmra.mxu1 %v16742_v57  ;;  %11544 = vmatprep.subr.mxu1 %v6156_v8 }
 0x649   :  { %11322 = vmatprep.mubr.f32.mxu1 %v16746_v33  ;;  %11545 = vmatpush3.msra.mxu1 %v6156_v8  ;;  %v6154_v33 = vld [vmem:[#allocation4 + $0x258] sm:$0xff]  ;;  %v6686_v8 = vld [vmem:[#allocation4 + $0x2e8] sm:$0xff] }
 0x64a   :  { %11445 = vmatmul.mubr.f32.vlgmr.msra.gmra.mxu0 %v19631_v37  ;;  %11546 = vmatprep.subr.mxu1 %v6155_v35  ;;  %v16763_v37 = vld [vmem:[#allocation3 + $0x62] sm:$0xff] }
 0x64b   :  { %11447 = vmatprep.mubr.f32.mxu0 %v19632_v18  ;;  %11669 = vmatpush3.msra.mxu0 %v16559_v17  ;;  %v16767_v18 = vld [vmem:[#allocation3 + $0x6a] sm:$0xff] }
 0x64c   :  { %11323 = vmatmul.mubr.f32.gmra.mxu1 %v16750_v13  ;;  %11670 = vmatprep.subr.mxu0 %v6687_v36  ;;  %v6153_v17 = vld [vmem:[#allocation4 + $0x250] sm:$0xff] }
 0x64d   :  { %11325 = vmatprep.mubr.f32.mxu1 %v16754_v31  ;;  %11547 = vmatpush3.msra.mxu1 %v6155_v35  ;;  %v6685_v35 = vld [vmem:[#allocation4 + $0x2e0] sm:$0xff] }
 0x64e   :  { %11448 = vmatmul.mubr.f32.gmra.mxu0 %v16435_v21  ;;  %11548 = vmatprep.subr.mxu1 %v6154_v33  ;;  %v16771_v21 = vld [vmem:[#allocation3 + $0x7a] sm:$0xff] }
 0x64f   :  { %11450 = vmatprep.mubr.f32.mxu0 %v16450_v43  ;;  %11671 = vmatpush3.msra.mxu0 %v6687_v36  ;;  %v16775_v43 = vld [vmem:[#allocation3 + $0x82] sm:$0xff] }
 0x650   :  { %11326 = vmatmul.mubr.f32.gmra.mxu1 %v16759_v58  ;;  %11672 = vmatprep.subr.mxu0 %v6686_v8  ;;  %v6152_v36 = vld [vmem:[#allocation4 + $0x248] sm:$0xff] }
 0x651   :  { %11328 = vmatprep.mubr.f32.mxu1 %v16763_v37  ;;  %11549 = vmatpush3.msra.mxu1 %v6154_v33  ;;  %v6684_v33 = vld [vmem:[#allocation4 + $0x2d8] sm:$0xff] }
 0x652   :  { %11451 = vmatmul.mubr.f32.gmra.mxu0 %v16469_v3  ;;  %11550 = vmatprep.subr.mxu1 %v6153_v17  ;;  %v16779_v3 = vld [vmem:[#allocation3 + $0x92] sm:$0xff] }
 0x653   :  { %11453 = vmatprep.mubr.f32.mxu0 %v16472_v20  ;;  %11673 = vmatpush3.msra.mxu0 %v6686_v8  ;;  %v16783_v20 = vld [vmem:[#allocation3 + $0x9a] sm:$0xff] }
 0x654   :  { %11329 = vmatmul.mubr.f32.gmra.mxu1 %v16767_v18  ;;  %11674 = vmatprep.subr.mxu0 %v6685_v35  ;;  %v6151_v8 = vld [vmem:[#allocation4 + $0x240] sm:$0xff] }
 0x655   :  { %11331 = vmatprep.mubr.f32.mxu1 %v16771_v21  ;;  %11551 = vmatpush3.msra.mxu1 %v6153_v17  ;;  %v6683_v17 = vld [vmem:[#allocation4 + $0x2d0] sm:$0xff] }
 0x656   :  { %11454 = vmatmul.mubr.f32.gmra.mxu0 %v16479_v27  ;;  %11552 = vmatprep.subr.mxu1 %v6152_v36  ;;  %v16787_v27 = vld [vmem:[#allocation3 + $0xaa] sm:$0xff] }
 0x657   :  { %11456 = vmatprep.mubr.f32.mxu0 %v16482_v32  ;;  %11675 = vmatpush3.msra.mxu0 %v6685_v35  ;;  %v16791_v32 = vld [vmem:[#allocation3 + $0xb2] sm:$0xff] }
 0x658   :  { %11332 = vmatmul.mubr.f32.gmra.mxu1 %v16775_v43  ;;  %11676 = vmatprep.subr.mxu0 %v6684_v33  ;;  %v6150_v35 = vld [vmem:[#allocation4 + $0x238] sm:$0xff] }
 0x659   :  { %11334 = vmatprep.mubr.f32.mxu1 %v16779_v3  ;;  %11553 = vmatpush3.msra.mxu1 %v6152_v36  ;;  %v6682_v36 = vld [vmem:[#allocation4 + $0x2c8] sm:$0xff] }
 0x65a   :  { %11457 = vmatmul.mubr.f32.gmra.mxu0 %v16489_v25  ;;  %11554 = vmatprep.subr.mxu1 %v6151_v8  ;;  %v16795_v25 = vld [vmem:[#allocation3 + $0xc2] sm:$0xff] }
 0x65b   :  { %11459 = vmatprep.mubr.f32.mxu0 %v16492_v50  ;;  %11677 = vmatpush3.msra.mxu0 %v6684_v33  ;;  %v16799_v50 = vld [vmem:[#allocation3 + $0xca] sm:$0xff] }
 0x65c   :  { %11335 = vmatmul.mubr.f32.gmra.mxu1 %v16783_v20  ;;  %11678 = vmatprep.subr.mxu0 %v6683_v17  ;;  %v6149_v33 = vld [vmem:[#allocation4 + $0x230] sm:$0xff] }
 0x65d   :  { %11337 = vmatprep.mubr.f32.mxu1 %v16787_v27  ;;  %11555 = vmatpush3.msra.mxu1 %v6151_v8  ;;  %v6681_v8 = vld [vmem:[#allocation4 + $0x2c0] sm:$0xff] }
 0x65e   :  { %11460 = vmatmul.mubr.f32.gmra.mxu0 %v16499_v16  ;;  %11556 = vmatprep.subr.mxu1 %v6150_v35  ;;  %v16803_v16 = vld [vmem:[#allocation3 + $0xda] sm:$0xff] }
 0x65f   :  { %11462 = vmatprep.mubr.f32.mxu0 %v16502_v59  ;;  %11679 = vmatpush3.msra.mxu0 %v6683_v17  ;;  %v16807_v59 = vld [vmem:[#allocation3 + $0xe2] sm:$0xff] }
 0x660   :  { %11338 = vmatmul.mubr.f32.gmra.mxu1 %v16791_v32  ;;  %11680 = vmatprep.subr.mxu0 %v6682_v36  ;;  %v6148_v17 = vld [vmem:[#allocation4 + $0x228] sm:$0xff] }
 0x661   :  { %11340 = vmatprep.mubr.f32.mxu1 %v16795_v25  ;;  %11557 = vmatpush3.msra.mxu1 %v6150_v35  ;;  %v6680_v35 = vld [vmem:[#allocation4 + $0x2b8] sm:$0xff] }
 0x662   :  { %11463 = vmatmul.mubr.f32.gmra.mxu0 %v16509_v49  ;;  %11558 = vmatprep.subr.mxu1 %v6149_v33  ;;  %v16811_v49 = vld [vmem:[#allocation3 + $0xf2] sm:$0xff] }
 0x663   :  { %11465 = vmatprep.mubr.f32.mxu0 %v16512_v34  ;;  %11681 = vmatpush3.msra.mxu0 %v6682_v36  ;;  %v16815_v34 = vld [vmem:[#allocation3 + $0xfa] sm:$0xff] }
 0x664   :  { %11341 = vmatmul.mubr.f32.gmra.mxu1 %v16799_v50  ;;  %11682 = vmatprep.subr.mxu0 %v6681_v8  ;;  %v6147_v36 = vld [vmem:[#allocation4 + $0x220] sm:$0xff] }
 0x665   :  { %11343 = vmatprep.mubr.f32.mxu1 %v16803_v16  ;;  %11559 = vmatpush3.msra.mxu1 %v6149_v33  ;;  %v6679_v33 = vld [vmem:[#allocation4 + $0x2b0] sm:$0xff] }
 0x666   :  { %11466 = vmatmul.mubr.f32.gmra.mxu0 %v16519_v55  ;;  %11560 = vmatprep.subr.mxu1 %v6148_v17  ;;  %v16819_v55 = vld [vmem:[#allocation3 + $0x10a] sm:$0xff] }
 0x667   :  { %11468 = vmatprep.mubr.f32.mxu0 %v16522_v28  ;;  %11683 = vmatpush3.msra.mxu0 %v6681_v8  ;;  %v16823_v28 = vld [vmem:[#allocation3 + $0x112] sm:$0xff] }
 0x668   :  { %11344 = vmatmul.mubr.f32.gmra.mxu1 %v16807_v59  ;;  %11684 = vmatprep.subr.mxu0 %v6680_v35  ;;  %v6146_v8 = vld [vmem:[#allocation4 + $0x218] sm:$0xff] }
 0x669   :  { %11346 = vmatprep.mubr.f32.mxu1 %v16811_v49  ;;  %11561 = vmatpush3.msra.mxu1 %v6148_v17  ;;  %v6678_v17 = vld [vmem:[#allocation4 + $0x2a8] sm:$0xff] }
 0x66a   :  { %11469 = vmatmul.mubr.f32.gmra.mxu0 %v16529_v53  ;;  %11562 = vmatprep.subr.mxu1 %v6147_v36  ;;  %v16827_v53 = vld [vmem:[#allocation3 + $0x122] sm:$0xff] }
 0x66b   :  { %11471 = vmatprep.mubr.f32.mxu0 %v16532_v48  ;;  %11685 = vmatpush3.msra.mxu0 %v6680_v35  ;;  %v16831_v48 = vld [vmem:[#allocation3 + $0x12a] sm:$0xff] }
 0x66c   :  { %11347 = vmatmul.mubr.f32.gmra.mxu1 %v16815_v34  ;;  %11686 = vmatprep.subr.mxu0 %v6679_v33  ;;  %19633 = vst [vmem:[#allocation74_spill] sm:$0xff] %v16831_v48  ;;  %v6145_v35 = vld [vmem:[#allocation4 + $0x210] sm:$0xff] }
 0x66d   :  { %11349 = vmatprep.mubr.f32.mxu1 %v16819_v55  ;;  %11563 = vmatpush3.msra.mxu1 %v6147_v36  ;;  %v6677_v36 = vld [vmem:[#allocation4 + $0x2a0] sm:$0xff] }
 0x66e   :  { %11472 = vmatmul.mubr.f32.gmra.mxu0 %v16539_v11  ;;  %11564 = vmatprep.subr.mxu1 %v6146_v8  ;;  %v16835_v11 = vld [vmem:[#allocation3 + $0x13a] sm:$0xff] }
 0x66f   :  { %11474 = vmatprep.mubr.f32.mxu0 %v16542_v22  ;;  %11687 = vmatpush3.msra.mxu0 %v6679_v33  ;;  %v5045_v22 = vld [vmem:[#allocation3 + $0x142] sm:$0xff] }
 0x670   :  { %11350 = vmatmul.mubr.f32.gmra.mxu1 %v16823_v28  ;;  %11688 = vmatprep.subr.mxu0 %v6678_v17  ;;  %v6144_v33 = vld [vmem:[#allocation4 + $0x208] sm:$0xff] }
 0x671   :  { %11352 = vmatprep.mubr.f32.mxu1 %v16827_v53  ;;  %11565 = vmatpush3.msra.mxu1 %v6146_v8  ;;  %v5046_v8 = vld [vmem:[#allocation3 + $0x152] sm:$0xff] }
 0x672   :  { %11475 = vmatmul.mubr.f32.gmra.mxu0 %v16549_v0  ;;  %11566 = vmatprep.subr.mxu1 %v6145_v35  ;;  %v6676_v0 = vld [vmem:[#allocation4 + $0x298] sm:$0xff] }
 0x673   :  { %11477 = vmatprep.mubr.f32.mxu0 %v16552_v60  ;;  %11689 = vmatpush3.msra.mxu0 %v6678_v17  ;;  %v6143_v60 = vld [vmem:[#allocation4 + $0x200] sm:$0xff]  ;;  %v5048_v17 = vld [vmem:[#allocation3 + $0x16a] sm:$0xff] }
 0x674   :  { %11353 = vmatmul.mubr.f32.gmra.mxu1 %v16831_v48  ;;  %11690 = vmatprep.subr.mxu0 %v6677_v36  ;;  %v5047_v48 = vld [vmem:[#allocation3 + $0x15a] sm:$0xff] }
 0x675   :  { %11355 = vmatprep.mubr.f32.mxu1 %v16835_v11  ;;  %11567 = vmatpush3.msra.mxu1 %v6145_v35  ;;  %v6675_v35 = vld [vmem:[#allocation4 + $0x290] sm:$0xff] }
 0x676   :  { %11478 = vmatmul.mubr.f32.gmra.mxu0 %v16562_v10  ;;  %11568 = vmatprep.subr.mxu1 %v6144_v33  ;;  %v5050_v10 = vld [vmem:[#allocation3 + $0x1b2] sm:$0xff] }
 0x677   :  { %11480 = vmatprep.mubr.f32.mxu0 %v16565_v45  ;;  %11691 = vmatpush3.msra.mxu0 %v6677_v36  ;;  %v16843_v45 = vld [vmem:[#allocation4 + $0x378] sm:$0xff]  ;;  %v6674_v36 = vld [vmem:[#allocation4 + $0x288] sm:$0xff] }
 0x678   :  { %11356 = vmatmul.mubr.f32.gmra.mxu1 %v5045_v22  ;;  %11692 = vmatprep.subr.mxu0 %v6676_v0  ;;  %v5049_v22 = vld [vmem:[#allocation3 + $0x172] sm:$0xff] }
 0x679   :  { %11358 = vmatprep.mubr.f32.mxu1 %v5046_v8  ;;  %11569 = vmatpush3.msra.mxu1 %v6144_v33  ;;  %v19634_v33 = vld [vmem:[#allocation85_spill] sm:$0xff]  ;;  %v6673_v8 = vld [vmem:[#allocation4 + $0x280] sm:$0xff] }
 0x67a   :  { %11481 = vmatmul.mubr.f32.gmra.mxu0 %v16572_v6  ;;  %11570 = vmatprep.subr.mxu1 %v6143_v60  ;;  %v5051_v6 = vld [vmem:[#allocation3 + $0x1ba] sm:$0xff] }
 0x67b   :  { %11483 = vmatprep.mubr.f32.mxu0 %v16575_v61  ;;  %11693 = vmatpush3.msra.mxu0 %v6676_v0  ;;  %v5578_v61 = vld [vmem:[#allocation3 + $0x180] sm:$0xff]  ;;  %v16849_v0 = vpop.f32.mrf.mxu1 }
 0x67c   :  { %11359 = vmatmul.mubr.f32.gmra.mxu1 %v5047_v48  ;;  %11694 = vmatprep.subr.mxu0 %v6675_v35  ;;  %v5052_v48 = vld [vmem:[#allocation3 + $0x1ca] sm:$0xff]  ;;  %19635 = vst [vmem:[#allocation77_spill] sm:$0xff] %v16849_v0 }
 0x67d   :  { %11361 = vmatprep.mubr.f32.mxu1 %v5048_v17  ;;  %11571 = vmatpush3.msra.mxu1 %v6143_v60  ;;  %v5053_v60 = vld [vmem:[#allocation3 + $0x1d2] sm:$0xff]  ;;  %v11065_v17 = vpop.f32.mrf.mxu1  ;;  %v5060_v0 = vld [vmem:[#allocation3 + $0x22a] sm:$0xff] }
 0x67e   :  { %11484 = vmatmul.mubr.f32.gmra.mxu0 %v16580_v41  ;;  %11796 = vmatprep.subr.mxu1 %v16843_v45  ;;  %v5579_v41 = vld [vmem:[#allocation3 + $0x188] sm:$0xff] }
 0x67f   :  { %11486 = vmatprep.mubr.f32.mxu0 %v19634_v33  ;;  %11695 = vmatpush3.msra.mxu0 %v6675_v35  ;;  %v5054_v35 = vld [vmem:[#allocation3 + $0x1e2] sm:$0xff]  ;;  %v5056_v33 = vld [vmem:[#allocation3 + $0x1fa] sm:$0xff] }
 0x680   :  { %11362 = vmatmul.mubr.f32.gmra.mxu1 %v5049_v22  ;;  %11696 = vmatprep.subr.mxu0 %v6674_v36  ;;  %v5055_v22 = vld [vmem:[#allocation3 + $0x1ea] sm:$0xff] }
 0x681   :  { %11364 = vmatprep.mubr.f32.mxu1 %v5050_v10  ;;  %11697 = vmatpush3.msra.mxu0 %v6674_v36  ;;  %v16851_v10 = vld [vmem:[#allocation4 + $0x3f8] sm:$0xff] }
 0x682   :  { %11487 = vmatmul.mubr.f32.gmra.mxu0 %v16588_v56  ;;  %11698 = vmatprep.subr.mxu0 %v6673_v8  ;;  %v4324_v56 = vpop.f32.mrf.mxu1 }
 0x683   :  { %11489 = vmatprep.mubr.f32.mxu0 %v5578_v61  ;;  %11699 = vmatpush3.msra.mxu0 %v6673_v8  ;;  %v5058_v8 = vld [vmem:[#allocation3 + $0x212] sm:$0xff] }
 0x684   :  { %11365 = vmatmul.mubr.f32.gmra.mxu1 %v5051_v6  ;;  %11924 = vmatprep.subr.mxu0 %v16851_v10  ;;  %v11068_v36 = vpop.f32.mrf.mxu1  ;;  %v16857_v6 = vpop.f32.mrf.mxu0 }
 0x685   :  { %11367 = vmatprep.mubr.f32.mxu1 %v5052_v48  ;;  %19636 = vst [vmem:[#allocation76_spill] sm:$0xff] %v16857_v6  ;;  %v5057_v48 = vld [vmem:[#allocation3 + $0x202] sm:$0xff] }
 0x686   :  { %11490 = vmatmul.mubr.f32.gmra.mxu0 %v5579_v41  ;;  %v4334_v61 = vpop.f32.mrf.mxu1  ;;  %v11193_v41 = vpop.f32.mrf.mxu0 }
 0x687   :  { %11492 = vmatprep.mubr.f32.mxu0 %v16595_v38 }
 0x688   :  { %11368 = vmatmul.mubr.f32.gmra.mxu1 %v5053_v60  ;;  %v16860_v60 = vadd.f32 %v11193_v41, %v11065_v17  ;;  %v5061_v41 = vld [vmem:[#allocation3 + $0x232] sm:$0xff] }
 0x689   :  { %11370 = vmatprep.mubr.f32.mxu1 %v5054_v35 }
 0x68a   :  { %11493 = vmatmul.mubr.f32.gmra.mxu0 %v16602_v24  ;;  %v4709_v24 = vpop.f32.mrf.mxu0 }
 0x68b   :  { %11495 = vmatprep.mubr.f32.mxu0 %v16605_v62  ;;  %v5059_v62 = vld [vmem:[#allocation3 + $0x21a] sm:$0xff] }
 0x68c   :  { %11371 = vmatmul.mubr.f32.gmra.mxu1 %v5055_v22  ;;  %v11071_v38 = vpop.f32.mrf.mxu1  ;;  %v16863_v22 = vadd.f32 %v4709_v24, %v4324_v56  ;;  %v5062_v24 = vld [vmem:[#allocation3 + $0x242] sm:$0xff] }
 0x68d   :  { %11373 = vmatprep.mubr.f32.mxu1 %v5056_v33 }
 0x68e   :  { %11496 = vmatmul.mubr.f32.gmra.mxu0 %v16612_v30  ;;  %v4344_v35 = vpop.f32.mrf.mxu1 }
 0x68f   :  { %11498 = vmatprep.mubr.f32.mxu0 %v16617_v51 }
 0x690   :  { %11374 = vmatmul.mubr.f32.gmra.mxu1 %v5057_v48  ;;  %v11074_v6 = vpop.f32.mrf.mxu1 }
 0x691   :  { %11376 = vmatprep.mubr.f32.mxu1 %v5058_v8 }
 0x692   :  { %v11196_v33 = vpop.f32.mrf.mxu0  ;;  %11499 = vmatmul.mubr.f32.gmra.mxu0 %v16624_v46  ;;  %v4354_v48 = vpop.f32.mrf.mxu1 }
 0x693   :  { %v16866_v30 = vadd.f32 %v11196_v33, %v11068_v36  ;;  %11501 = vmatprep.mubr.f32.mxu0 %v16627_v44 }
 0x694   :  { %11377 = vmatmul.mubr.f32.gmra.mxu1 %v5059_v62  ;;  %v4719_v17 = vpop.f32.mrf.mxu0 }
 0x695   :  { %11379 = vmatprep.mubr.f32.mxu1 %v5060_v0  ;;  %v16869_v51 = vadd.f32 %v4719_v17, %v4334_v61  ;;  %v5063_v0 = vld [vmem:[#allocation3 + $0x24a] sm:$0xff]  ;;  %v5064_v17 = vld [vmem:[#allocation3 + $0x25a] sm:$0xff] }
 0x696   :  { %v11199_v8 = vpop.f32.mrf.mxu0  ;;  %11502 = vmatmul.mubr.f32.gmra.mxu0 %v16634_v39 }
 0x697   :  { %v16872_v46 = vadd.f32 %v11199_v8, %v11071_v38  ;;  %11504 = vmatprep.mubr.f32.mxu0 %v16637_v5  ;;  %v5065_v8 = vld [vmem:[#allocation3 + $0x262] sm:$0xff] }
 0x698   :  { %v11077_v56 = vpop.f32.mrf.mxu1  ;;  %11380 = vmatmul.mubr.f32.gmra.mxu1 %v5061_v41  ;;  %v4729_v36 = vpop.f32.mrf.mxu0 }
 0x699   :  { %11382 = vmatprep.mubr.f32.mxu1 %v5062_v24  ;;  %v16875_v44 = vadd.f32 %v4729_v36, %v4344_v35  ;;  %v5066_v36 = vld [vmem:[#allocation3 + $0x272] sm:$0xff] }
 0x69a   :  { %v4364_v62 = vpop.f32.mrf.mxu1  ;;  %v11202_v33 = vpop.f32.mrf.mxu0  ;;  %11505 = vmatmul.mubr.f32.gmra.mxu0 %v16644_v9 }
 0x69b   :  { %v16878_v39 = vadd.f32 %v11202_v33, %v11074_v6  ;;  %11507 = vmatprep.mubr.f32.mxu0 %v16647_v14  ;;  %v5067_v33 = vld [vmem:[#allocation3 + $0x27a] sm:$0xff] }
 0x69c   :  { %v11080_v61 = vpop.f32.mrf.mxu1  ;;  %11383 = vmatmul.mubr.f32.gmra.mxu1 %v5063_v0  ;;  %v4739_v38 = vpop.f32.mrf.mxu0 }
 0x69d   :  { %11385 = vmatprep.mubr.f32.mxu1 %v5064_v17  ;;  %v16881_v5 = vadd.f32 %v4739_v38, %v4354_v48  ;;  %v5068_v38 = vld [vmem:[#allocation3 + $0x28a] sm:$0xff] }
 0x69e   :  { %v4374_v41 = vpop.f32.mrf.mxu1  ;;  %v11205_v24 = vpop.f32.mrf.mxu0  ;;  %11508 = vmatmul.mubr.f32.gmra.mxu0 %v16654_v1 }
 0x69f   :  { %v16884_v9 = vadd.f32 %v11205_v24, %v11077_v56  ;;  %11510 = vmatprep.mubr.f32.mxu0 %v16657_v47  ;;  %v5069_v24 = vld [vmem:[#allocation3 + $0x292] sm:$0xff] }
 0x6a0   :  { %v11083_v35 = vpop.f32.mrf.mxu1  ;;  %11386 = vmatmul.mubr.f32.gmra.mxu1 %v5065_v8  ;;  %v4749_v6 = vpop.f32.mrf.mxu0 }
 0x6a1   :  { %11388 = vmatprep.mubr.f32.mxu1 %v5066_v36  ;;  %v16887_v14 = vadd.f32 %v4749_v6, %v4364_v62  ;;  %v5070_v6 = vld [vmem:[#allocation3 + $0x2a2] sm:$0xff] }
 0x6a2   :  { %v4384_v0 = vpop.f32.mrf.mxu1  ;;  %v11208_v17 = vpop.f32.mrf.mxu0  ;;  %11511 = vmatmul.mubr.f32.gmra.mxu0 %v16664_v52 }
 0x6a3   :  { %v16890_v1 = vadd.f32 %v11208_v17, %v11080_v61  ;;  %11513 = vmatprep.mubr.f32.mxu0 %v16667_v29  ;;  %v5071_v17 = vld [vmem:[#allocation3 + $0x2aa] sm:$0xff] }
 0x6a4   :  { %v11086_v48 = vpop.f32.mrf.mxu1  ;;  %11389 = vmatmul.mubr.f32.gmra.mxu1 %v5067_v33  ;;  %v4759_v56 = vpop.f32.mrf.mxu0 }
 0x6a5   :  { %11391 = vmatprep.mubr.f32.mxu1 %v5068_v38  ;;  %v16893_v47 = vadd.f32 %v4759_v56, %v4374_v41  ;;  %v5072_v56 = vld [vmem:[#allocation3 + $0x2ba] sm:$0xff] }
 0x6a6   :  { %v4394_v8 = vpop.f32.mrf.mxu1  ;;  %v11211_v36 = vpop.f32.mrf.mxu0  ;;  %11514 = vmatmul.mubr.f32.gmra.mxu0 %v16674_v15 }
 0x6a7   :  { %v16896_v52 = vadd.f32 %v11211_v36, %v11083_v35  ;;  %11516 = vmatprep.mubr.f32.mxu0 %v16677_v40  ;;  %v5073_v36 = vld [vmem:[#allocation3 + $0x2c2] sm:$0xff] }
 0x6a8   :  { %v11089_v62 = vpop.f32.mrf.mxu1  ;;  %11392 = vmatmul.mubr.f32.gmra.mxu1 %v5069_v24  ;;  %v4769_v61 = vpop.f32.mrf.mxu0 }
 0x6a9   :  { %11394 = vmatprep.mubr.f32.mxu1 %v5070_v6  ;;  %v16899_v29 = vadd.f32 %v4769_v61, %v4384_v0  ;;  %v5074_v61 = vld [vmem:[#allocation3 + $0x2d2] sm:$0xff] }
 0x6aa   :  { %v4404_v33 = vpop.f32.mrf.mxu1  ;;  %v11214_v38 = vpop.f32.mrf.mxu0  ;;  %11517 = vmatmul.mubr.f32.gmra.mxu0 %v16684_v12 }
 0x6ab   :  { %v16902_v15 = vadd.f32 %v11214_v38, %v11086_v48  ;;  %11519 = vmatprep.mubr.f32.mxu0 %v16687_v7  ;;  %v5075_v38 = vld [vmem:[#allocation3 + $0x2da] sm:$0xff] }
 0x6ac   :  { %v11092_v41 = vpop.f32.mrf.mxu1  ;;  %11395 = vmatmul.mubr.f32.gmra.mxu1 %v5071_v17  ;;  %v4779_v35 = vpop.f32.mrf.mxu0 }
 0x6ad   :  { %11397 = vmatprep.mubr.f32.mxu1 %v5072_v56  ;;  %v16905_v40 = vadd.f32 %v4779_v35, %v4394_v8  ;;  %v5076_v35 = vld [vmem:[#allocation3 + $0x2ea] sm:$0xff] }
 0x6ae   :  { %v4414_v24 = vpop.f32.mrf.mxu1  ;;  %v11217_v6 = vpop.f32.mrf.mxu0  ;;  %11520 = vmatmul.mubr.f32.gmra.mxu0 %v16694_v26 }
 0x6af   :  { %v16908_v12 = vadd.f32 %v11217_v6, %v11089_v62  ;;  %11522 = vmatprep.mubr.f32.mxu0 %v16697_v2  ;;  %v5077_v6 = vld [vmem:[#allocation3 + $0x2f2] sm:$0xff] }
 0x6b0   :  { %v11095_v0 = vpop.f32.mrf.mxu1  ;;  %11398 = vmatmul.mubr.f32.gmra.mxu1 %v5073_v36  ;;  %v4789_v48 = vpop.f32.mrf.mxu0 }
 0x6b1   :  { %11400 = vmatprep.mubr.f32.mxu1 %v5074_v61  ;;  %v16911_v7 = vadd.f32 %v4789_v48, %v4404_v33  ;;  %v5078_v48 = vld [vmem:[#allocation3 + $0x302] sm:$0xff] }
 0x6b2   :  { %v4424_v17 = vpop.f32.mrf.mxu1  ;;  %v11220_v56 = vpop.f32.mrf.mxu0  ;;  %11523 = vmatmul.mubr.f32.gmra.mxu0 %v16704_v63 }
 0x6b3   :  { %v16914_v26 = vadd.f32 %v11220_v56, %v11092_v41  ;;  %11525 = vmatprep.mubr.f32.mxu0 %v16707_v19  ;;  %v5079_v56 = vld [vmem:[#allocation3 + $0x30a] sm:$0xff] }
 0x6b4   :  { %v11098_v8 = vpop.f32.mrf.mxu1  ;;  %11401 = vmatmul.mubr.f32.gmra.mxu1 %v5075_v38  ;;  %v4799_v62 = vpop.f32.mrf.mxu0 }
 0x6b5   :  { %11403 = vmatprep.mubr.f32.mxu1 %v5076_v35  ;;  %v16917_v2 = vadd.f32 %v4799_v62, %v4414_v24  ;;  %v5080_v62 = vld [vmem:[#allocation3 + $0x31a] sm:$0xff] }
 0x6b6   :  { %v4434_v36 = vpop.f32.mrf.mxu1  ;;  %v11223_v61 = vpop.f32.mrf.mxu0  ;;  %11526 = vmatmul.mubr.f32.gmra.mxu0 %v16714_v23 }
 0x6b7   :  { %v16920_v63 = vadd.f32 %v11223_v61, %v11095_v0  ;;  %11528 = vmatprep.mubr.f32.mxu0 %v16717_v54  ;;  %v5081_v61 = vld [vmem:[#allocation3 + $0x322] sm:$0xff] }
 0x6b8   :  { %v11101_v33 = vpop.f32.mrf.mxu1  ;;  %11404 = vmatmul.mubr.f32.gmra.mxu1 %v5077_v6  ;;  %v4809_v41 = vpop.f32.mrf.mxu0 }
 0x6b9   :  { %19637 = vst [vmem:[#allocation79_spill] sm:$0xff] %v16920_v63  ;;  %11406 = vmatprep.mubr.f32.mxu1 %v5078_v48  ;;  %v16923_v19 = vadd.f32 %v4809_v41, %v4424_v17  ;;  %v19641_v17 = vld [vmem:[#allocation87_spill] sm:$0xff] }
 0x6ba   :  { %v4444_v38 = vpop.f32.mrf.mxu1  ;;  %v11226_v35 = vpop.f32.mrf.mxu0  ;;  %11529 = vmatmul.mubr.f32.gmra.mxu0 %v16724_v4 }
 0x6bb   :  { %19638 = vst [vmem:[#allocation78_spill] sm:$0xff] %v16923_v19  ;;  %v16926_v23 = vadd.f32 %v11226_v35, %v11098_v8  ;;  %11531 = vmatprep.mubr.f32.mxu0 %v16727_v42  ;;  %v6078_v19 = vld [vmem:[#allocation3 + $0x19] sm:$0xff] }
 0x6bc   :  { %v11104_v24 = vpop.f32.mrf.mxu1  ;;  %11407 = vmatmul.mubr.f32.gmra.mxu1 %v5079_v56  ;;  %v4819_v0 = vpop.f32.mrf.mxu0  ;;  %v19642_v56 = vld [vmem:[#allocation86_spill] sm:$0xff] }
 0x6bd   :  { %19639 = vst [vmem:[#allocation88_spill] sm:$0xff] %v16926_v23  ;;  %11409 = vmatprep.mubr.f32.mxu1 %v5080_v62  ;;  %v16929_v54 = vadd.f32 %v4819_v0, %v4434_v36  ;;  %v6079_v62 = vld [vmem:[#allocation3 + $0x21] sm:$0xff]  ;;  %v7218_v23 = vld [vmem:[#allocation4 + $0x370] sm:$0xff] }
 0x6be   :  { %v4454_v6 = vpop.f32.mrf.mxu1  ;;  %v11229_v48 = vpop.f32.mrf.mxu0  ;;  %11532 = vmatmul.mubr.f32.gmra.mxu0 %v19641_v17  ;;  %v19644_v0 = vld [vmem:[#allocation92_spill] sm:$0xff] }
 0x6bf   :  { %19640 = vst [vmem:[#allocation91_spill] sm:$0xff] %v16929_v54  ;;  %v16932_v4 = vadd.f32 %v11229_v48, %v11101_v33  ;;  %11534 = vmatprep.mubr.f32.mxu0 %v19642_v56  ;;  %v5610_v54 = vld [vmem:[#allocation3 + $0x330] sm:$0xff]  ;;  %v5611_v48 = vld [vmem:[#allocation3 + $0x338] sm:$0xff] }
 0x6c0   :  { %v11107_v41 = vpop.f32.mrf.mxu1  ;;  %11410 = vmatmul.mubr.f32.gmra.mxu1 %v5081_v61  ;;  %v4829_v8 = vpop.f32.mrf.mxu0  ;;  %v6080_v33 = vld [vmem:[#allocation3 + $0x31] sm:$0xff]  ;;  %v6081_v56 = vld [vmem:[#allocation3 + $0x39] sm:$0xff] }
 0x6c1   :  { %11572 = vmatprep.mubr.f32.mxu1 %v6078_v19  ;;  %v16935_v42 = vadd.f32 %v4829_v8, %v4444_v38  ;;  %v7217_v8 = vld [vmem:[#allocation4 + $0x368] sm:$0xff] }
 0x6c2   :  { %v4464_v35 = vpop.f32.mrf.mxu1  ;;  %v11232_v36 = vpop.f32.mrf.mxu0  ;;  %11535 = vmatmul.mubr.f32.gmra.mxu0 %v19644_v0 }
 0x6c3   :  { %19643 = vst [vmem:[#allocation90_spill] sm:$0xff] %v16935_v42  ;;  %v16938_v17 = vadd.f32 %v11232_v36, %v11104_v24  ;;  %11537 = vmatprep.mubr.f32.mxu0 %v5610_v54  ;;  %v6082_v24 = vld [vmem:[#allocation3 + $0x49] sm:$0xff]  ;;  %v19646_v54 = vld [vmem:[#allocation89_spill] sm:$0xff] }
 0x6c4   :  { %v11110_v63 = vpop.f32.mrf.mxu1  ;;  %11573 = vmatmul.mubr.f32.vlgmr.msra.gmra.mxu1 %v6079_v62  ;;  %v4839_v61 = vpop.f32.mrf.mxu0 }
 0x6c5   :  { %11797 = vmatpush3.msra.mxu1 %v16843_v45  ;;  %11575 = vmatprep.mubr.f32.mxu1 %v6080_v33  ;;  %v16941_v38 = vadd.f32 %v4839_v61, %v4454_v6  ;;  %v6083_v6 = vld [vmem:[#allocation3 + $0x51] sm:$0xff]  ;;  %v7216_v61 = vld [vmem:[#allocation4 + $0x360] sm:$0xff] }
 0x6c6   :  { %v4474_v19 = vpop.f32.mrf.mxu1  ;;  %11798 = vmatprep.subr.mxu1 %v7218_v23  ;;  %v11235_v0 = vpop.f32.mrf.mxu0  ;;  %11538 = vmatmul.mubr.f32.gmra.mxu0 %v5611_v48 }
 0x6c7   :  { %19645 = vst [vmem:[#allocation93_spill] sm:$0xff] %v16941_v38  ;;  %11799 = vmatpush3.msra.mxu1 %v7218_v23  ;;  %v16943_v62 = vadd.f32 %v11235_v0, %v11107_v41  ;;  %11700 = vmatprep.mubr.f32.mxu0 %v19646_v54  ;;  %v7748_v38 = vld [vmem:[#allocation4 + $0x3f0] sm:$0xff]  ;;  %v19647_v0 = vld [vmem:[#allocation94_spill] sm:$0xff] }
 0x6c8   :  { %v11113_v42 = vpop.f32.mrf.mxu1  ;;  %11576 = vmatmul.mubr.f32.gmra.mxu1 %v6081_v56  ;;  %v4849_v45 = vpop.f32.mrf.mxu0  ;;  %11800 = vmatprep.subr.mxu1 %v7217_v8  ;;  %v6084_v56 = vld [vmem:[#allocation3 + $0x61] sm:$0xff] }
 0x6c9   :  { %11578 = vmatprep.mubr.f32.mxu1 %v6082_v24  ;;  %v16946_v33 = vadd.f32 %v4849_v45, %v4464_v35  ;;  %11801 = vmatpush3.msra.mxu1 %v7217_v8  ;;  %v6085_v8 = vld [vmem:[#allocation3 + $0x69] sm:$0xff]  ;;  %v7215_v45 = vld [vmem:[#allocation4 + $0x358] sm:$0xff] }
 0x6ca   :  { %v4484_v36 = vpop.f32.mrf.mxu1  ;;  %v11238_v23 = vpop.f32.mrf.mxu0  ;;  %11701 = vmatmul.mubr.f32.vlgmr.msra.gmra.mxu0 %v16742_v57  ;;  %11802 = vmatprep.subr.mxu1 %v7216_v61 }
 0x6cb   :  { %v16949_v41 = vadd.f32 %v11238_v23, %v11110_v63  ;;  %11703 = vmatprep.mubr.f32.mxu0 %v19647_v0  ;;  %11925 = vmatpush3.msra.mxu0 %v16851_v10  ;;  %v6086_v63 = vld [vmem:[#allocation3 + $0x79] sm:$0xff]  ;;  %v7747_v23 = vld [vmem:[#allocation4 + $0x3e8] sm:$0xff] }
 0x6cc   :  { %v11116_v48 = vpop.f32.mrf.mxu1  ;;  %11579 = vmatmul.mubr.f32.gmra.mxu1 %v6083_v6  ;;  %v4859_v24 = vpop.f32.mrf.mxu0  ;;  %11926 = vmatprep.subr.mxu0 %v7748_v38 }
 0x6cd   :  { %11581 = vmatprep.mubr.f32.mxu1 %v6084_v56  ;;  %v16953_v35 = vadd.f32 %v4859_v24, %v4474_v19  ;;  %11803 = vmatpush3.msra.mxu1 %v7216_v61  ;;  %v6087_v61 = vld [vmem:[#allocation3 + $0x81] sm:$0xff]  ;;  %v7214_v24 = vld [vmem:[#allocation4 + $0x350] sm:$0xff] }
 0x6ce   :  { %v4494_v54 = vpop.f32.mrf.mxu1  ;;  %v11241_v57 = vpop.f32.mrf.mxu0  ;;  %11704 = vmatmul.mubr.f32.gmra.mxu0 %v16750_v13  ;;  %11804 = vmatprep.subr.mxu1 %v7215_v45 }
 0x6cf   :  { %v16956_v0 = vadd.f32 %v11241_v57, %v11113_v42  ;;  %11706 = vmatprep.mubr.f32.mxu0 %v16754_v31  ;;  %11927 = vmatpush3.msra.mxu0 %v7748_v38  ;;  %v6088_v42 = vld [vmem:[#allocation3 + $0x91] sm:$0xff]  ;;  %v7746_v57 = vld [vmem:[#allocation4 + $0x3e0] sm:$0xff] }
 0x6d0   :  { %v11119_v6 = vpop.f32.mrf.mxu1  ;;  %11582 = vmatmul.mubr.f32.gmra.mxu1 %v6085_v8  ;;  %v4869_v56 = vpop.f32.mrf.mxu0  ;;  %11928 = vmatprep.subr.mxu0 %v7747_v23 }
 0x6d1   :  { %19648 = vst [vmem:[#allocation81_spill] sm:$0xff] %v16956_v0  ;;  %11584 = vmatprep.mubr.f32.mxu1 %v6086_v63  ;;  %v16959_v19 = vadd.f32 %v4869_v56, %v4484_v36  ;;  %11805 = vmatpush3.msra.mxu1 %v7215_v45  ;;  %v6089_v45 = vld [vmem:[#allocation3 + $0x99] sm:$0xff]  ;;  %v7213_v63 = vld [vmem:[#allocation4 + $0x348] sm:$0xff] }
 0x6d2   :  { %v4504_v10 = vpop.f32.mrf.mxu1  ;;  %v11244_v13 = vpop.f32.mrf.mxu0  ;;  %11707 = vmatmul.mubr.f32.gmra.mxu0 %v16759_v58  ;;  %11806 = vmatprep.subr.mxu1 %v7214_v24 }
 0x6d3   :  { %v16962_v0 = vadd.f32 %v11244_v13, %v11116_v48  ;;  %11709 = vmatprep.mubr.f32.mxu0 %v16763_v37  ;;  %11929 = vmatpush3.msra.mxu0 %v7747_v23  ;;  %v6090_v48 = vld [vmem:[#allocation3 + $0xa9] sm:$0xff] }
 0x6d4   :  { %v11122_v8 = vpop.f32.mrf.mxu1  ;;  %11585 = vmatmul.mubr.f32.gmra.mxu1 %v6087_v61  ;;  %v4879_v31 = vpop.f32.mrf.mxu0  ;;  %11930 = vmatprep.subr.mxu0 %v7746_v57  ;;  %v7745_v61 = vld [vmem:[#allocation4 + $0x3d8] sm:$0xff] }
 0x6d5   :  { %11587 = vmatprep.mubr.f32.mxu1 %v6088_v42  ;;  %v16965_v36 = vadd.f32 %v4879_v31, %v4494_v54  ;;  %11807 = vmatpush3.msra.mxu1 %v7214_v24  ;;  %v6091_v24 = vld [vmem:[#allocation3 + $0xb1] sm:$0xff]  ;;  %v7212_v42 = vld [vmem:[#allocation4 + $0x340] sm:$0xff] }
 0x6d6   :  { %v4514_v38 = vpop.f32.mrf.mxu1  ;;  %v11247_v58 = vpop.f32.mrf.mxu0  ;;  %11710 = vmatmul.mubr.f32.gmra.mxu0 %v16767_v18  ;;  %11808 = vmatprep.subr.mxu1 %v7213_v63 }
 0x6d7   :  { %v16968_v13 = vadd.f32 %v11247_v58, %v11119_v6  ;;  %11712 = vmatprep.mubr.f32.mxu0 %v16771_v21  ;;  %11931 = vmatpush3.msra.mxu0 %v7746_v57  ;;  %v6092_v6 = vld [vmem:[#allocation3 + $0xc1] sm:$0xff] }
 0x6d8   :  { %v11125_v56 = vpop.f32.mrf.mxu1  ;;  %11588 = vmatmul.mubr.f32.gmra.mxu1 %v6089_v45  ;;  %v4889_v37 = vpop.f32.mrf.mxu0  ;;  %11932 = vmatprep.subr.mxu0 %v7745_v61  ;;  %v7744_v45 = vld [vmem:[#allocation4 + $0x3d0] sm:$0xff] }
 0x6d9   :  { %11590 = vmatprep.mubr.f32.mxu1 %v6090_v48  ;;  %v16971_v54 = vadd.f32 %v4889_v37, %v4504_v10  ;;  %11809 = vmatpush3.msra.mxu1 %v7213_v63  ;;  %v6093_v63 = vld [vmem:[#allocation3 + $0xc9] sm:$0xff]  ;;  %v7211_v48 = vld [vmem:[#allocation4 + $0x338] sm:$0xff] }
 0x6da   :  { %v4524_v23 = vpop.f32.mrf.mxu1  ;;  %v11250_v18 = vpop.f32.mrf.mxu0  ;;  %11713 = vmatmul.mubr.f32.gmra.mxu0 %v16775_v43  ;;  %11810 = vmatprep.subr.mxu1 %v7212_v42 }
 0x6db   :  { %v16974_v58 = vadd.f32 %v11250_v18, %v11122_v8  ;;  %11715 = vmatprep.mubr.f32.mxu0 %v16779_v3  ;;  %11933 = vmatpush3.msra.mxu0 %v7745_v61  ;;  %v6094_v8 = vld [vmem:[#allocation3 + $0xd9] sm:$0xff] }
 0x6dc   :  { %v11128_v31 = vpop.f32.mrf.mxu1  ;;  %11591 = vmatmul.mubr.f32.gmra.mxu1 %v6091_v24  ;;  %v4899_v21 = vpop.f32.mrf.mxu0  ;;  %11934 = vmatprep.subr.mxu0 %v7744_v45  ;;  %v7743_v24 = vld [vmem:[#allocation4 + $0x3c8] sm:$0xff] }
 0x6dd   :  { %11593 = vmatprep.mubr.f32.mxu1 %v6092_v6  ;;  %v16977_v10 = vadd.f32 %v4899_v21, %v4514_v38  ;;  %11811 = vmatpush3.msra.mxu1 %v7212_v42  ;;  %v6095_v42 = vld [vmem:[#allocation3 + $0xe1] sm:$0xff]  ;;  %v7210_v6 = vld [vmem:[#allocation4 + $0x330] sm:$0xff] }
 0x6de   :  { %v4534_v57 = vpop.f32.mrf.mxu1  ;;  %v11253_v43 = vpop.f32.mrf.mxu0  ;;  %11716 = vmatmul.mubr.f32.gmra.mxu0 %v16783_v20  ;;  %11812 = vmatprep.subr.mxu1 %v7211_v48 }
 0x6df   :  { %v16980_v18 = vadd.f32 %v11253_v43, %v11125_v56  ;;  %11718 = vmatprep.mubr.f32.mxu0 %v16787_v27  ;;  %11935 = vmatpush3.msra.mxu0 %v7744_v45  ;;  %v6096_v56 = vld [vmem:[#allocation3 + $0xf1] sm:$0xff] }
 0x6e0   :  { %v11131_v37 = vpop.f32.mrf.mxu1  ;;  %11594 = vmatmul.mubr.f32.gmra.mxu1 %v6093_v63  ;;  %v4909_v3 = vpop.f32.mrf.mxu0  ;;  %11936 = vmatprep.subr.mxu0 %v7743_v24  ;;  %v7742_v63 = vld [vmem:[#allocation4 + $0x3c0] sm:$0xff] }
 0x6e1   :  { %11596 = vmatprep.mubr.f32.mxu1 %v6094_v8  ;;  %v16983_v38 = vadd.f32 %v4909_v3, %v4524_v23  ;;  %11813 = vmatpush3.msra.mxu1 %v7211_v48  ;;  %v6097_v48 = vld [vmem:[#allocation3 + $0xf9] sm:$0xff]  ;;  %v7209_v8 = vld [vmem:[#allocation4 + $0x328] sm:$0xff] }
 0x6e2   :  { %v4544_v61 = vpop.f32.mrf.mxu1  ;;  %v11256_v20 = vpop.f32.mrf.mxu0  ;;  %11719 = vmatmul.mubr.f32.gmra.mxu0 %v16791_v32  ;;  %11814 = vmatprep.subr.mxu1 %v7210_v6 }
 0x6e3   :  { %v16986_v43 = vadd.f32 %v11256_v20, %v11128_v31  ;;  %11721 = vmatprep.mubr.f32.mxu0 %v16795_v25  ;;  %11937 = vmatpush3.msra.mxu0 %v7743_v24  ;;  %v6098_v31 = vld [vmem:[#allocation3 + $0x109] sm:$0xff] }
 0x6e4   :  { %v11134_v21 = vpop.f32.mrf.mxu1  ;;  %11597 = vmatmul.mubr.f32.gmra.mxu1 %v6095_v42  ;;  %v4919_v27 = vpop.f32.mrf.mxu0  ;;  %11938 = vmatprep.subr.mxu0 %v7742_v63  ;;  %v7741_v42 = vld [vmem:[#allocation4 + $0x3b8] sm:$0xff] }
 0x6e5   :  { %11599 = vmatprep.mubr.f32.mxu1 %v6096_v56  ;;  %v16989_v23 = vadd.f32 %v4919_v27, %v4534_v57  ;;  %11815 = vmatpush3.msra.mxu1 %v7210_v6  ;;  %v6099_v6 = vld [vmem:[#allocation3 + $0x111] sm:$0xff]  ;;  %v7208_v56 = vld [vmem:[#allocation4 + $0x320] sm:$0xff] }
 0x6e6   :  { %v4554_v45 = vpop.f32.mrf.mxu1  ;;  %v11259_v32 = vpop.f32.mrf.mxu0  ;;  %11722 = vmatmul.mubr.f32.gmra.mxu0 %v16799_v50  ;;  %11816 = vmatprep.subr.mxu1 %v7209_v8 }
 0x6e7   :  { %v16992_v20 = vadd.f32 %v11259_v32, %v11131_v37  ;;  %11724 = vmatprep.mubr.f32.mxu0 %v16803_v16  ;;  %11939 = vmatpush3.msra.mxu0 %v7742_v63  ;;  %v6100_v37 = vld [vmem:[#allocation3 + $0x121] sm:$0xff] }
 0x6e8   :  { %v11137_v3 = vpop.f32.mrf.mxu1  ;;  %11600 = vmatmul.mubr.f32.gmra.mxu1 %v6097_v48  ;;  %v4929_v25 = vpop.f32.mrf.mxu0  ;;  %11940 = vmatprep.subr.mxu0 %v7741_v42  ;;  %v7740_v48 = vld [vmem:[#allocation4 + $0x3b0] sm:$0xff] }
 0x6e9   :  { %11602 = vmatprep.mubr.f32.mxu1 %v6098_v31  ;;  %v16995_v57 = vadd.f32 %v4929_v25, %v4544_v61  ;;  %11817 = vmatpush3.msra.mxu1 %v7209_v8  ;;  %v6101_v8 = vld [vmem:[#allocation3 + $0x129] sm:$0xff]  ;;  %v7207_v31 = vld [vmem:[#allocation4 + $0x318] sm:$0xff] }
 0x6ea   :  { %v4564_v24 = vpop.f32.mrf.mxu1  ;;  %v11262_v50 = vpop.f32.mrf.mxu0  ;;  %11725 = vmatmul.mubr.f32.gmra.mxu0 %v16807_v59  ;;  %11818 = vmatprep.subr.mxu1 %v7208_v56 }
 0x6eb   :  { %v16998_v32 = vadd.f32 %v11262_v50, %v11134_v21  ;;  %11727 = vmatprep.mubr.f32.mxu0 %v16811_v49  ;;  %11941 = vmatpush3.msra.mxu0 %v7741_v42  ;;  %v6102_v21 = vld [vmem:[#allocation3 + $0x139] sm:$0xff] }
 0x6ec   :  { %v11140_v27 = vpop.f32.mrf.mxu1  ;;  %11603 = vmatmul.mubr.f32.gmra.mxu1 %v6099_v6  ;;  %v4939_v16 = vpop.f32.mrf.mxu0  ;;  %11942 = vmatprep.subr.mxu0 %v7740_v48  ;;  %v7739_v6 = vld [vmem:[#allocation4 + $0x3a8] sm:$0xff] }
 0x6ed   :  { %11605 = vmatprep.mubr.f32.mxu1 %v6100_v37  ;;  %v17001_v61 = vadd.f32 %v4939_v16, %v4554_v45  ;;  %11819 = vmatpush3.msra.mxu1 %v7208_v56  ;;  %v6103_v56 = vld [vmem:[#allocation3 + $0x141] sm:$0xff]  ;;  %v7206_v37 = vld [vmem:[#allocation4 + $0x310] sm:$0xff] }
 0x6ee   :  { %v4574_v63 = vpop.f32.mrf.mxu1  ;;  %v11265_v59 = vpop.f32.mrf.mxu0  ;;  %11728 = vmatmul.mubr.f32.gmra.mxu0 %v16815_v34  ;;  %11820 = vmatprep.subr.mxu1 %v7207_v31 }
 0x6ef   :  { %v17004_v50 = vadd.f32 %v11265_v59, %v11137_v3  ;;  %11730 = vmatprep.mubr.f32.mxu0 %v16819_v55  ;;  %11943 = vmatpush3.msra.mxu0 %v7740_v48  ;;  %v6104_v3 = vld [vmem:[#allocation3 + $0x151] sm:$0xff] }
 0x6f0   :  { %v11143_v25 = vpop.f32.mrf.mxu1  ;;  %11606 = vmatmul.mubr.f32.gmra.mxu1 %v6101_v8  ;;  %v4949_v49 = vpop.f32.mrf.mxu0  ;;  %11944 = vmatprep.subr.mxu0 %v7739_v6  ;;  %v7738_v8 = vld [vmem:[#allocation4 + $0x3a0] sm:$0xff] }
 0x6f1   :  { %19649 = vst [vmem:[#allocation80_spill] sm:$0xff] %v17004_v50  ;;  %11608 = vmatprep.mubr.f32.mxu1 %v6102_v21  ;;  %v17007_v45 = vadd.f32 %v4949_v49, %v4564_v24  ;;  %11821 = vmatpush3.msra.mxu1 %v7207_v31  ;;  %v6105_v31 = vld [vmem:[#allocation3 + $0x159] sm:$0xff]  ;;  %v7205_v21 = vld [vmem:[#allocation4 + $0x308] sm:$0xff] }
 0x6f2   :  { %v4584_v42 = vpop.f32.mrf.mxu1  ;;  %v11268_v34 = vpop.f32.mrf.mxu0  ;;  %11731 = vmatmul.mubr.f32.gmra.mxu0 %v16823_v28  ;;  %11822 = vmatprep.subr.mxu1 %v7206_v37  ;;  %v19653_v49 = vld [vmem:[#allocation74_spill] sm:$0xff] }
 0x6f3   :  { %19650 = vst [vmem:[#allocation75_spill] sm:$0xff] %v17007_v45  ;;  %v17010_v59 = vadd.f32 %v11268_v34, %v11140_v27  ;;  %11733 = vmatprep.mubr.f32.mxu0 %v16827_v53  ;;  %11945 = vmatpush3.msra.mxu0 %v7739_v6  ;;  %v6106_v27 = vld [vmem:[#allocation3 + $0x169] sm:$0xff]  ;;  %v7737_v34 = vld [vmem:[#allocation4 + $0x398] sm:$0xff] }
 0x6f4   :  { %v11146_v16 = vpop.f32.mrf.mxu1  ;;  %11609 = vmatmul.mubr.f32.gmra.mxu1 %v6103_v56  ;;  %v4959_v55 = vpop.f32.mrf.mxu0  ;;  %11946 = vmatprep.subr.mxu0 %v7738_v8  ;;  %v6640_v45 = vld [vmem:[#allocation3 + $0x1ca] sm:$0xff]  ;;  %v6114_v50 = vld [vmem:[#allocation3 + $0x1f9] sm:$0xff] }
 0x6f5   :  { %19651 = vst [vmem:[#allocation83_spill] sm:$0xff] %v17010_v59  ;;  %11611 = vmatprep.mubr.f32.mxu1 %v6104_v3  ;;  %v17013_v24 = vadd.f32 %v4959_v55, %v4574_v63  ;;  %11823 = vmatpush3.msra.mxu1 %v7206_v37  ;;  %v6633_v37 = vld [vmem:[#allocation3 + $0x142] sm:$0xff]  ;;  %v6107_v3 = vld [vmem:[#allocation3 + $0x171] sm:$0xff] }
 0x6f6   :  { %v4594_v48 = vpop.f32.mrf.mxu1  ;;  %v11271_v28 = vpop.f32.mrf.mxu0  ;;  %11734 = vmatmul.mubr.f32.gmra.mxu0 %v19653_v49  ;;  %11824 = vmatprep.subr.mxu1 %v7205_v21  ;;  %v7204_v55 = vld [vmem:[#allocation4 + $0x300] sm:$0xff] }
 0x6f7   :  { %19652 = vst [vmem:[#allocation82_spill] sm:$0xff] %v17013_v24  ;;  %v17016_v59 = vadd.f32 %v11271_v28, %v11143_v25  ;;  %11736 = vmatprep.mubr.f32.mxu0 %v16835_v11  ;;  %11947 = vmatpush3.msra.mxu0 %v7738_v8  ;;  %v6108_v25 = vld [vmem:[#allocation3 + $0x181] sm:$0xff]  ;;  %v7736_v28 = vld [vmem:[#allocation4 + $0x390] sm:$0xff] }
 0x6f8   :  { %v11149_v56 = vpop.f32.mrf.mxu1  ;;  %11612 = vmatmul.mubr.f32.gmra.mxu1 %v6105_v31  ;;  %v4969_v53 = vpop.f32.mrf.mxu0  ;;  %11948 = vmatprep.subr.mxu0 %v7737_v34  ;;  %v6634_v31 = vld [vmem:[#allocation3 + $0x152] sm:$0xff] }
 0x6f9   :  { %19654 = vst [vmem:[#allocation85_spill] sm:$0xff] %v17016_v59  ;;  %11614 = vmatprep.mubr.f32.mxu1 %v6106_v27  ;;  %v17019_v63 = vadd.f32 %v4969_v53, %v4584_v42  ;;  %11825 = vmatpush3.msra.mxu1 %v7205_v21  ;;  %v6635_v21 = vld [vmem:[#allocation3 + $0x15a] sm:$0xff]  ;;  %v6109_v53 = vld [vmem:[#allocation3 + $0x189] sm:$0xff] }
 0x6fa   :  { %v4604_v6 = vpop.f32.mrf.mxu1  ;;  %v11274_v49 = vpop.f32.mrf.mxu0  ;;  %11737 = vmatmul.mubr.f32.gmra.mxu0 %v6633_v37  ;;  %11826 = vmatprep.subr.mxu1 %v7204_v55  ;;  %v17025_v37 = vld [vmem:[#allocation4 + $0x478] sm:$0xff] }
 0x6fb   :  { %19655 = vst [vmem:[#allocation87_spill] sm:$0xff] %v17019_v63  ;;  %v17021_v11 = vadd.f32 %v11274_v49, %v11146_v16  ;;  %11739 = vmatprep.mubr.f32.mxu0 %v6634_v31  ;;  %11949 = vmatpush3.msra.mxu0 %v7737_v34  ;;  %v6110_v16 = vld [vmem:[#allocation3 + $0x1c9] sm:$0xff] }
 0x6fc   :  { %v11152_v24 = vpop.f32.mrf.mxu1  ;;  %11615 = vmatmul.mubr.f32.gmra.mxu1 %v6107_v3  ;;  %v4979_v27 = vpop.f32.mrf.mxu0  ;;  %11950 = vmatprep.subr.mxu0 %v7736_v28  ;;  %v6636_v3 = vld [vmem:[#allocation3 + $0x16a] sm:$0xff] }
 0x6fd   :  { %19656 = vst [vmem:[#allocation86_spill] sm:$0xff] %v17021_v11  ;;  %11617 = vmatprep.mubr.f32.mxu1 %v6108_v25  ;;  %v17023_v42 = vadd.f32 %v4979_v27, %v4594_v48  ;;  %11827 = vmatpush3.msra.mxu1 %v7204_v55  ;;  %v7735_v49 = vld [vmem:[#allocation4 + $0x388] sm:$0xff]  ;;  %v6637_v25 = vld [vmem:[#allocation3 + $0x172] sm:$0xff] }
 0x6fe   :  { %v4614_v8 = vpop.f32.mrf.mxu1  ;;  %v11277_v63 = vpop.f32.mrf.mxu0  ;;  %11740 = vmatmul.mubr.f32.gmra.mxu0 %v6635_v21  ;;  %12052 = vmatprep.subr.mxu1 %v17025_v37  ;;  %v6111_v27 = vld [vmem:[#allocation3 + $0x1d1] sm:$0xff]  ;;  %v6112_v11 = vld [vmem:[#allocation3 + $0x1e1] sm:$0xff] }
 0x6ff   :  { %19657 = vst [vmem:[#allocation92_spill] sm:$0xff] %v17023_v42  ;;  %v17027_v31 = vadd.f32 %v11277_v63, %v11149_v56  ;;  %11742 = vmatprep.mubr.f32.mxu0 %v6636_v3  ;;  %11951 = vmatpush3.msra.mxu0 %v7736_v28  ;;  %v6638_v42 = vld [vmem:[#allocation3 + $0x182] sm:$0xff]  ;;  %v19660_v3 = vld [vmem:[#allocation84_spill] sm:$0xff] }
 0x700   :  { %v11155_v59 = vpop.f32.mrf.mxu1  ;;  %11618 = vmatmul.mubr.f32.gmra.mxu1 %v6109_v53  ;;  %v4989_v34 = vpop.f32.mrf.mxu0  ;;  %11952 = vmatprep.subr.mxu0 %v7735_v49  ;;  %v7734_v56 = vld [vmem:[#allocation4 + $0x380] sm:$0xff] }
 0x701   :  { %19658 = vst [vmem:[#allocation89_spill] sm:$0xff] %v17027_v31  ;;  %11620 = vmatprep.mubr.f32.mxu1 %v6110_v16  ;;  %v17030_v55 = vadd.f32 %v4989_v34, %v4604_v6  ;;  %11953 = vmatpush3.msra.mxu0 %v7735_v49  ;;  %v6639_v34 = vld [vmem:[#allocation3 + $0x18a] sm:$0xff] }
 0x702   :  { %v4624_v48 = vpop.f32.mrf.mxu1  ;;  %v11280_v21 = vpop.f32.mrf.mxu0  ;;  %11743 = vmatmul.mubr.f32.gmra.mxu0 %v6637_v25  ;;  %11954 = vmatprep.subr.mxu0 %v7734_v56 }
 0x703   :  { %19659 = vst [vmem:[#allocation94_spill] sm:$0xff] %v17030_v55  ;;  %v17032_v63 = vadd.f32 %v11280_v21, %v11152_v24  ;;  %11745 = vmatprep.mubr.f32.mxu0 %v6638_v42  ;;  %v6113_v55 = vld [vmem:[#allocation3 + $0x1e9] sm:$0xff]  ;;  %v17040_v24 = vld [vmem:[%s19074_s7] sm:$0xf]  ;;  %11955 = vmatpush3.msra.mxu0 %v7734_v56  ;;  %v19662_v21 = vld [vmem:[#allocation77_spill] sm:$0xff] }
 0x704   :  { %v11318_v53 = vpop.f32.mrf.mxu1  ;;  %11621 = vmatmul.mubr.f32.gmra.mxu1 %v6111_v27  ;;  %v4999_v28 = vpop.f32.mrf.mxu0  ;;  %12180 = vmatprep.subr.msk.mxu0 %vm3005_vm3, %v17040_v24 }
 0x705   :  { %v5485_v16 = vadd.f32 %v11318_v53, %v19660_v3  ;;  %11623 = vmatprep.mubr.f32.mxu1 %v6112_v11  ;;  %v17035_v6 = vadd.f32 %v4999_v28, %v4614_v8  ;;  %v19663_v53 = vld [vmem:[#allocation76_spill] sm:$0xff] }
 0x706   :  { %v5165_v31 = vpop.f32.mrf.mxu1  ;;  %v11283_v25 = vpop.f32.mrf.mxu0  ;;  %11746 = vmatmul.mubr.f32.gmra.mxu0 %v6639_v34  ;;  %v4700_v3 = vadd.f32 %v19663_v53, %v19662_v21  ;;  %v6117_v53 = vld [vmem:[#allocation3 + $0x219] sm:$0xff] }
 0x707   :  { %19661 = vst [vmem:[#allocation74_spill] sm:$0xff] %v17035_v6  ;;  %v17042_v11 = vadd.f32 %v11283_v25, %v11155_v59  ;;  %11748 = vmatprep.mubr.f32.mxu0 %v6640_v45  ;;  %v6115_v6 = vld [vmem:[#allocation3 + $0x201] sm:$0xff] }
 0x708   :  { %v11321_v27 = vpop.f32.mrf.mxu1  ;;  %11624 = vmatmul.mubr.f32.gmra.mxu1 %v6113_v55  ;;  %v5009_v42 = vpop.f32.mrf.mxu0  ;;  %v6641_v55 = vld [vmem:[#allocation3 + $0x1d2] sm:$0xff]  ;;  %v6642_v45 = vld [vmem:[#allocation3 + $0x1e2] sm:$0xff]  ;;  %v5484_v56 = vadd.f32 %v5165_v31, %v4700_v3 }
 0x709   :  { %v5487_v8 = vadd.f32 %v11321_v27, %v16860_v60  ;;  %11626 = vmatprep.mubr.f32.mxu1 %v6114_v50  ;;  %v17047_v28 = vadd.f32 %v5009_v42, %v4624_v48  ;;  %v6116_v50 = vld [vmem:[#allocation3 + $0x211] sm:$0xff] }
 0x70a   :  { %v5175_v49 = vpop.f32.mrf.mxu1  ;;  %v11446_v59 = vpop.f32.mrf.mxu0  ;;  %11749 = vmatmul.mubr.f32.gmra.mxu0 %v6641_v55 }
 0x70b   :  { %19664 = vst [vmem:[#allocation84_spill] sm:$0xff] %v17047_v28  ;;  %v5486_v34 = vadd.f32 %v5175_v49, %v16863_v22  ;;  %v17052_v25 = vadd.f32 %v11446_v59, %v5485_v16  ;;  %11751 = vmatprep.mubr.f32.mxu0 %v6642_v45  ;;  %v6643_v49 = vld [vmem:[#allocation3 + $0x1ea] sm:$0xff]  ;;  %v6644_v28 = vld [vmem:[#allocation3 + $0x1fa] sm:$0xff] }
 0x70c   :  { %v11324_v60 = vpop.f32.mrf.mxu1  ;;  %11627 = vmatmul.mubr.f32.gmra.mxu1 %v6115_v6  ;;  %v5695_v27 = vpop.f32.mrf.mxu0  ;;  %v6118_v16 = vld [vmem:[#allocation3 + $0x229] sm:$0xff] }
 0x70d   :  { %v5489_v48 = vadd.f32 %v11324_v60, %v16866_v30  ;;  %11629 = vmatprep.mubr.f32.mxu1 %v6116_v50  ;;  %v17055_v22 = vadd.f32 %v5695_v27, %v5484_v56  ;;  %v6645_v60 = vld [vmem:[#allocation3 + $0x202] sm:$0xff]  ;;  %v6119_v50 = vld [vmem:[#allocation3 + $0x231] sm:$0xff] }
 0x70e   :  { %v5185_v42 = vpop.f32.mrf.mxu1  ;;  %v11449_v55 = vpop.f32.mrf.mxu0  ;;  %11752 = vmatmul.mubr.f32.gmra.mxu0 %v6643_v49  ;;  %v6646_v27 = vld [vmem:[#allocation3 + $0x212] sm:$0xff]  ;;  %v6120_v49 = vld [vmem:[#allocation3 + $0x241] sm:$0xff] }
 0x70f   :  { %v5488_v21 = vadd.f32 %v5185_v42, %v16869_v51  ;;  %v17058_v59 = vadd.f32 %v11449_v55, %v5487_v8  ;;  %11754 = vmatprep.mubr.f32.mxu0 %v6644_v28  ;;  %v6647_v55 = vld [vmem:[#allocation3 + $0x21a] sm:$0xff] }
 0x710   :  { %v11327_v6 = vpop.f32.mrf.mxu1  ;;  %11630 = vmatmul.mubr.f32.gmra.mxu1 %v6117_v53  ;;  %v5705_v31 = vpop.f32.mrf.mxu0 }
 0x711   :  { %v5491_v30 = vadd.f32 %v11327_v6, %v16872_v46  ;;  %11632 = vmatprep.mubr.f32.mxu1 %v6118_v16  ;;  %v17061_v45 = vadd.f32 %v5705_v31, %v5486_v34  ;;  %v6121_v6 = vld [vmem:[#allocation3 + $0x249] sm:$0xff] }
 0x712   :  { %v5195_v3 = vpop.f32.mrf.mxu1  ;;  %v11452_v56 = vpop.f32.mrf.mxu0  ;;  %11755 = vmatmul.mubr.f32.gmra.mxu0 %v6645_v60  ;;  %v6648_v31 = vld [vmem:[#allocation3 + $0x22a] sm:$0xff]  ;;  %v6122_v60 = vld [vmem:[#allocation3 + $0x259] sm:$0xff] }
 0x713   :  { %v5490_v51 = vadd.f32 %v5195_v3, %v16875_v44  ;;  %v17064_v8 = vadd.f32 %v11452_v56, %v5489_v48  ;;  %11757 = vmatprep.mubr.f32.mxu0 %v6646_v27  ;;  %v6649_v27 = vld [vmem:[#allocation3 + $0x232] sm:$0xff] }
 0x714   :  { %v11330_v42 = vpop.f32.mrf.mxu1  ;;  %11633 = vmatmul.mubr.f32.gmra.mxu1 %v6119_v50  ;;  %v5715_v28 = vpop.f32.mrf.mxu0 }
 0x715   :  { %v5493_v46 = vadd.f32 %v11330_v42, %v16878_v39  ;;  %11635 = vmatprep.mubr.f32.mxu1 %v6120_v49  ;;  %v17067_v34 = vadd.f32 %v5715_v28, %v5488_v21  ;;  %v6123_v42 = vld [vmem:[#allocation3 + $0x261] sm:$0xff] }
 0x716   :  { %v5205_v53 = vpop.f32.mrf.mxu1  ;;  %v11455_v16 = vpop.f32.mrf.mxu0  ;;  %11758 = vmatmul.mubr.f32.gmra.mxu0 %v6647_v55  ;;  %v6650_v28 = vld [vmem:[#allocation3 + $0x242] sm:$0xff]  ;;  %v6124_v55 = vld [vmem:[#allocation3 + $0x271] sm:$0xff] }
 0x717   :  { %v5492_v44 = vadd.f32 %v5205_v53, %v16881_v5  ;;  %v17070_v48 = vadd.f32 %v11455_v16, %v5491_v30  ;;  %11760 = vmatprep.mubr.f32.mxu0 %v6648_v31  ;;  %v6651_v31 = vld [vmem:[#allocation3 + $0x24a] sm:$0xff] }
 0x718   :  { %v11333_v3 = vpop.f32.mrf.mxu1  ;;  %11636 = vmatmul.mubr.f32.gmra.mxu1 %v6121_v6  ;;  %v5725_v50 = vpop.f32.mrf.mxu0 }
 0x719   :  { %v5495_v39 = vadd.f32 %v11333_v3, %v16884_v9  ;;  %11638 = vmatprep.mubr.f32.mxu1 %v6122_v60  ;;  %v17073_v21 = vadd.f32 %v5725_v50, %v5490_v51  ;;  %v6125_v3 = vld [vmem:[#allocation3 + $0x279] sm:$0xff] }
 0x71a   :  { %v5215_v56 = vpop.f32.mrf.mxu1  ;;  %v11458_v49 = vpop.f32.mrf.mxu0  ;;  %11761 = vmatmul.mubr.f32.gmra.mxu0 %v6649_v27  ;;  %v6652_v50 = vld [vmem:[#allocation3 + $0x25a] sm:$0xff]  ;;  %v6126_v27 = vld [vmem:[#allocation3 + $0x289] sm:$0xff] }
 0x71b   :  { %v5494_v5 = vadd.f32 %v5215_v56, %v16887_v14  ;;  %v17076_v30 = vadd.f32 %v11458_v49, %v5493_v46  ;;  %11763 = vmatprep.mubr.f32.mxu0 %v6650_v28  ;;  %v6653_v28 = vld [vmem:[#allocation3 + $0x262] sm:$0xff] }
 0x71c   :  { %v11336_v53 = vpop.f32.mrf.mxu1  ;;  %11639 = vmatmul.mubr.f32.gmra.mxu1 %v6123_v42  ;;  %v5735_v6 = vpop.f32.mrf.mxu0 }
 0x71d   :  { %v5497_v9 = vadd.f32 %v11336_v53, %v16890_v1  ;;  %11641 = vmatprep.mubr.f32.mxu1 %v6124_v55  ;;  %v17079_v51 = vadd.f32 %v5735_v6, %v5492_v44  ;;  %v6127_v53 = vld [vmem:[#allocation3 + $0x291] sm:$0xff] }
 0x71e   :  { %v5225_v16 = vpop.f32.mrf.mxu1  ;;  %v11461_v60 = vpop.f32.mrf.mxu0  ;;  %11764 = vmatmul.mubr.f32.gmra.mxu0 %v6651_v31  ;;  %v6654_v6 = vld [vmem:[#allocation3 + $0x272] sm:$0xff]  ;;  %v6128_v31 = vld [vmem:[#allocation3 + $0x2a1] sm:$0xff] }
 0x71f   :  { %v5496_v14 = vadd.f32 %v5225_v16, %v16893_v47  ;;  %v17082_v46 = vadd.f32 %v11461_v60, %v5495_v39  ;;  %11766 = vmatprep.mubr.f32.mxu0 %v6652_v50  ;;  %v6655_v50 = vld [vmem:[#allocation3 + $0x27a] sm:$0xff] }
 0x720   :  { %v11339_v56 = vpop.f32.mrf.mxu1  ;;  %11642 = vmatmul.mubr.f32.gmra.mxu1 %v6125_v3  ;;  %v5745_v42 = vpop.f32.mrf.mxu0 }
 0x721   :  { %v5499_v1 = vadd.f32 %v11339_v56, %v16896_v52  ;;  %11644 = vmatprep.mubr.f32.mxu1 %v6126_v27  ;;  %v17085_v44 = vadd.f32 %v5745_v42, %v5494_v5  ;;  %v6129_v56 = vld [vmem:[#allocation3 + $0x2a9] sm:$0xff] }
 0x722   :  { %v5235_v49 = vpop.f32.mrf.mxu1  ;;  %v11464_v55 = vpop.f32.mrf.mxu0  ;;  %11767 = vmatmul.mubr.f32.gmra.mxu0 %v6653_v28  ;;  %v6656_v42 = vld [vmem:[#allocation3 + $0x28a] sm:$0xff]  ;;  %v6130_v28 = vld [vmem:[#allocation3 + $0x2b9] sm:$0xff] }
 0x723   :  { %v5498_v47 = vadd.f32 %v5235_v49, %v16899_v29  ;;  %v17088_v39 = vadd.f32 %v11464_v55, %v5497_v9  ;;  %11769 = vmatprep.mubr.f32.mxu0 %v6654_v6  ;;  %v6657_v6 = vld [vmem:[#allocation3 + $0x292] sm:$0xff] }
 0x724   :  { %v11342_v16 = vpop.f32.mrf.mxu1  ;;  %11645 = vmatmul.mubr.f32.gmra.mxu1 %v6127_v53  ;;  %v5755_v3 = vpop.f32.mrf.mxu0 }
 0x725   :  { %v5501_v52 = vadd.f32 %v11342_v16, %v16902_v15  ;;  %11647 = vmatprep.mubr.f32.mxu1 %v6128_v31  ;;  %v17091_v5 = vadd.f32 %v5755_v3, %v5496_v14  ;;  %v6131_v16 = vld [vmem:[#allocation3 + $0x2c1] sm:$0xff] }
 0x726   :  { %v5245_v60 = vpop.f32.mrf.mxu1  ;;  %v11467_v27 = vpop.f32.mrf.mxu0  ;;  %11770 = vmatmul.mubr.f32.gmra.mxu0 %v6655_v50  ;;  %v6658_v3 = vld [vmem:[#allocation3 + $0x2a2] sm:$0xff]  ;;  %v6132_v50 = vld [vmem:[#allocation3 + $0x2d1] sm:$0xff] }
 0x727   :  { %v5500_v29 = vadd.f32 %v5245_v60, %v16905_v40  ;;  %v17094_v9 = vadd.f32 %v11467_v27, %v5499_v1  ;;  %11772 = vmatprep.mubr.f32.mxu0 %v6656_v42  ;;  %v6659_v42 = vld [vmem:[#allocation3 + $0x2aa] sm:$0xff] }
 0x728   :  { %v11345_v49 = vpop.f32.mrf.mxu1  ;;  %11648 = vmatmul.mubr.f32.gmra.mxu1 %v6129_v56  ;;  %v5765_v53 = vpop.f32.mrf.mxu0 }
 0x729   :  { %v5503_v15 = vadd.f32 %v11345_v49, %v16908_v12  ;;  %11650 = vmatprep.mubr.f32.mxu1 %v6130_v28  ;;  %v17097_v14 = vadd.f32 %v5765_v53, %v5498_v47  ;;  %v6133_v49 = vld [vmem:[#allocation3 + $0x2d9] sm:$0xff] }
 0x72a   :  { %v5255_v55 = vpop.f32.mrf.mxu1  ;;  %v11470_v31 = vpop.f32.mrf.mxu0  ;;  %11773 = vmatmul.mubr.f32.gmra.mxu0 %v6657_v6  ;;  %v6660_v53 = vld [vmem:[#allocation3 + $0x2ba] sm:$0xff]  ;;  %v6134_v6 = vld [vmem:[#allocation3 + $0x2e9] sm:$0xff] }
 0x72b   :  { %v5502_v40 = vadd.f32 %v5255_v55, %v16911_v7  ;;  %v17100_v1 = vadd.f32 %v11470_v31, %v5501_v52  ;;  %11775 = vmatprep.mubr.f32.mxu0 %v6658_v3 }
 0x72c   :  { %v11348_v60 = vpop.f32.mrf.mxu1  ;;  %11651 = vmatmul.mubr.f32.gmra.mxu1 %v6131_v16  ;;  %v5775_v56 = vpop.f32.mrf.mxu0  ;;  %v19667_v16 = vld [vmem:[#allocation79_spill] sm:$0xff] }
 0x72d   :  { %v5505_v12 = vadd.f32 %v11348_v60, %v16914_v26  ;;  %11653 = vmatprep.mubr.f32.mxu1 %v6132_v50  ;;  %v17103_v47 = vadd.f32 %v5775_v56, %v5500_v29  ;;  %v6661_v60 = vld [vmem:[#allocation3 + $0x2c2] sm:$0xff]  ;;  %v6135_v56 = vld [vmem:[#allocation3 + $0x2f1] sm:$0xff] }
 0x72e   :  { %v5265_v27 = vpop.f32.mrf.mxu1  ;;  %v11473_v28 = vpop.f32.mrf.mxu0  ;;  %11776 = vmatmul.mubr.f32.gmra.mxu0 %v6659_v42  ;;  %v19669_v50 = vld [vmem:[#allocation78_spill] sm:$0xff]  ;;  %v6662_v42 = vld [vmem:[#allocation3 + $0x2d2] sm:$0xff] }
 0x72f   :  { %19665 = vst [vmem:[#allocation77_spill] sm:$0xff] %v17103_v47  ;;  %v5504_v7 = vadd.f32 %v5265_v27, %v16917_v2  ;;  %v17106_v52 = vadd.f32 %v11473_v28, %v5503_v15  ;;  %11778 = vmatprep.mubr.f32.mxu0 %v6660_v53  ;;  %v19670_v28 = vld [vmem:[#allocation88_spill] sm:$0xff] }
 0x730   :  { %v11351_v55 = vpop.f32.mrf.mxu1  ;;  %11654 = vmatmul.mubr.f32.gmra.mxu1 %v6133_v49  ;;  %v5785_v31 = vpop.f32.mrf.mxu0  ;;  %v6136_v49 = vld [vmem:[#allocation3 + $0x301] sm:$0xff] }
 0x731   :  { %19666 = vst [vmem:[#allocation76_spill] sm:$0xff] %v17106_v52  ;;  %v5507_v26 = vadd.f32 %v11351_v55, %v19667_v16  ;;  %11656 = vmatprep.mubr.f32.mxu1 %v6134_v6  ;;  %v17109_v29 = vadd.f32 %v5785_v31, %v5502_v40  ;;  %v6663_v16 = vld [vmem:[#allocation3 + $0x2da] sm:$0xff]  ;;  %v19672_v31 = vld [vmem:[#allocation91_spill] sm:$0xff] }
 0x732   :  { %v5275_v3 = vpop.f32.mrf.mxu1  ;;  %v11476_v27 = vpop.f32.mrf.mxu0  ;;  %11779 = vmatmul.mubr.f32.gmra.mxu0 %v6661_v60  ;;  %v6664_v60 = vld [vmem:[#allocation3 + $0x2ea] sm:$0xff] }
 0x733   :  { %19668 = vst [vmem:[#allocation79_spill] sm:$0xff] %v17109_v29  ;;  %v5506_v2 = vadd.f32 %v5275_v3, %v19669_v50  ;;  %v17112_v15 = vadd.f32 %v11476_v27, %v5505_v12  ;;  %11781 = vmatprep.mubr.f32.mxu0 %v6662_v42  ;;  %v6137_v50 = vld [vmem:[#allocation3 + $0x309] sm:$0xff] }
 0x734   :  { %v11354_v47 = vpop.f32.mrf.mxu1  ;;  %11657 = vmatmul.mubr.f32.gmra.mxu1 %v6135_v56  ;;  %v5795_v55 = vpop.f32.mrf.mxu0  ;;  %v6138_v56 = vld [vmem:[#allocation3 + $0x319] sm:$0xff] }
 0x735   :  { %v5509_v53 = vadd.f32 %v11354_v47, %v19670_v28  ;;  %11659 = vmatprep.mubr.f32.mxu1 %v6136_v49  ;;  %v17115_v40 = vadd.f32 %v5795_v55, %v5504_v7  ;;  %v6665_v49 = vld [vmem:[#allocation3 + $0x2f2] sm:$0xff]  ;;  %v19674_v28 = vld [vmem:[#allocation90_spill] sm:$0xff] }
 0x736   :  { %v5285_v6 = vpop.f32.mrf.mxu1  ;;  %v11479_v29 = vpop.f32.mrf.mxu0  ;;  %11782 = vmatmul.mubr.f32.gmra.mxu0 %v6663_v16  ;;  %v6666_v16 = vld [vmem:[#allocation3 + $0x302] sm:$0xff] }
 0x737   :  { %19671 = vst [vmem:[#allocation78_spill] sm:$0xff] %v17115_v40  ;;  %v5508_v3 = vadd.f32 %v5285_v6, %v19672_v31  ;;  %v17118_v12 = vadd.f32 %v11479_v29, %v5507_v26  ;;  %11784 = vmatprep.mubr.f32.mxu0 %v6664_v60  ;;  %v6139_v6 = vld [vmem:[#allocation3 + $0x321] sm:$0xff]  ;;  %v6667_v60 = vld [vmem:[#allocation3 + $0x30a] sm:$0xff] }
 0x738   :  { %v11357_v52 = vpop.f32.mrf.mxu1  ;;  %11660 = vmatmul.mubr.f32.gmra.mxu1 %v6137_v50  ;;  %v5805_v27 = vpop.f32.mrf.mxu0  ;;  %v6140_v50 = vld [vmem:[#allocation3 + $0x331] sm:$0xff] }
 0x739   :  { %v5511_v47 = vadd.f32 %v11357_v52, %v16932_v4  ;;  %11662 = vmatprep.mubr.f32.mxu1 %v6138_v56  ;;  %v17121_v7 = vadd.f32 %v5805_v27, %v5506_v2  ;;  %v19675_v56 = vld [vmem:[#allocation93_spill] sm:$0xff] }
 0x73a   :  { %v5295_v42 = vpop.f32.mrf.mxu1  ;;  %v11482_v31 = vpop.f32.mrf.mxu0  ;;  %11785 = vmatmul.mubr.f32.gmra.mxu0 %v6665_v49  ;;  %v6668_v49 = vld [vmem:[#allocation3 + $0x31a] sm:$0xff] }
 0x73b   :  { %19673 = vst [vmem:[#allocation88_spill] sm:$0xff] %v17121_v7  ;;  %v5510_v55 = vadd.f32 %v5295_v42, %v19674_v28  ;;  %v17124_v26 = vadd.f32 %v11482_v31, %v5509_v53  ;;  %11787 = vmatprep.mubr.f32.mxu0 %v6666_v16  ;;  %v6141_v42 = vld [vmem:[#allocation3 + $0x339] sm:$0xff]  ;;  %v6669_v16 = vld [vmem:[#allocation3 + $0x322] sm:$0xff] }
 0x73c   :  { %v11360_v40 = vpop.f32.mrf.mxu1  ;;  %11663 = vmatmul.mubr.f32.gmra.mxu1 %v6139_v6  ;;  %v5815_v52 = vpop.f32.mrf.mxu0  ;;  %v7139_v6 = vld [vmem:[#allocation3 + $0x30] sm:$0xff] }
 0x73d   :  { %v5513_v4 = vadd.f32 %v11360_v40, %v16938_v17  ;;  %11665 = vmatprep.mubr.f32.mxu1 %v6140_v50  ;;  %v17127_v2 = vadd.f32 %v5815_v52, %v5508_v3  ;;  %v7140_v52 = vld [vmem:[#allocation3 + $0x38] sm:$0xff] }
 0x73e   :  { %v5305_v29 = vpop.f32.mrf.mxu1  ;;  %v11485_v28 = vpop.f32.mrf.mxu0  ;;  %11788 = vmatmul.mubr.f32.gmra.mxu0 %v6667_v60 }
 0x73f   :  { %v5512_v27 = vadd.f32 %v5305_v29, %v19675_v56  ;;  %v17130_v53 = vadd.f32 %v11485_v28, %v5511_v47  ;;  %11790 = vmatprep.mubr.f32.mxu0 %v6668_v49  ;;  %v8278_v29 = vld [vmem:[#allocation4 + $0x470] sm:$0xff]  ;;  %v6671_v49 = vld [vmem:[#allocation3 + $0x33a] sm:$0xff] }
 0x740   :  { %v11363_v7 = vpop.f32.mrf.mxu1  ;;  %11666 = vmatmul.mubr.f32.gmra.mxu1 %v6141_v42  ;;  %v5825_v40 = vpop.f32.mrf.mxu0  ;;  %v6670_v56 = vld [vmem:[#allocation3 + $0x332] sm:$0xff] }
 0x741   :  { %v5515_v17 = vadd.f32 %v11363_v7, %v16943_v62  ;;  %11828 = vmatprep.mubr.f32.mxu1 %v7139_v6  ;;  %v17133_v3 = vadd.f32 %v5825_v40, %v5510_v55  ;;  %v7141_v7 = vld [vmem:[#allocation3 + $0x48] sm:$0xff]  ;;  %v7142_v40 = vld [vmem:[#allocation3 + $0x50] sm:$0xff] }
 0x742   :  { %v5315_v31 = vpop.f32.mrf.mxu1  ;;  %v11488_v60 = vpop.f32.mrf.mxu0  ;;  %11791 = vmatmul.mubr.f32.gmra.mxu0 %v6669_v16  ;;  %v7669_v16 = vld [vmem:[#allocation3 + $0x31] sm:$0xff] }
 0x743   :  { %v5514_v50 = vadd.f32 %v5315_v31, %v16946_v33  ;;  %v17136_v47 = vadd.f32 %v11488_v60, %v5513_v4  ;;  %11793 = vmatprep.mubr.f32.mxu0 %v6670_v56  ;;  %v8277_v31 = vld [vmem:[#allocation4 + $0x468] sm:$0xff]  ;;  %v19676_v60 = vld [vmem:[#allocation81_spill] sm:$0xff] }
 0x744   :  { %v11366_v42 = vpop.f32.mrf.mxu1  ;;  %11829 = vmatmul.mubr.f32.vlgmr.msra.gmra.mxu1 %v7140_v52  ;;  %v5835_v55 = vpop.f32.mrf.mxu0 }
 0x745   :  { %v5517_v62 = vadd.f32 %v11366_v42, %v16949_v41  ;;  %12053 = vmatpush3.msra.mxu1 %v17025_v37  ;;  %11831 = vmatprep.mubr.f32.mxu1 %v7141_v7  ;;  %v17140_v33 = vadd.f32 %v5835_v55, %v5512_v27  ;;  %v7143_v41 = vld [vmem:[#allocation3 + $0x60] sm:$0xff]  ;;  %v7144_v55 = vld [vmem:[#allocation3 + $0x68] sm:$0xff] }
 0x746   :  { %v5325_v28 = vpop.f32.mrf.mxu1  ;;  %12054 = vmatprep.subr.mxu1 %v8278_v29  ;;  %v11491_v4 = vpop.f32.mrf.mxu0  ;;  %11794 = vmatmul.mubr.f32.gmra.mxu0 %v6671_v49 }
 0x747   :  { %v5516_v6 = vadd.f32 %v5325_v28, %v16953_v35  ;;  %12055 = vmatpush3.msra.mxu1 %v8278_v29  ;;  %v17143_v37 = vadd.f32 %v11491_v4, %v5515_v17  ;;  %11956 = vmatprep.mubr.f32.mxu0 %v7669_v16  ;;  %v7670_v35 = vld [vmem:[#allocation3 + $0x39] sm:$0xff] }
 0x748   :  { %v11369_v52 = vpop.f32.mrf.mxu1  ;;  %11832 = vmatmul.mubr.f32.gmra.mxu1 %v7142_v40  ;;  %v5845_v27 = vpop.f32.mrf.mxu0  ;;  %12056 = vmatprep.subr.mxu1 %v8277_v31  ;;  %v8276_v28 = vld [vmem:[#allocation4 + $0x460] sm:$0xff]  ;;  %v7671_v40 = vld [vmem:[#allocation3 + $0x49] sm:$0xff]  ;;  %v7145_v4 = vld [vmem:[#allocation3 + $0x78] sm:$0xff] }
 0x749   :  { %v5519_v56 = vadd.f32 %v11369_v52, %v19676_v60  ;;  %11834 = vmatprep.mubr.f32.mxu1 %v7143_v41  ;;  %v17146_v7 = vadd.f32 %v5845_v27, %v5514_v50  ;;  %12057 = vmatpush3.msra.mxu1 %v8277_v31  ;;  %v7672_v31 = vld [vmem:[#allocation3 + $0x51] sm:$0xff]  ;;  %v7146_v27 = vld [vmem:[#allocation3 + $0x80] sm:$0xff] }
 0x74a   :  { %v5335_v42 = vpop.f32.mrf.mxu1  ;;  %v11494_v49 = vpop.f32.mrf.mxu0  ;;  %11957 = vmatmul.mubr.f32.vlgmr.msra.gmra.mxu0 %v7670_v35  ;;  %12058 = vmatprep.subr.mxu1 %v8276_v28  ;;  %v7673_v35 = vld [vmem:[#allocation3 + $0x61] sm:$0xff] }
 0x74b   :  { %v5518_v29 = vadd.f32 %v5335_v42, %v16959_v19  ;;  %v17149_v16 = vadd.f32 %v11494_v49, %v5517_v62  ;;  %11959 = vmatprep.mubr.f32.mxu0 %v7671_v40  ;;  %12181 = vmatpush3.msk.msra.mxu0 %vm3005_vm3, %v17040_v24  ;;  %v8275_v42 = vld [vmem:[#allocation4 + $0x458] sm:$0xff] }
 0x74c   :  { %v11372_v17 = vpop.f32.mrf.mxu1  ;;  %11835 = vmatmul.mubr.f32.gmra.mxu1 %v7144_v55  ;;  %v5855_v50 = vpop.f32.mrf.mxu0 }
 0x74d   :  { %v5521_v52 = vadd.f32 %v11372_v17, %v16962_v0  ;;  %11837 = vmatprep.mubr.f32.mxu1 %v7145_v4  ;;  %v17154_v19 = vadd.f32 %v5855_v50, %v5516_v6  ;;  %12059 = vmatpush3.msra.mxu1 %v8276_v28  ;;  %v7147_v0 = vld [vmem:[#allocation3 + $0x90] sm:$0xff]  ;;  %v7148_v4 = vld [vmem:[#allocation3 + $0x98] sm:$0xff] }
 0x74e   :  { %v5345_v41 = vpop.f32.mrf.mxu1  ;;  %v11497_v62 = vpop.f32.mrf.mxu0  ;;  %11960 = vmatmul.mubr.f32.gmra.mxu0 %v7672_v31  ;;  %12060 = vmatprep.subr.mxu1 %v8275_v42  ;;  %v8274_v50 = vld [vmem:[#allocation4 + $0x450] sm:$0xff]  ;;  %v7675_v31 = vld [vmem:[#allocation3 + $0x79] sm:$0xff] }
 0x74f   :  { %v5520_v60 = vadd.f32 %v5345_v41, %v16965_v36  ;;  %v17157_v49 = vadd.f32 %v11497_v62, %v5519_v56  ;;  %11962 = vmatprep.mubr.f32.mxu0 %v7673_v35  ;;  %v7674_v36 = vld [vmem:[#allocation3 + $0x69] sm:$0xff]  ;;  %12061 = vmatpush3.msra.mxu1 %v8275_v42 }
 0x750   :  { %v11375_v55 = vpop.f32.mrf.mxu1  ;;  %11838 = vmatmul.mubr.f32.gmra.mxu1 %v7146_v27  ;;  %v5865_v24 = vpop.f32.mrf.mxu0  ;;  %v7149_v27 = vld [vmem:[#allocation3 + $0xa8] sm:$0xff]  ;;  %12062 = vmatprep.subr.mxu1 %v8274_v50 }
 0x751   :  { %v5523_v40 = vadd.f32 %v11375_v55, %v16968_v13  ;;  %11840 = vmatprep.mubr.f32.mxu1 %v7147_v0  ;;  %v17160_v17 = vadd.f32 %v5865_v24, %v5518_v29  ;;  %v7150_v0 = vld [vmem:[#allocation3 + $0xb0] sm:$0xff]  ;;  %12063 = vmatpush3.msra.mxu1 %v8274_v50  ;;  %v8273_v24 = vld [vmem:[#allocation4 + $0x448] sm:$0xff] }
 0x752   :  { %v5355_v6 = vpop.f32.mrf.mxu1  ;;  %v11500_v41 = vpop.f32.mrf.mxu0  ;;  %11963 = vmatmul.mubr.f32.gmra.mxu0 %v7674_v36  ;;  %v7677_v36 = vld [vmem:[#allocation3 + $0x91] sm:$0xff]  ;;  %12064 = vmatprep.subr.mxu1 %v8273_v24 }
 0x753   :  { %v5522_v28 = vadd.f32 %v5355_v6, %v16971_v54  ;;  %v17163_v62 = vadd.f32 %v11500_v41, %v5521_v52  ;;  %11965 = vmatprep.mubr.f32.mxu0 %v7675_v31  ;;  %v7676_v54 = vld [vmem:[#allocation3 + $0x81] sm:$0xff]  ;;  %12065 = vmatpush3.msra.mxu1 %v8273_v24 }
 0x754   :  { %v11378_v56 = vpop.f32.mrf.mxu1  ;;  %11841 = vmatmul.mubr.f32.gmra.mxu1 %v7148_v4  ;;  %v5875_v29 = vpop.f32.mrf.mxu0  ;;  %v7151_v4 = vld [vmem:[#allocation3 + $0xc0] sm:$0xff] }
 0x755   :  { %v5525_v13 = vadd.f32 %v11378_v56, %v16974_v58  ;;  %11843 = vmatprep.mubr.f32.mxu1 %v7149_v27  ;;  %v17166_v55 = vadd.f32 %v5875_v29, %v5520_v60  ;;  %v7152_v27 = vld [vmem:[#allocation3 + $0xc8] sm:$0xff]  ;;  %v8272_v29 = vld [vmem:[#allocation4 + $0x440] sm:$0xff] }
 0x756   :  { %v5365_v35 = vpop.f32.mrf.mxu1  ;;  %v11503_v6 = vpop.f32.mrf.mxu0  ;;  %11966 = vmatmul.mubr.f32.gmra.mxu0 %v7676_v54  ;;  %v7679_v54 = vld [vmem:[#allocation3 + $0xa9] sm:$0xff]  ;;  %12066 = vmatprep.subr.mxu1 %v8272_v29 }
 0x757   :  { %v5524_v42 = vadd.f32 %v5365_v35, %v16977_v10  ;;  %v17169_v41 = vadd.f32 %v11503_v6, %v5523_v40  ;;  %11968 = vmatprep.mubr.f32.mxu0 %v7677_v36  ;;  %v7678_v10 = vld [vmem:[#allocation3 + $0x99] sm:$0xff]  ;;  %12067 = vmatpush3.msra.mxu1 %v8272_v29 }
 0x758   :  { %v11381_v52 = vpop.f32.mrf.mxu1  ;;  %11844 = vmatmul.mubr.f32.gmra.mxu1 %v7150_v0  ;;  %v5885_v60 = vpop.f32.mrf.mxu0  ;;  %v7153_v0 = vld [vmem:[#allocation3 + $0xd8] sm:$0xff] }
 0x759   :  { %v5527_v58 = vadd.f32 %v11381_v52, %v16980_v18  ;;  %11846 = vmatprep.mubr.f32.mxu1 %v7151_v4  ;;  %v17172_v56 = vadd.f32 %v5885_v60, %v5522_v28  ;;  %v7154_v4 = vld [vmem:[#allocation3 + $0xe0] sm:$0xff]  ;;  %v8271_v60 = vld [vmem:[#allocation4 + $0x438] sm:$0xff] }
 0x75a   :  { %v5375_v31 = vpop.f32.mrf.mxu1  ;;  %v11506_v35 = vpop.f32.mrf.mxu0  ;;  %11969 = vmatmul.mubr.f32.gmra.mxu0 %v7678_v10  ;;  %v7681_v10 = vld [vmem:[#allocation3 + $0xc1] sm:$0xff]  ;;  %12068 = vmatprep.subr.mxu1 %v8271_v60 }
 0x75b   :  { %v5526_v50 = vadd.f32 %v5375_v31, %v16983_v38  ;;  %v17175_v6 = vadd.f32 %v11506_v35, %v5525_v13  ;;  %11971 = vmatprep.mubr.f32.mxu0 %v7679_v54  ;;  %v7680_v38 = vld [vmem:[#allocation3 + $0xb1] sm:$0xff]  ;;  %12069 = vmatpush3.msra.mxu1 %v8271_v60 }
 0x75c   :  { %v11384_v40 = vpop.f32.mrf.mxu1  ;;  %11847 = vmatmul.mubr.f32.gmra.mxu1 %v7152_v27  ;;  %v5895_v28 = vpop.f32.mrf.mxu0  ;;  %v7155_v27 = vld [vmem:[#allocation3 + $0xf0] sm:$0xff] }
 0x75d   :  { %v5529_v18 = vadd.f32 %v11384_v40, %v16986_v43  ;;  %11849 = vmatprep.mubr.f32.mxu1 %v7153_v0  ;;  %v17178_v52 = vadd.f32 %v5895_v28, %v5524_v42  ;;  %v7156_v0 = vld [vmem:[#allocation3 + $0xf8] sm:$0xff]  ;;  %v8270_v28 = vld [vmem:[#allocation4 + $0x430] sm:$0xff] }
 0x75e   :  { %v5385_v36 = vpop.f32.mrf.mxu1  ;;  %v11509_v31 = vpop.f32.mrf.mxu0  ;;  %11972 = vmatmul.mubr.f32.gmra.mxu0 %v7680_v38  ;;  %v7683_v38 = vld [vmem:[#allocation3 + $0xd9] sm:$0xff]  ;;  %12070 = vmatprep.subr.mxu1 %v8270_v28 }
 0x75f   :  { %v5528_v24 = vadd.f32 %v5385_v36, %v16989_v23  ;;  %v17181_v35 = vadd.f32 %v11509_v31, %v5527_v58  ;;  %11974 = vmatprep.mubr.f32.mxu0 %v7681_v10  ;;  %v7682_v23 = vld [vmem:[#allocation3 + $0xc9] sm:$0xff]  ;;  %12071 = vmatpush3.msra.mxu1 %v8270_v28 }
 0x760   :  { %v11387_v13 = vpop.f32.mrf.mxu1  ;;  %11850 = vmatmul.mubr.f32.gmra.mxu1 %v7154_v4  ;;  %v5905_v42 = vpop.f32.mrf.mxu0  ;;  %v7157_v4 = vld [vmem:[#allocation3 + $0x108] sm:$0xff] }
 0x761   :  { %v5531_v43 = vadd.f32 %v11387_v13, %v16992_v20  ;;  %11852 = vmatprep.mubr.f32.mxu1 %v7155_v27  ;;  %v17184_v40 = vadd.f32 %v5905_v42, %v5526_v50  ;;  %v7158_v27 = vld [vmem:[#allocation3 + $0x110] sm:$0xff]  ;;  %v8269_v42 = vld [vmem:[#allocation4 + $0x428] sm:$0xff] }
 0x762   :  { %v5395_v54 = vpop.f32.mrf.mxu1  ;;  %v11512_v36 = vpop.f32.mrf.mxu0  ;;  %11975 = vmatmul.mubr.f32.gmra.mxu0 %v7682_v23  ;;  %v7685_v23 = vld [vmem:[#allocation3 + $0xf1] sm:$0xff]  ;;  %12072 = vmatprep.subr.mxu1 %v8269_v42  ;;  %v19681_v28 = vld [vmem:[#allocation75_spill] sm:$0xff] }
 0x763   :  { %v5530_v29 = vadd.f32 %v5395_v54, %v16995_v57  ;;  %v17187_v31 = vadd.f32 %v11512_v36, %v5529_v18  ;;  %11977 = vmatprep.mubr.f32.mxu0 %v7683_v38  ;;  %v7684_v57 = vld [vmem:[#allocation3 + $0xe1] sm:$0xff]  ;;  %12073 = vmatpush3.msra.mxu1 %v8269_v42 }
 0x764   :  { %v11390_v58 = vpop.f32.mrf.mxu1  ;;  %11853 = vmatmul.mubr.f32.gmra.mxu1 %v7156_v0  ;;  %v5915_v50 = vpop.f32.mrf.mxu0  ;;  %v7159_v0 = vld [vmem:[#allocation3 + $0x120] sm:$0xff] }
 0x765   :  { %v5533_v20 = vadd.f32 %v11390_v58, %v16998_v32  ;;  %11855 = vmatprep.mubr.f32.mxu1 %v7157_v4  ;;  %v17190_v13 = vadd.f32 %v5915_v50, %v5528_v24  ;;  %v19679_v32 = vld [vmem:[#allocation80_spill] sm:$0xff]  ;;  %v19685_v42 = vld [vmem:[#allocation82_spill] sm:$0xff] }
 0x766   :  { %v5405_v10 = vpop.f32.mrf.mxu1  ;;  %v11515_v54 = vpop.f32.mrf.mxu0  ;;  %11978 = vmatmul.mubr.f32.gmra.mxu0 %v7684_v57  ;;  %v8268_v57 = vld [vmem:[#allocation4 + $0x420] sm:$0xff] }
 0x767   :  { %19677 = vst [vmem:[#allocation91_spill] sm:$0xff] %v17190_v13  ;;  %v5532_v60 = vadd.f32 %v5405_v10, %v17001_v61  ;;  %v17193_v36 = vadd.f32 %v11515_v54, %v5531_v43  ;;  %11980 = vmatprep.mubr.f32.mxu0 %v7685_v23  ;;  %v7686_v61 = vld [vmem:[#allocation3 + $0xf9] sm:$0xff]  ;;  %v7160_v10 = vld [vmem:[#allocation3 + $0x128] sm:$0xff]  ;;  %12074 = vmatprep.subr.mxu1 %v8268_v57 }
 0x768   :  { %v11393_v18 = vpop.f32.mrf.mxu1  ;;  %11856 = vmatmul.mubr.f32.gmra.mxu1 %v7158_v27  ;;  %v5925_v24 = vpop.f32.mrf.mxu0  ;;  %v7687_v27 = vld [vmem:[#allocation3 + $0x109] sm:$0xff]  ;;  %v7161_v54 = vld [vmem:[#allocation3 + $0x138] sm:$0xff] }
 0x769   :  { %19678 = vst [vmem:[#allocation90_spill] sm:$0xff] %v17193_v36  ;;  %v5535_v38 = vadd.f32 %v11393_v18, %v19679_v32  ;;  %11858 = vmatprep.mubr.f32.mxu1 %v7159_v0  ;;  %v17196_v4 = vadd.f32 %v5925_v24, %v5530_v29  ;;  %v19683_v18 = vld [vmem:[#allocation83_spill] sm:$0xff]  ;;  %12075 = vmatpush3.msra.mxu1 %v8268_v57 }
 0x76a   :  { %v5415_v58 = vpop.f32.mrf.mxu1  ;;  %v11518_v13 = vpop.f32.mrf.mxu0  ;;  %11981 = vmatmul.mubr.f32.gmra.mxu0 %v7686_v61  ;;  %v8267_v61 = vld [vmem:[#allocation4 + $0x418] sm:$0xff]  ;;  %v19689_v57 = vld [vmem:[#allocation87_spill] sm:$0xff] }
 0x76b   :  { %19680 = vst [vmem:[#allocation93_spill] sm:$0xff] %v17196_v4  ;;  %v5534_v50 = vadd.f32 %v5415_v58, %v19681_v28  ;;  %v17199_v23 = vadd.f32 %v11518_v13, %v5533_v20  ;;  %11983 = vmatprep.mubr.f32.mxu0 %v7687_v27  ;;  %v7688_v58 = vld [vmem:[#allocation3 + $0x111] sm:$0xff]  ;;  %v7162_v4 = vld [vmem:[#allocation3 + $0x140] sm:$0xff]  ;;  %12076 = vmatprep.subr.mxu1 %v8267_v61 }
 0x76c   :  { %v11396_v43 = vpop.f32.mrf.mxu1  ;;  %11859 = vmatmul.mubr.f32.gmra.mxu1 %v7160_v10  ;;  %v5935_v29 = vpop.f32.mrf.mxu0  ;;  %v7689_v10 = vld [vmem:[#allocation3 + $0x121] sm:$0xff]  ;;  %v7163_v13 = vld [vmem:[#allocation3 + $0x150] sm:$0xff] }
 0x76d   :  { %19682 = vst [vmem:[#allocation81_spill] sm:$0xff] %v17199_v23  ;;  %v5537_v0 = vadd.f32 %v11396_v43, %v19683_v18  ;;  %11861 = vmatprep.mubr.f32.mxu1 %v7161_v54  ;;  %v17202_v24 = vadd.f32 %v5935_v29, %v5532_v60  ;;  %v19687_v43 = vld [vmem:[#allocation85_spill] sm:$0xff]  ;;  %12077 = vmatpush3.msra.mxu1 %v8267_v61  ;;  %v19693_v61 = vld [vmem:[#allocation92_spill] sm:$0xff] }
 0x76e   :  { %v5425_v32 = vpop.f32.mrf.mxu1  ;;  %v11521_v36 = vpop.f32.mrf.mxu0  ;;  %11984 = vmatmul.mubr.f32.gmra.mxu0 %v7688_v58  ;;  %v8266_v58 = vld [vmem:[#allocation4 + $0x410] sm:$0xff] }
 0x76f   :  { %19684 = vst [vmem:[#allocation80_spill] sm:$0xff] %v17202_v24  ;;  %v5536_v28 = vadd.f32 %v5425_v32, %v19685_v42  ;;  %v17205_v27 = vadd.f32 %v11521_v36, %v5535_v38  ;;  %11986 = vmatprep.mubr.f32.mxu0 %v7689_v10  ;;  %v7690_v32 = vld [vmem:[#allocation3 + $0x129] sm:$0xff]  ;;  %v7164_v24 = vld [vmem:[#allocation3 + $0x158] sm:$0xff]  ;;  %12078 = vmatprep.subr.mxu1 %v8266_v58 }
 0x770   :  { %v11399_v20 = vpop.f32.mrf.mxu1  ;;  %11862 = vmatmul.mubr.f32.gmra.mxu1 %v7162_v4  ;;  %v5945_v60 = vpop.f32.mrf.mxu0  ;;  %v7691_v4 = vld [vmem:[#allocation3 + $0x139] sm:$0xff]  ;;  %v7165_v38 = vld [vmem:[#allocation3 + $0x168] sm:$0xff] }
 0x771   :  { %19686 = vst [vmem:[#allocation75_spill] sm:$0xff] %v17205_v27  ;;  %v5539_v54 = vadd.f32 %v11399_v20, %v19687_v43  ;;  %11864 = vmatprep.mubr.f32.mxu1 %v7163_v13  ;;  %v17208_v29 = vadd.f32 %v5945_v60, %v5534_v50  ;;  %v19691_v20 = vld [vmem:[#allocation86_spill] sm:$0xff]  ;;  %12079 = vmatpush3.msra.mxu1 %v8266_v58 }
 0x772   :  { %v5435_v18 = vpop.f32.mrf.mxu1  ;;  %v11524_v23 = vpop.f32.mrf.mxu0  ;;  %11987 = vmatmul.mubr.f32.gmra.mxu0 %v7690_v32  ;;  %v8265_v32 = vld [vmem:[#allocation4 + $0x408] sm:$0xff]  ;;  %v7694_v58 = vld [vmem:[#allocation3 + $0x159] sm:$0xff] }
 0x773   :  { %19688 = vst [vmem:[#allocation83_spill] sm:$0xff] %v17208_v29  ;;  %v5538_v42 = vadd.f32 %v5435_v18, %v19689_v57  ;;  %v17211_v10 = vadd.f32 %v11524_v23, %v5537_v0  ;;  %11989 = vmatprep.mubr.f32.mxu0 %v7691_v4  ;;  %v7692_v18 = vld [vmem:[#allocation3 + $0x141] sm:$0xff]  ;;  %v7166_v29 = vld [vmem:[#allocation3 + $0x170] sm:$0xff]  ;;  %12080 = vmatprep.subr.mxu1 %v8265_v32 }
 0x774   :  { %v11402_v36 = vpop.f32.mrf.mxu1  ;;  %11865 = vmatmul.mubr.f32.gmra.mxu1 %v7164_v24  ;;  %v5955_v50 = vpop.f32.mrf.mxu0  ;;  %v7693_v24 = vld [vmem:[#allocation3 + $0x151] sm:$0xff]  ;;  %v7167_v0 = vld [vmem:[#allocation3 + $0x180] sm:$0xff] }
 0x775   :  { %19690 = vst [vmem:[#allocation82_spill] sm:$0xff] %v17211_v10  ;;  %v5541_v13 = vadd.f32 %v11402_v36, %v19691_v20  ;;  %11867 = vmatprep.mubr.f32.mxu1 %v7165_v38  ;;  %v17214_v60 = vadd.f32 %v5955_v50, %v5536_v28  ;;  %v19694_v36 = vld [vmem:[#allocation89_spill] sm:$0xff]  ;;  %12081 = vmatpush3.msra.mxu1 %v8265_v32  ;;  %v8264_v10 = vld [vmem:[#allocation4 + $0x400] sm:$0xff] }
 0x776   :  { %v5445_v43 = vpop.f32.mrf.mxu1  ;;  %v11527_v27 = vpop.f32.mrf.mxu0  ;;  %11990 = vmatmul.mubr.f32.gmra.mxu0 %v7692_v18  ;;  %v7169_v50 = vld [vmem:[#allocation3 + $0x198] sm:$0xff]  ;;  %v7168_v18 = vld [vmem:[#allocation3 + $0x188] sm:$0xff]  ;;  %12082 = vmatprep.subr.mxu1 %v8264_v10 }
 0x777   :  { %19692 = vst [vmem:[#allocation85_spill] sm:$0xff] %v17214_v60  ;;  %v5540_v57 = vadd.f32 %v5445_v43, %v19693_v61  ;;  %v17217_v4 = vadd.f32 %v11527_v27, %v5539_v54  ;;  %11992 = vmatprep.mubr.f32.mxu0 %v7693_v24  ;;  %v19696_v61 = vld [vmem:[#allocation94_spill] sm:$0xff]  ;;  %v7695_v27 = vld [vmem:[#allocation3 + $0x169] sm:$0xff]  ;;  %12083 = vmatpush3.msra.mxu1 %v8264_v10 }
 0x778   :  { %v11405_v23 = vpop.f32.mrf.mxu1  ;;  %11868 = vmatmul.mubr.f32.gmra.mxu1 %v7166_v29  ;;  %v5965_v28 = vpop.f32.mrf.mxu0  ;;  %v7698_v10 = vld [vmem:[#allocation3 + $0x189] sm:$0xff] }
 0x779   :  { %v5543_v38 = vadd.f32 %v11405_v23, %v19694_v36  ;;  %11870 = vmatprep.mubr.f32.mxu1 %v7167_v0  ;;  %v17220_v43 = vadd.f32 %v5965_v28, %v5538_v42  ;;  %v7696_v28 = vld [vmem:[#allocation3 + $0x171] sm:$0xff] }
 0x77a   :  { %v5455_v20 = vpop.f32.mrf.mxu1  ;;  %v11530_v29 = vpop.f32.mrf.mxu0  ;;  %11993 = vmatmul.mubr.f32.gmra.mxu0 %v7694_v58  ;;  %v7697_v58 = vld [vmem:[#allocation3 + $0x181] sm:$0xff] }
 0x77b   :  { %19695 = vst [vmem:[#allocation87_spill] sm:$0xff] %v17220_v43  ;;  %v5542_v60 = vadd.f32 %v5455_v20, %v19696_v61  ;;  %v17223_v24 = vadd.f32 %v11530_v29, %v5541_v13  ;;  %11995 = vmatprep.mubr.f32.mxu0 %v7695_v27  ;;  %v19699_v20 = vld [vmem:[#allocation74_spill] sm:$0xff] }
 0x77c   :  { %v11408_v54 = vpop.f32.mrf.mxu1  ;;  %11871 = vmatmul.mubr.f32.gmra.mxu1 %v7168_v18  ;;  %v5975_v0 = vpop.f32.mrf.mxu0  ;;  %v17229_v18 = vld [vmem:[#allocation3 + $0x8] sm:$0xff]  ;;  %v7171_v13 = vld [vmem:[#allocation3 + $0x1e0] sm:$0xff] }
 0x77d   :  { %19697 = vst [vmem:[#allocation86_spill] sm:$0xff] %v17223_v24  ;;  %v5545_v23 = vadd.f32 %v11408_v54, %v17032_v63  ;;  %11873 = vmatprep.mubr.f32.mxu1 %v7169_v50  ;;  %v17226_v36 = vadd.f32 %v5975_v0, %v5540_v57  ;;  %v7699_v29 = vld [vmem:[#allocation3 + $0x199] sm:$0xff]  ;;  %v19700_v0 = vld [vmem:[#allocation84_spill] sm:$0xff] }
 0x77e   :  { %v5465_v42 = vpop.f32.mrf.mxu1  ;;  %v11533_v61 = vpop.f32.mrf.mxu0  ;;  %11996 = vmatmul.mubr.f32.gmra.mxu0 %v7696_v28  ;;  %v7172_v28 = vld [vmem:[#allocation3 + $0x1e8] sm:$0xff]  ;;  %v7173_v24 = vld [vmem:[#allocation3 + $0x1f8] sm:$0xff] }
 0x77f   :  { %19698 = vst [vmem:[#allocation92_spill] sm:$0xff] %v17226_v36  ;;  %v5544_v32 = vadd.f32 %v5465_v42, %v19699_v20  ;;  %v17232_v63 = vadd.f32 %v11533_v61, %v5543_v38  ;;  %11998 = vmatprep.mubr.f32.mxu0 %v7697_v58  ;;  %v7700_v61 = vld [vmem:[#allocation3 + $0x1a1] sm:$0xff] }
 0x780   :  { %v11411_v43 = vpop.f32.mrf.mxu1  ;;  %11874 = vmatmul.mubr.f32.gmra.mxu1 %v17229_v18  ;;  %v5985_v57 = vpop.f32.mrf.mxu0 }
 0x781   :  { %v5547_v50 = vadd.f32 %v11411_v43, %v17042_v11  ;;  %11876 = vmatprep.mubr.f32.mxu1 %v7171_v13  ;;  %v17235_v54 = vadd.f32 %v5985_v57, %v5542_v60  ;;  %v7174_v57 = vld [vmem:[#allocation3 + $0x200] sm:$0xff] }
 0x782   :  { %v5475_v27 = vpop.f32.mrf.mxu1  ;;  %v11536_v20 = vpop.f32.mrf.mxu0  ;;  %11999 = vmatmul.mubr.f32.gmra.mxu0 %v7698_v10  ;;  %v7701_v10 = vld [vmem:[#allocation3 + $0x1e1] sm:$0xff] }
 0x783   :  { %v5546_v42 = vadd.f32 %v5475_v27, %v19700_v0  ;;  %v17238_v38 = vadd.f32 %v11536_v20, %v5545_v23  ;;  %12001 = vmatprep.mubr.f32.mxu0 %v7699_v29  ;;  %v7176_v20 = vld [vmem:[#allocation3 + $0x218] sm:$0xff] }
 0x784   :  { %v11574_v36 = vpop.f32.mrf.mxu1  ;;  %11877 = vmatmul.mubr.f32.gmra.mxu1 %v7172_v28  ;;  %v5995_v43 = vpop.f32.mrf.mxu0  ;;  %v7175_v28 = vld [vmem:[#allocation3 + $0x210] sm:$0xff] }
 0x785   :  { %v6545_v11 = vadd.f32 %v11574_v36, %v17052_v25  ;;  %11879 = vmatprep.mubr.f32.mxu1 %v7173_v24  ;;  %v17241_v60 = vadd.f32 %v5995_v43, %v5544_v32  ;;  %v7702_v32 = vld [vmem:[#allocation3 + $0x1e9] sm:$0xff] }
 0x786   :  { %v6225_v58 = vpop.f32.mrf.mxu1  ;;  %v11539_v27 = vpop.f32.mrf.mxu0  ;;  %12002 = vmatmul.mubr.f32.gmra.mxu0 %v7700_v61  ;;  %v7703_v61 = vld [vmem:[#allocation3 + $0x1f9] sm:$0xff] }
 0x787   :  { %v6544_v13 = vadd.f32 %v6225_v58, %v17055_v22  ;;  %v17244_v23 = vadd.f32 %v11539_v27, %v5547_v50  ;;  %12004 = vmatprep.mubr.f32.mxu0 %v7701_v10 }
 0x788   :  { %v11577_v0 = vpop.f32.mrf.mxu1  ;;  %11880 = vmatmul.mubr.f32.gmra.mxu1 %v7174_v57  ;;  %v6005_v25 = vpop.f32.mrf.mxu0  ;;  %v7177_v57 = vld [vmem:[#allocation3 + $0x228] sm:$0xff] }
 0x789   :  { %v6547_v29 = vadd.f32 %v11577_v0, %v17058_v59  ;;  %11882 = vmatprep.mubr.f32.mxu1 %v7175_v28  ;;  %v17247_v36 = vadd.f32 %v6005_v25, %v5546_v42  ;;  %v7704_v0 = vld [vmem:[#allocation3 + $0x201] sm:$0xff]  ;;  %v7178_v28 = vld [vmem:[#allocation3 + $0x230] sm:$0xff] }
 0x78a   :  { %v6235_v24 = vpop.f32.mrf.mxu1  ;;  %v11702_v43 = vpop.f32.mrf.mxu0  ;;  %12005 = vmatmul.mubr.f32.gmra.mxu0 %v7702_v32 }
 0x78b   :  { %v6546_v22 = vadd.f32 %v6235_v24, %v17061_v45  ;;  %v17250_v50 = vadd.f32 %v11702_v43, %v6545_v11  ;;  %12007 = vmatprep.mubr.f32.mxu0 %v7703_v61  ;;  %v7705_v24 = vld [vmem:[#allocation3 + $0x211] sm:$0xff] }
 0x78c   :  { %v11580_v58 = vpop.f32.mrf.mxu1  ;;  %11883 = vmatmul.mubr.f32.gmra.mxu1 %v7176_v20  ;;  %v6755_v27 = vpop.f32.mrf.mxu0  ;;  %v7179_v20 = vld [vmem:[#allocation3 + $0x240] sm:$0xff] }
 0x78d   :  { %v6549_v59 = vadd.f32 %v11580_v58, %v17064_v8  ;;  %11885 = vmatprep.mubr.f32.mxu1 %v7177_v57  ;;  %v17253_v42 = vadd.f32 %v6755_v27, %v6544_v13  ;;  %v7706_v58 = vld [vmem:[#allocation3 + $0x219] sm:$0xff]  ;;  %v7180_v57 = vld [vmem:[#allocation3 + $0x248] sm:$0xff] }
 0x78e   :  { %v6245_v10 = vpop.f32.mrf.mxu1  ;;  %v11705_v25 = vpop.f32.mrf.mxu0  ;;  %12008 = vmatmul.mubr.f32.gmra.mxu0 %v7704_v0 }
 0x78f   :  { %v6548_v45 = vadd.f32 %v6245_v10, %v17067_v34  ;;  %v17256_v11 = vadd.f32 %v11705_v25, %v6547_v29  ;;  %12010 = vmatprep.mubr.f32.mxu0 %v7705_v24  ;;  %v7707_v10 = vld [vmem:[#allocation3 + $0x229] sm:$0xff] }
 0x790   :  { %v11583_v32 = vpop.f32.mrf.mxu1  ;;  %11886 = vmatmul.mubr.f32.gmra.mxu1 %v7178_v28  ;;  %v6765_v43 = vpop.f32.mrf.mxu0  ;;  %v7181_v28 = vld [vmem:[#allocation3 + $0x258] sm:$0xff] }
 0x791   :  { %v6551_v8 = vadd.f32 %v11583_v32, %v17070_v48  ;;  %11888 = vmatprep.mubr.f32.mxu1 %v7179_v20  ;;  %v17259_v13 = vadd.f32 %v6765_v43, %v6546_v22  ;;  %v7708_v32 = vld [vmem:[#allocation3 + $0x231] sm:$0xff]  ;;  %v7182_v20 = vld [vmem:[#allocation3 + $0x260] sm:$0xff] }
 0x792   :  { %v6255_v61 = vpop.f32.mrf.mxu1  ;;  %v11708_v27 = vpop.f32.mrf.mxu0  ;;  %12011 = vmatmul.mubr.f32.gmra.mxu0 %v7706_v58 }
 0x793   :  { %v6550_v34 = vadd.f32 %v6255_v61, %v17073_v21  ;;  %v17262_v29 = vadd.f32 %v11708_v27, %v6549_v59  ;;  %12013 = vmatprep.mubr.f32.mxu0 %v7707_v10  ;;  %v7709_v61 = vld [vmem:[#allocation3 + $0x241] sm:$0xff] }
 0x794   :  { %v11586_v0 = vpop.f32.mrf.mxu1  ;;  %11889 = vmatmul.mubr.f32.gmra.mxu1 %v7180_v57  ;;  %v6775_v25 = vpop.f32.mrf.mxu0  ;;  %v7183_v57 = vld [vmem:[#allocation3 + $0x270] sm:$0xff] }
 0x795   :  { %v6553_v48 = vadd.f32 %v11586_v0, %v17076_v30  ;;  %11891 = vmatprep.mubr.f32.mxu1 %v7181_v28  ;;  %v17265_v22 = vadd.f32 %v6775_v25, %v6548_v45  ;;  %v7710_v0 = vld [vmem:[#allocation3 + $0x249] sm:$0xff]  ;;  %v7184_v28 = vld [vmem:[#allocation3 + $0x278] sm:$0xff] }
 0x796   :  { %v6265_v24 = vpop.f32.mrf.mxu1  ;;  %v11711_v43 = vpop.f32.mrf.mxu0  ;;  %12014 = vmatmul.mubr.f32.gmra.mxu0 %v7708_v32 }
 0x797   :  { %v6552_v21 = vadd.f32 %v6265_v24, %v17079_v51  ;;  %v17268_v59 = vadd.f32 %v11711_v43, %v6551_v8  ;;  %12016 = vmatprep.mubr.f32.mxu0 %v7709_v61  ;;  %v7711_v24 = vld [vmem:[#allocation3 + $0x259] sm:$0xff] }
 0x798   :  { %v11589_v58 = vpop.f32.mrf.mxu1  ;;  %11892 = vmatmul.mubr.f32.gmra.mxu1 %v7182_v20  ;;  %v6785_v27 = vpop.f32.mrf.mxu0  ;;  %v7185_v20 = vld [vmem:[#allocation3 + $0x288] sm:$0xff] }
 0x799   :  { %v6555_v30 = vadd.f32 %v11589_v58, %v17082_v46  ;;  %11894 = vmatprep.mubr.f32.mxu1 %v7183_v57  ;;  %v17271_v45 = vadd.f32 %v6785_v27, %v6550_v34  ;;  %v7712_v58 = vld [vmem:[#allocation3 + $0x261] sm:$0xff]  ;;  %v7186_v57 = vld [vmem:[#allocation3 + $0x290] sm:$0xff] }
 0x79a   :  { %v6275_v10 = vpop.f32.mrf.mxu1  ;;  %v11714_v25 = vpop.f32.mrf.mxu0  ;;  %12017 = vmatmul.mubr.f32.gmra.mxu0 %v7710_v0 }
 0x79b   :  { %v6554_v51 = vadd.f32 %v6275_v10, %v17085_v44  ;;  %v17274_v8 = vadd.f32 %v11714_v25, %v6553_v48  ;;  %12019 = vmatprep.mubr.f32.mxu0 %v7711_v24  ;;  %v7713_v10 = vld [vmem:[#allocation3 + $0x271] sm:$0xff] }
 0x79c   :  { %v11592_v32 = vpop.f32.mrf.mxu1  ;;  %11895 = vmatmul.mubr.f32.gmra.mxu1 %v7184_v28  ;;  %v6795_v43 = vpop.f32.mrf.mxu0  ;;  %v7187_v28 = vld [vmem:[#allocation3 + $0x2a0] sm:$0xff] }
 0x79d   :  { %v6557_v46 = vadd.f32 %v11592_v32, %v17088_v39  ;;  %11897 = vmatprep.mubr.f32.mxu1 %v7185_v20  ;;  %v17277_v34 = vadd.f32 %v6795_v43, %v6552_v21  ;;  %v7714_v32 = vld [vmem:[#allocation3 + $0x279] sm:$0xff]  ;;  %v7188_v20 = vld [vmem:[#allocation3 + $0x2a8] sm:$0xff] }
 0x79e   :  { %v6285_v61 = vpop.f32.mrf.mxu1  ;;  %v11717_v27 = vpop.f32.mrf.mxu0  ;;  %12020 = vmatmul.mubr.f32.gmra.mxu0 %v7712_v58 }
 0x79f   :  { %v6556_v44 = vadd.f32 %v6285_v61, %v17091_v5  ;;  %v17280_v48 = vadd.f32 %v11717_v27, %v6555_v30  ;;  %12022 = vmatprep.mubr.f32.mxu0 %v7713_v10  ;;  %v7715_v61 = vld [vmem:[#allocation3 + $0x289] sm:$0xff] }
 0x7a0   :  { %v11595_v0 = vpop.f32.mrf.mxu1  ;;  %11898 = vmatmul.mubr.f32.gmra.mxu1 %v7186_v57  ;;  %v6805_v25 = vpop.f32.mrf.mxu0  ;;  %v7189_v57 = vld [vmem:[#allocation3 + $0x2b8] sm:$0xff] }
 0x7a1   :  { %v6559_v39 = vadd.f32 %v11595_v0, %v17094_v9  ;;  %11900 = vmatprep.mubr.f32.mxu1 %v7187_v28  ;;  %v17283_v21 = vadd.f32 %v6805_v25, %v6554_v51  ;;  %v7716_v0 = vld [vmem:[#allocation3 + $0x291] sm:$0xff]  ;;  %v7190_v25 = vld [vmem:[#allocation3 + $0x2c0] sm:$0xff] }
 0x7a2   :  { %v6295_v24 = vpop.f32.mrf.mxu1  ;;  %v11720_v43 = vpop.f32.mrf.mxu0  ;;  %12023 = vmatmul.mubr.f32.gmra.mxu0 %v7714_v32  ;;  %v19704_v28 = vld [vmem:[#allocation77_spill] sm:$0xff]  ;;  %v7717_v32 = vld [vmem:[#allocation3 + $0x2a1] sm:$0xff] }
 0x7a3   :  { %19701 = vst [vmem:[#allocation89_spill] sm:$0xff] %v17283_v21  ;;  %v6558_v5 = vadd.f32 %v6295_v24, %v17097_v14  ;;  %v17286_v30 = vadd.f32 %v11720_v43, %v6557_v46  ;;  %12025 = vmatprep.mubr.f32.mxu0 %v7715_v61  ;;  %v19705_v43 = vld [vmem:[#allocation76_spill] sm:$0xff] }
 0x7a4   :  { %v11598_v58 = vpop.f32.mrf.mxu1  ;;  %11901 = vmatmul.mubr.f32.gmra.mxu1 %v7188_v20  ;;  %v6815_v27 = vpop.f32.mrf.mxu0  ;;  %v7191_v20 = vld [vmem:[#allocation3 + $0x2d0] sm:$0xff] }
 0x7a5   :  { %19702 = vst [vmem:[#allocation94_spill] sm:$0xff] %v17286_v30  ;;  %v6561_v9 = vadd.f32 %v11598_v58, %v17100_v1  ;;  %11903 = vmatprep.mubr.f32.mxu1 %v7189_v57  ;;  %v17289_v51 = vadd.f32 %v6815_v27, %v6556_v44  ;;  %v7718_v57 = vld [vmem:[#allocation3 + $0x2a9] sm:$0xff] }
 0x7a6   :  { %v6305_v10 = vpop.f32.mrf.mxu1  ;;  %v11723_v24 = vpop.f32.mrf.mxu0  ;;  %12026 = vmatmul.mubr.f32.gmra.mxu0 %v7716_v0  ;;  %v19707_v27 = vld [vmem:[#allocation79_spill] sm:$0xff]  ;;  %v7719_v0 = vld [vmem:[#allocation3 + $0x2b9] sm:$0xff] }
 0x7a7   :  { %19703 = vst [vmem:[#allocation74_spill] sm:$0xff] %v17289_v51  ;;  %v6560_v14 = vadd.f32 %v6305_v10, %v19704_v28  ;;  %v17292_v46 = vadd.f32 %v11723_v24, %v6559_v39  ;;  %12028 = vmatprep.mubr.f32.mxu0 %v7717_v32  ;;  %v7192_v28 = vld [vmem:[#allocation3 + $0x2d8] sm:$0xff] }
 0x7a8   :  { %v11601_v21 = vpop.f32.mrf.mxu1  ;;  %11904 = vmatmul.mubr.f32.gmra.mxu1 %v7190_v25  ;;  %v6825_v61 = vpop.f32.mrf.mxu0  ;;  %v7193_v25 = vld [vmem:[#allocation3 + $0x2e8] sm:$0xff] }
 0x7a9   :  { %v6563_v1 = vadd.f32 %v11601_v21, %v19705_v43  ;;  %11906 = vmatprep.mubr.f32.mxu1 %v7191_v20  ;;  %v17295_v44 = vadd.f32 %v6825_v61, %v6558_v5  ;;  %v7720_v20 = vld [vmem:[#allocation3 + $0x2c1] sm:$0xff] }
 0x7aa   :  { %v6315_v58 = vpop.f32.mrf.mxu1  ;;  %v11726_v51 = vpop.f32.mrf.mxu0  ;;  %12029 = vmatmul.mubr.f32.gmra.mxu0 %v7718_v57  ;;  %v19709_v43 = vld [vmem:[#allocation78_spill] sm:$0xff]  ;;  %v7721_v57 = vld [vmem:[#allocation3 + $0x2d1] sm:$0xff] }
 0x7ab   :  { %19706 = vst [vmem:[#allocation84_spill] sm:$0xff] %v17295_v44  ;;  %v6562_v10 = vadd.f32 %v6315_v58, %v19707_v27  ;;  %v17298_v39 = vadd.f32 %v11726_v51, %v6561_v9  ;;  %12031 = vmatprep.mubr.f32.mxu0 %v7719_v0  ;;  %v7194_v58 = vld [vmem:[#allocation3 + $0x2f0] sm:$0xff]  ;;  %v7722_v0 = vld [vmem:[#allocation3 + $0x2d9] sm:$0xff] }
 0x7ac   :  { %v11604_v30 = vpop.f32.mrf.mxu1  ;;  %11907 = vmatmul.mubr.f32.gmra.mxu1 %v7192_v28  ;;  %v6835_v24 = vpop.f32.mrf.mxu0  ;;  %v7195_v28 = vld [vmem:[#allocation3 + $0x300] sm:$0xff] }
 0x7ad   :  { %v6565_v21 = vadd.f32 %v11604_v30, %v17112_v15  ;;  %11909 = vmatprep.mubr.f32.mxu1 %v7193_v25  ;;  %v17301_v5 = vadd.f32 %v6835_v24, %v6560_v14  ;;  %v19710_v25 = vld [vmem:[#allocation88_spill] sm:$0xff] }
 0x7ae   :  { %v6325_v32 = vpop.f32.mrf.mxu1  ;;  %v11729_v27 = vpop.f32.mrf.mxu0  ;;  %12032 = vmatmul.mubr.f32.gmra.mxu0 %v7720_v20  ;;  %v7723_v20 = vld [vmem:[#allocation3 + $0x2e9] sm:$0xff] }
 0x7af   :  { %19708 = vst [vmem:[#allocation77_spill] sm:$0xff] %v17301_v5  ;;  %v6564_v61 = vadd.f32 %v6325_v32, %v19709_v43  ;;  %v17304_v9 = vadd.f32 %v11729_v27, %v6563_v1  ;;  %12034 = vmatprep.mubr.f32.mxu0 %v7721_v57  ;;  %v7196_v32 = vld [vmem:[#allocation3 + $0x308] sm:$0xff]  ;;  %v7724_v57 = vld [vmem:[#allocation3 + $0x2f1] sm:$0xff] }
 0x7b0   :  { %v11607_v44 = vpop.f32.mrf.mxu1  ;;  %11910 = vmatmul.mubr.f32.gmra.mxu1 %v7194_v58  ;;  %v6845_v30 = vpop.f32.mrf.mxu0  ;;  %v7197_v58 = vld [vmem:[#allocation3 + $0x318] sm:$0xff] }
 0x7b1   :  { %v6567_v15 = vadd.f32 %v11607_v44, %v17118_v12  ;;  %11912 = vmatprep.mubr.f32.mxu1 %v7195_v28  ;;  %v17307_v14 = vadd.f32 %v6845_v30, %v6562_v10  ;;  %v7198_v30 = vld [vmem:[#allocation3 + $0x320] sm:$0xff] }
 0x7b2   :  { %v6335_v51 = vpop.f32.mrf.mxu1  ;;  %v11732_v43 = vpop.f32.mrf.mxu0  ;;  %12035 = vmatmul.mubr.f32.gmra.mxu0 %v7722_v0  ;;  %v7725_v0 = vld [vmem:[#allocation3 + $0x301] sm:$0xff] }
 0x7b3   :  { %v6566_v24 = vadd.f32 %v6335_v51, %v19710_v25  ;;  %v17310_v1 = vadd.f32 %v11732_v43, %v6565_v21  ;;  %12037 = vmatprep.mubr.f32.mxu0 %v7723_v20 }
 0x7b4   :  { %v11610_v5 = vpop.f32.mrf.mxu1  ;;  %11913 = vmatmul.mubr.f32.gmra.mxu1 %v7196_v32  ;;  %v6855_v44 = vpop.f32.mrf.mxu0  ;;  %v7199_v32 = vld [vmem:[#allocation3 + $0x330] sm:$0xff] }
 0x7b5   :  { %v6569_v12 = vadd.f32 %v11610_v5, %v17124_v26  ;;  %11915 = vmatprep.mubr.f32.mxu1 %v7197_v58  ;;  %v17313_v10 = vadd.f32 %v6855_v44, %v6564_v61  ;;  %v7201_v61 = vld [vmem:[#allocation3 + $0x348] sm:$0xff]  ;;  %v7200_v44 = vld [vmem:[#allocation3 + $0x338] sm:$0xff] }
 0x7b6   :  { %v6345_v27 = vpop.f32.mrf.mxu1  ;;  %v11735_v51 = vpop.f32.mrf.mxu0  ;;  %12038 = vmatmul.mubr.f32.gmra.mxu0 %v7724_v57  ;;  %v7726_v58 = vld [vmem:[#allocation3 + $0x309] sm:$0xff]  ;;  %v7727_v57 = vld [vmem:[#allocation3 + $0x319] sm:$0xff] }
 0x7b7   :  { %v6568_v28 = vadd.f32 %v6345_v27, %v17127_v2  ;;  %v17316_v21 = vadd.f32 %v11735_v51, %v6567_v15  ;;  %12040 = vmatprep.mubr.f32.mxu0 %v7725_v0 }
 0x7b8   :  { %v11613_v25 = vpop.f32.mrf.mxu1  ;;  %11916 = vmatmul.mubr.f32.gmra.mxu1 %v7198_v30  ;;  %v6865_v5 = vpop.f32.mrf.mxu0 }
 0x7b9   :  { %v6571_v26 = vadd.f32 %v11613_v25, %v17130_v53  ;;  %11918 = vmatprep.mubr.f32.mxu1 %v7199_v32  ;;  %v17319_v20 = vadd.f32 %v6865_v5, %v6566_v24  ;;  %v7728_v24 = vld [vmem:[#allocation3 + $0x321] sm:$0xff]  ;;  %v7729_v5 = vld [vmem:[#allocation3 + $0x331] sm:$0xff] }
 0x7ba   :  { %v6355_v43 = vpop.f32.mrf.mxu1  ;;  %v11738_v27 = vpop.f32.mrf.mxu0  ;;  %12041 = vmatmul.mubr.f32.gmra.mxu0 %v7726_v58  ;;  %v8199_v58 = vld [vmem:[#allocation3 + $0x32] sm:$0xff] }
 0x7bb   :  { %v6570_v2 = vadd.f32 %v6355_v43, %v17133_v3  ;;  %v17322_v15 = vadd.f32 %v11738_v27, %v6569_v12  ;;  %12043 = vmatprep.mubr.f32.mxu0 %v7727_v57  ;;  %v7730_v57 = vld [vmem:[#allocation3 + $0x339] sm:$0xff] }
 0x7bc   :  { %v11616_v30 = vpop.f32.mrf.mxu1  ;;  %11919 = vmatmul.mubr.f32.gmra.mxu1 %v7200_v44  ;;  %v6875_v51 = vpop.f32.mrf.mxu0  ;;  %v7731_v44 = vld [vmem:[#allocation3 + $0x349] sm:$0xff] }
 0x7bd   :  { %v6573_v53 = vadd.f32 %v11616_v30, %v17136_v47  ;;  %11921 = vmatprep.mubr.f32.mxu1 %v7201_v61  ;;  %v17325_v25 = vadd.f32 %v6875_v51, %v6568_v28  ;;  %v8200_v30 = vld [vmem:[#allocation3 + $0x3a] sm:$0xff] }
 0x7be   :  { %v6365_v0 = vpop.f32.mrf.mxu1  ;;  %v11741_v3 = vpop.f32.mrf.mxu0  ;;  %12044 = vmatmul.mubr.f32.gmra.mxu0 %v7728_v24  ;;  %v7732_v24 = vld [vmem:[#allocation3 + $0x351] sm:$0xff] }
 0x7bf   :  { %v6572_v32 = vadd.f32 %v6365_v0, %v17140_v33  ;;  %v17329_v12 = vadd.f32 %v11741_v3, %v6571_v26  ;;  %12046 = vmatprep.mubr.f32.mxu0 %v7729_v5 }
 0x7c0   :  { %v11619_v43 = vpop.f32.mrf.mxu1  ;;  %11922 = vmatmul.mubr.f32.gmra.mxu1 %v17229_v18  ;;  %v6885_v61 = vpop.f32.mrf.mxu0  ;;  %v8201_v18 = vld [vmem:[#allocation3 + $0x4a] sm:$0xff] }
 0x7c1   :  { %v6575_v47 = vadd.f32 %v11619_v43, %v17143_v37  ;;  %12084 = vmatprep.mubr.f32.mxu1 %v8199_v58  ;;  %v17332_v27 = vadd.f32 %v6885_v61, %v6570_v2 }
 0x7c2   :  { %v6375_v28 = vpop.f32.mrf.mxu1  ;;  %v11744_v51 = vpop.f32.mrf.mxu0  ;;  %12047 = vmatmul.mubr.f32.gmra.mxu0 %v7730_v57 }
 0x7c3   :  { %v6574_v33 = vadd.f32 %v6375_v28, %v17146_v7  ;;  %v17335_v26 = vadd.f32 %v11744_v51, %v6573_v53  ;;  %12049 = vmatprep.mubr.f32.mxu0 %v7731_v44  ;;  %v8202_v7 = vld [vmem:[#allocation3 + $0x52] sm:$0xff]  ;;  %v8203_v28 = vld [vmem:[#allocation3 + $0x62] sm:$0xff]  ;;  %v8204_v51 = vld [vmem:[#allocation3 + $0x6a] sm:$0xff] }
 0x7c4   :  { %v11622_v0 = vpop.f32.mrf.mxu1  ;;  %12085 = vmatmul.mubr.f32.vlgmr.msra.gmra.mxu1 %v8200_v30  ;;  %v6895_v3 = vpop.f32.mrf.mxu0  ;;  %v19711_v44 = vld [vmem:[#allocation10_spill] sm:$0xff] }
 0x7c5   :  { %v6577_v37 = vadd.f32 %v11622_v0, %v17149_v16  ;;  %12087 = vmatprep.mubr.f32.mxu1 %v8201_v18  ;;  %v17338_v2 = vadd.f32 %v6895_v3, %v6572_v32  ;;  %v19712_v3 = vld [vmem:[#allocation11_spill] sm:$0xff] }
 0x7c6   :  { %v6385_v5 = vpop.f32.mrf.mxu1  ;;  %v11747_v58 = vpop.f32.mrf.mxu0  ;;  %12050 = vmatmul.mubr.f32.gmra.mxu0 %v7732_v24  ;;  %v8205_v24 = vld [vmem:[#allocation3 + $0x7a] sm:$0xff] }
 0x7c7   :  { %v6576_v43 = vadd.f32 %v6385_v5, %v17154_v19  ;;  %v17341_v57 = vadd.f32 %v11747_v58, %v6575_v47  ;;  %12182 = vmatprep.mubr.msk.f32.mxu0 %vm152_vm0, %v19711_v44  ;;  %v19713_v5 = vld [vmem:[#allocation12_spill] sm:$0xff] }
 0x7c8   :  { %v11625_v61 = vpop.f32.mrf.mxu1  ;;  %12088 = vmatmul.mubr.f32.gmra.mxu1 %v8202_v7  ;;  %v6905_v16 = vpop.f32.mrf.mxu0 }
 0x7c9   :  { %v6579_v53 = vadd.f32 %v11625_v61, %v17157_v49  ;;  %12090 = vmatprep.mubr.f32.mxu1 %v8203_v28  ;;  %v17346_v32 = vadd.f32 %v6905_v16, %v6574_v33  ;;  %v8206_v61 = vld [vmem:[#allocation3 + $0x82] sm:$0xff]  ;;  %v8207_v16 = vld [vmem:[#allocation3 + $0x92] sm:$0xff] }
 0x7ca   :  { %v6395_v30 = vpop.f32.mrf.mxu1  ;;  %v11750_v0 = vpop.f32.mrf.mxu0  ;;  %12183 = vmatmul.mubr.msk.f32.vlgmr.msra.gmra.mxu0 %vm152_vm0, %v19712_v3 }
 0x7cb   :  { %v6578_v19 = vadd.f32 %v6395_v30, %v17160_v17  ;;  %v17351_v47 = vadd.f32 %v11750_v0, %v6577_v37  ;;  %12185 = vmatprep.mubr.msk.f32.mxu0 %vm152_vm0, %v19713_v5  ;;  %v19714_v30 = vld [vmem:[#allocation13_spill] sm:$0xff] }
 0x7cc   :  { %v11628_v18 = vpop.f32.mrf.mxu1  ;;  %12091 = vmatmul.mubr.f32.gmra.mxu1 %v8204_v51  ;;  %v6915_v33 = vpop.f32.mrf.mxu0  ;;  %v19715_v51 = vld [vmem:[#allocation14_spill] sm:$0xff] }
 0x7cd   :  { %v6581_v49 = vadd.f32 %v11628_v18, %v17163_v62  ;;  %12093 = vmatprep.mubr.f32.mxu1 %v8205_v24  ;;  %v17356_v58 = vadd.f32 %v6915_v33, %v6576_v43  ;;  %v8208_v24 = vld [vmem:[#allocation3 + $0x9a] sm:$0xff]  ;;  %v8209_v33 = vld [vmem:[#allocation3 + $0xaa] sm:$0xff] }
 0x7ce   :  { %v6405_v7 = vpop.f32.mrf.mxu1  ;;  %v11753_v28 = vpop.f32.mrf.mxu0  ;;  %12186 = vmatmul.mubr.msk.f32.gmra.mxu0 %vm152_vm0, %v19714_v30 }
 0x7cf   :  { %v6580_v17 = vadd.f32 %v6405_v7, %v17166_v55  ;;  %v17361_v37 = vadd.f32 %v11753_v28, %v6579_v53  ;;  %12188 = vmatprep.mubr.msk.f32.mxu0 %vm152_vm0, %v19715_v51  ;;  %v19716_v7 = vld [vmem:[#allocation15_spill] sm:$0xff] }
 0x7d0   :  { %v11631_v44 = vpop.f32.mrf.mxu1  ;;  %12094 = vmatmul.mubr.f32.gmra.mxu1 %v8206_v61  ;;  %v6925_v43 = vpop.f32.mrf.mxu0  ;;  %v19717_v61 = vld [vmem:[#allocation16_spill] sm:$0xff] }
 0x7d1   :  { %v6583_v62 = vadd.f32 %v11631_v44, %v17169_v41  ;;  %12096 = vmatprep.mubr.f32.mxu1 %v8207_v16  ;;  %v17366_v18 = vadd.f32 %v6925_v43, %v6578_v19  ;;  %v8210_v16 = vld [vmem:[#allocation3 + $0xb2] sm:$0xff]  ;;  %v8211_v43 = vld [vmem:[#allocation3 + $0xc2] sm:$0xff] }
 0x7d2   :  { %v6415_v0 = vpop.f32.mrf.mxu1  ;;  %v11756_v3 = vpop.f32.mrf.mxu0  ;;  %12189 = vmatmul.mubr.msk.f32.gmra.mxu0 %vm152_vm0, %v19716_v7 }
 0x7d3   :  { %v6582_v55 = vadd.f32 %v6415_v0, %v17172_v56  ;;  %v17371_v53 = vadd.f32 %v11756_v3, %v6581_v49  ;;  %12191 = vmatprep.mubr.msk.f32.mxu0 %vm152_vm0, %v19717_v61  ;;  %v19718_v0 = vld [vmem:[#allocation17_spill] sm:$0xff] }
 0x7d4   :  { %v11634_v5 = vpop.f32.mrf.mxu1  ;;  %12097 = vmatmul.mubr.f32.gmra.mxu1 %v8208_v24  ;;  %v6935_v19 = vpop.f32.mrf.mxu0  ;;  %v19719_v24 = vld [vmem:[#allocation18_spill] sm:$0xff] }
 0x7d5   :  { %v6585_v41 = vadd.f32 %v11634_v5, %v17175_v6  ;;  %12099 = vmatprep.mubr.f32.mxu1 %v8209_v33  ;;  %v17376_v44 = vadd.f32 %v6935_v19, %v6580_v17  ;;  %v8212_v33 = vld [vmem:[#allocation3 + $0xca] sm:$0xff]  ;;  %v8213_v19 = vld [vmem:[#allocation3 + $0xda] sm:$0xff] }
 0x7d6   :  { %v6425_v28 = vpop.f32.mrf.mxu1  ;;  %v11759_v30 = vpop.f32.mrf.mxu0  ;;  %12192 = vmatmul.mubr.msk.f32.gmra.mxu0 %vm152_vm0, %v19718_v0  ;;  %v8214_v0 = vld [vmem:[#allocation3 + $0xe2] sm:$0xff] }
 0x7d7   :  { %v6584_v56 = vadd.f32 %v6425_v28, %v17178_v52  ;;  %v17381_v49 = vadd.f32 %v11759_v30, %v6583_v62  ;;  %12194 = vmatprep.mubr.msk.f32.mxu0 %vm152_vm0, %v19719_v24  ;;  %v19720_v28 = vld [vmem:[#allocation19_spill] sm:$0xff] }
 0x7d8   :  { %v11637_v51 = vpop.f32.mrf.mxu1  ;;  %12100 = vmatmul.mubr.f32.gmra.mxu1 %v8210_v16  ;;  %v6945_v17 = vpop.f32.mrf.mxu0  ;;  %v19721_v16 = vld [vmem:[#allocation20_spill] sm:$0xff] }
 0x7d9   :  { %v6587_v6 = vadd.f32 %v11637_v51, %v17181_v35  ;;  %12102 = vmatprep.mubr.f32.mxu1 %v8211_v43  ;;  %v17386_v5 = vadd.f32 %v6945_v17, %v6582_v55 }
 0x7da   :  { %v6435_v3 = vpop.f32.mrf.mxu1  ;;  %v11762_v7 = vpop.f32.mrf.mxu0  ;;  %12195 = vmatmul.mubr.msk.f32.gmra.mxu0 %vm152_vm0, %v19720_v28 }
 0x7db   :  { %v6586_v52 = vadd.f32 %v6435_v3, %v17184_v40  ;;  %v17391_v62 = vadd.f32 %v11762_v7, %v6585_v41  ;;  %12197 = vmatprep.mubr.msk.f32.mxu0 %vm152_vm0, %v19721_v16  ;;  %v19723_v40 = vld [vmem:[#allocation91_spill] sm:$0xff]  ;;  %v8215_v3 = vld [vmem:[#allocation3 + $0xf2] sm:$0xff] }
 0x7dc   :  { %v11640_v61 = vpop.f32.mrf.mxu1  ;;  %12103 = vmatmul.mubr.f32.gmra.mxu1 %v8212_v33  ;;  %v6955_v55 = vpop.f32.mrf.mxu0  ;;  %v19724_v33 = vld [vmem:[#allocation21_spill] sm:$0xff] }
 0x7dd   :  { %v6589_v35 = vadd.f32 %v11640_v61, %v17187_v31  ;;  %12105 = vmatprep.mubr.f32.mxu1 %v8213_v19  ;;  %v17396_v51 = vadd.f32 %v6955_v55, %v6584_v56  ;;  %v19726_v31 = vld [vmem:[#allocation90_spill] sm:$0xff]  ;;  %v19729_v16 = vld [vmem:[#allocation93_spill] sm:$0xff] }
 0x7de   :  { %v6445_v30 = vpop.f32.mrf.mxu1  ;;  %v11765_v24 = vpop.f32.mrf.mxu0  ;;  %12198 = vmatmul.mubr.msk.f32.gmra.mxu0 %vm152_vm0, %v19724_v33  ;;  %v19727_v61 = vld [vmem:[#allocation22_spill] sm:$0xff]  ;;  %v19730_v33 = vld [vmem:[#allocation23_spill] sm:$0xff] }
 0x7df   :  { %19722 = vst [vmem:[#allocation76_spill] sm:$0xff] %v17396_v51  ;;  %v6588_v43 = vadd.f32 %v6445_v30, %v19723_v40  ;;  %v17401_v41 = vadd.f32 %v11765_v24, %v6587_v6  ;;  %12200 = vmatprep.mubr.msk.f32.mxu0 %vm152_vm0, %v19727_v61  ;;  %v8216_v30 = vld [vmem:[#allocation3 + $0xfa] sm:$0xff]  ;;  %v8217_v51 = vld [vmem:[#allocation3 + $0x10a] sm:$0xff] }
 0x7e0   :  { %v11643_v17 = vpop.f32.mrf.mxu1  ;;  %12106 = vmatmul.mubr.f32.gmra.mxu1 %v8214_v0  ;;  %v6965_v56 = vpop.f32.mrf.mxu0  ;;  %v19732_v24 = vld [vmem:[#allocation81_spill] sm:$0xff] }
 0x7e1   :  { %19725 = vst [vmem:[#allocation79_spill] sm:$0xff] %v17401_v41  ;;  %v6591_v7 = vadd.f32 %v11643_v17, %v19726_v31  ;;  %12108 = vmatprep.mubr.f32.mxu1 %v8215_v3  ;;  %v17406_v28 = vadd.f32 %v6965_v56, %v6586_v52  ;;  %v19733_v3 = vld [vmem:[#allocation24_spill] sm:$0xff]  ;;  %v8219_v41 = vld [vmem:[#allocation3 + $0x122] sm:$0xff] }
 0x7e2   :  { %v6455_v19 = vpop.f32.mrf.mxu1  ;;  %v11768_v40 = vpop.f32.mrf.mxu0  ;;  %12201 = vmatmul.mubr.msk.f32.gmra.mxu0 %vm152_vm0, %v19730_v33  ;;  %v19735_v56 = vld [vmem:[#allocation80_spill] sm:$0xff]  ;;  %v19736_v33 = vld [vmem:[#allocation25_spill] sm:$0xff] }
 0x7e3   :  { %19728 = vst [vmem:[#allocation78_spill] sm:$0xff] %v17406_v28  ;;  %v6590_v55 = vadd.f32 %v6455_v19, %v19729_v16  ;;  %v17411_v6 = vadd.f32 %v11768_v40, %v6589_v35  ;;  %12203 = vmatprep.mubr.msk.f32.mxu0 %vm152_vm0, %v19733_v3  ;;  %v8218_v16 = vld [vmem:[#allocation3 + $0x112] sm:$0xff] }
 0x7e4   :  { %v11646_v0 = vpop.f32.mrf.mxu1  ;;  %12109 = vmatmul.mubr.f32.gmra.mxu1 %v8216_v30  ;;  %v6975_v52 = vpop.f32.mrf.mxu0 }
 0x7e5   :  { %19731 = vst [vmem:[#allocation88_spill] sm:$0xff] %v17411_v6  ;;  %v6593_v17 = vadd.f32 %v11646_v0, %v19732_v24  ;;  %12111 = vmatprep.mubr.f32.mxu1 %v8217_v51  ;;  %v17416_v61 = vadd.f32 %v6975_v52, %v6588_v43  ;;  %v19738_v51 = vld [vmem:[#allocation75_spill] sm:$0xff]  ;;  %v19739_v0 = vld [vmem:[#allocation26_spill] sm:$0xff] }
 0x7e6   :  { %v6465_v31 = vpop.f32.mrf.mxu1  ;;  %v11771_v30 = vpop.f32.mrf.mxu0  ;;  %12204 = vmatmul.mubr.msk.f32.gmra.mxu0 %vm152_vm0, %v19736_v33  ;;  %v19741_v52 = vld [vmem:[#allocation83_spill] sm:$0xff]  ;;  %v8221_v6 = vld [vmem:[#allocation3 + $0x13a] sm:$0xff] }
 0x7e7   :  { %19734 = vst [vmem:[#allocation10_spill] sm:$0xff] %v17416_v61  ;;  %v6592_v19 = vadd.f32 %v6465_v31, %v19735_v56  ;;  %v17421_v35 = vadd.f32 %v11771_v30, %v6591_v7  ;;  %12206 = vmatprep.mubr.msk.f32.mxu0 %vm152_vm0, %v19739_v0  ;;  %v8220_v56 = vld [vmem:[#allocation3 + $0x12a] sm:$0xff] }
 0x7e8   :  { %v11649_v28 = vpop.f32.mrf.mxu1  ;;  %12112 = vmatmul.mubr.f32.gmra.mxu1 %v8218_v16  ;;  %v6985_v43 = vpop.f32.mrf.mxu0  ;;  %v19742_v33 = vld [vmem:[#allocation27_spill] sm:$0xff]  ;;  %v19744_v30 = vld [vmem:[#allocation28_spill] sm:$0xff] }
 0x7e9   :  { %19737 = vst [vmem:[#allocation11_spill] sm:$0xff] %v17421_v35  ;;  %v6595_v40 = vadd.f32 %v11649_v28, %v19738_v51  ;;  %12114 = vmatprep.mubr.f32.mxu1 %v8219_v41  ;;  %v17426_v3 = vadd.f32 %v6985_v43, %v6590_v55  ;;  %v19743_v41 = vld [vmem:[#allocation82_spill] sm:$0xff]  ;;  %v19746_v43 = vld [vmem:[#allocation85_spill] sm:$0xff] }
 0x7ea   :  { %v6475_v24 = vpop.f32.mrf.mxu1  ;;  %v11774_v16 = vpop.f32.mrf.mxu0  ;;  %12207 = vmatmul.mubr.msk.f32.gmra.mxu0 %vm152_vm0, %v19742_v33  ;;  %v8223_v35 = vld [vmem:[#allocation3 + $0x152] sm:$0xff] }
 0x7eb   :  { %19740 = vst [vmem:[#allocation12_spill] sm:$0xff] %v17426_v3  ;;  %v6594_v31 = vadd.f32 %v6475_v24, %v19741_v52  ;;  %v17431_v7 = vadd.f32 %v11774_v16, %v6593_v17  ;;  %12209 = vmatprep.mubr.msk.f32.mxu0 %vm152_vm0, %v19744_v30  ;;  %v8222_v52 = vld [vmem:[#allocation3 + $0x142] sm:$0xff]  ;;  %v19747_v33 = vld [vmem:[#allocation29_spill] sm:$0xff] }
 0x7ec   :  { %v11652_v61 = vpop.f32.mrf.mxu1  ;;  %12115 = vmatmul.mubr.f32.gmra.mxu1 %v8220_v56  ;;  %v6995_v55 = vpop.f32.mrf.mxu0  ;;  %v19751_v30 = vld [vmem:[#allocation87_spill] sm:$0xff] }
 0x7ed   :  { %v6597_v28 = vadd.f32 %v11652_v61, %v19743_v41  ;;  %12117 = vmatprep.mubr.f32.mxu1 %v8221_v6  ;;  %v17436_v0 = vadd.f32 %v6995_v55, %v6592_v19  ;;  %v19749_v61 = vld [vmem:[#allocation30_spill] sm:$0xff] }
 0x7ee   :  { %v6485_v51 = vpop.f32.mrf.mxu1  ;;  %v11777_v56 = vpop.f32.mrf.mxu0  ;;  %12210 = vmatmul.mubr.msk.f32.gmra.mxu0 %vm152_vm0, %v19747_v33  ;;  %v19752_v33 = vld [vmem:[#allocation31_spill] sm:$0xff] }
 0x7ef   :  { %19745 = vst [vmem:[#allocation13_spill] sm:$0xff] %v17436_v0  ;;  %v6596_v24 = vadd.f32 %v6485_v51, %v19746_v43  ;;  %v17441_v17 = vadd.f32 %v11777_v56, %v6595_v40  ;;  %12212 = vmatprep.mubr.msk.f32.mxu0 %vm152_vm0, %v19749_v61  ;;  %v8224_v51 = vld [vmem:[#allocation3 + $0x15a] sm:$0xff]  ;;  %v8225_v0 = vld [vmem:[#allocation3 + $0x16a] sm:$0xff] }
 0x7f0   :  { %v11655_v3 = vpop.f32.mrf.mxu1  ;;  %12118 = vmatmul.mubr.f32.gmra.mxu1 %v8222_v52  ;;  %v7005_v19 = vpop.f32.mrf.mxu0 }
 0x7f1   :  { %19748 = vst [vmem:[#allocation14_spill] sm:$0xff] %v17441_v17  ;;  %v6599_v6 = vadd.f32 %v11655_v3, %v17217_v4  ;;  %12120 = vmatprep.mubr.f32.mxu1 %v8223_v35  ;;  %v17446_v41 = vadd.f32 %v7005_v19, %v6594_v31  ;;  %v19753_v4 = vld [vmem:[#allocation86_spill] sm:$0xff]  ;;  %v19754_v3 = vld [vmem:[#allocation32_spill] sm:$0xff] }
 0x7f2   :  { %v6495_v16 = vpop.f32.mrf.mxu1  ;;  %v11780_v43 = vpop.f32.mrf.mxu0  ;;  %12213 = vmatmul.mubr.msk.f32.gmra.mxu0 %vm152_vm0, %v19752_v33  ;;  %v19755_v19 = vld [vmem:[#allocation92_spill] sm:$0xff]  ;;  %v8227_v17 = vld [vmem:[#allocation3 + $0x182] sm:$0xff]  ;;  %v19756_v33 = vld [vmem:[#allocation33_spill] sm:$0xff] }
 0x7f3   :  { %19750 = vst [vmem:[#allocation15_spill] sm:$0xff] %v17446_v41  ;;  %v6598_v55 = vadd.f32 %v6495_v16, %v19751_v30  ;;  %v17451_v40 = vadd.f32 %v11780_v43, %v6597_v28  ;;  %12215 = vmatprep.mubr.msk.f32.mxu0 %vm152_vm0, %v19754_v3  ;;  %v8226_v30 = vld [vmem:[#allocation3 + $0x172] sm:$0xff]  ;;  %v19757_v43 = vld [vmem:[#allocation34_spill] sm:$0xff] }
 0x7f4   :  { %v11658_v52 = vpop.f32.mrf.mxu1  ;;  %12121 = vmatmul.mubr.f32.gmra.mxu1 %v8224_v51  ;;  %v7015_v31 = vpop.f32.mrf.mxu0 }
 0x7f5   :  { %v6601_v35 = vadd.f32 %v11658_v52, %v19753_v4  ;;  %12123 = vmatprep.mubr.f32.mxu1 %v8225_v0  ;;  %v17456_v61 = vadd.f32 %v7015_v31, %v6596_v24  ;;  %v8229_v4 = vld [vmem:[#allocation3 + $0x19a] sm:$0xff] }
 0x7f6   :  { %v6505_v56 = vpop.f32.mrf.mxu1  ;;  %v11783_v51 = vpop.f32.mrf.mxu0  ;;  %12216 = vmatmul.mubr.msk.f32.gmra.mxu0 %vm152_vm0, %v19756_v33  ;;  %v19758_v33 = vld [vmem:[#allocation35_spill] sm:$0xff] }
 0x7f7   :  { %v6600_v16 = vadd.f32 %v6505_v56, %v19755_v19  ;;  %v17461_v28 = vadd.f32 %v11783_v51, %v6599_v6  ;;  %12218 = vmatprep.mubr.msk.f32.mxu0 %vm152_vm0, %v19757_v43  ;;  %v8228_v56 = vld [vmem:[#allocation3 + $0x18a] sm:$0xff] }
 0x7f8   :  { %v11661_v41 = vpop.f32.mrf.mxu1  ;;  %12124 = vmatmul.mubr.f32.gmra.mxu1 %v8226_v30  ;;  %v7025_v24 = vpop.f32.mrf.mxu0 }
 0x7f9   :  { %v6603_v0 = vadd.f32 %v11661_v41, %v17232_v63  ;;  %12126 = vmatprep.mubr.f32.mxu1 %v8227_v17  ;;  %v17466_v3 = vadd.f32 %v7025_v24, %v6598_v55  ;;  %v8230_v17 = vld [vmem:[#allocation3 + $0x1a2] sm:$0xff]  ;;  %v19759_v41 = vld [vmem:[#allocation36_spill] sm:$0xff] }
 0x7fa   :  { %v6515_v52 = vpop.f32.mrf.mxu1  ;;  %v11786_v19 = vpop.f32.mrf.mxu0  ;;  %12219 = vmatmul.mubr.msk.f32.gmra.mxu0 %vm152_vm0, %v19758_v33  ;;  %v19760_v33 = vld [vmem:[#allocation37_spill] sm:$0xff] }
 0x7fb   :  { %v6602_v31 = vadd.f32 %v6515_v52, %v17235_v54  ;;  %v17471_v6 = vadd.f32 %v11786_v19, %v6601_v35  ;;  %12221 = vmatprep.mubr.msk.f32.mxu0 %vm152_vm0, %v19759_v41  ;;  %v8232_v41 = vld [vmem:[#allocation3 + $0x1ea] sm:$0xff] }
 0x7fc   :  { %v11664_v30 = vpop.f32.mrf.mxu1  ;;  %12127 = vmatmul.mubr.f32.gmra.mxu1 %v8228_v56  ;;  %v7035_v55 = vpop.f32.mrf.mxu0  ;;  %v8231_v56 = vld [vmem:[#allocation3 + $0x1e2] sm:$0xff] }
 0x7fd   :  { %v6605_v63 = vadd.f32 %v11664_v30, %v17238_v38  ;;  %12129 = vmatprep.mubr.f32.mxu1 %v8229_v4  ;;  %v17476_v43 = vadd.f32 %v7035_v55, %v6600_v16  ;;  %v19761_v4 = vld [vmem:[#allocation38_spill] sm:$0xff] }
 0x7fe   :  { %v6525_v51 = vpop.f32.mrf.mxu1  ;;  %v11789_v24 = vpop.f32.mrf.mxu0  ;;  %12222 = vmatmul.mubr.msk.f32.gmra.mxu0 %vm152_vm0, %v19760_v33  ;;  %v19762_v33 = vld [vmem:[#allocation39_spill] sm:$0xff] }
 0x7ff   :  { %v6604_v54 = vadd.f32 %v6525_v51, %v17241_v60  ;;  %v17481_v35 = vadd.f32 %v11789_v24, %v6603_v0  ;;  %12224 = vmatprep.mubr.msk.f32.mxu0 %vm152_vm0, %v19761_v4  ;;  %v8233_v51 = vld [vmem:[#allocation3 + $0x1fa] sm:$0xff]  ;;  %v19763_v24 = vld [vmem:[#allocation40_spill] sm:$0xff]  ;;  %v8234_v4 = vld [vmem:[#allocation3 + $0x202] sm:$0xff] }
 0x800   :  { %v11667_v52 = vpop.f32.mrf.mxu1  ;;  %12130 = vmatmul.mubr.f32.gmra.mxu1 %v8230_v17  ;;  %v7045_v19 = vpop.f32.mrf.mxu0 }
 0x801   :  { %v6607_v38 = vadd.f32 %v11667_v52, %v17244_v23  ;;  %12132 = vmatprep.mubr.f32.mxu1 %v8231_v56  ;;  %v17486_v30 = vadd.f32 %v7045_v19, %v6602_v31 }
 0x802   :  { %v6535_v16 = vpop.f32.mrf.mxu1  ;;  %v11792_v17 = vpop.f32.mrf.mxu0  ;;  %12225 = vmatmul.mubr.msk.f32.gmra.mxu0 %vm152_vm0, %v19762_v33  ;;  %v19764_v33 = vld [vmem:[#allocation41_spill] sm:$0xff] }
 0x803   :  { %v6606_v60 = vadd.f32 %v6535_v16, %v17247_v36  ;;  %v17491_v0 = vadd.f32 %v11792_v17, %v6605_v63  ;;  %12227 = vmatprep.mubr.msk.f32.mxu0 %vm152_vm0, %v19763_v24  ;;  %v19765_v17 = vld [vmem:[#allocation42_spill] sm:$0xff] }
 0x804   :  { %v11830_v55 = vpop.f32.mrf.mxu1  ;;  %12133 = vmatmul.mubr.f32.gmra.mxu1 %v8232_v41  ;;  %v7055_v31 = vpop.f32.mrf.mxu0  ;;  %v8235_v41 = vld [vmem:[#allocation3 + $0x212] sm:$0xff]  ;;  %v8236_v24 = vld [vmem:[#allocation3 + $0x21a] sm:$0xff] }
 0x805   :  { %v7606_v23 = vadd.f32 %v11830_v55, %v17250_v50  ;;  %12135 = vmatprep.mubr.f32.mxu1 %v8233_v51  ;;  %v17496_v56 = vadd.f32 %v7055_v31, %v6604_v54 }
 0x806   :  { %v7286_v52 = vpop.f32.mrf.mxu1  ;;  %v11795_v19 = vpop.f32.mrf.mxu0  ;;  %12228 = vmatmul.mubr.msk.f32.gmra.mxu0 %vm152_vm0, %v19764_v33  ;;  %v19766_v33 = vld [vmem:[#allocation43_spill] sm:$0xff] }
 0x807   :  { %v7605_v36 = vadd.f32 %v7286_v52, %v17253_v42  ;;  %v17501_v63 = vadd.f32 %v11795_v19, %v6607_v38  ;;  %12230 = vmatprep.mubr.msk.f32.mxu0 %vm152_vm0, %v19765_v17  ;;  %v19767_v19 = vld [vmem:[#allocation44_spill] sm:$0xff] }
 0x808   :  { %v11833_v16 = vpop.f32.mrf.mxu1  ;;  %12136 = vmatmul.mubr.f32.gmra.mxu1 %v8234_v4  ;;  %v7065_v54 = vpop.f32.mrf.mxu0  ;;  %v8237_v4 = vld [vmem:[#allocation3 + $0x22a] sm:$0xff]  ;;  %v8238_v17 = vld [vmem:[#allocation3 + $0x232] sm:$0xff] }
 0x809   :  { %v7608_v50 = vadd.f32 %v11833_v16, %v17256_v11  ;;  %12138 = vmatprep.mubr.f32.mxu1 %v8235_v41  ;;  %v17506_v51 = vadd.f32 %v7065_v54, %v6606_v60 }
 0x80a   :  { %v7296_v55 = vpop.f32.mrf.mxu1  ;;  %v11958_v31 = vpop.f32.mrf.mxu0  ;;  %12231 = vmatmul.mubr.msk.f32.gmra.mxu0 %vm152_vm0, %v19766_v33  ;;  %v19768_v33 = vld [vmem:[#allocation45_spill] sm:$0xff] }
 0x80b   :  { %v7607_v42 = vadd.f32 %v7296_v55, %v17259_v13  ;;  %v17511_v38 = vadd.f32 %v11958_v31, %v7606_v23  ;;  %12233 = vmatprep.mubr.msk.f32.mxu0 %vm152_vm0, %v19767_v19  ;;  %v19769_v31 = vld [vmem:[#allocation46_spill] sm:$0xff]  ;;  %v8240_v19 = vld [vmem:[#allocation3 + $0x24a] sm:$0xff] }
 0x80c   :  { %v11836_v52 = vpop.f32.mrf.mxu1  ;;  %12139 = vmatmul.mubr.f32.gmra.mxu1 %v8236_v24  ;;  %v7816_v60 = vpop.f32.mrf.mxu0  ;;  %v8239_v24 = vld [vmem:[#allocation3 + $0x242] sm:$0xff] }
 0x80d   :  { %v7610_v11 = vadd.f32 %v11836_v52, %v17262_v29  ;;  %12141 = vmatprep.mubr.f32.mxu1 %v8237_v4  ;;  %v17516_v41 = vadd.f32 %v7816_v60, %v7605_v36 }
 0x80e   :  { %v7306_v16 = vpop.f32.mrf.mxu1  ;;  %v11961_v54 = vpop.f32.mrf.mxu0  ;;  %12234 = vmatmul.mubr.msk.f32.gmra.mxu0 %vm152_vm0, %v19768_v33  ;;  %v19770_v33 = vld [vmem:[#allocation47_spill] sm:$0xff] }
 0x80f   :  { %v7609_v13 = vadd.f32 %v7306_v16, %v17265_v22  ;;  %v17521_v23 = vadd.f32 %v11961_v54, %v7608_v50  ;;  %12236 = vmatprep.mubr.msk.f32.mxu0 %vm152_vm0, %v19769_v31  ;;  %v19771_v54 = vld [vmem:[#allocation48_spill] sm:$0xff]  ;;  %v8242_v31 = vld [vmem:[#allocation3 + $0x262] sm:$0xff] }
 0x810   :  { %v11839_v55 = vpop.f32.mrf.mxu1  ;;  %12142 = vmatmul.mubr.f32.gmra.mxu1 %v8238_v17  ;;  %v7826_v36 = vpop.f32.mrf.mxu0  ;;  %v8241_v17 = vld [vmem:[#allocation3 + $0x25a] sm:$0xff] }
 0x811   :  { %v7612_v29 = vadd.f32 %v11839_v55, %v17268_v59  ;;  %12144 = vmatprep.mubr.f32.mxu1 %v8239_v24  ;;  %v17526_v4 = vadd.f32 %v7826_v36, %v7607_v42 }
 0x812   :  { %v7316_v52 = vpop.f32.mrf.mxu1  ;;  %v11964_v60 = vpop.f32.mrf.mxu0  ;;  %12237 = vmatmul.mubr.msk.f32.gmra.mxu0 %vm152_vm0, %v19770_v33  ;;  %v19773_v33 = vld [vmem:[#allocation49_spill] sm:$0xff] }
 0x813   :  { %v7611_v22 = vadd.f32 %v7316_v52, %v17271_v45  ;;  %v17531_v50 = vadd.f32 %v11964_v60, %v7610_v11  ;;  %12239 = vmatprep.mubr.msk.f32.mxu0 %vm152_vm0, %v19771_v54  ;;  %v19775_v60 = vld [vmem:[#allocation50_spill] sm:$0xff] }
 0x814   :  { %v11842_v16 = vpop.f32.mrf.mxu1  ;;  %12145 = vmatmul.mubr.f32.gmra.mxu1 %v8240_v19  ;;  %v7836_v42 = vpop.f32.mrf.mxu0  ;;  %v8243_v19 = vld [vmem:[#allocation3 + $0x272] sm:$0xff] }
 0x815   :  { %v7614_v59 = vadd.f32 %v11842_v16, %v17274_v8  ;;  %12147 = vmatprep.mubr.f32.mxu1 %v8241_v17  ;;  %v17536_v24 = vadd.f32 %v7836_v42, %v7609_v13  ;;  %v8244_v42 = vld [vmem:[#allocation3 + $0x27a] sm:$0xff] }
 0x816   :  { %v7326_v55 = vpop.f32.mrf.mxu1  ;;  %v11967_v36 = vpop.f32.mrf.mxu0  ;;  %12240 = vmatmul.mubr.msk.f32.gmra.mxu0 %vm152_vm0, %v19773_v33  ;;  %v19778_v33 = vld [vmem:[#allocation51_spill] sm:$0xff] }
 0x817   :  { %19772 = vst [vmem:[#allocation16_spill] sm:$0xff] %v17536_v24  ;;  %v7613_v45 = vadd.f32 %v7326_v55, %v17277_v34  ;;  %v17541_v11 = vadd.f32 %v11967_v36, %v7612_v29  ;;  %12242 = vmatprep.mubr.msk.f32.mxu0 %vm152_vm0, %v19775_v60  ;;  %v19777_v34 = vld [vmem:[#allocation89_spill] sm:$0xff]  ;;  %v8245_v24 = vld [vmem:[#allocation3 + $0x28a] sm:$0xff] }
 0x818   :  { %v11845_v52 = vpop.f32.mrf.mxu1  ;;  %12148 = vmatmul.mubr.f32.gmra.mxu1 %v8242_v31  ;;  %v7846_v13 = vpop.f32.mrf.mxu0 }
 0x819   :  { %19774 = vst [vmem:[#allocation17_spill] sm:$0xff] %v17541_v11  ;;  %v7616_v8 = vadd.f32 %v11845_v52, %v17280_v48  ;;  %12150 = vmatprep.mubr.f32.mxu1 %v8243_v19  ;;  %v17546_v17 = vadd.f32 %v7846_v13, %v7611_v22  ;;  %v19779_v48 = vld [vmem:[#allocation94_spill] sm:$0xff]  ;;  %v19780_v52 = vld [vmem:[#allocation52_spill] sm:$0xff] }
 0x81a   :  { %v7336_v16 = vpop.f32.mrf.mxu1  ;;  %v11970_v55 = vpop.f32.mrf.mxu0  ;;  %12243 = vmatmul.mubr.msk.f32.gmra.mxu0 %vm152_vm0, %v19778_v33  ;;  %v19782_v13 = vld [vmem:[#allocation74_spill] sm:$0xff]  ;;  %v19783_v33 = vld [vmem:[#allocation53_spill] sm:$0xff] }
 0x81b   :  { %19776 = vst [vmem:[#allocation18_spill] sm:$0xff] %v17546_v17  ;;  %v7615_v54 = vadd.f32 %v7336_v16, %v19777_v34  ;;  %v17551_v29 = vadd.f32 %v11970_v55, %v7614_v59  ;;  %12245 = vmatprep.mubr.msk.f32.mxu0 %vm152_vm0, %v19780_v52  ;;  %v8246_v34 = vld [vmem:[#allocation3 + $0x292] sm:$0xff]  ;;  %v8247_v11 = vld [vmem:[#allocation3 + $0x2a2] sm:$0xff] }
 0x81c   :  { %v11848_v31 = vpop.f32.mrf.mxu1  ;;  %12151 = vmatmul.mubr.f32.gmra.mxu1 %v8244_v42  ;;  %v7856_v22 = vpop.f32.mrf.mxu0  ;;  %v19784_v55 = vld [vmem:[#allocation54_spill] sm:$0xff]  ;;  %v19785_v52 = vld [vmem:[#allocation84_spill] sm:$0xff] }
 0x81d   :  { %v7618_v36 = vadd.f32 %v11848_v31, %v19779_v48  ;;  %12153 = vmatprep.mubr.f32.mxu1 %v8245_v24  ;;  %v17556_v60 = vadd.f32 %v7856_v22, %v7613_v45 }
 0x81e   :  { %v7346_v19 = vpop.f32.mrf.mxu1  ;;  %v11973_v42 = vpop.f32.mrf.mxu0  ;;  %12246 = vmatmul.mubr.msk.f32.gmra.mxu0 %vm152_vm0, %v19783_v33  ;;  %v19786_v33 = vld [vmem:[#allocation55_spill] sm:$0xff] }
 0x81f   :  { %19781 = vst [vmem:[#allocation19_spill] sm:$0xff] %v17556_v60  ;;  %v7617_v16 = vadd.f32 %v7346_v19, %v19782_v13  ;;  %v17561_v59 = vadd.f32 %v11973_v42, %v7616_v8  ;;  %12248 = vmatprep.mubr.msk.f32.mxu0 %vm152_vm0, %v19784_v55  ;;  %v8248_v19 = vld [vmem:[#allocation3 + $0x2aa] sm:$0xff]  ;;  %v8249_v60 = vld [vmem:[#allocation3 + $0x2ba] sm:$0xff] }
 0x820   :  { %v11851_v17 = vpop.f32.mrf.mxu1  ;;  %12154 = vmatmul.mubr.f32.gmra.mxu1 %v8246_v34  ;;  %v7866_v45 = vpop.f32.mrf.mxu0  ;;  %v19788_v55 = vld [vmem:[#allocation77_spill] sm:$0xff] }
 0x821   :  { %v7620_v24 = vadd.f32 %v11851_v17, %v17292_v46  ;;  %12156 = vmatprep.mubr.f32.mxu1 %v8247_v11  ;;  %v17566_v48 = vadd.f32 %v7866_v45, %v7615_v54  ;;  %v19787_v11 = vld [vmem:[#allocation56_spill] sm:$0xff] }
 0x822   :  { %v7356_v31 = vpop.f32.mrf.mxu1  ;;  %v11976_v13 = vpop.f32.mrf.mxu0  ;;  %12249 = vmatmul.mubr.msk.f32.gmra.mxu0 %vm152_vm0, %v19786_v33 }
 0x823   :  { %v7619_v22 = vadd.f32 %v7356_v31, %v19785_v52  ;;  %v17571_v8 = vadd.f32 %v11976_v13, %v7618_v36  ;;  %12251 = vmatprep.mubr.msk.f32.mxu0 %vm152_vm0, %v19787_v11  ;;  %v8250_v31 = vld [vmem:[#allocation3 + $0x2c2] sm:$0xff]  ;;  %v8251_v36 = vld [vmem:[#allocation3 + $0x2d2] sm:$0xff] }
 0x824   :  { %v11854_v34 = vpop.f32.mrf.mxu1  ;;  %12157 = vmatmul.mubr.f32.gmra.mxu1 %v8248_v19  ;;  %v7876_v17 = vpop.f32.mrf.mxu0  ;;  %v19789_v13 = vld [vmem:[#allocation57_spill] sm:$0xff] }
 0x825   :  { %v17574_v46 = vadd.f32 %v11854_v34, %v17298_v39  ;;  %12159 = vmatprep.mubr.f32.mxu1 %v8249_v60  ;;  %v17578_v42 = vadd.f32 %v7876_v17, %v7617_v16  ;;  %v19790_v34 = vld [vmem:[#allocation58_spill] sm:$0xff] }
 0x826   :  { %v7366_v54 = vpop.f32.mrf.mxu1  ;;  %v11979_v52 = vpop.f32.mrf.mxu0  ;;  %12252 = vmatmul.mubr.msk.f32.gmra.mxu0 %vm152_vm0, %v19789_v13  ;;  %v8254_v13 = vld [vmem:[#allocation3 + $0x2f2] sm:$0xff] }
 0x827   :  { %v17581_v45 = vadd.f32 %v7366_v54, %v19788_v55  ;;  %v17585_v39 = vadd.f32 %v11979_v52, %v7620_v24  ;;  %12254 = vmatprep.mubr.msk.f32.mxu0 %vm152_vm0, %v19790_v34  ;;  %v8252_v54 = vld [vmem:[#allocation3 + $0x2da] sm:$0xff]  ;;  %v8253_v24 = vld [vmem:[#allocation3 + $0x2ea] sm:$0xff] }
 0x828   :  { %v11857_v19 = vpop.f32.mrf.mxu1  ;;  %12160 = vmatmul.mubr.f32.gmra.mxu1 %v8250_v31  ;;  %v7886_v16 = vpop.f32.mrf.mxu0  ;;  %v19791_v52 = vld [vmem:[#allocation59_spill] sm:$0xff] }
 0x829   :  { %v17588_v60 = vadd.f32 %v11857_v19, %v17304_v9  ;;  %12162 = vmatprep.mubr.f32.mxu1 %v8251_v36  ;;  %v17592_v11 = vadd.f32 %v7886_v16, %v7619_v22  ;;  %v19792_v19 = vld [vmem:[#allocation60_spill] sm:$0xff] }
 0x82a   :  { %v7376_v33 = vpop.f32.mrf.mxu1  ;;  %v17597_v55 = vpop.f32.mrf.mxu0  ;;  %12255 = vmatmul.mubr.msk.f32.gmra.mxu0 %vm152_vm0, %v19791_v52 }
 0x82b   :  { %v17595_v17 = vadd.f32 %v7376_v33, %v17307_v14  ;;  %12257 = vmatprep.mubr.msk.f32.mxu0 %vm152_vm0, %v19792_v19  ;;  %v8255_v33 = vld [vmem:[#allocation3 + $0x302] sm:$0xff]  ;;  %v8256_v19 = vld [vmem:[#allocation3 + $0x30a] sm:$0xff] }
 0x82c   :  { %v11860_v31 = vpop.f32.mrf.mxu1  ;;  %12163 = vmatmul.mubr.f32.gmra.mxu1 %v8252_v54  ;;  %v17606_v22 = vpop.f32.mrf.mxu0  ;;  %v19794_v54 = vld [vmem:[#allocation61_spill] sm:$0xff] }
 0x82d   :  { %v17602_v9 = vadd.f32 %v11860_v31, %v17310_v1  ;;  %12165 = vmatprep.mubr.f32.mxu1 %v8253_v24  ;;  %v19796_v31 = vld [vmem:[#allocation62_spill] sm:$0xff] }
 0x82e   :  { %v7386_v14 = vpop.f32.mrf.mxu1  ;;  %v17611_v34 = vpop.f32.mrf.mxu0  ;;  %12258 = vmatmul.mubr.msk.f32.gmra.mxu0 %vm152_vm0, %v19794_v54  ;;  %v19798_v54 = vld [vmem:[#allocation63_spill] sm:$0xff] }
 0x82f   :  { %v17609_v36 = vadd.f32 %v7386_v14, %v17313_v10  ;;  %12260 = vmatprep.mubr.msk.f32.mxu0 %vm152_vm0, %v19796_v31 }
 0x830   :  { %v11863_v16 = vpop.f32.mrf.mxu1  ;;  %12166 = vmatmul.mubr.f32.gmra.mxu1 %v8254_v13  ;;  %v17620_v24 = vpop.f32.mrf.mxu0 }
 0x831   :  { %19793 = vst [vmem:[#allocation20_spill] sm:$0xff] %v17609_v36  ;;  %v17616_v1 = vadd.f32 %v11863_v16, %v17316_v21  ;;  %12168 = vmatprep.mubr.f32.mxu1 %v8255_v33  ;;  %v8257_v36 = vld [vmem:[#allocation3 + $0x31a] sm:$0xff]  ;;  %v19800_v16 = vld [vmem:[#allocation64_spill] sm:$0xff] }
 0x832   :  { %v7396_v10 = vpop.f32.mrf.mxu1  ;;  %v17625_v14 = vpop.f32.mrf.mxu0  ;;  %12261 = vmatmul.mubr.msk.f32.gmra.mxu0 %vm152_vm0, %v19798_v54  ;;  %v19802_v54 = vld [vmem:[#allocation65_spill] sm:$0xff] }
 0x833   :  { %19795 = vst [vmem:[#allocation91_spill] sm:$0xff] %v17616_v1  ;;  %v17623_v52 = vadd.f32 %v7396_v10, %v17319_v20  ;;  %12263 = vmatprep.mubr.msk.f32.mxu0 %vm152_vm0, %v19800_v16  ;;  %v8258_v10 = vld [vmem:[#allocation3 + $0x322] sm:$0xff]  ;;  %v8259_v1 = vld [vmem:[#allocation3 + $0x332] sm:$0xff]  ;;  %v8261_v16 = vld [vmem:[#allocation3 + $0x34a] sm:$0xff] }
 0x834   :  { %v11866_v13 = vpop.f32.mrf.mxu1  ;;  %12169 = vmatmul.mubr.f32.gmra.mxu1 %v8256_v19  ;;  %v17634_v33 = vpop.f32.mrf.mxu0 }
 0x835   :  { %19797 = vst [vmem:[#allocation21_spill] sm:$0xff] %v17623_v52  ;;  %v17630_v21 = vadd.f32 %v11866_v13, %v17322_v15  ;;  %12171 = vmatprep.mubr.f32.mxu1 %v8257_v36  ;;  %v19804_v36 = vld [vmem:[#allocation66_spill] sm:$0xff] }
 0x836   :  { %v7406_v20 = vpop.f32.mrf.mxu1  ;;  %v17639_v52 = vpop.f32.mrf.mxu0  ;;  %12264 = vmatmul.mubr.msk.f32.gmra.mxu0 %vm152_vm0, %v19802_v54  ;;  %v19806_v54 = vld [vmem:[#allocation67_spill] sm:$0xff] }
 0x837   :  { %19799 = vst [vmem:[#allocation90_spill] sm:$0xff] %v17630_v21  ;;  %v17637_v31 = vadd.f32 %v7406_v20, %v17325_v25  ;;  %12266 = vmatprep.mubr.msk.f32.mxu0 %vm152_vm0, %v19804_v36 }
 0x838   :  { %v11869_v19 = vpop.f32.mrf.mxu1  ;;  %12172 = vmatmul.mubr.f32.gmra.mxu1 %v8258_v10  ;;  %v17648_v13 = vpop.f32.mrf.mxu0 }
 0x839   :  { %19801 = vst [vmem:[#allocation22_spill] sm:$0xff] %v17637_v31  ;;  %v17644_v15 = vadd.f32 %v11869_v19, %v17329_v12  ;;  %12174 = vmatprep.mubr.f32.mxu1 %v8259_v1  ;;  %v8260_v31 = vld [vmem:[#allocation3 + $0x33a] sm:$0xff]  ;;  %v8262_v1 = vld [vmem:[#allocation3 + $0x352] sm:$0xff] }
 0x83a   :  { %v7416_v25 = vpop.f32.mrf.mxu1  ;;  %v17653_v10 = vpop.f32.mrf.mxu0  ;;  %12267 = vmatmul.mubr.msk.f32.gmra.mxu0 %vm152_vm0, %v19806_v54  ;;  %v19807_v19 = vld [vmem:[#allocation68_spill] sm:$0xff] }
 0x83b   :  { %19803 = vst [vmem:[#allocation93_spill] sm:$0xff] %v17644_v15  ;;  %v17651_v20 = vadd.f32 %v7416_v25, %v17332_v27  ;;  %12269 = vmatprep.mubr.msk.f32.mxu0 %vm152_vm0, %v19807_v19  ;;  %v19809_v15 = vld [vmem:[#allocation69_spill] sm:$0xff] }
 0x83c   :  { %v11872_v21 = vpop.f32.mrf.mxu1  ;;  %12175 = vmatmul.mubr.f32.gmra.mxu1 %v8260_v31  ;;  %v17662_v36 = vpop.f32.mrf.mxu0 }
 0x83d   :  { %19805 = vst [vmem:[#allocation23_spill] sm:$0xff] %v17651_v20  ;;  %v17658_v12 = vadd.f32 %v11872_v21, %v17335_v26  ;;  %12177 = vmatprep.mubr.f32.mxu1 %v8261_v16  ;;  %v19811_v21 = vld [vmem:[#allocation70_spill] sm:$0xff] }
 0x83e   :  { %v7426_v27 = vpop.f32.mrf.mxu1  ;;  %v17667_v20 = vpop.f32.mrf.mxu0  ;;  %12270 = vmatmul.mubr.msk.f32.gmra.mxu0 %vm152_vm0, %v19809_v15 }
 0x83f   :  { %v17665_v25 = vadd.f32 %v7426_v27, %v17338_v2  ;;  %12272 = vmatprep.mubr.msk.f32.mxu0 %vm152_vm0, %v19811_v21 }
 0x840   :  { %v11875_v31 = vpop.f32.mrf.mxu1  ;;  %12178 = vmatmul.mubr.f32.gmra.mxu1 %v8262_v1  ;;  %v17676_v16 = vpop.f32.mrf.mxu0 }
 0x841   :  { %19808 = vst [vmem:[#allocation81_spill] sm:$0xff] %v17665_v25  ;;  %v17672_v26 = vadd.f32 %v11875_v31, %v17341_v57  ;;  %v19813_v25 = vld [vmem:[#allocation71_spill] sm:$0xff]  ;;  %v19815_v57 = vld [vmem:[#allocation72_spill] sm:$0xff] }
 0x842   :  { %v7436_v54 = vpop.f32.mrf.mxu1  ;;  %v17681_v2 = vpop.f32.mrf.mxu0  ;;  %12273 = vmatmul.mubr.msk.f32.gmra.mxu0 %vm152_vm0, %v19813_v25 }
 0x843   :  { %19810 = vst [vmem:[#allocation24_spill] sm:$0xff] %v17672_v26  ;;  %v17679_v19 = vadd.f32 %v7436_v54, %v17346_v32  ;;  %12275 = vmatprep.mubr.msk.f32.mxu0 %vm152_vm0, %v19815_v57 }
 0x844   :  { %v11878_v27 = vpop.f32.mrf.mxu1  ;;  %v17690_v1 = vpop.f32.mrf.mxu0 }
 0x845   :  { %19812 = vst [vmem:[#allocation80_spill] sm:$0xff] %v17679_v19  ;;  %v17686_v15 = vadd.f32 %v11878_v27, %v17351_v47  ;;  %v19817_v19 = vld [vmem:[#allocation73_spill] sm:$0xff] }
 0x846   :  { %v7446_v31 = vpop.f32.mrf.mxu1  ;;  %v17695_v32 = vpop.f32.mrf.mxu0  ;;  %12276 = vmatmul.mubr.msk.f32.gmra.mxu0 %vm152_vm0, %v19817_v19 }
 0x847   :  { %19814 = vst [vmem:[#allocation25_spill] sm:$0xff] %v17686_v15  ;;  %v17693_v21 = vadd.f32 %v7446_v31, %v17356_v58 }
 0x848   :  { %v11881_v54 = vpop.f32.mrf.mxu1  ;;  %v17702_v47 = vpop.f32.mrf.mxu0 }
 0x849   :  { %19816 = vst [vmem:[#allocation75_spill] sm:$0xff] %v17693_v21  ;;  %v17700_v25 = vadd.f32 %v11881_v54, %v17361_v37 }
 0x84a   :  { %v7456_v27 = vpop.f32.mrf.mxu1  ;;  %v17707_v15 = vpop.f32.mrf.mxu0 }
 0x84b   :  { %19818 = vst [vmem:[#allocation26_spill] sm:$0xff] %v17700_v25  ;;  %v17705_v57 = vadd.f32 %v7456_v27, %v17366_v18 }
 0x84c   :  { %v11884_v26 = vpop.f32.mrf.mxu1  ;;  %v17712_v31 = vpop.f32.mrf.mxu0 }
 0x84d   :  { %19819 = vst [vmem:[#allocation83_spill] sm:$0xff] %v17705_v57  ;;  %v17710_v58 = vadd.f32 %v11884_v26, %v17371_v53 }
 0x84e   :  { %v7466_v21 = vpop.f32.mrf.mxu1  ;;  %v17717_v37 = vpop.f32.mrf.mxu0 }
 0x84f   :  { %19820 = vst [vmem:[#allocation27_spill] sm:$0xff] %v17710_v58  ;;  %v17715_v19 = vadd.f32 %v7466_v21, %v17376_v44  ;;  %19822 = vst [vmem:[#allocation28_spill] sm:$0xff] %v17717_v37 }
 0x850   :  { %v11887_v54 = vpop.f32.mrf.mxu1  ;;  %v17722_v18 = vpop.f32.mrf.mxu0 }
 0x851   :  { %19821 = vst [vmem:[#allocation82_spill] sm:$0xff] %v17715_v19  ;;  %v17720_v25 = vadd.f32 %v11887_v54, %v17381_v49  ;;  %19824 = vst [vmem:[#allocation29_spill] sm:$0xff] %v17722_v18  ;;  %v19829_v19 = vld [vmem:[#allocation76_spill] sm:$0xff] }
 0x852   :  { %v7476_v27 = vpop.f32.mrf.mxu1  ;;  %v17727_v53 = vpop.f32.mrf.mxu0 }
 0x853   :  { %19823 = vst [vmem:[#allocation85_spill] sm:$0xff] %v17720_v25  ;;  %v17725_v57 = vadd.f32 %v7476_v27, %v17386_v5  ;;  %19826 = vst [vmem:[#allocation87_spill] sm:$0xff] %v17727_v53  ;;  %v19832_v25 = vld [vmem:[#allocation79_spill] sm:$0xff] }
 0x854   :  { %v11890_v26 = vpop.f32.mrf.mxu1  ;;  %v17732_v44 = vpop.f32.mrf.mxu0 }
 0x855   :  { %19825 = vst [vmem:[#allocation30_spill] sm:$0xff] %v17725_v57  ;;  %v17730_v58 = vadd.f32 %v11890_v26, %v17391_v62  ;;  %19828 = vst [vmem:[#allocation86_spill] sm:$0xff] %v17732_v44  ;;  %v19835_v57 = vld [vmem:[#allocation78_spill] sm:$0xff] }
 0x856   :  { %v7486_v21 = vpop.f32.mrf.mxu1  ;;  %v17737_v49 = vpop.f32.mrf.mxu0 }
 0x857   :  { %19827 = vst [vmem:[#allocation31_spill] sm:$0xff] %v17730_v58  ;;  %v17735_v37 = vadd.f32 %v7486_v21, %v19829_v19  ;;  %19831 = vst [vmem:[#allocation92_spill] sm:$0xff] %v17737_v49  ;;  %v19838_v58 = vld [vmem:[#allocation88_spill] sm:$0xff] }
 0x858   :  { %v11893_v54 = vpop.f32.mrf.mxu1  ;;  %v17742_v5 = vpop.f32.mrf.mxu0 }
 0x859   :  { %19830 = vst [vmem:[#allocation32_spill] sm:$0xff] %v17735_v37  ;;  %v17740_v18 = vadd.f32 %v11893_v54, %v19832_v25  ;;  %19834 = vst [vmem:[#allocation34_spill] sm:$0xff] %v17742_v5  ;;  %v19840_v37 = vld [vmem:[#allocation10_spill] sm:$0xff] }
 0x85a   :  { %v7496_v27 = vpop.f32.mrf.mxu1  ;;  %v17747_v62 = vpop.f32.mrf.mxu0 }
 0x85b   :  { %19833 = vst [vmem:[#allocation33_spill] sm:$0xff] %v17740_v18  ;;  %v17745_v53 = vadd.f32 %v7496_v27, %v19835_v57  ;;  %19837 = vst [vmem:[#allocation36_spill] sm:$0xff] %v17747_v62  ;;  %v19843_v18 = vld [vmem:[#allocation11_spill] sm:$0xff] }
 0x85c   :  { %v11896_v26 = vpop.f32.mrf.mxu1  ;;  %v17752_v19 = vpop.f32.mrf.mxu0 }
 0x85d   :  { %19836 = vst [vmem:[#allocation35_spill] sm:$0xff] %v17745_v53  ;;  %v17750_v44 = vadd.f32 %v11896_v26, %v19838_v58  ;;  %v19846_v53 = vld [vmem:[#allocation12_spill] sm:$0xff] }
 0x85e   :  { %v7506_v21 = vpop.f32.mrf.mxu1  ;;  %v17757_v25 = vpop.f32.mrf.mxu0 }
 0x85f   :  { %19839 = vst [vmem:[#allocation37_spill] sm:$0xff] %v17750_v44  ;;  %v17755_v49 = vadd.f32 %v7506_v21, %v19840_v37  ;;  %19842 = vst [vmem:[#allocation39_spill] sm:$0xff] %v17757_v25 }
 0x860   :  { %v11899_v54 = vpop.f32.mrf.mxu1  ;;  %v17762_v57 = vpop.f32.mrf.mxu0 }
 0x861   :  { %19841 = vst [vmem:[#allocation38_spill] sm:$0xff] %v17755_v49  ;;  %v17760_v5 = vadd.f32 %v11899_v54, %v19843_v18  ;;  %19845 = vst [vmem:[#allocation41_spill] sm:$0xff] %v17762_v57  ;;  %v19850_v49 = vld [vmem:[#allocation13_spill] sm:$0xff] }
 0x862   :  { %v7516_v27 = vpop.f32.mrf.mxu1  ;;  %v17767_v58 = vpop.f32.mrf.mxu0 }
 0x863   :  { %19844 = vst [vmem:[#allocation40_spill] sm:$0xff] %v17760_v5  ;;  %v17765_v62 = vadd.f32 %v7516_v27, %v19846_v53  ;;  %19848 = vst [vmem:[#allocation43_spill] sm:$0xff] %v17767_v58  ;;  %v19852_v5 = vld [vmem:[#allocation14_spill] sm:$0xff] }
 0x864   :  { %v11902_v26 = vpop.f32.mrf.mxu1  ;;  %v17772_v37 = vpop.f32.mrf.mxu0 }
 0x865   :  { %19847 = vst [vmem:[#allocation42_spill] sm:$0xff] %v17765_v62  ;;  %v17770_v44 = vadd.f32 %v11902_v26, %v17431_v7  ;;  %v19854_v62 = vld [vmem:[#allocation15_spill] sm:$0xff] }
 0x866   :  { %v7526_v21 = vpop.f32.mrf.mxu1  ;;  %v17777_v18 = vpop.f32.mrf.mxu0 }
 0x867   :  { %19849 = vst [vmem:[#allocation44_spill] sm:$0xff] %v17770_v44  ;;  %v17775_v25 = vadd.f32 %v7526_v21, %v19850_v49 }
 0x868   :  { %v11905_v54 = vpop.f32.mrf.mxu1  ;;  %v17782_v53 = vpop.f32.mrf.mxu0 }
 0x869   :  { %19851 = vst [vmem:[#allocation45_spill] sm:$0xff] %v17775_v25  ;;  %v17780_v57 = vadd.f32 %v11905_v54, %v19852_v5 }
 0x86a   :  { %v7536_v27 = vpop.f32.mrf.mxu1  ;;  %v17787_v7 = vpop.f32.mrf.mxu0 }
 0x86b   :  { %19853 = vst [vmem:[#allocation46_spill] sm:$0xff] %v17780_v57  ;;  %v17785_v58 = vadd.f32 %v7536_v27, %v19854_v62 }
 0x86c   :  { %v11908_v26 = vpop.f32.mrf.mxu1  ;;  %v17792_v49 = vpop.f32.mrf.mxu0 }
 0x86d   :  { %19855 = vst [vmem:[#allocation47_spill] sm:$0xff] %v17785_v58  ;;  %v17790_v44 = vadd.f32 %v11908_v26, %v17451_v40 }
 0x86e   :  { %v7546_v21 = vpop.f32.mrf.mxu1  ;;  %v17797_v5 = vpop.f32.mrf.mxu0 }
 0x86f   :  { %19856 = vst [vmem:[#allocation48_spill] sm:$0xff] %v17790_v44  ;;  %v17795_v25 = vadd.f32 %v7546_v21, %v17456_v61 }
 0x870   :  { %v11911_v54 = vpop.f32.mrf.mxu1  ;;  %v17802_v62 = vpop.f32.mrf.mxu0 }
 0x871   :  { %19857 = vst [vmem:[#allocation49_spill] sm:$0xff] %v17795_v25  ;;  %v17800_v57 = vadd.f32 %v11911_v54, %v17461_v28 }
 0x872   :  { %v7556_v27 = vpop.f32.mrf.mxu1  ;;  %v17807_v40 = vpop.f32.mrf.mxu0 }
 0x873   :  { %19858 = vst [vmem:[#allocation50_spill] sm:$0xff] %v17800_v57  ;;  %v17805_v58 = vadd.f32 %v7556_v27, %v17466_v3 }
 0x874   :  { %v11914_v26 = vpop.f32.mrf.mxu1  ;;  %v17812_v61 = vpop.f32.mrf.mxu0 }
 0x875   :  { %19859 = vst [vmem:[#allocation89_spill] sm:$0xff] %v17805_v58  ;;  %v17810_v44 = vadd.f32 %v11914_v26, %v17471_v6 }
 0x876   :  { %v7566_v21 = vpop.f32.mrf.mxu1  ;;  %v17817_v28 = vpop.f32.mrf.mxu0 }
 0x877   :  { %19860 = vst [vmem:[#allocation51_spill] sm:$0xff] %v17810_v44  ;;  %v17815_v25 = vadd.f32 %v7566_v21, %v17476_v43 }
 0x878   :  { %v11917_v54 = vpop.f32.mrf.mxu1  ;;  %v17822_v3 = vpop.f32.mrf.mxu0 }
 0x879   :  { %19861 = vst [vmem:[#allocation94_spill] sm:$0xff] %v17815_v25  ;;  %v17820_v57 = vadd.f32 %v11917_v54, %v17481_v35 }
 0x87a   :  { %v7576_v27 = vpop.f32.mrf.mxu1  ;;  %v17827_v6 = vpop.f32.mrf.mxu0 }
 0x87b   :  { %19862 = vst [vmem:[#allocation52_spill] sm:$0xff] %v17820_v57  ;;  %v17825_v58 = vadd.f32 %v7576_v27, %v17486_v30 }
 0x87c   :  { %v11920_v26 = vpop.f32.mrf.mxu1  ;;  %v17832_v43 = vpop.f32.mrf.mxu0 }
 0x87d   :  { %19863 = vst [vmem:[#allocation74_spill] sm:$0xff] %v17825_v58  ;;  %v17830_v44 = vadd.f32 %v11920_v26, %v17491_v0  ;;  %19865 = vst [vmem:[#allocation54_spill] sm:$0xff] %v17832_v43 }
 0x87e   :  { %v7586_v21 = vpop.f32.mrf.mxu1  ;;  %v17837_v35 = vpop.f32.mrf.mxu0 }
 0x87f   :  { %19864 = vst [vmem:[#allocation53_spill] sm:$0xff] %v17830_v44  ;;  %v17835_v25 = vadd.f32 %v7586_v21, %v17496_v56 }
 0x880   :  { %v11923_v54 = vpop.f32.mrf.mxu1  ;;  %v17842_v30 = vpop.f32.mrf.mxu0 }
 0x881   :  { %19866 = vst [vmem:[#allocation84_spill] sm:$0xff] %v17835_v25  ;;  %v17840_v57 = vadd.f32 %v11923_v54, %v17501_v63  ;;  %19868 = vst [vmem:[#allocation56_spill] sm:$0xff] %v17842_v30 }
 0x882   :  { %v7596_v27 = vpop.f32.mrf.mxu1  ;;  %v17847_v0 = vpop.f32.mrf.mxu0 }
 0x883   :  { %19867 = vst [vmem:[#allocation55_spill] sm:$0xff] %v17840_v57  ;;  %v17845_v58 = vadd.f32 %v7596_v27, %v17506_v51  ;;  %19870 = vst [vmem:[#allocation57_spill] sm:$0xff] %v17847_v0 }
 0x884   :  { %v12086_v26 = vpop.f32.mrf.mxu1  ;;  %v17849_v44 = vpop.f32.mrf.mxu0 }
 0x885   :  { %19869 = vst [vmem:[#allocation77_spill] sm:$0xff] %v17845_v58  ;;  %19871 = vst [vmem:[#allocation58_spill] sm:$0xff] %v17849_v44  ;;  %v17852_v56 = vadd.f32 %v12086_v26, %v17511_v38 }
 0x886   :  { %v8346_v43 = vpop.f32.mrf.mxu1  ;;  %v17857_v63 = vpop.f32.mrf.mxu0 }
 0x887   :  { %19872 = vst [vmem:[#allocation59_spill] sm:$0xff] %v17852_v56  ;;  %v17855_v21 = vadd.f32 %v8346_v43, %v17516_v41  ;;  %19874 = vst [vmem:[#allocation61_spill] sm:$0xff] %v17857_v63  ;;  %v8799_v58 = vmul.f32 %v17852_v56, %v17852_v56 }
 0x888   :  { %v12089_v54 = vpop.f32.mrf.mxu1  ;;  %v17861_v51 = vpop.f32.mrf.mxu0 }
 0x889   :  { %19873 = vst [vmem:[#allocation60_spill] sm:$0xff] %v17855_v21  ;;  %v8798_v57 = vmul.f32 %v17855_v21, %v17855_v21  ;;  %19875 = vst [vmem:[#allocation62_spill] sm:$0xff] %v17861_v51  ;;  %v8729_v44 = vadd.f32 %v17852_v56, %v17855_v21  ;;  %v17868_v38 = vadd.f32 %v12089_v54, %v17521_v23 }
 0x88a   :  { %v8356_v27 = vpop.f32.mrf.mxu1  ;;  %v17873_v26 = vpop.f32.mrf.mxu0 }
 0x88b   :  { %19876 = vst [vmem:[#allocation63_spill] sm:$0xff] %v17868_v38  ;;  %v17871_v41 = vadd.f32 %v8356_v27, %v17526_v4  ;;  %19878 = vst [vmem:[#allocation65_spill] sm:$0xff] %v17873_v26  ;;  %v8862_v63 = vadd.f32 %v8799_v58, %v8798_v57  ;;  %v8801_v23 = vmul.f32 %v17868_v38, %v17868_v38  ;;  %v19880_v27 = vld [vmem:[#allocation16_spill] sm:$0xff] }
 0x88c   :  { %v12092_v43 = vpop.f32.mrf.mxu1  ;;  %v17881_v56 = vpop.f32.mrf.mxu0 }
 0x88d   :  { %19877 = vst [vmem:[#allocation64_spill] sm:$0xff] %v17871_v41  ;;  %v8730_v25 = vadd.f32 %v8729_v44, %v17871_v41  ;;  %v8800_v51 = vmul.f32 %v17871_v41, %v17871_v41  ;;  %v17879_v0 = vadd.f32 %v12092_v43, %v17531_v50  ;;  %19879 = vst [vmem:[#allocation66_spill] sm:$0xff] %v17881_v56 }
 0x88e   :  { %v8366_v30 = vpop.f32.mrf.mxu1  ;;  %v17889_v44 = vpop.f32.mrf.mxu0 }
 0x88f   :  { %v8731_v4 = vadd.f32 %v8730_v25, %v17868_v38  ;;  %v8863_v54 = vadd.f32 %v8862_v63, %v8800_v51  ;;  %v17887_v26 = vadd.f32 %v8366_v30, %v19880_v27  ;;  %19882 = vst [vmem:[#allocation68_spill] sm:$0xff] %v17889_v44  ;;  %v8803_v43 = vmul.f32 %v17879_v0, %v17879_v0  ;;  %v19884_v63 = vld [vmem:[#allocation17_spill] sm:$0xff]  ;;  %v19885_v30 = vld [vmem:[#allocation18_spill] sm:$0xff] }
 0x890   :  { %v12095_v57 = vpop.f32.mrf.mxu1  ;;  %v17896_v21 = vpop.f32.mrf.mxu0 }
 0x891   :  { %19881 = vst [vmem:[#allocation67_spill] sm:$0xff] %v17887_v26  ;;  %v8864_v58 = vadd.f32 %v8863_v54, %v8801_v23  ;;  %v8732_v41 = vadd.f32 %v8731_v4, %v17887_v26  ;;  %v8802_v50 = vmul.f32 %v17887_v26, %v17887_v26  ;;  %19883 = vst [vmem:[#allocation69_spill] sm:$0xff] %v17896_v21 }
 0x892   :  { %v8376_v56 = vpop.f32.mrf.mxu1  ;;  %v17899_v51 = vadd.f32 %v12095_v57, %v19884_v63  ;;  %v17905_v4 = vpop.f32.mrf.mxu0 }
 0x893   :  { %v8865_v25 = vadd.f32 %v8864_v58, %v8802_v50  ;;  %v17902_v27 = vadd.f32 %v8376_v56, %v19885_v30  ;;  %v8733_v23 = vadd.f32 %v8732_v41, %v17879_v0  ;;  %19887 = vst [vmem:[#allocation71_spill] sm:$0xff] %v17905_v4  ;;  %v19889_v41 = vld [vmem:[#allocation19_spill] sm:$0xff] }
 0x894   :  { %v12098_v54 = vpop.f32.mrf.mxu1  ;;  %v17913_v57 = vpop.f32.mrf.mxu0  ;;  %v8805_v56 = vmul.f32 %v17899_v51, %v17899_v51 }
 0x895   :  { %19886 = vst [vmem:[#allocation70_spill] sm:$0xff] %v17902_v27  ;;  %v8734_v44 = vadd.f32 %v8733_v23, %v17902_v27  ;;  %v8804_v26 = vmul.f32 %v17902_v27, %v17902_v27  ;;  %v8866_v38 = vadd.f32 %v8865_v25, %v8803_v43  ;;  %v17911_v21 = vadd.f32 %v12098_v54, %v17551_v29 }
 0x896   :  { %v8386_v58 = vpop.f32.mrf.mxu1  ;;  %19888 = vst [vmem:[#allocation72_spill] sm:$0xff] %v17913_v57  ;;  %v17921_v4 = vpop.f32.mrf.mxu0 }
 0x897   :  { %v8867_v50 = vadd.f32 %v8866_v38, %v8804_v26  ;;  %v17918_v63 = vadd.f32 %v8386_v58, %v19889_v41  ;;  %v8735_v30 = vadd.f32 %v8734_v44, %v17899_v51  ;;  %19890 = vst [vmem:[#allocation73_spill] sm:$0xff] %v17921_v4  ;;  %v8807_v54 = vmul.f32 %v17911_v21, %v17911_v21 }
 0x898   :  { %v12101_v23 = vpop.f32.mrf.mxu1  ;;  %v17935_v58 = vpop.f32.mrf.mxu0 }
 0x899   :  { %v8736_v43 = vadd.f32 %v8735_v30, %v17918_v63  ;;  %v8806_v29 = vmul.f32 %v17918_v63, %v17918_v63  ;;  %v8868_v25 = vadd.f32 %v8867_v50, %v8805_v56  ;;  %v17929_v38 = vadd.f32 %v12101_v23, %v17561_v59  ;;  %19891 = vst [vmem:[#allocation76_spill] sm:$0xff] %v17935_v58 }
 0x89a   :  { %v8396_v57 = vpop.f32.mrf.mxu1 }
 0x89b   :  { %v8869_v27 = vadd.f32 %v8868_v25, %v8806_v29  ;;  %v17932_v26 = vadd.f32 %v8396_v57, %v17566_v48  ;;  %v8737_v44 = vadd.f32 %v8736_v43, %v17911_v21  ;;  %v8809_v59 = vmul.f32 %v17929_v38, %v17929_v38  ;;  %v17949_v43 = vpop.f32.mrf.mxu0 }
 0x89c   :  { %v12104_v41 = vpop.f32.mrf.mxu1  ;;  %19892 = vst [vmem:[#allocation79_spill] sm:$0xff] %v17949_v43  ;;  %v19927_v43 = vld [vmem:[#allocation86_spill] sm:$0xff] }
 0x89d   :  { %v8738_v30 = vadd.f32 %v8737_v44, %v17932_v26  ;;  %v8808_v56 = vmul.f32 %v17932_v26, %v17932_v26  ;;  %v8870_v50 = vadd.f32 %v8869_v27, %v8807_v54  ;;  %v17941_v4 = vadd.f32 %v12104_v41, %v17571_v8 }
 0x89e   :  { %v8406_v29 = vpop.f32.mrf.mxu1 }
 0x89f   :  { %v8871_v48 = vadd.f32 %v8870_v50, %v8808_v56  ;;  %v17946_v57 = vadd.f32 %v8406_v29, %v17578_v42  ;;  %v8739_v23 = vadd.f32 %v8738_v30, %v17929_v38  ;;  %v8811_v54 = vmul.f32 %v17941_v4, %v17941_v4  ;;  %v17963_v50 = vpop.f32.mrf.mxu0 }
 0x8a0   :  { %v12107_v25 = vpop.f32.mrf.mxu1  ;;  %19893 = vst [vmem:[#allocation78_spill] sm:$0xff] %v17963_v50  ;;  %v8152_v29 = vadd.f32 %v17597_v55, %v17574_v46  ;;  %v19933_v50 = vld [vmem:[#allocation30_spill] sm:$0xff] }
 0x8a1   :  { %v8740_v44 = vadd.f32 %v8739_v23, %v17946_v57  ;;  %v8810_v27 = vmul.f32 %v17946_v57, %v17946_v57  ;;  %v8872_v8 = vadd.f32 %v8871_v48, %v8809_v59  ;;  %v17957_v56 = vadd.f32 %v12107_v25, %v17585_v39  ;;  %v17979_v55 = vpop.f32.mrf.mxu0 }
 0x8a2   :  { %v8416_v41 = vpop.f32.mrf.mxu1  ;;  %v8151_v59 = vadd.f32 %v17606_v22, %v17581_v45  ;;  %19894 = vst [vmem:[#allocation88_spill] sm:$0xff] %v17979_v55  ;;  %v8154_v45 = vadd.f32 %v17611_v34, %v17588_v60  ;;  %v19920_v55 = vld [vmem:[#allocation29_spill] sm:$0xff] }
 0x8a3   :  { %v8873_v58 = vadd.f32 %v8872_v8, %v8810_v27  ;;  %v17960_v42 = vadd.f32 %v8416_v41, %v17592_v11  ;;  %v8741_v30 = vadd.f32 %v8740_v44, %v17941_v4  ;;  %v8813_v44 = vmul.f32 %v17957_v56, %v17957_v56  ;;  %v17995_v34 = vpop.f32.mrf.mxu0 }
 0x8a4   :  { %v12110_v23 = vpop.f32.mrf.mxu1  ;;  %19895 = vst [vmem:[#allocation10_spill] sm:$0xff] %v17995_v34  ;;  %v19926_v34 = vld [vmem:[#allocation82_spill] sm:$0xff] }
 0x8a5   :  { %v8742_v48 = vadd.f32 %v8741_v30, %v17960_v42  ;;  %v8812_v39 = vmul.f32 %v17960_v42, %v17960_v42  ;;  %v8874_v25 = vadd.f32 %v8873_v58, %v8811_v54  ;;  %v17972_v27 = vadd.f32 %v12110_v23, %v8152_v29 }
 0x8a6   :  { %v8426_v11 = vpop.f32.mrf.mxu1  ;;  %v8153_v58 = vadd.f32 %v17620_v24, %v17595_v17  ;;  %v8156_v17 = vadd.f32 %v17625_v14, %v17602_v9  ;;  %v18011_v14 = vpop.f32.mrf.mxu0 }
 0x8a7   :  { %v8875_v8 = vadd.f32 %v8874_v25, %v8812_v39  ;;  %v17976_v41 = vadd.f32 %v8426_v11, %v8151_v59  ;;  %v8743_v46 = vadd.f32 %v8742_v48, %v17957_v56  ;;  %v8815_v23 = vmul.f32 %v17972_v27, %v17972_v27  ;;  %v19896_v11 = vld [vmem:[#allocation20_spill] sm:$0xff]  ;;  %19897 = vst [vmem:[#allocation11_spill] sm:$0xff] %v18011_v14  ;;  %v19902_v14 = vld [vmem:[#allocation22_spill] sm:$0xff] }
 0x8a8   :  { %v12113_v22 = vpop.f32.mrf.mxu1 }
 0x8a9   :  { %v8744_v54 = vadd.f32 %v8743_v46, %v17976_v41  ;;  %v8814_v30 = vmul.f32 %v17976_v41, %v17976_v41  ;;  %v8876_v29 = vadd.f32 %v8875_v8, %v8813_v44  ;;  %v17990_v39 = vadd.f32 %v12113_v22, %v8154_v45 }
 0x8aa   :  { %v8436_v59 = vpop.f32.mrf.mxu1  ;;  %v8155_v44 = vadd.f32 %v17634_v33, %v19896_v11  ;;  %v19898_v33 = vld [vmem:[#allocation91_spill] sm:$0xff]  ;;  %v19899_v11 = vld [vmem:[#allocation21_spill] sm:$0xff] }
 0x8ab   :  { %v8877_v48 = vadd.f32 %v8876_v29, %v8814_v30  ;;  %v17992_v25 = vadd.f32 %v8436_v59, %v8153_v58  ;;  %v8745_v60 = vadd.f32 %v8744_v54, %v17972_v27  ;;  %v8817_v54 = vmul.f32 %v17990_v39, %v17990_v39 }
 0x8ac   :  { %v12116_v24 = vpop.f32.mrf.mxu1  ;;  %v8158_v59 = vadd.f32 %v17639_v52, %v19898_v33  ;;  %v18027_v33 = vpop.f32.mrf.mxu0 }
 0x8ad   :  { %v8746_v8 = vadd.f32 %v8745_v60, %v17992_v25  ;;  %v8816_v46 = vmul.f32 %v17992_v25, %v17992_v25  ;;  %v8878_v45 = vadd.f32 %v8877_v48, %v8815_v23  ;;  %v18004_v22 = vadd.f32 %v12116_v24, %v8156_v17  ;;  %19900 = vst [vmem:[#allocation12_spill] sm:$0xff] %v18027_v33  ;;  %v19905_v33 = vld [vmem:[#allocation23_spill] sm:$0xff] }
 0x8ae   :  { %v8446_v58 = vpop.f32.mrf.mxu1  ;;  %v8157_v23 = vadd.f32 %v17648_v13, %v19899_v11  ;;  %v19901_v13 = vld [vmem:[#allocation90_spill] sm:$0xff] }
 0x8af   :  { %v8879_v30 = vadd.f32 %v8878_v45, %v8816_v46  ;;  %v18008_v29 = vadd.f32 %v8446_v58, %v8155_v44  ;;  %v8747_v9 = vadd.f32 %v8746_v8, %v17990_v39  ;;  %v8819_v44 = vmul.f32 %v18004_v22, %v18004_v22 }
 0x8b0   :  { %v12119_v60 = vpop.f32.mrf.mxu1 }
 0x8b1   :  { %v8748_v48 = vadd.f32 %v8747_v9, %v18008_v29  ;;  %v8818_v17 = vmul.f32 %v18008_v29, %v18008_v29  ;;  %v8880_v24 = vadd.f32 %v8879_v30, %v8817_v54  ;;  %v18022_v45 = vadd.f32 %v12119_v60, %v8158_v59 }
 0x8b2   :  { %v8456_v46 = vpop.f32.mrf.mxu1  ;;  %v8160_v9 = vadd.f32 %v17653_v10, %v19901_v13  ;;  %v8159_v54 = vadd.f32 %v17662_v36, %v19902_v14  ;;  %v18043_v13 = vpop.f32.mrf.mxu0  ;;  %v19904_v36 = vld [vmem:[#allocation93_spill] sm:$0xff] }
 0x8b3   :  { %v8881_v8 = vadd.f32 %v8880_v24, %v8818_v17  ;;  %v18024_v58 = vadd.f32 %v8456_v46, %v8157_v23  ;;  %v8749_v52 = vadd.f32 %v8748_v48, %v18004_v22  ;;  %v8821_v48 = vmul.f32 %v18022_v45, %v18022_v45  ;;  %19903 = vst [vmem:[#allocation13_spill] sm:$0xff] %v18043_v13  ;;  %v19910_v13 = vld [vmem:[#allocation80_spill] sm:$0xff] }
 0x8b4   :  { %v12122_v11 = vpop.f32.mrf.mxu1  ;;  %v8162_v14 = vadd.f32 %v17667_v20, %v19904_v36  ;;  %v18059_v36 = vpop.f32.mrf.mxu0 }
 0x8b5   :  { %v8750_v30 = vadd.f32 %v8749_v52, %v18024_v58  ;;  %v8820_v17 = vmul.f32 %v18024_v58, %v18024_v58  ;;  %v8882_v59 = vadd.f32 %v8881_v8, %v8819_v44  ;;  %v18036_v60 = vadd.f32 %v12122_v11, %v8160_v9  ;;  %19906 = vst [vmem:[#allocation14_spill] sm:$0xff] %v18059_v36  ;;  %v19919_v36 = vld [vmem:[#allocation83_spill] sm:$0xff] }
 0x8b6   :  { %v8466_v23 = vpop.f32.mrf.mxu1  ;;  %v8161_v44 = vadd.f32 %v17676_v16, %v19905_v33  ;;  %v8164_v16 = vadd.f32 %v17681_v2, %v17658_v12  ;;  %v18075_v2 = vpop.f32.mrf.mxu0 }
 0x8b7   :  { %v8883_v24 = vadd.f32 %v8882_v59, %v8820_v17  ;;  %v18040_v46 = vadd.f32 %v8466_v23, %v8159_v54  ;;  %v8751_v10 = vadd.f32 %v8750_v30, %v18022_v45  ;;  %v8823_v54 = vmul.f32 %v18036_v60, %v18036_v60  ;;  %19908 = vst [vmem:[#allocation15_spill] sm:$0xff] %v18075_v2  ;;  %v19913_v2 = vld [vmem:[#allocation75_spill] sm:$0xff] }
 0x8b8   :  { %v12125_v52 = vpop.f32.mrf.mxu1 }
 0x8b9   :  { %v8752_v8 = vadd.f32 %v8751_v10, %v18040_v46  ;;  %v8822_v9 = vmul.f32 %v18040_v46, %v18040_v46  ;;  %v8884_v11 = vadd.f32 %v8883_v24, %v8821_v48  ;;  %v18054_v59 = vadd.f32 %v12125_v52, %v8162_v14  ;;  %v19907_v10 = vld [vmem:[#allocation81_spill] sm:$0xff] }
 0x8ba   :  { %v8476_v17 = vpop.f32.mrf.mxu1  ;;  %v8163_v48 = vadd.f32 %v17690_v1, %v19907_v10  ;;  %v19909_v1 = vld [vmem:[#allocation24_spill] sm:$0xff] }
 0x8bb   :  { %v8885_v30 = vadd.f32 %v8884_v11, %v8822_v9  ;;  %v18056_v23 = vadd.f32 %v8476_v17, %v8161_v44  ;;  %v8753_v20 = vadd.f32 %v8752_v8, %v18036_v60  ;;  %v8825_v8 = vmul.f32 %v18054_v59, %v18054_v59 }
 0x8bc   :  { %v12128_v33 = vpop.f32.mrf.mxu1 }
 0x8bd   :  { %v8754_v24 = vadd.f32 %v8753_v20, %v18056_v23  ;;  %v8824_v9 = vmul.f32 %v18056_v23, %v18056_v23  ;;  %v8886_v14 = vadd.f32 %v8885_v30, %v8823_v54  ;;  %v18068_v52 = vadd.f32 %v12128_v33, %v8164_v16 }
 0x8be   :  { %v8486_v44 = vpop.f32.mrf.mxu1  ;;  %v8166_v20 = vadd.f32 %v17695_v32, %v19909_v1  ;;  %v8165_v54 = vadd.f32 %v17702_v47, %v19910_v13  ;;  %v18091_v1 = vpop.f32.mrf.mxu0  ;;  %v19912_v47 = vld [vmem:[#allocation25_spill] sm:$0xff] }
 0x8bf   :  { %v8887_v11 = vadd.f32 %v8886_v14, %v8824_v9  ;;  %v18072_v17 = vadd.f32 %v8486_v44, %v8163_v48  ;;  %v8755_v12 = vadd.f32 %v8754_v24, %v18054_v59  ;;  %v8827_v48 = vmul.f32 %v18068_v52, %v18068_v52  ;;  %19911 = vst [vmem:[#allocation16_spill] sm:$0xff] %v18091_v1 }
 0x8c0   :  { %v12131_v10 = vpop.f32.mrf.mxu1  ;;  %v8168_v13 = vadd.f32 %v17707_v15, %v19912_v47  ;;  %v18107_v47 = vpop.f32.mrf.mxu0 }
 0x8c1   :  { %v8756_v30 = vadd.f32 %v8755_v12, %v18072_v17  ;;  %v8826_v16 = vmul.f32 %v18072_v17, %v18072_v17  ;;  %v8888_v33 = vadd.f32 %v8887_v11, %v8825_v8  ;;  %v18086_v14 = vadd.f32 %v12131_v10, %v8166_v20  ;;  %19916 = vst [vmem:[#allocation19_spill] sm:$0xff] %v18107_v47 }
 0x8c2   :  { %v8496_v9 = vpop.f32.mrf.mxu1  ;;  %v8167_v8 = vadd.f32 %v17712_v31, %v19913_v2  ;;  %v19917_v31 = vld [vmem:[#allocation26_spill] sm:$0xff]  ;;  %v19918_v2 = vld [vmem:[#allocation28_spill] sm:$0xff] }
 0x8c3   :  { %v8889_v24 = vadd.f32 %v8888_v33, %v8826_v16  ;;  %v18088_v44 = vadd.f32 %v8496_v9, %v8165_v54  ;;  %v8757_v32 = vadd.f32 %v8756_v30, %v18068_v52  ;;  %v8829_v30 = vmul.f32 %v18086_v14, %v18086_v14 }
 0x8c4   :  { %v12134_v12 = vpop.f32.mrf.mxu1 }
 0x8c5   :  { %v8758_v11 = vadd.f32 %v8757_v32, %v18088_v44  ;;  %v8828_v16 = vmul.f32 %v18088_v44, %v18088_v44  ;;  %v8890_v20 = vadd.f32 %v8889_v24, %v8827_v48  ;;  %v18100_v10 = vadd.f32 %v12134_v12, %v8168_v13 }
 0x8c6   :  { %v8506_v54 = vpop.f32.mrf.mxu1  ;;  %v8170_v32 = vadd.f32 %v19918_v2, %v19917_v31  ;;  %v8169_v48 = vadd.f32 %v19920_v55, %v19919_v36  ;;  %v18123_v2 = vpop.f32.mrf.mxu0  ;;  %v19924_v55 = vld [vmem:[#allocation27_spill] sm:$0xff] }
 0x8c7   :  { %19914 = vst [vmem:[#allocation17_spill] sm:$0xff] %v18100_v10  ;;  %v8891_v33 = vadd.f32 %v8890_v20, %v8828_v16  ;;  %v18104_v9 = vadd.f32 %v8506_v54, %v8167_v8  ;;  %v8759_v15 = vadd.f32 %v8758_v11, %v18086_v14  ;;  %v8831_v8 = vmul.f32 %v18100_v10, %v18100_v10  ;;  %v19925_v36 = vld [vmem:[#allocation87_spill] sm:$0xff] }
 0x8c8   :  { %v12137_v1 = vpop.f32.mrf.mxu1  ;;  %19923 = vst [vmem:[#allocation21_spill] sm:$0xff] %v18123_v2 }
 0x8c9   :  { %19915 = vst [vmem:[#allocation18_spill] sm:$0xff] %v18104_v9  ;;  %v8760_v24 = vadd.f32 %v8759_v15, %v18104_v9  ;;  %v8830_v13 = vmul.f32 %v18104_v9, %v18104_v9  ;;  %v8892_v12 = vadd.f32 %v8891_v33, %v8829_v30  ;;  %v18118_v20 = vadd.f32 %v12137_v1, %v8170_v32 }
 0x8ca   :  { %v8516_v16 = vpop.f32.mrf.mxu1  ;;  %v8172_v15 = vadd.f32 %v19925_v36, %v19924_v55  ;;  %v8171_v30 = vadd.f32 %v19927_v43, %v19926_v34  ;;  %v18139_v36 = vpop.f32.mrf.mxu0  ;;  %v19931_v43 = vld [vmem:[#allocation85_spill] sm:$0xff]  ;;  %v19932_v34 = vld [vmem:[#allocation92_spill] sm:$0xff] }
 0x8cb   :  { %v8893_v11 = vadd.f32 %v8892_v12, %v8830_v13  ;;  %19921 = vst [vmem:[#allocation20_spill] sm:$0xff] %v18118_v20  ;;  %v18120_v54 = vadd.f32 %v8516_v16, %v8169_v48  ;;  %v8761_v31 = vadd.f32 %v8760_v24, %v18100_v10  ;;  %v8833_v24 = vmul.f32 %v18118_v20, %v18118_v20 }
 0x8cc   :  { %v12140_v47 = vpop.f32.mrf.mxu1  ;;  %19930 = vst [vmem:[#allocation93_spill] sm:$0xff] %v18139_v36 }
 0x8cd   :  { %19922 = vst [vmem:[#allocation91_spill] sm:$0xff] %v18120_v54  ;;  %v8762_v33 = vadd.f32 %v8761_v31, %v18120_v54  ;;  %v8832_v13 = vmul.f32 %v18120_v54, %v18120_v54  ;;  %v8894_v1 = vadd.f32 %v8893_v11, %v8831_v8  ;;  %v18132_v32 = vadd.f32 %v12140_v47, %v8172_v15  ;;  %v19934_v54 = vld [vmem:[#allocation34_spill] sm:$0xff] }
 0x8ce   :  { %v8526_v48 = vpop.f32.mrf.mxu1  ;;  %v8174_v31 = vadd.f32 %v19932_v34, %v19931_v43  ;;  %v8173_v8 = vadd.f32 %v19934_v54, %v19933_v50  ;;  %v18155_v34 = vpop.f32.mrf.mxu0  ;;  %v19938_v50 = vld [vmem:[#allocation31_spill] sm:$0xff]  ;;  %v19939_v54 = vld [vmem:[#allocation36_spill] sm:$0xff] }
 0x8cf   :  { %19928 = vst [vmem:[#allocation90_spill] sm:$0xff] %v18132_v32  ;;  %v8895_v12 = vadd.f32 %v8894_v1, %v8832_v13  ;;  %v18136_v16 = vadd.f32 %v8526_v48, %v8171_v30  ;;  %v8763_v55 = vadd.f32 %v8762_v33, %v18118_v20  ;;  %v8835_v30 = vmul.f32 %v18132_v32, %v18132_v32  ;;  %v19940_v20 = vld [vmem:[#allocation32_spill] sm:$0xff] }
 0x8d0   :  { %v12143_v2 = vpop.f32.mrf.mxu1  ;;  %19937 = vst [vmem:[#allocation24_spill] sm:$0xff] %v18155_v34 }
 0x8d1   :  { %19929 = vst [vmem:[#allocation22_spill] sm:$0xff] %v18136_v16  ;;  %v8764_v47 = vadd.f32 %v8763_v55, %v18136_v16  ;;  %v8834_v11 = vmul.f32 %v18136_v16, %v18136_v16  ;;  %v8896_v15 = vadd.f32 %v8895_v12, %v8833_v24  ;;  %v18150_v1 = vadd.f32 %v12143_v2, %v8174_v31 }
 0x8d2   :  { %v8536_v13 = vpop.f32.mrf.mxu1  ;;  %v8176_v55 = vadd.f32 %v19939_v54, %v19938_v50  ;;  %v8175_v24 = vadd.f32 %v17752_v19, %v19940_v20  ;;  %v18171_v54 = vpop.f32.mrf.mxu0  ;;  %v19944_v19 = vld [vmem:[#allocation33_spill] sm:$0xff]  ;;  %v19945_v20 = vld [vmem:[#allocation39_spill] sm:$0xff] }
 0x8d3   :  { %v8897_v33 = vadd.f32 %v8896_v15, %v8834_v11  ;;  %19935 = vst [vmem:[#allocation23_spill] sm:$0xff] %v18150_v1  ;;  %v18152_v48 = vadd.f32 %v8536_v13, %v8173_v8  ;;  %v8765_v43 = vadd.f32 %v8764_v47, %v18132_v32  ;;  %v8837_v47 = vmul.f32 %v18150_v1, %v18150_v1  ;;  %v19946_v32 = vld [vmem:[#allocation35_spill] sm:$0xff] }
 0x8d4   :  { %v12146_v36 = vpop.f32.mrf.mxu1  ;;  %19943 = vst [vmem:[#allocation75_spill] sm:$0xff] %v18171_v54 }
 0x8d5   :  { %19936 = vst [vmem:[#allocation81_spill] sm:$0xff] %v18152_v48  ;;  %v8766_v12 = vadd.f32 %v8765_v43, %v18152_v48  ;;  %v8836_v11 = vmul.f32 %v18152_v48, %v18152_v48  ;;  %v8898_v2 = vadd.f32 %v8897_v33, %v8835_v30  ;;  %v18164_v31 = vadd.f32 %v12146_v36, %v8176_v55  ;;  %v19947_v48 = vld [vmem:[#allocation41_spill] sm:$0xff] }
 0x8d6   :  { %v8546_v8 = vpop.f32.mrf.mxu1  ;;  %v8178_v43 = vadd.f32 %v19945_v20, %v19944_v19  ;;  %v8177_v30 = vadd.f32 %v19947_v48, %v19946_v32  ;;  %v18187_v20 = vpop.f32.mrf.mxu0  ;;  %v19951_v32 = vld [vmem:[#allocation37_spill] sm:$0xff]  ;;  %v19952_v48 = vld [vmem:[#allocation43_spill] sm:$0xff] }
 0x8d7   :  { %19941 = vst [vmem:[#allocation80_spill] sm:$0xff] %v18164_v31  ;;  %v8899_v15 = vadd.f32 %v8898_v2, %v8836_v11  ;;  %v18168_v13 = vadd.f32 %v8546_v8, %v8175_v24  ;;  %v8767_v50 = vadd.f32 %v8766_v12, %v18150_v1  ;;  %v8839_v24 = vmul.f32 %v18164_v31, %v18164_v31  ;;  %v19953_v1 = vld [vmem:[#allocation38_spill] sm:$0xff] }
 0x8d8   :  { %v12149_v34 = vpop.f32.mrf.mxu1  ;;  %19950 = vst [vmem:[#allocation83_spill] sm:$0xff] %v18187_v20  ;;  %v19958_v20 = vld [vmem:[#allocation42_spill] sm:$0xff] }
 0x8d9   :  { %19942 = vst [vmem:[#allocation25_spill] sm:$0xff] %v18168_v13  ;;  %v8768_v36 = vadd.f32 %v8767_v50, %v18168_v13  ;;  %v8838_v33 = vmul.f32 %v18168_v13, %v18168_v13  ;;  %v8900_v55 = vadd.f32 %v8899_v15, %v8837_v47  ;;  %v18182_v2 = vadd.f32 %v12149_v34, %v8178_v43 }
 0x8da   :  { %v8556_v11 = vpop.f32.mrf.mxu1  ;;  %v8180_v50 = vadd.f32 %v19952_v48, %v19951_v32  ;;  %v8179_v47 = vadd.f32 %v17772_v37, %v19953_v1  ;;  %v18203_v48 = vpop.f32.mrf.mxu0  ;;  %v19957_v37 = vld [vmem:[#allocation40_spill] sm:$0xff] }
 0x8db   :  { %v8901_v12 = vadd.f32 %v8900_v55, %v8838_v33  ;;  %19948 = vst [vmem:[#allocation26_spill] sm:$0xff] %v18182_v2  ;;  %v18184_v8 = vadd.f32 %v8556_v11, %v8177_v30  ;;  %v8769_v19 = vadd.f32 %v8768_v36, %v18164_v31  ;;  %v8841_v36 = vmul.f32 %v18182_v2, %v18182_v2  ;;  %v20004_v31 = vld [vmem:[#allocation62_spill] sm:$0xff] }
 0x8dc   :  { %v12152_v54 = vpop.f32.mrf.mxu1  ;;  %19956 = vst [vmem:[#allocation87_spill] sm:$0xff] %v18203_v48  ;;  %v8182_v1 = vadd.f32 %v17777_v18, %v19957_v37  ;;  %v18219_v37 = vpop.f32.mrf.mxu0  ;;  %v19963_v48 = vld [vmem:[#allocation45_spill] sm:$0xff] }
 0x8dd   :  { %19949 = vst [vmem:[#allocation28_spill] sm:$0xff] %v18184_v8  ;;  %v8770_v15 = vadd.f32 %v8769_v19, %v18184_v8  ;;  %v8840_v33 = vmul.f32 %v18184_v8, %v18184_v8  ;;  %v8902_v34 = vadd.f32 %v8901_v12, %v8839_v24  ;;  %v18196_v43 = vadd.f32 %v12152_v54, %v8180_v50 }
 0x8de   :  { %v8566_v30 = vpop.f32.mrf.mxu1  ;;  %v8181_v24 = vadd.f32 %v17782_v53, %v19958_v20  ;;  %19961 = vst [vmem:[#allocation85_spill] sm:$0xff] %v18219_v37  ;;  %v19962_v53 = vld [vmem:[#allocation44_spill] sm:$0xff]  ;;  %v19968_v37 = vld [vmem:[#allocation47_spill] sm:$0xff] }
 0x8df   :  { %19954 = vst [vmem:[#allocation29_spill] sm:$0xff] %v18196_v43  ;;  %v8903_v55 = vadd.f32 %v8902_v34, %v8840_v33  ;;  %v18200_v11 = vadd.f32 %v8566_v30, %v8179_v47  ;;  %v8771_v32 = vadd.f32 %v8770_v15, %v18182_v2  ;;  %v8843_v47 = vmul.f32 %v18196_v43, %v18196_v43  ;;  %v19997_v2 = vld [vmem:[#allocation58_spill] sm:$0xff] }
 0x8e0   :  { %v12155_v19 = vpop.f32.mrf.mxu1  ;;  %v8184_v20 = vadd.f32 %v17787_v7, %v19962_v53  ;;  %v18235_v53 = vpop.f32.mrf.mxu0 }
 0x8e1   :  { %19955 = vst [vmem:[#allocation27_spill] sm:$0xff] %v18200_v11  ;;  %v8772_v54 = vadd.f32 %v8771_v32, %v18200_v11  ;;  %v8842_v12 = vmul.f32 %v18200_v11, %v18200_v11  ;;  %v8904_v50 = vadd.f32 %v8903_v55, %v8841_v36  ;;  %v18214_v34 = vadd.f32 %v12155_v19, %v8182_v1  ;;  %v19996_v11 = vld [vmem:[#allocation84_spill] sm:$0xff] }
 0x8e2   :  { %v8576_v33 = vpop.f32.mrf.mxu1  ;;  %v8183_v36 = vadd.f32 %v17792_v49, %v19963_v48  ;;  %19966 = vst [vmem:[#allocation34_spill] sm:$0xff] %v18235_v53  ;;  %v19967_v49 = vld [vmem:[#allocation46_spill] sm:$0xff]  ;;  %v19973_v53 = vld [vmem:[#allocation49_spill] sm:$0xff] }
 0x8e3   :  { %v8905_v15 = vadd.f32 %v8904_v50, %v8842_v12  ;;  %19959 = vst [vmem:[#allocation82_spill] sm:$0xff] %v18214_v34  ;;  %v18216_v30 = vadd.f32 %v8576_v33, %v8181_v24  ;;  %v8773_v18 = vadd.f32 %v8772_v54, %v18196_v43  ;;  %v8845_v54 = vmul.f32 %v18214_v34, %v18214_v34 }
 0x8e4   :  { %v12158_v32 = vpop.f32.mrf.mxu1  ;;  %v8186_v48 = vadd.f32 %v17797_v5, %v19967_v49 }
 0x8e5   :  { %19960 = vst [vmem:[#allocation86_spill] sm:$0xff] %v18216_v30  ;;  %v8774_v55 = vadd.f32 %v8773_v18, %v18216_v30  ;;  %v8844_v12 = vmul.f32 %v18216_v30, %v18216_v30  ;;  %v8906_v1 = vadd.f32 %v8905_v15, %v8843_v47  ;;  %v18228_v19 = vadd.f32 %v12158_v32, %v8184_v20 }
 0x8e6   :  { %v8586_v24 = vpop.f32.mrf.mxu1  ;;  %v8185_v47 = vadd.f32 %v17802_v62, %v19968_v37  ;;  %v19972_v62 = vld [vmem:[#allocation48_spill] sm:$0xff] }
 0x8e7   :  { %19964 = vst [vmem:[#allocation92_spill] sm:$0xff] %v18228_v19  ;;  %v8907_v50 = vadd.f32 %v8906_v1, %v8844_v12  ;;  %v18232_v33 = vadd.f32 %v8586_v24, %v8183_v36  ;;  %v8775_v7 = vadd.f32 %v8774_v55, %v18214_v34  ;;  %v8847_v36 = vmul.f32 %v18228_v19, %v18228_v19  ;;  %v18248_v24 = vpop.f32.mrf.mxu0  ;;  %v19984_v34 = vld [vmem:[#allocation54_spill] sm:$0xff] }
 0x8e8   :  { %v12161_v18 = vpop.f32.mrf.mxu1  ;;  %19970 = vst [vmem:[#allocation36_spill] sm:$0xff] %v18248_v24  ;;  %v8188_v37 = vadd.f32 %v17807_v40, %v19972_v62  ;;  %v19978_v24 = vld [vmem:[#allocation89_spill] sm:$0xff] }
 0x8e9   :  { %19965 = vst [vmem:[#allocation30_spill] sm:$0xff] %v18232_v33  ;;  %v8776_v15 = vadd.f32 %v8775_v7, %v18232_v33  ;;  %v8846_v20 = vmul.f32 %v18232_v33, %v18232_v33  ;;  %v8908_v32 = vadd.f32 %v8907_v50, %v8845_v54  ;;  %v18246_v1 = vadd.f32 %v12161_v18, %v8186_v48 }
 0x8ea   :  { %v8596_v12 = vpop.f32.mrf.mxu1  ;;  %v8187_v54 = vadd.f32 %v17812_v61, %v19973_v53  ;;  %v19977_v61 = vld [vmem:[#allocation50_spill] sm:$0xff] }
 0x8eb   :  { %v8909_v55 = vadd.f32 %v8908_v32, %v8846_v20  ;;  %19969 = vst [vmem:[#allocation31_spill] sm:$0xff] %v18246_v1  ;;  %v18250_v5 = vadd.f32 %v8596_v12, %v8185_v47  ;;  %v8777_v49 = vadd.f32 %v8776_v15, %v18228_v19  ;;  %v8849_v47 = vmul.f32 %v18246_v1, %v18246_v1  ;;  %v18264_v12 = vpop.f32.mrf.mxu0 }
 0x8ec   :  { %v12164_v7 = vpop.f32.mrf.mxu1  ;;  %19975 = vst [vmem:[#allocation39_spill] sm:$0xff] %v18264_v12  ;;  %v8190_v53 = vadd.f32 %v17817_v28, %v19977_v61  ;;  %v19983_v12 = vld [vmem:[#allocation94_spill] sm:$0xff] }
 0x8ed   :  { %19971 = vst [vmem:[#allocation32_spill] sm:$0xff] %v18250_v5  ;;  %v8778_v50 = vadd.f32 %v8777_v49, %v18250_v5  ;;  %v8848_v20 = vmul.f32 %v18250_v5, %v18250_v5  ;;  %v8910_v48 = vadd.f32 %v8909_v55, %v8847_v36  ;;  %v18260_v18 = vadd.f32 %v12164_v7, %v8188_v37 }
 0x8ee   :  { %v8606_v32 = vpop.f32.mrf.mxu1  ;;  %v8189_v36 = vadd.f32 %v17822_v3, %v19978_v24  ;;  %v19982_v3 = vld [vmem:[#allocation51_spill] sm:$0xff] }
 0x8ef   :  { %19974 = vst [vmem:[#allocation33_spill] sm:$0xff] %v18260_v18  ;;  %v8911_v15 = vadd.f32 %v8910_v48, %v8848_v20  ;;  %v18266_v40 = vadd.f32 %v8606_v32, %v8187_v54  ;;  %v8779_v62 = vadd.f32 %v8778_v50, %v18246_v1  ;;  %v8851_v20 = vmul.f32 %v18260_v18, %v18260_v18  ;;  %v18278_v48 = vpop.f32.mrf.mxu0 }
 0x8f0   :  { %v12167_v49 = vpop.f32.mrf.mxu1  ;;  %19979 = vst [vmem:[#allocation41_spill] sm:$0xff] %v18278_v48  ;;  %v8192_v24 = vadd.f32 %v17827_v6, %v19982_v3  ;;  %v19990_v3 = vld [vmem:[#allocation56_spill] sm:$0xff] }
 0x8f1   :  { %19976 = vst [vmem:[#allocation35_spill] sm:$0xff] %v18266_v40  ;;  %v8780_v55 = vadd.f32 %v8779_v62, %v18266_v40  ;;  %v8850_v37 = vmul.f32 %v18266_v40, %v18266_v40  ;;  %v8912_v7 = vadd.f32 %v8911_v15, %v8849_v47  ;;  %v18280_v32 = vadd.f32 %v12167_v49, %v8190_v53  ;;  %v18294_v49 = vpop.f32.mrf.mxu0 }
 0x8f2   :  { %v8616_v54 = vpop.f32.mrf.mxu1  ;;  %v8191_v47 = vadd.f32 %v19984_v34, %v19983_v12  ;;  %19986 = vst [vmem:[#allocation40_spill] sm:$0xff] %v18294_v49  ;;  %v19988_v34 = vld [vmem:[#allocation52_spill] sm:$0xff] }
 0x8f3   :  { %v8913_v50 = vadd.f32 %v8912_v7, %v8850_v37  ;;  %19980 = vst [vmem:[#allocation37_spill] sm:$0xff] %v18280_v32  ;;  %v18282_v28 = vadd.f32 %v8616_v54, %v8189_v36  ;;  %v8781_v61 = vadd.f32 %v8780_v55, %v18260_v18  ;;  %v8853_v36 = vmul.f32 %v18280_v32, %v18280_v32 }
 0x8f4   :  { %v12170_v62 = vpop.f32.mrf.mxu1  ;;  %v8194_v12 = vadd.f32 %v17837_v35, %v19988_v34 }
 0x8f5   :  { %19981 = vst [vmem:[#allocation43_spill] sm:$0xff] %v18282_v28  ;;  %v8782_v15 = vadd.f32 %v8781_v61, %v18282_v28  ;;  %v8852_v43 = vmul.f32 %v18282_v28, %v18282_v28  ;;  %v8914_v48 = vadd.f32 %v8913_v50, %v8851_v20  ;;  %v18292_v37 = vadd.f32 %v12170_v62, %v8192_v24  ;;  %v19989_v61 = vld [vmem:[#allocation74_spill] sm:$0xff] }
 0x8f6   :  { %v8626_v53 = vpop.f32.mrf.mxu1  ;;  %v8193_v20 = vadd.f32 %v19990_v3, %v19989_v61  ;;  %v19994_v61 = vld [vmem:[#allocation53_spill] sm:$0xff] }
 0x8f7   :  { %19985 = vst [vmem:[#allocation38_spill] sm:$0xff] %v18292_v37  ;;  %v8915_v55 = vadd.f32 %v8914_v48, %v8852_v43  ;;  %v18298_v6 = vadd.f32 %v8626_v53, %v8191_v47  ;;  %v8783_v7 = vadd.f32 %v8782_v15, %v18280_v32  ;;  %v8855_v43 = vmul.f32 %v18292_v37, %v18292_v37  ;;  %v18310_v47 = vpop.f32.mrf.mxu0  ;;  %v19995_v3 = vld [vmem:[#allocation57_spill] sm:$0xff] }
 0x8f8   :  { %v12173_v54 = vpop.f32.mrf.mxu1  ;;  %19991 = vst [vmem:[#allocation44_spill] sm:$0xff] %v18310_v47 }
 0x8f9   :  { %19987 = vst [vmem:[#allocation42_spill] sm:$0xff] %v18298_v6  ;;  %v8784_v50 = vadd.f32 %v8783_v7, %v18298_v6  ;;  %v8854_v24 = vmul.f32 %v18298_v6, %v18298_v6  ;;  %v8916_v62 = vadd.f32 %v8915_v55, %v8853_v36  ;;  %v18312_v53 = vadd.f32 %v12173_v54, %v8194_v12  ;;  %v18326_v54 = vpop.f32.mrf.mxu0 }
 0x8fa   :  { %v8636_v48 = vpop.f32.mrf.mxu1  ;;  %v8196_v7 = vadd.f32 %v19995_v3, %v19994_v61  ;;  %v8195_v36 = vadd.f32 %v19997_v2, %v19996_v11  ;;  %19999 = vst [vmem:[#allocation48_spill] sm:$0xff] %v18326_v54  ;;  %v20001_v2 = vld [vmem:[#allocation55_spill] sm:$0xff]  ;;  %v20002_v11 = vld [vmem:[#allocation61_spill] sm:$0xff] }
 0x8fb   :  { %v8917_v15 = vadd.f32 %v8916_v62, %v8854_v24  ;;  %19992 = vst [vmem:[#allocation45_spill] sm:$0xff] %v18312_v53  ;;  %v18314_v35 = vadd.f32 %v8636_v48, %v8193_v20  ;;  %v8785_v34 = vadd.f32 %v8784_v50, %v18292_v37  ;;  %v8857_v20 = vmul.f32 %v18312_v53, %v18312_v53  ;;  %v20003_v3 = vld [vmem:[#allocation77_spill] sm:$0xff] }
 0x8fc   :  { %v12176_v49 = vpop.f32.mrf.mxu1 }
 0x8fd   :  { %19993 = vst [vmem:[#allocation46_spill] sm:$0xff] %v18314_v35  ;;  %v8786_v55 = vadd.f32 %v8785_v34, %v18314_v35  ;;  %v8856_v8 = vmul.f32 %v18314_v35, %v18314_v35  ;;  %v8918_v47 = vadd.f32 %v8917_v15, %v8855_v43  ;;  %v18324_v24 = vadd.f32 %v12176_v49, %v8196_v7 }
 0x8fe   :  { %v8646_v12 = vpop.f32.mrf.mxu1  ;;  %v8198_v34 = vadd.f32 %v20002_v11, %v20001_v2  ;;  %v8197_v43 = vadd.f32 %v20004_v31, %v20003_v3 }
 0x8ff   :  { %19998 = vst [vmem:[#allocation47_spill] sm:$0xff] %v18324_v24  ;;  %v8919_v50 = vadd.f32 %v8918_v47, %v8856_v8  ;;  %v18330_v62 = vadd.f32 %v8646_v12, %v8195_v36  ;;  %v8787_v48 = vadd.f32 %v8786_v55, %v18312_v53  ;;  %v8859_v8 = vmul.f32 %v18324_v24, %v18324_v24  ;;  %v18342_v36 = vpop.f32.mrf.mxu0 }
 0x900   :  { %v12179_v61 = vpop.f32.mrf.mxu1  ;;  %20005 = vst [vmem:[#allocation50_spill] sm:$0xff] %v18342_v36 }
 0x901   :  { %20000 = vst [vmem:[#allocation49_spill] sm:$0xff] %v18330_v62  ;;  %v8788_v49 = vadd.f32 %v8787_v48, %v18330_v62  ;;  %v8858_v15 = vmul.f32 %v18330_v62, %v18330_v62  ;;  %v8920_v7 = vadd.f32 %v8919_v50, %v8857_v20  ;;  %v18344_v12 = vadd.f32 %v12179_v61, %v8198_v34  ;;  %v18352_v20 = vpop.f32.mrf.mxu0  ;;  %v20020_v62 = vld [vmem:[#allocation17_spill] sm:$0xff] }
 0x902   :  { %v8656_v47 = vpop.f32.mrf.mxu1  ;;  %20008 = vst [vmem:[#allocation94_spill] sm:$0xff] %v18352_v20 }
 0x903   :  { %v8921_v55 = vadd.f32 %v8920_v7, %v8858_v15  ;;  %20006 = vst [vmem:[#allocation89_spill] sm:$0xff] %v18344_v12  ;;  %v18346_v2 = vadd.f32 %v8656_v47, %v8197_v43  ;;  %v8789_v11 = vadd.f32 %v8788_v49, %v18324_v24  ;;  %v8861_v50 = vmul.f32 %v18344_v12, %v18344_v12  ;;  %v18357_v43 = vpop.f32.mrf.mxu0 }
 0x905   :  { %20007 = vst [vmem:[#allocation51_spill] sm:$0xff] %v18346_v2  ;;  %v8790_v31 = vadd.f32 %v8789_v11, %v18346_v2  ;;  %v8860_v48 = vmul.f32 %v18346_v2, %v18346_v2  ;;  %v8922_v3 = vadd.f32 %v8921_v55, %v8859_v8  ;;  %v18359_v36 = vpop.f32.mrf.mxu0 }
 0x907   :  { %v8791_v54 = vadd.f32 %v8790_v31, %v18344_v12  ;;  %v8923_v15 = vadd.f32 %v8922_v3, %v8860_v48  ;;  %v18361_v16 = vpop.f32.mrf.mxu0 }
 0x909   :  { %v8792_v34 = vrot.slane %v8791_v54, 4  ;;  %v8924_v61 = vadd.f32 %v8923_v15, %v8861_v50  ;;  %v18365_v3 = vpop.f32.mrf.mxu0 }
 0x90a   :  { %20010 = vst [vmem:[#allocation52_spill] sm:$0xff] %v18365_v3  ;;  %v20080_v3 = vld [vmem:[#allocation76_spill] sm:$0xff] }
 0x90b   :  { %v8793_v7 = vadd.f32 %v8792_v34, %v8791_v54  ;;  %v8925_v49 = vrot.slane %v8924_v61, 4 }
 0x90d   :  { %v8794_v47 = vrot.slane %v8793_v7, 2  ;;  %v8926_v11 = vadd.f32 %v8925_v49, %v8924_v61  ;;  %v18371_v61 = vpop.f32.mrf.mxu0  ;;  %v20011_v49 = vld [vmem:[#allocation60_spill] sm:$0xff] }
 0x90f   :  { %v8795_v13 = vadd.f32 %v8794_v47, %v8793_v7  ;;  %v8927_v8 = vrot.slane %v8926_v11, 2  ;;  %v18395_v15 = vpop.f32.mrf.mxu0 }
 0x911   :  { %v8796_v55 = vrot.slane %v8795_v13, 1  ;;  %v8928_v20 = vadd.f32 %v8927_v8, %v8926_v11  ;;  %v20014_v8 = vld [vmem:[#allocation63_spill] sm:$0xff] }
 0x913   :  { %v8797_v10 = vadd.f32 %v8796_v55, %v8795_v13  ;;  %v8929_v9 = vrot.slane %v8928_v20, 1  ;;  %v18429_v13 = vpop.f32.mrf.mxu0 }
 0x914   :  { %20017 = vst [vmem:[#allocation74_spill] sm:$0xff] %v18429_v13 }
 0x915   :  { %v8930_v31 = vadd.f32 %v8929_v9, %v8928_v20  ;;  %v18363_v48 = vmul.f32 0.001953125, %v8797_v10  ;;  %v20012_v10 = vld [vmem:[#allocation59_spill] sm:$0xff]  ;;  %v20013_v20 = vld [vmem:[#allocation64_spill] sm:$0xff]  ;;  %v18463_v2 = vpop.f32.mrf.mxu0 }
 0x916   :  { %20018 = vst [vmem:[#allocation56_spill] sm:$0xff] %v18463_v2 }
 0x917   :  { %20009 = vst [vmem:[#allocation54_spill] sm:$0xff] %v18363_v48  ;;  %v8932_v50 = vmul.f32 0.001953125, %v8930_v31  ;;  %v8933_v54 = vmul.f32 %v18363_v48, %v18363_v48  ;;  %v20015_v31 = vld [vmem:[#allocation67_spill] sm:$0xff]  ;;  %v8965_v55 = vsub.f32 %v18068_v52, %v18363_v48  ;;  %v8967_v9 = vsub.f32 %v18086_v14, %v18363_v48  ;;  %v20025_v14 = vld [vmem:[#allocation81_spill] sm:$0xff]  ;;  %v18497_v5 = vpop.f32.mrf.mxu0 }
 0x918   :  { %v8969_v35 = vsub.f32 %v20020_v62, %v18363_v48  ;;  %v20021_v52 = vld [vmem:[#allocation91_spill] sm:$0xff]  ;;  %v8974_v37 = vsub.f32 %v20025_v14, %v18363_v48  ;;  %20030 = vst [vmem:[#allocation53_spill] sm:$0xff] %v18497_v5  ;;  %v20037_v5 = vsub.f32 %v20012_v10, %v18363_v48  ;;  %v20038_v1 = vsub.f32 %v20013_v20, %v18363_v48 }
 0x919   :  { %v8934_v34 = vsub.f32 %v8932_v50, %v8933_v54  ;;  %v20016_v54 = vld [vmem:[#allocation70_spill] sm:$0xff]  ;;  %v8966_v50 = vsub.f32 %v18088_v44, %v18363_v48  ;;  %v8970_v53 = vsub.f32 %v20021_v52, %v18363_v48  ;;  %v20022_v44 = vld [vmem:[#allocation20_spill] sm:$0xff]  ;;  %v20039_v33 = vsub.f32 %v20014_v8, %v18363_v48  ;;  %v18557_v32 = vpop.f32.mrf.mxu0  ;;  %v20079_v62 = vld [vmem:[#allocation71_spill] sm:$0xff] }
 0x91a   :  { %v8971_v6 = vsub.f32 %v20022_v44, %v18363_v48  ;;  %v20028_v52 = vld [vmem:[#allocation80_spill] sm:$0xff]  ;;  %v20041_v10 = vsub.f32 %v17879_v0, %v18363_v48  ;;  %v20042_v20 = vsub.f32 %v20016_v54, %v18363_v48  ;;  %v20043_v8 = vsub.f32 %v17899_v51, %v18363_v48  ;;  %20048 = vst [vmem:[#allocation84_spill] sm:$0xff] %v18557_v32 }
 0x91b   :  { %v8935_v7 = vmax.f32 %v8934_v34, 0.0  ;;  %v20023_v34 = vld [vmem:[#allocation22_spill] sm:$0xff]  ;;  %v8977_v40 = vsub.f32 %v20028_v52, %v18363_v48  ;;  %v20036_v52 = vsub.f32 %v20011_v49, %v18363_v48  ;;  %v20040_v49 = vsub.f32 %v20015_v31, %v18363_v48  ;;  %v18623_v32 = vpop.f32.mrf.mxu0 }
 0x91c   :  { %v8972_v24 = vsub.f32 %v20023_v34, %v18363_v48  ;;  %v20044_v31 = vsub.f32 %v17918_v63, %v18363_v48  ;;  %v20045_v0 = vsub.f32 %v17911_v21, %v18363_v48  ;;  %v20046_v54 = vsub.f32 %v17932_v26, %v18363_v48  ;;  %20065 = vst [vmem:[#allocation58_spill] sm:$0xff] %v18623_v32 }
 0x91d   :  { %v9000_v47 = vadd.f32 1e-05, %v8935_v7  ;;  %v20019_v7 = vld [vmem:[#allocation18_spill] sm:$0xff]  ;;  %v20047_v51 = vsub.f32 %v17929_v38, %v18363_v48  ;;  %v20049_v63 = vsub.f32 %v17946_v57, %v18363_v48  ;;  %v20050_v21 = vsub.f32 %v17941_v4, %v18363_v48  ;;  %v18649_v44 = vpop.f32.mrf.mxu0 }
 0x91e   :  { %v8968_v11 = vsub.f32 %v20019_v7, %v18363_v48  ;;  %v20026_v7 = vld [vmem:[#allocation23_spill] sm:$0xff]  ;;  %v20051_v26 = vsub.f32 %v17960_v42, %v18363_v48  ;;  %v20052_v38 = vsub.f32 %v17957_v56, %v18363_v48  ;;  %v20053_v57 = vsub.f32 %v17976_v41, %v18363_v48  ;;  %20068 = vst [vmem:[#allocation61_spill] sm:$0xff] %v18649_v44 }
 0x91f   :  { %12302 = vrsqrt.f32 %v9000_v47  ;;  %v20024_v47 = vld [vmem:[#allocation90_spill] sm:$0xff]  ;;  %v8975_v28 = vsub.f32 %v20026_v7, %v18363_v48  ;;  %v20054_v4 = vsub.f32 %v17972_v27, %v18363_v48  ;;  %v20055_v42 = vsub.f32 %v17992_v25, %v18363_v48  ;;  %v18667_v44 = vpop.f32.mrf.mxu0 }
 0x920   :  { %v8973_v12 = vsub.f32 %v20024_v47, %v18363_v48  ;;  %v20056_v56 = vsub.f32 %v17990_v39, %v18363_v48  ;;  %v20057_v41 = vsub.f32 %v18008_v29, %v18363_v48  ;;  %v20058_v27 = vsub.f32 %v18004_v22, %v18363_v48  ;;  %20069 = vst [vmem:[#allocation77_spill] sm:$0xff] %v18667_v44 }
 0x921   :  { %v20059_v25 = vsub.f32 %v18024_v58, %v18363_v48  ;;  %v20060_v39 = vsub.f32 %v18022_v45, %v18363_v48  ;;  %v20061_v29 = vsub.f32 %v18040_v46, %v18363_v48  ;;  %v20062_v22 = vsub.f32 %v18036_v60, %v18363_v48  ;;  %v18628_v46 = vld [vmem:[%s19072_s5] ss:$0 sm:$0xff] }
 0x922   :  { %v20063_v58 = vsub.f32 %v18056_v23, %v18363_v48  ;;  %v20064_v45 = vsub.f32 %v18054_v59, %v18363_v48  ;;  %20066 = vst [vmem:[#allocation55_spill] sm:$0xff] %v18628_v46  ;;  %v20067_v60 = vsub.f32 %v18072_v17, %v18363_v48  ;;  %v20078_v48 = vld [vmem:[#allocation72_spill] sm:$0xff] }
 0x92c   :  { %v18499_v34 = vpop.eup %12302 }
 0x92d   :  { %20031 = vst [vmem:[#allocation57_spill] sm:$0xff] %v18499_v34  ;;  %v9002_v18 = vmul.f32 %v18499_v34, %v20036_v52  ;;  %v9003_v30 = vmul.f32 %v18499_v34, %v20037_v5  ;;  %v9004_v2 = vmul.f32 %v18499_v34, %v20038_v1  ;;  %v9005_v19 = vmul.f32 %v18499_v34, %v20039_v33 }
 0x92e   :  { %v9006_v52 = vmul.f32 %v18499_v34, %v20040_v49  ;;  %v9007_v5 = vmul.f32 %v18499_v34, %v20041_v10  ;;  %v9008_v1 = vmul.f32 %v18499_v34, %v20042_v20  ;;  %v9009_v33 = vmul.f32 %v18499_v34, %v20043_v8 }
 0x92f   :  { %v9010_v49 = vmul.f32 %v18499_v34, %v20044_v31  ;;  %v9011_v10 = vmul.f32 %v18499_v34, %v20045_v0  ;;  %v9012_v20 = vmul.f32 %v18499_v34, %v20046_v54  ;;  %v9013_v8 = vmul.f32 %v18499_v34, %v20047_v51 }
 0x930   :  { %v9014_v31 = vmul.f32 %v18499_v34, %v20049_v63  ;;  %v9015_v0 = vmul.f32 %v18499_v34, %v20050_v21  ;;  %v9016_v54 = vmul.f32 %v18499_v34, %v20051_v26  ;;  %v9017_v51 = vmul.f32 %v18499_v34, %v20052_v38 }
 0x931   :  { %v9018_v63 = vmul.f32 %v18499_v34, %v20053_v57  ;;  %v9019_v21 = vmul.f32 %v18499_v34, %v20054_v4  ;;  %v9020_v26 = vmul.f32 %v18499_v34, %v20055_v42  ;;  %v9021_v38 = vmul.f32 %v18499_v34, %v20056_v56 }
 0x932   :  { %v9022_v57 = vmul.f32 %v18499_v34, %v20057_v41  ;;  %v9023_v4 = vmul.f32 %v18499_v34, %v20058_v27  ;;  %v9024_v42 = vmul.f32 %v18499_v34, %v20059_v25  ;;  %v9025_v56 = vmul.f32 %v18499_v34, %v20060_v39 }
 0x933   :  { %v9026_v41 = vmul.f32 %v18499_v34, %v20061_v29  ;;  %v9027_v27 = vmul.f32 %v18499_v34, %v20062_v22  ;;  %v9028_v25 = vmul.f32 %v18499_v34, %v20063_v58  ;;  %v9029_v39 = vmul.f32 %v18499_v34, %v20064_v45 }
 0x934   :  { %v9030_v29 = vmul.f32 %v18499_v34, %v20067_v60  ;;  %v9031_v23 = vmul.f32 %v18499_v34, %v8965_v55  ;;  %v9032_v22 = vmul.f32 %v18499_v34, %v8966_v50  ;;  %v9033_v59 = vmul.f32 %v18499_v34, %v8967_v9 }
 0x935   :  { %v9034_v58 = vmul.f32 %v18499_v34, %v8968_v11  ;;  %v9035_v45 = vmul.f32 %v18499_v34, %v8969_v35  ;;  %v9036_v32 = vmul.f32 %v18499_v34, %v8970_v53  ;;  %v9037_v14 = vmul.f32 %v18499_v34, %v8971_v6 }
 0x936   :  { %v9038_v7 = vmul.f32 %v18499_v34, %v8972_v24  ;;  %v9039_v17 = vmul.f32 %v18499_v34, %v8973_v12  ;;  %v9040_v60 = vmul.f32 %v18499_v34, %v8974_v37  ;;  %v9041_v55 = vmul.f32 %v18499_v34, %v8975_v28 }
 0x937   :  { %v9043_v50 = vmul.f32 %v18499_v34, %v8977_v40  ;;  %v9073_v9 = vmul.f32 %v18628_v46, %v9002_v18  ;;  %v9074_v11 = vmul.f32 %v18628_v46, %v9003_v30  ;;  %v9075_v35 = vmul.f32 %v18628_v46, %v9004_v2  ;;  %v20077_v34 = vld [vmem:[#allocation68_spill] sm:$0xff] }
 0x938   :  { %v9076_v6 = vmul.f32 %v18628_v46, %v9005_v19  ;;  %v9077_v53 = vmul.f32 %v18628_v46, %v9006_v52  ;;  %v9078_v24 = vmul.f32 %v18628_v46, %v9007_v5  ;;  %v9079_v37 = vmul.f32 %v18628_v46, %v9008_v1 }
 0x939   :  { %v9080_v28 = vmul.f32 %v18628_v46, %v9009_v33  ;;  %v9081_v40 = vmul.f32 %v18628_v46, %v9010_v49  ;;  %v9082_v18 = vmul.f32 %v18628_v46, %v9011_v10  ;;  %v9083_v30 = vmul.f32 %v18628_v46, %v9012_v20 }
 0x93a   :  { %v9084_v12 = vmul.f32 %v18628_v46, %v9013_v8  ;;  %v9085_v2 = vmul.f32 %v18628_v46, %v9014_v31  ;;  %v9086_v19 = vmul.f32 %v18628_v46, %v9015_v0  ;;  %v9087_v52 = vmul.f32 %v18628_v46, %v9016_v54 }
 0x93b   :  { %v9088_v5 = vmul.f32 %v18628_v46, %v9017_v51  ;;  %v9089_v1 = vmul.f32 %v18628_v46, %v9018_v63  ;;  %v9090_v33 = vmul.f32 %v18628_v46, %v9019_v21  ;;  %v9091_v49 = vmul.f32 %v18628_v46, %v9020_v26  ;;  %v18680_v21 = vld [vmem:[%s19073_s6] ss:$0 sm:$0xff]  ;;  %s12361_s6 = smov [#allocation7]  }
 0x93c   :  { %v9092_v10 = vmul.f32 %v18628_v46, %v9021_v38  ;;  %v9093_v20 = vmul.f32 %v18628_v46, %v9022_v57  ;;  %v9094_v8 = vmul.f32 %v18628_v46, %v9023_v4  ;;  %v9095_v31 = vmul.f32 %v18628_v46, %v9024_v42  ;;  %20070 = vst [vmem:[#allocation62_spill] sm:$0xff] %v18680_v21  ;;  %s9922_s1 = sshll.u32 %s12361_s6, 4  ;;  %s9923_s1 = int_to_ptr.vmem [resolvable:$true] %s9922_s1 }
 0x93d   :  { %v9096_v0 = vmul.f32 %v18628_v46, %v9025_v56  ;;  %v9097_v54 = vmul.f32 %v18628_v46, %v9026_v41  ;;  %v9098_v51 = vmul.f32 %v18628_v46, %v9027_v27  ;;  %v9099_v63 = vmul.f32 %v18628_v46, %v9028_v25  ;;  %v18690_v25 = vpop.f32.mrf.mxu0  ;;  %s12326_s26 = scalar_lea.vmem %s9923_s1, 8192  ;;  %p12331_p6 = scmp.lt.s32.totalorder %s9923_s1, %s9923_s1 }
 0x93e   :  { %v9100_v26 = vmul.f32 %v18628_v46, %v9029_v39  ;;  %v9101_v38 = vmul.f32 %v18628_v46, %v9030_v29  ;;  %v9102_v57 = vmul.f32 %v18628_v46, %v9031_v23  ;;  %v9103_v4 = vmul.f32 %v18628_v46, %v9032_v22  ;;  %20071 = vst [vmem:[#allocation60_spill] sm:$0xff] %v18690_v25  ;;  %p12327_p5 = scmp.ne.s32.totalorder %s9923_s1, %s12326_s26  ;;  %p12332_p7 = scmp.lt.s32.totalorder %s12326_s26, %s12326_s26 }
 0x93f   :  { %v9104_v42 = vmul.f32 %v18628_v46, %v9033_v59  ;;  %v9105_v56 = vmul.f32 %v18628_v46, %v9034_v58  ;;  %v9106_v41 = vmul.f32 %v18628_v46, %v9035_v45  ;;  %v9107_v27 = vmul.f32 %v18628_v46, %v9036_v32  ;;  %v18708_v47 = vpop.f32.mrf.mxu0 }
 0x940   :  { %v9108_v44 = vmul.f32 %v18628_v46, %v9037_v14  ;;  %v9109_v39 = vmul.f32 %v18628_v46, %v9038_v7  ;;  %v9110_v29 = vmul.f32 %v18628_v46, %v9039_v17  ;;  %v9111_v23 = vmul.f32 %v18628_v46, %v9040_v60  ;;  %20072 = vst [vmem:[#allocation59_spill] sm:$0xff] %v18708_v47  ;;  %p12333_p8 = por %p12332_p7, %p12331_p6 }
 0x941   :  { %v9112_v22 = vmul.f32 %v18628_v46, %v9041_v55  ;;  %v9114_v59 = vmul.f32 %v18628_v46, %v9043_v50  ;;  %v9144_v58 = vadd.f32 %v18680_v21, %v9073_v9  ;;  %v9145_v45 = vadd.f32 %v18680_v21, %v9074_v11  ;;  %v18726_v47 = vpop.f32.mrf.mxu0  ;;  %v20076_v46 = vld [vmem:[#allocation69_spill] sm:$0xff] }
 0x942   :  { %v9146_v32 = vadd.f32 %v18680_v21, %v9075_v35  ;;  %v9147_v25 = vadd.f32 %v18680_v21, %v9076_v6  ;;  %v9148_v14 = vadd.f32 %v18680_v21, %v9077_v53  ;;  %v9149_v7 = vadd.f32 %v18680_v21, %v9078_v24  ;;  %20073 = vst [vmem:[#allocation64_spill] sm:$0xff] %v18726_v47  ;;  %v20074_v47 = vld [vmem:[#allocation66_spill] sm:$0xff]  ;;  %p12334_p9 = pnand %p12333_p8, %p12327_p5 }
 0x943   :  { %v9150_v17 = vadd.f32 %v18680_v21, %v9079_v37  ;;  %v9151_v60 = vadd.f32 %v18680_v21, %v9080_v28  ;;  %v9152_v55 = vadd.f32 %v18680_v21, %v9081_v40  ;;  %v9153_v50 = vadd.f32 %v18680_v21, %v9082_v18  ;;  %v18744_v13 = vpop.f32.mrf.mxu0 }
 0x944   :  { %v9154_v9 = vadd.f32 %v18680_v21, %v9083_v30  ;;  %v9155_v11 = vadd.f32 %v18680_v21, %v9084_v12  ;;  %v9156_v35 = vadd.f32 %v18680_v21, %v9085_v2  ;;  %v9157_v6 = vadd.f32 %v18680_v21, %v9086_v19 }
 0x945   :  { %v9158_v53 = vadd.f32 %v18680_v21, %v9087_v52  ;;  %v9159_v24 = vadd.f32 %v18680_v21, %v9088_v5  ;;  %v9160_v37 = vadd.f32 %v18680_v21, %v9089_v1  ;;  %v9161_v28 = vadd.f32 %v18680_v21, %v9090_v33 }
 0x946   :  { %v9162_v40 = vadd.f32 %v18680_v21, %v9091_v49  ;;  %v9163_v18 = vadd.f32 %v18680_v21, %v9092_v10  ;;  %v9164_v30 = vadd.f32 %v18680_v21, %v9093_v20  ;;  %v9165_v12 = vadd.f32 %v18680_v21, %v9094_v8 }
 0x947   :  { %v9166_v2 = vadd.f32 %v18680_v21, %v9095_v31  ;;  %v9167_v19 = vadd.f32 %v18680_v21, %v9096_v0  ;;  %v9168_v52 = vadd.f32 %v18680_v21, %v9097_v54  ;;  %v9169_v5 = vadd.f32 %v18680_v21, %v9098_v51 }
 0x948   :  { %v9170_v1 = vadd.f32 %v18680_v21, %v9099_v63  ;;  %v9171_v33 = vadd.f32 %v18680_v21, %v9100_v26  ;;  %v9172_v49 = vadd.f32 %v18680_v21, %v9101_v38  ;;  %v9173_v10 = vadd.f32 %v18680_v21, %v9102_v57 }
 0x949   :  { %v9174_v20 = vadd.f32 %v18680_v21, %v9103_v4  ;;  %v9175_v8 = vadd.f32 %v18680_v21, %v9104_v42  ;;  %v9176_v31 = vadd.f32 %v18680_v21, %v9105_v56  ;;  %v9177_v0 = vadd.f32 %v18680_v21, %v9106_v41  ;;  %v20075_v56 = vld [vmem:[#allocation65_spill] sm:$0xff] }
 0x94a   :  { %v9178_v54 = vadd.f32 %v18680_v21, %v9107_v27  ;;  %v9179_v51 = vadd.f32 %v18680_v21, %v9108_v44  ;;  %v9180_v63 = vadd.f32 %v18680_v21, %v9109_v39  ;;  %v9181_v26 = vadd.f32 %v18680_v21, %v9110_v29 }
 0x94b   :  { %v9182_v38 = vadd.f32 %v18680_v21, %v9111_v23  ;;  %v9183_v57 = vadd.f32 %v18680_v21, %v9112_v22  ;;  %v9185_v4 = vadd.f32 %v18680_v21, %v9114_v59  ;;  %v9725_v42 = vadd.f32 %v20074_v47, %v9144_v58  ;;  %v20081_v59 = vld [vmem:[#allocation73_spill] sm:$0xff]  ;;  %v20082_v47 = vld [vmem:[#allocation78_spill] sm:$0xff] }
 0x94c   :  { %v9726_v41 = vadd.f32 %v20075_v56, %v9145_v45  ;;  %v9727_v27 = vadd.f32 %v20076_v46, %v9146_v32  ;;  %v9728_v44 = vadd.f32 %v20077_v34, %v9147_v25  ;;  %v9729_v39 = vadd.f32 %v20078_v48, %v9148_v14  ;;  %v20083_v45 = vld [vmem:[#allocation79_spill] sm:$0xff]  ;;  %v20084_v46 = vld [vmem:[#allocation10_spill] sm:$0xff]  ;;  %v20085_v48 = vld [vmem:[#allocation88_spill] sm:$0xff] }
 0x94d   :  { %v9766_v29 = vadd.f32 %v18395_v15, %v9185_v4  ;;  %v9730_v23 = vadd.f32 %v20079_v62, %v9149_v7  ;;  %v18753_v22 = vadd.f32 %v20080_v3, %v9150_v17  ;;  %v18756_v21 = vadd.f32 %v20081_v59, %v9151_v60  ;;  %v20086_v62 = vld [vmem:[#allocation12_spill] sm:$0xff]  ;;  %v20087_v3 = vld [vmem:[#allocation11_spill] sm:$0xff]  ;;  %v20088_v7 = vld [vmem:[#allocation14_spill] sm:$0xff]  ;;  %v18779_v60 = vpop.f32.mrf.mxu0 }
 0x94e   :  { %v18759_v58 = vadd.f32 %v20082_v47, %v9152_v55  ;;  %v18762_v56 = vadd.f32 %v20083_v45, %v9153_v50  ;;  %v18765_v34 = vadd.f32 %v20084_v46, %v9154_v9  ;;  %v18768_v25 = vadd.f32 %v20085_v48, %v9155_v11  ;;  %v20089_v55 = vld [vmem:[#allocation13_spill] sm:$0xff]  ;;  %v20090_v9 = vld [vmem:[#allocation16_spill] sm:$0xff]  ;;  %v20091_v11 = vld [vmem:[#allocation15_spill] sm:$0xff] }
 0x94f   :  { %v9830_v15 = vmax.f32 %v9766_v29, 0.0  ;;  %v18771_v32 = vadd.f32 %v20086_v62, %v9156_v35  ;;  %v18774_v14 = vadd.f32 %v20087_v3, %v9157_v6  ;;  %v18777_v17 = vadd.f32 %v20088_v7, %v9158_v53  ;;  %v20092_v29 = vld [vmem:[#allocation21_spill] sm:$0xff]  ;;  %v20093_v6 = vld [vmem:[#allocation19_spill] sm:$0xff]  ;;  %v20094_v53 = vld [vmem:[#allocation24_spill] sm:$0xff] }
 0x950   :  { %v18782_v50 = vadd.f32 %v20089_v55, %v9159_v24  ;;  %v18785_v4 = vadd.f32 %v20090_v9, %v9160_v37  ;;  %v18788_v59 = vadd.f32 %v20091_v11, %v9161_v28  ;;  %v18791_v35 = vadd.f32 %v20092_v29, %v9162_v40  ;;  %v20095_v46 = vld [vmem:[#allocation93_spill] sm:$0xff]  ;;  %v20096_v24 = vld [vmem:[#allocation83_spill] sm:$0xff] }
 0x951   :  { %9894 = vst [vmem:[#allocation7 + $0x148] sm:$0xff] %v9830_v15  ;;  %v18794_v47 = vadd.f32 %v20093_v6, %v9163_v18  ;;  %v18797_v45 = vadd.f32 %v20094_v53, %v9164_v30  ;;  %v18800_v48 = vadd.f32 %v20095_v46, %v9165_v12  ;;  %v18803_v62 = vadd.f32 %v20096_v24, %v9166_v2  ;;  %v20097_v37 = vld [vmem:[#allocation75_spill] sm:$0xff]  ;;  %v20098_v28 = vld [vmem:[#allocation85_spill] sm:$0xff]  ;;  %v20100_v18 = vld [vmem:[#allocation36_spill] sm:$0xff] }
 0x952   :  { %v18806_v3 = vadd.f32 %v20097_v37, %v9167_v19  ;;  %v18809_v7 = vadd.f32 %v20098_v28, %v9168_v52  ;;  %v20099_v40 = vld [vmem:[#allocation87_spill] sm:$0xff]  ;;  %v18815_v55 = vadd.f32 %v20100_v18, %v9170_v1  ;;  %v20101_v30 = vld [vmem:[#allocation34_spill] sm:$0xff]  ;;  %v20102_v12 = vld [vmem:[#allocation41_spill] sm:$0xff]  ;;  %v18829_v52 = vpop.f32.mrf.mxu0  ;;  %v18850_v28 = vadd.f32 %v18359_v36, %v9181_v26 }
 0x953   :  { %v18812_v15 = vadd.f32 %v20099_v40, %v9169_v5  ;;  %v18818_v9 = vadd.f32 %v20101_v30, %v9171_v33  ;;  %v18821_v11 = vadd.f32 %v20102_v12, %v9172_v49  ;;  %v20103_v2 = vld [vmem:[#allocation39_spill] sm:$0xff]  ;;  %v20104_v19 = vld [vmem:[#allocation44_spill] sm:$0xff]  ;;  %v20106_v46 = vld [vmem:[#allocation50_spill] sm:$0xff]  ;;  %v18841_v49 = vadd.f32 %v18357_v43, %v9178_v54 }
 0x954   :  { %v18824_v29 = vadd.f32 %v20103_v2, %v9173_v10  ;;  %v18827_v6 = vadd.f32 %v20104_v19, %v9174_v20  ;;  %v20105_v53 = vld [vmem:[#allocation40_spill] sm:$0xff]  ;;  %v18835_v1 = vadd.f32 %v20106_v46, %v9176_v31  ;;  %v20108_v37 = vld [vmem:[#allocation94_spill] sm:$0xff]  ;;  %v18847_v20 = vadd.f32 %v18361_v16, %v9180_v63  ;;  %v20113_v43 = vld [vmem:[#allocation57_spill] sm:$0xff] }
 0x955   :  { %v18832_v5 = vadd.f32 %v20105_v53, %v9175_v8  ;;  %v20107_v24 = vld [vmem:[#allocation48_spill] sm:$0xff]  ;;  %v18844_v10 = vadd.f32 %v20108_v37, %v9179_v51  ;;  %v18853_v8 = vadd.f32 %v18371_v61, %v9182_v38  ;;  %v20111_v18 = vld [vmem:[#allocation54_spill] sm:$0xff]  ;;  %v9789_v12 = vmax.f32 %v9725_v42, 0.0  ;;  %v18862_v53 = vpop.f32.mrf.mxu0  ;;  %v20114_v36 = vld [vmem:[#allocation55_spill] sm:$0xff] }
 0x956   :  { %v18838_v33 = vadd.f32 %v20107_v24, %v9177_v0  ;;  %v20109_v31 = vld [vmem:[#allocation52_spill] sm:$0xff]  ;;  %v20110_v0 = vld [vmem:[#allocation25_spill] sm:$0xff]  ;;  %v9790_v51 = vmax.f32 %v9726_v41, 0.0  ;;  %v9791_v2 = vmax.f32 %v9727_v27, 0.0  ;;  %v9792_v19 = vmax.f32 %v9728_v44, 0.0  ;;  %v20115_v44 = vld [vmem:[#allocation62_spill] sm:$0xff] }
 0x957   :  { %v18856_v40 = vadd.f32 %v20109_v31, %v9183_v57  ;;  %v20112_v30 = vsub.f32 %v20110_v0, %v20111_v18  ;;  %v9793_v16 = vmax.f32 %v9729_v39, 0.0  ;;  %v9794_v63 = vmax.f32 %v9730_v23, 0.0  ;;  %9853 = vst [vmem:[#allocation7] sm:$0xff] %v9789_v12  ;;  %v20123_v12 = vld [vmem:[#allocation27_spill] sm:$0xff] }
 0x958   :  { %v9795_v61 = vmax.f32 %v18753_v22, 0.0  ;;  %v9796_v38 = vmax.f32 %v18756_v21, 0.0  ;;  %v9797_v57 = vmax.f32 %v18759_v58, 0.0  ;;  %9854 = vst [vmem:[#allocation7 + $0x8] sm:$0xff] %v9790_v51  ;;  %v9798_v46 = vmax.f32 %v18762_v56, 0.0  ;;  %9855 = vst [vmem:[#allocation7 + $0x10] sm:$0xff] %v9791_v2 }
 0x959   :  { %v9042_v54 = vmul.f32 %v20113_v43, %v20112_v30  ;;  %v9799_v42 = vmax.f32 %v18765_v34, 0.0  ;;  %v9800_v41 = vmax.f32 %v18768_v25, 0.0  ;;  %v9801_v27 = vmax.f32 %v18771_v32, 0.0  ;;  %9856 = vst [vmem:[#allocation7 + $0x18] sm:$0xff] %v9792_v19  ;;  %9857 = vst [vmem:[#allocation7 + $0x20] sm:$0xff] %v9793_v16  ;;  %v18880_v32 = vpop.f32.mrf.mxu0  ;;  %v20125_v19 = vld [vmem:[#allocation82_spill] sm:$0xff] }
 0x95a   :  { %9858 = vst [vmem:[#allocation7 + $0x28] sm:$0xff] %v9794_v63  ;;  %v9802_v21 = vmax.f32 %v18774_v14, 0.0  ;;  %v9803_v23 = vmax.f32 %v18777_v17, 0.0  ;;  %v9804_v22 = vmax.f32 %v18782_v50, 0.0  ;;  %9859 = vst [vmem:[#allocation7 + $0x30] sm:$0xff] %v9795_v61  ;;  %v9805_v58 = vmax.f32 %v18785_v4, 0.0 }
 0x95b   :  { %v9113_v26 = vmul.f32 %v20114_v36, %v9042_v54  ;;  %9860 = vst [vmem:[#allocation7 + $0x38] sm:$0xff] %v9796_v38  ;;  %9861 = vst [vmem:[#allocation7 + $0x40] sm:$0xff] %v9797_v57  ;;  %v9806_v56 = vmax.f32 %v18788_v59, 0.0  ;;  %v9807_v34 = vmax.f32 %v18791_v35, 0.0  ;;  %v9808_v25 = vmax.f32 %v18794_v47, 0.0  ;;  %v20116_v14 = vld [vmem:[#allocation74_spill] sm:$0xff] }
 0x95c   :  { %9862 = vst [vmem:[#allocation7 + $0x48] sm:$0xff] %v9798_v46  ;;  %9863 = vst [vmem:[#allocation7 + $0x50] sm:$0xff] %v9799_v42  ;;  %v9809_v50 = vmax.f32 %v18797_v45, 0.0  ;;  %v9810_v24 = vmax.f32 %v18800_v48, 0.0  ;;  %v9811_v4 = vmax.f32 %v18803_v62, 0.0  ;;  %v9812_v59 = vmax.f32 %v18806_v3, 0.0 }
 0x95d   :  { %v9184_v39 = vadd.f32 %v20115_v44, %v9113_v26  ;;  %9864 = vst [vmem:[#allocation7 + $0x58] sm:$0xff] %v9800_v41  ;;  %9865 = vst [vmem:[#allocation7 + $0x60] sm:$0xff] %v9801_v27  ;;  %v9813_v35 = vmax.f32 %v18809_v7, 0.0  ;;  %v9814_v47 = vmax.f32 %v18812_v15, 0.0  ;;  %v9815_v37 = vmax.f32 %v18815_v55, 0.0  ;;  %v20127_v26 = vld [vmem:[#allocation86_spill] sm:$0xff] }
 0x95e   :  { %9866 = vst [vmem:[#allocation7 + $0x68] sm:$0xff] %v9802_v21  ;;  %9867 = vst [vmem:[#allocation7 + $0x70] sm:$0xff] %v9803_v23  ;;  %v9816_v48 = vmax.f32 %v18818_v9, 0.0  ;;  %v9817_v62 = vmax.f32 %v18821_v11, 0.0  ;;  %v9818_v31 = vmax.f32 %v18824_v29, 0.0  ;;  %v9819_v3 = vmax.f32 %v18827_v6, 0.0  ;;  %v18897_v9 = vpop.f32.mrf.mxu0 }
 0x95f   :  { %v9765_v17 = vadd.f32 %v20116_v14, %v9184_v39  ;;  %9868 = vst [vmem:[#allocation7 + $0x78] sm:$0xff] %v9804_v22  ;;  %9869 = vst [vmem:[#allocation7 + $0x80] sm:$0xff] %v9805_v58  ;;  %v9820_v7 = vmax.f32 %v18832_v5, 0.0  ;;  %v9821_v15 = vmax.f32 %v18835_v1, 0.0  ;;  %v9822_v55 = vmax.f32 %v18838_v33, 0.0  ;;  %v20117_v33 = vld [vmem:[#allocation26_spill] sm:$0xff] }
 0x960   :  { %9870 = vst [vmem:[#allocation7 + $0x88] sm:$0xff] %v9806_v56  ;;  %9871 = vst [vmem:[#allocation7 + $0x90] sm:$0xff] %v9807_v34  ;;  %v9823_v11 = vmax.f32 %v18841_v49, 0.0  ;;  %v9824_v29 = vmax.f32 %v18844_v10, 0.0  ;;  %v9825_v0 = vmax.f32 %v18847_v20, 0.0  ;;  %v9826_v6 = vmax.f32 %v18850_v28, 0.0  ;;  %v18939_v22 = vpop.f32.mrf.mxu0 }
 0x961   :  { %9872 = vst [vmem:[#allocation7 + $0x98] sm:$0xff] %v9808_v25  ;;  %v9829_v45 = vmax.f32 %v9765_v17, 0.0  ;;  %9873 = vst [vmem:[#allocation7 + $0xa0] sm:$0xff] %v9809_v50  ;;  %v9827_v5 = vmax.f32 %v18853_v8, 0.0  ;;  %v9828_v1 = vmax.f32 %v18856_v40, 0.0  ;;  %v20118_v30 = vsub.f32 %v20117_v33, %v20111_v18  ;;  %v20119_v49 = vld [vmem:[#allocation28_spill] sm:$0xff] }
 0x962   :  { %9874 = vst [vmem:[#allocation7 + $0xa8] sm:$0xff] %v9810_v24  ;;  %9875 = vst [vmem:[#allocation7 + $0xb0] sm:$0xff] %v9811_v4  ;;  %v20120_v10 = vsub.f32 %v20119_v49, %v20111_v18  ;;  %v20121_v28 = vld [vmem:[#allocation29_spill] sm:$0xff]  ;;  %v20124_v51 = vsub.f32 %v20123_v12, %v20111_v18  ;;  %v20126_v16 = vsub.f32 %v20125_v19, %v20111_v18  ;;  %v20129_v42 = vld [vmem:[#allocation92_spill] sm:$0xff] }
 0x963   :  { %9876 = vst [vmem:[#allocation7 + $0xb8] sm:$0xff] %v9812_v59  ;;  %9877 = vst [vmem:[#allocation7 + $0xc0] sm:$0xff] %v9813_v35  ;;  %v9045_v54 = vmul.f32 %v20113_v43, %v20118_v30  ;;  %v20122_v8 = vsub.f32 %v20121_v28, %v20111_v18  ;;  %v20128_v61 = vsub.f32 %v20127_v26, %v20111_v18  ;;  %v20131_v39 = vld [vmem:[#allocation30_spill] sm:$0xff]  ;;  %v20141_v19 = vld [vmem:[#allocation31_spill] sm:$0xff] }
 0x964   :  { %9878 = vst [vmem:[#allocation7 + $0xc8] sm:$0xff] %v9814_v47  ;;  %9879 = vst [vmem:[#allocation7 + $0xd0] sm:$0xff] %v9815_v37  ;;  %v9044_v20 = vmul.f32 %v20113_v43, %v20120_v10  ;;  %v9046_v2 = vmul.f32 %v20113_v43, %v20124_v51  ;;  %v9049_v63 = vmul.f32 %v20113_v43, %v20126_v16  ;;  %v20133_v37 = vld [vmem:[#allocation56_spill] sm:$0xff]  ;;  %v20140_v10 = vld [vmem:[#allocation59_spill] sm:$0xff] }
 0x965   :  { %9893 = vst [vmem:[#allocation7 + $0x140] sm:$0xff] %v9829_v45  ;;  %9880 = vst [vmem:[#allocation7 + $0xd8] sm:$0xff] %v9816_v48  ;;  %v9047_v40 = vmul.f32 %v20113_v43, %v20122_v8  ;;  %v9048_v38 = vmul.f32 %v20113_v43, %v20128_v61  ;;  %v9116_v57 = vmul.f32 %v20114_v36, %v9045_v54  ;;  %v20134_v48 = vld [vmem:[#allocation53_spill] sm:$0xff]  ;;  %v20139_v54 = vld [vmem:[#allocation60_spill] sm:$0xff] }
 0x966   :  { %9881 = vst [vmem:[#allocation7 + $0xe0] sm:$0xff] %v9817_v62  ;;  %9882 = vst [vmem:[#allocation7 + $0xe8] sm:$0xff] %v9818_v31  ;;  %v9115_v46 = vmul.f32 %v20114_v36, %v9044_v20  ;;  %v20130_v41 = vsub.f32 %v20129_v42, %v20111_v18  ;;  %v20132_v21 = vsub.f32 %v20131_v39, %v20111_v18  ;;  %v20143_v26 = vld [vmem:[#allocation32_spill] sm:$0xff] }
 0x967   :  { %9883 = vst [vmem:[#allocation7 + $0xf0] sm:$0xff] %v9819_v3  ;;  %9884 = vst [vmem:[#allocation7 + $0xf8] sm:$0xff] %v9820_v7  ;;  %v9118_v58 = vmul.f32 %v20114_v36, %v9047_v40  ;;  %v9117_v56 = vmul.f32 %v20114_v36, %v9046_v2  ;;  %v9120_v34 = vmul.f32 %v20114_v36, %v9049_v63  ;;  %v18957_v7 = vpop.f32.mrf.mxu0 }
 0x968   :  { %9885 = vst [vmem:[#allocation7 + $0x100] sm:$0xff] %v9821_v15  ;;  %9886 = vst [vmem:[#allocation7 + $0x108] sm:$0xff] %v9822_v55  ;;  %v9051_v27 = vmul.f32 %v20113_v43, %v20130_v41  ;;  %v9050_v23 = vmul.f32 %v20113_v43, %v20132_v21  ;;  %v9119_v25 = vmul.f32 %v20114_v36, %v9048_v38  ;;  %v20135_v15 = vld [vmem:[#allocation84_spill] sm:$0xff] }
 0x969   :  { %9887 = vst [vmem:[#allocation7 + $0x110] sm:$0xff] %v9823_v11  ;;  %9888 = vst [vmem:[#allocation7 + $0x118] sm:$0xff] %v9824_v29  ;;  %v9187_v14 = vadd.f32 %v20115_v44, %v9116_v57  ;;  %v9186_v17 = vadd.f32 %v20115_v44, %v9115_v46  ;;  %v9189_v4 = vadd.f32 %v20115_v44, %v9118_v58  ;;  %v20136_v11 = vld [vmem:[#allocation58_spill] sm:$0xff]  ;;  %v18973_v57 = vpop.f32.mrf.mxu0  ;;  %v20145_v46 = vld [vmem:[#allocation33_spill] sm:$0xff] }
 0x96a   :  { %9889 = vst [vmem:[#allocation7 + $0x120] sm:$0xff] %v9825_v0  ;;  %9890 = vst [vmem:[#allocation7 + $0x128] sm:$0xff] %v9826_v6  ;;  %v9122_v50 = vmul.f32 %v20114_v36, %v9051_v27  ;;  %v9121_v24 = vmul.f32 %v20114_v36, %v9050_v23  ;;  %v9188_v59 = vadd.f32 %v20115_v44, %v9117_v56  ;;  %v20137_v0 = vld [vmem:[#allocation61_spill] sm:$0xff]  ;;  %v20147_v27 = vld [vmem:[#allocation35_spill] sm:$0xff] }
 0x96b   :  { %9891 = vst [vmem:[#allocation7 + $0x130] sm:$0xff] %v9827_v5  ;;  %9892 = vst [vmem:[#allocation7 + $0x138] sm:$0xff] %v9828_v1  ;;  %v9191_v35 = vadd.f32 %v20115_v44, %v9120_v34  ;;  %v9190_v47 = vadd.f32 %v20115_v44, %v9119_v25  ;;  %v9768_v45 = vadd.f32 %v20133_v37, %v9187_v14  ;;  %v20138_v5 = vld [vmem:[#allocation77_spill] sm:$0xff]  ;;  %v20151_v34 = vld [vmem:[#allocation43_spill] sm:$0xff] }
 0x96c   :  { %v9767_v62 = vadd.f32 %v20134_v48, %v9186_v17  ;;  %v9193_v31 = vadd.f32 %v20115_v44, %v9122_v50  ;;  %v9192_v3 = vadd.f32 %v20115_v44, %v9121_v24  ;;  %v9770_v55 = vadd.f32 %v20135_v15, %v9189_v4  ;;  %v20149_v23 = vld [vmem:[#allocation37_spill] sm:$0xff]  ;;  %v20153_v24 = vld [vmem:[#allocation38_spill] sm:$0xff] }
 0x96d   :  { %v9769_v29 = vadd.f32 %v20136_v11, %v9188_v59  ;;  %v9772_v6 = vadd.f32 %v20137_v0, %v9191_v35  ;;  %v9771_v1 = vadd.f32 %v20138_v5, %v9190_v47  ;;  %v9832_v33 = vmax.f32 %v9768_v45, 0.0  ;;  %v20155_v35 = vld [vmem:[#allocation42_spill] sm:$0xff] }
 0x96e   :  { %v9831_v30 = vmax.f32 %v9767_v62, 0.0  ;;  %v9774_v49 = vadd.f32 %v20139_v54, %v9193_v31  ;;  %v9773_v20 = vadd.f32 %v20140_v10, %v9192_v3  ;;  %v9834_v28 = vmax.f32 %v9770_v55, 0.0 }
 0x96f   :  { %v9833_v8 = vmax.f32 %v9769_v29, 0.0  ;;  %v9836_v40 = vmax.f32 %v9772_v6, 0.0  ;;  %v9835_v12 = vmax.f32 %v9771_v1, 0.0  ;;  %9896 = vst [vmem:[#allocation7 + $0x158] sm:$0xff] %v9832_v33  ;;  %v20142_v16 = vsub.f32 %v20141_v19, %v20111_v18  ;;  %v12274_v29 = vpop.f32.mrf.mxu0  ;;  %v20157_v33 = vld [vmem:[#allocation64_spill] sm:$0xff] }
 0x970   :  { %9895 = vst [vmem:[#allocation7 + $0x150] sm:$0xff] %v9831_v30  ;;  %v9838_v51 = vmax.f32 %v9774_v49, 0.0  ;;  %v9837_v2 = vmax.f32 %v9773_v20, 0.0  ;;  %v20144_v61 = vsub.f32 %v20143_v26, %v20111_v18  ;;  %9898 = vst [vmem:[#allocation7 + $0x168] sm:$0xff] %v9834_v28  ;;  %v20146_v42 = vsub.f32 %v20145_v46, %v20111_v18  ;;  %v20160_v46 = vld [vmem:[#allocation46_spill] sm:$0xff] }
 0x971   :  { %v9053_v63 = vmul.f32 %v20113_v43, %v20142_v16  ;;  %9897 = vst [vmem:[#allocation7 + $0x160] sm:$0xff] %v9833_v8  ;;  %9900 = vst [vmem:[#allocation7 + $0x178] sm:$0xff] %v9836_v40  ;;  %v20148_v39 = vsub.f32 %v20147_v27, %v20111_v18  ;;  %v20150_v58 = vsub.f32 %v20149_v23, %v20111_v18  ;;  %v9706_v16 = vpop.f32.mrf.mxu0 }
 0x972   :  { %v9052_v38 = vmul.f32 %v20113_v43, %v20144_v61  ;;  %9899 = vst [vmem:[#allocation7 + $0x170] sm:$0xff] %v9835_v12  ;;  %v9055_v41 = vmul.f32 %v20113_v43, %v20146_v42  ;;  %v20152_v25 = vsub.f32 %v20151_v34, %v20111_v18  ;;  %9902 = vst [vmem:[#allocation7 + $0x188] sm:$0xff] %v9838_v51 }
 0x973   :  { %v9054_v21 = vmul.f32 %v20113_v43, %v20148_v39  ;;  %v9057_v56 = vmul.f32 %v20113_v43, %v20150_v58  ;;  %9901 = vst [vmem:[#allocation7 + $0x180] sm:$0xff] %v9837_v2  ;;  %v9124_v17 = vmul.f32 %v20114_v36, %v9053_v63  ;;  %v20154_v4 = vsub.f32 %v20153_v24, %v20111_v18  ;;  %v20164_v39 = vld [vmem:[#allocation49_spill] sm:$0xff] }
 0x974   :  { %v9056_v14 = vmul.f32 %v20113_v43, %v20152_v25  ;;  %v9123_v50 = vmul.f32 %v20114_v36, %v9052_v38  ;;  %v20156_v47 = vsub.f32 %v20155_v35, %v20111_v18  ;;  %v9126_v45 = vmul.f32 %v20114_v36, %v9055_v41  ;;  %v20166_v58 = vld [vmem:[#allocation89_spill] sm:$0xff]  ;;  %v20168_v25 = vld [vmem:[#allocation51_spill] sm:$0xff] }
 0x975   :  { %v9059_v59 = vmul.f32 %v20113_v43, %v20154_v4  ;;  %v9125_v48 = vmul.f32 %v20114_v36, %v9054_v21  ;;  %v9128_v62 = vmul.f32 %v20114_v36, %v9057_v56  ;;  %v9195_v3 = vadd.f32 %v20115_v44, %v9124_v17  ;;  %v12277_v4 = vpop.f32.mrf.mxu0 }
 0x976   :  { %v9058_v37 = vmul.f32 %v20113_v43, %v20156_v47  ;;  %v9127_v31 = vmul.f32 %v20114_v36, %v9056_v14  ;;  %v9194_v15 = vadd.f32 %v20115_v44, %v9123_v50  ;;  %v9197_v0 = vadd.f32 %v20115_v44, %v9126_v45 }
 0x977   :  { %v9130_v55 = vmul.f32 %v20114_v36, %v9059_v59  ;;  %v9196_v6 = vadd.f32 %v20115_v44, %v9125_v48  ;;  %v9199_v5 = vadd.f32 %v20115_v44, %v9128_v62  ;;  %v9776_v30 = vadd.f32 %v20157_v33, %v9195_v3 }
 0x978   :  { %v9129_v11 = vmul.f32 %v20114_v36, %v9058_v37  ;;  %v9198_v1 = vadd.f32 %v20115_v44, %v9127_v31  ;;  %v9775_v54 = vadd.f32 %v18744_v13, %v9194_v15  ;;  %v9778_v20 = vadd.f32 %v18779_v60, %v9197_v0 }
 0x979   :  { %v9201_v49 = vadd.f32 %v20115_v44, %v9130_v55  ;;  %v9777_v28 = vadd.f32 %v18829_v52, %v9196_v6  ;;  %v9780_v8 = vadd.f32 %v18862_v53, %v9199_v5  ;;  %v9840_v12 = vmax.f32 %v9776_v30, 0.0  ;;  %v20158_v52 = vld [vmem:[#allocation45_spill] sm:$0xff]  ;;  %v9716_v55 = vpop.f32.mrf.mxu0 }
 0x97a   :  { %v9200_v10 = vadd.f32 %v20115_v44, %v9129_v11  ;;  %v9779_v40 = vadd.f32 %v18880_v32, %v9198_v1  ;;  %v9839_v51 = vmax.f32 %v9775_v54, 0.0  ;;  %v9842_v13 = vmax.f32 %v9778_v20, 0.0 }
 0x97b   :  { %v9782_v2 = vadd.f32 %v18897_v9, %v9201_v49  ;;  %v9841_v63 = vmax.f32 %v9777_v28, 0.0  ;;  %v9844_v26 = vmax.f32 %v9780_v8, 0.0  ;;  %9904 = vst [vmem:[#allocation7 + $0x198] sm:$0xff] %v9840_v12  ;;  %v20159_v53 = vsub.f32 %v20158_v52, %v20111_v18 }
 0x97c   :  { %v9781_v19 = vadd.f32 %v18939_v22, %v9200_v10  ;;  %v9843_v61 = vmax.f32 %v9779_v40, 0.0  ;;  %9903 = vst [vmem:[#allocation7 + $0x190] sm:$0xff] %v9839_v51  ;;  %v20161_v42 = vsub.f32 %v20160_v46, %v20111_v18  ;;  %9906 = vst [vmem:[#allocation7 + $0x1a8] sm:$0xff] %v9842_v13  ;;  %v20162_v22 = vld [vmem:[#allocation47_spill] sm:$0xff]  ;;  %v20165_v21 = vsub.f32 %v20164_v39, %v20111_v18 }
 0x97d   :  { %v9846_v60 = vmax.f32 %v9782_v2, 0.0  ;;  %v9061_v32 = vmul.f32 %v20113_v43, %v20159_v53  ;;  %9905 = vst [vmem:[#allocation7 + $0x1a0] sm:$0xff] %v9841_v63  ;;  %9908 = vst [vmem:[#allocation7 + $0x1b8] sm:$0xff] %v9844_v26  ;;  %v20163_v41 = vsub.f32 %v20162_v22, %v20111_v18  ;;  %v20167_v56 = vsub.f32 %v20166_v58, %v20111_v18 }
 0x97e   :  { %v9845_v38 = vmax.f32 %v9781_v19, 0.0  ;;  %v9060_v9 = vmul.f32 %v20113_v43, %v20161_v42  ;;  %9907 = vst [vmem:[#allocation7 + $0x1b0] sm:$0xff] %v9843_v61  ;;  %v9062_v23 = vmul.f32 %v20113_v43, %v20165_v21  ;;  %v20169_v14 = vsub.f32 %v20168_v25, %v20111_v18 }
 0x97f   :  { %v9063_v27 = vmul.f32 %v20113_v43, %v20163_v41  ;;  %v9065_v34 = vmul.f32 %v20113_v43, %v20167_v56  ;;  %9910 = vst [vmem:[#allocation7 + $0x1c8] sm:$0xff] %v9846_v60  ;;  %v9132_v50 = vmul.f32 %v20114_v36, %v9061_v32 }
 0x980   :  { %v9064_v17 = vmul.f32 %v20113_v43, %v20169_v14  ;;  %9909 = vst [vmem:[#allocation7 + $0x1c0] sm:$0xff] %v9845_v38  ;;  %v9131_v24 = vmul.f32 %v20114_v36, %v9060_v9  ;;  %v9133_v35 = vmul.f32 %v20114_v36, %v9062_v23 }
 0x981   :  { %v9134_v59 = vmul.f32 %v20114_v36, %v9063_v27  ;;  %v9136_v47 = vmul.f32 %v20114_v36, %v9065_v34  ;;  %v9203_v45 = vadd.f32 %v20115_v44, %v9132_v50 }
 0x982   :  { %v9135_v37 = vmul.f32 %v20114_v36, %v9064_v17  ;;  %v9202_v18 = vadd.f32 %v20115_v44, %v9131_v24  ;;  %v9204_v48 = vadd.f32 %v20115_v44, %v9133_v35 }
 0x983   :  { %v9205_v43 = vadd.f32 %v20115_v44, %v9134_v59  ;;  %v9207_v62 = vadd.f32 %v20115_v44, %v9136_v47  ;;  %v9784_v3 = vadd.f32 %v18957_v7, %v9203_v45 }
 0x984   :  { %v9206_v31 = vadd.f32 %v20115_v44, %v9135_v37  ;;  %v9783_v15 = vadd.f32 %v18973_v57, %v9202_v18  ;;  %v9785_v11 = vadd.f32 %v9706_v16, %v9204_v48 }
 0x985   :  { %v9786_v36 = vadd.f32 %v12274_v29, %v9205_v43  ;;  %v9788_v0 = vadd.f32 %v12277_v4, %v9207_v62  ;;  %v9848_v5 = vmax.f32 %v9784_v3, 0.0 }
 0x986   :  { %v9787_v6 = vadd.f32 %v9716_v55, %v9206_v31  ;;  %v9847_v1 = vmax.f32 %v9783_v15, 0.0  ;;  %v9849_v30 = vmax.f32 %v9785_v11, 0.0 }
 0x987   :  { %v9850_v33 = vmax.f32 %v9786_v36, 0.0  ;;  %v9852_v54 = vmax.f32 %v9788_v0, 0.0  ;;  %9912 = vst [vmem:[#allocation7 + $0x1d8] sm:$0xff] %v9848_v5 }
 0x988   :  { %v9851_v49 = vmax.f32 %v9787_v6, 0.0  ;;  %9911 = vst [vmem:[#allocation7 + $0x1d0] sm:$0xff] %v9847_v1  ;;  %9913 = vst [vmem:[#allocation7 + $0x1e0] sm:$0xff] %v9849_v30 }
 0x989   :  { %9914 = vst [vmem:[#allocation7 + $0x1e8] sm:$0xff] %v9850_v33  ;;  %9916 = vst [vmem:[#allocation7 + $0x1f8] sm:$0xff] %v9852_v54 }
 0x98a   :  { %9915 = vst [vmem:[#allocation7 + $0x1f0] sm:$0xff] %v9851_v49 }
 0x98b   :  { %12337 = shalt.err (!%p12334_p9)
}
 0x98c   :  { %9928 = dma.vmem_to_hbm [thread:$0]  %s9923_s1, 8192, %s19075_s8, [#allocation6], %s12351_s30, %s12351_s30, %s12352_s9  }
 0x98d   :  { %12348 = dma.done.wait [#allocation6], 8192  }
 0x98e   :  { %12349 = vsyncadd [#allocation6], 4294959104 }
 0x98f   :  { %9932 = vsyncpa [#allocation5], 1 }
 0x990   :  { %9933 = vsyncpa [#allocation6], 1 }

</bundles_post_ra>
